<compile_context>
chip_gen: v6e
topology: v6e:2x2x1
jax: 0.10.0
libtpu: 0.0.40
codegen_flags: <defaults>
</compile_context>

<pallas_src>
import functools

import jax
import jax.numpy as jnp
from jax import lax
from jax.experimental import pallas as pl
from jax.experimental.pallas import tpu as pltpu


_MM_DTYPE = jnp.bfloat16   # matmul-operand dtype (f32 accumulation); state math stays f32


def _vmem():
    return pl.BlockSpec(memory_space=pltpu.MemorySpace.VMEM)


# --------------------------------------------------------------------------
# Single fused kernel for the whole forward pass.
# --------------------------------------------------------------------------
def _expressnet_kernel(ids_ref, emb_ref, wpre_ref, wpost_ref, attw_ref, attbv_ref,
                       fcw_ref, fcb_ref,
                       out_ref,
                       seq_ref, pre_a_ref, pre_b_ref, hf_ref, hr_ref,
                       *, S, BP, D, binary):
    f32 = jnp.float32
    T = S + 1
    V = emb_ref.shape[0]

    def mm(a, w):
        # MXU matmul: operands in the (bf16) weight dtype, f32 accumulation.
        return jnp.dot(a.astype(w.dtype), w, preferred_element_type=f32)

    def cell(g, c):
        # PyTorch gate order i, f, g, o (bias=False). g: (BP, 4D).
        # One full-vreg sigmoid covers i, f, o; g-gate tanh is a narrow push.
        sg = jax.nn.sigmoid(g)
        i = sg[:, 0 * D:1 * D]
        f = sg[:, 1 * D:2 * D]
        o = sg[:, 3 * D:4 * D]
        gg = jnp.tanh(g[:, 2 * D:3 * D])
        c_new = f * c + i * gg
        return o * jnp.tanh(c_new), c_new

    # ---- Embedding gather: one-hot @ bf16 table on the MXU (exact selection). --
    ids = ids_ref[...]                                                   # (S*BP, 1) int32, time-major
    onehot = (lax.broadcasted_iota(jnp.int32, (S * BP, V), 1) == ids)
    onehot = onehot.astype(jnp.float32).astype(emb_ref.dtype)
    emb = jnp.dot(onehot, emb_ref[...], preferred_element_type=f32)      # (S*BP, D) f32
    # Dropout p=0.5 on embeddings: eval-mode identity.
    seq_ref[BP:T * BP, :] = emb        # post_lstm input rows [1..S] (aligned store)

    # ---- pre_lstm: 3 stacked unidirectional layers. ---------------------------
    # Input projection hoisted out of the recurrence; time loop statically
    # unrolled; per-step outputs stored into aligned VMEM slabs (ping-pong).
    pre_slabs = (pre_a_ref, pre_b_ref)
    xin = emb
    h_fin_sum = jnp.zeros((BP, D), f32)
    for l in range(3):
        base = l * 2 * D
        wih = wpre_ref[base:base + D, :]                                 # (D, 4D) bf16
        whh = wpre_ref[base + D:base + 2 * D, :]                         # (D, 4D) bf16
        out_slab = pre_slabs[l % 2]
        xg = mm(xin, wih)                                                # (S*BP, 4D)
        h = jnp.zeros((BP, D), f32)
        c = jnp.zeros((BP, D), f32)
        for t in range(S):
            g = xg[t * BP:(t + 1) * BP, :] + mm(h, whh)
            h, c = cell(g, c)
            out_slab[t * BP:(t + 1) * BP, :] = h                         # aligned (8, D) store
        h_fin_sum = h_fin_sum + h
        xin = out_slab[...]                                              # next layer input / attn values
    values = xin                                                         # (S*BP, D) last pre_lstm outputs
    ht_mean = h_fin_sum * (1.0 / 3.0)                                    # mean over layers' final h

    # ---- Bahdanau additive attention (query = mean of per-layer final h). ----
    w1 = attw_ref[0:D, :]                                                # (D, D) bf16
    w2 = attw_ref[D:2 * D, :]                                            # (D, D) bf16
    b1 = attbv_ref[0:1, :]                                               # (1, D) f32
    b2 = attbv_ref[1:2, :]                                               # (1, D) f32
    av = attbv_ref[2:3, :]                                               # (1, D) f32
    hv = mm(values, w1) + b1                                             # (S*BP, D)
    hq = mm(ht_mean, w2) + b2                                            # (BP, D)
    hq_tiled = jnp.concatenate([hq] * S, axis=0)                         # (S*BP, D), aligned tiles
    hh = jnp.tanh(hv + hq_tiled)                                         # one EUP push over the slab
    # Score bias (bv) dropped: a constant added to every score cancels in softmax.
    scores = jnp.sum(hh * av, axis=-1, keepdims=True)                    # (S*BP, 1)
    s_t = [scores[t * BP:(t + 1) * BP, :] for t in range(S)]
    m = functools.reduce(jnp.maximum, s_t)                               # (BP, 1)
    e = jnp.exp(scores - jnp.concatenate([m] * S, axis=0))               # one EUP push
    denom = functools.reduce(
        jnp.add, [e[t * BP:(t + 1) * BP, :] for t in range(S)])          # (BP, 1)
    weighted = values * e                                                # (S*BP, D)
    ctx_un = functools.reduce(
        jnp.add, [weighted[t * BP:(t + 1) * BP, :] for t in range(S)])   # (BP, D)
    ctx = ctx_un * pl.reciprocal(denom, approx=True)
    # NOTE: softmax assumes fixed-length, unpadded sequences (as in the reference usage).
    seq_ref[0:BP, :] = ctx                                               # post_lstm input row 0

    # ---- post_lstm: 2 stacked bidirectional layers. ---------------------------
    # Two independent recurrent matmuls per step (fwd / rev) — no per-step concat.
    def bi_layer(xg_f, xg_r, whh_f, whh_r, hf_out=None, hr_out=None):
        hf = jnp.zeros((BP, D), f32)
        cf = jnp.zeros((BP, D), f32)
        hr = jnp.zeros((BP, D), f32)
        cr = jnp.zeros((BP, D), f32)
        acc = hf_out is None
        mf = jnp.zeros((BP, D), f32)
        mr = jnp.zeros((BP, D), f32)
        for s in range(T):
            tr = T - 1 - s
            gf = xg_f[s * BP:(s + 1) * BP, :] + mm(hf, whh_f)
            gr = xg_r[tr * BP:(tr + 1) * BP, :] + mm(hr, whh_r)
            hf, cf = cell(gf, cf)
            hr, cr = cell(gr, cr)
            if acc:
                mf = mf + hf                                             # head mean accumulated in-loop
                mr = mr + hr
            else:
                hf_out[s * BP:(s + 1) * BP, :] = hf                      # aligned slab stores
                hr_out[tr * BP:(tr + 1) * BP, :] = hr
        return mf, mr

    seq = seq_ref[...]                                                   # (T*BP, D) = [ctx ; emb]

    # Layer 0 (input size D).
    xg0_f = mm(seq, wpost_ref[0:D, :])                                   # (T*BP, 4D)
    xg0_r = mm(seq, wpost_ref[D:2 * D, :])
    bi_layer(xg0_f, xg0_r,
             wpost_ref[2 * D:3 * D, :], wpost_ref[3 * D:4 * D, :],
             hf_out=hf_ref, hr_out=hr_ref)

    # Layer 1 (input size 2D): split the contraction over the fwd / rev slabs so
    # no per-row lane concat of [hf, hr] is ever materialized.
    hf0 = hf_ref[...]
    hr0 = hr_ref[...]
    xg1_f = mm(hf0, wpost_ref[4 * D:5 * D, :]) + mm(hr0, wpost_ref[5 * D:6 * D, :])
    xg1_r = mm(hf0, wpost_ref[6 * D:7 * D, :]) + mm(hr0, wpost_ref[7 * D:8 * D, :])
    mf, mr = bi_layer(xg1_f, xg1_r,
                      wpost_ref[8 * D:9 * D, :], wpost_ref[9 * D:10 * D, :])

    # ---- head: mean over the T timesteps (incl. context row) + Linear. --------
    inv_T = 1.0 / T
    y = (mm(mf * inv_T, fcw_ref[0:D, :]) +
         mm(mr * inv_T, fcw_ref[D:2 * D, :]) + fcb_ref[...])             # (BP, n_out)
    if binary:
        y = jax.nn.sigmoid(y)
    out_ref[...] = y.astype(out_ref.dtype)


# --------------------------------------------------------------------------
# Parameter init (deterministic) — same structure/semantics as the module.
# --------------------------------------------------------------------------
def init_params(key, d_model, vocab_size, n_out):
    D = d_model
    keys = iter(jax.random.split(key, 32))

    def w(fan_in, shape):
        return (jax.random.normal(next(keys), shape, jnp.float32)
                * (1.0 / jnp.sqrt(jnp.float32(fan_in))))

    params = {}
    params["embedding"] = w(D, (vocab_size, D))

    # pre_lstm: 3 unidirectional layers, bias=False. Weights stored transposed (Din, 4D).
    params["pre_lstm"] = [(w(D, (D, 4 * D)), w(D, (D, 4 * D))) for _ in range(3)]

    # post_lstm: 2 bidirectional layers, bias=False. Layer 1 input size = 2D.
    post = []
    for layer in range(2):
        din = D if layer == 0 else 2 * D
        post.append({
            "fwd": (w(din, (din, 4 * D)), w(D, (D, 4 * D))),
            "rev": (w(din, (din, 4 * D)), w(D, (D, 4 * D))),
        })
    params["post_lstm"] = post

    params["attn"] = {
        "w1": w(D, (D, D)), "b1": jnp.zeros((1, D), jnp.float32),
        "w2": w(D, (D, D)), "b2": jnp.zeros((1, D), jnp.float32),
        "v": w(D, (1, D)), "bv": jnp.zeros((1, 1), jnp.float32),
    }
    params["fc"] = (w(2 * D, (2 * D, n_out)), jnp.zeros((1, n_out), jnp.float32))
    return params


# --------------------------------------------------------------------------
# One-time weight preparation (casts + packing) — hoisted out of the forward.
# --------------------------------------------------------------------------
def prepare_weights(params):
    mmdt = _MM_DTYPE
    D = params["embedding"].shape[1]
    assert D % 16 == 0, "D must be a multiple of 16 for aligned bf16 weight slicing"

    emb = params["embedding"].astype(mmdt)                               # (V, D) bf16

    # pre_lstm packed: per layer [W_ih; W_hh] -> (3*2D, 4D).
    wpre = jnp.concatenate(
        [jnp.concatenate([wih, whh], axis=0) for (wih, whh) in params["pre_lstm"]],
        axis=0).astype(mmdt)

    # post_lstm packed (rows): L0 wih_f | wih_r | whh_f | whh_r (D each),
    #                          L1 wih_f | wih_r (2D each) | whh_f | whh_r (D each).
    l0, l1 = params["post_lstm"]
    wpost = jnp.concatenate([
        l0["fwd"][0], l0["rev"][0], l0["fwd"][1], l0["rev"][1],
        l1["fwd"][0], l1["rev"][0], l1["fwd"][1], l1["rev"][1],
    ], axis=0).astype(mmdt)                                              # (10D, 4D)

    ap = params["attn"]
    attw = jnp.concatenate([ap["w1"], ap["w2"]], axis=0).astype(mmdt)    # (2D, D) bf16
    attbv = jnp.zeros((8, D), jnp.float32)                               # rows: b1, b2, v (rest zero)
    attbv = attbv.at[0].set(ap["b1"][0]).at[1].set(ap["b2"][0]).at[2].set(ap["v"][0])
    # ap["bv"] (score bias) is intentionally dropped: it cancels in the softmax.

    w_fc, b_fc = params["fc"]
    return {
        "emb": emb, "wpre": wpre, "wpost": wpost,
        "attw": attw, "attbv": attbv,
        "fcw": w_fc.astype(mmdt), "fcb": b_fc,
    }


# --------------------------------------------------------------------------
# Wrapper: batch padding + single pallas_call.
# --------------------------------------------------------------------------
def expressnet_forward(prepared, x, classification_type):
    """x: (B, S) int32 token ids -> (B, n_out) logits (sigmoid probs if binary)."""
    B, S = x.shape
    BP = max(8, ((B + 7) // 8) * 8)       # pad batch to the 8-row sublane tile
    T = S + 1
    D = prepared["emb"].shape[1]
    n_out = prepared["fcw"].shape[1]

    # Token ids, padded and time-major flattened: row t*BP + b  <-  x[b, t].
    x_pad = jnp.zeros((BP, S), jnp.int32).at[:B, :].set(x.astype(jnp.int32))
    ids_tm = jnp.transpose(x_pad, (1, 0)).reshape(S * BP, 1)

    kernel = functools.partial(_expressnet_kernel, S=S, BP=BP, D=D,
                               binary=(classification_type == "binary"))

    out = pl.pallas_call(
        kernel,
        out_shape=jax.ShapeDtypeStruct((BP, n_out), jnp.float32),
        in_specs=[_vmem()] * 8,
        out_specs=_vmem(),
        scratch_shapes=[
            pltpu.VMEM((T * BP, D), jnp.float32),   # post_lstm input slab: [ctx ; emb]
            pltpu.VMEM((S * BP, D), jnp.float32),   # pre_lstm output slab A (ping)
            pltpu.VMEM((S * BP, D), jnp.float32),   # pre_lstm output slab B (pong)
            pltpu.VMEM((T * BP, D), jnp.float32),   # bi layer-0 fwd outputs
            pltpu.VMEM((T * BP, D), jnp.float32),   # bi layer-0 rev outputs
        ],
    )(ids_tm, prepared["emb"], prepared["wpre"], prepared["wpost"],
      prepared["attw"], prepared["attbv"], prepared["fcw"], prepared["fcb"])
    return out[:B]


if __name__ == "__main__":
    d_model = 32
    vocab_size = 50
    n_classes = 5
    B, S = 2, 8

    key = jax.random.PRNGKey(0)
    pkey, xkey = jax.random.split(key)
    params = init_params(pkey, d_model, vocab_size, n_classes)
    prepared = prepare_weights(params)          # one-time prep; cached outside the forward
    x = jax.random.randint(xkey, (B, S), 0, vocab_size, dtype=jnp.int32)

    fwd = jax.jit(lambda w, xx: expressnet_forward(w, xx, "multiclass"))
    out = jax.block_until_ready(fwd(prepared, x))
    assert out.shape == (B, n_classes), out.shape
    assert bool(jnp.all(jnp.isfinite(out)))
    print("KERNEL_OK")
</pallas_src>

<mosaic_0001>
module attributes {stable_mosaic.version = 11 : i64} {
  func.func @_expressnet_kernel(%arg0: memref<64x1xi32, #tpu.memory_space<vmem>>, %arg1: memref<50x32xbf16, #tpu.memory_space<vmem>>, %arg2: memref<192x128xbf16, #tpu.memory_space<vmem>>, %arg3: memref<320x128xbf16, #tpu.memory_space<vmem>>, %arg4: memref<64x32xbf16, #tpu.memory_space<vmem>>, %arg5: memref<8x32xf32, #tpu.memory_space<vmem>>, %arg6: memref<64x5xbf16, #tpu.memory_space<vmem>>, %arg7: memref<1x5xf32, #tpu.memory_space<vmem>>, %arg8: memref<8x5xf32, #tpu.memory_space<vmem>>, %arg9: memref<72x32xf32, #tpu.memory_space<vmem>>, %arg10: memref<64x32xf32, #tpu.memory_space<vmem>>, %arg11: memref<64x32xf32, #tpu.memory_space<vmem>>, %arg12: memref<72x32xf32, #tpu.memory_space<vmem>>, %arg13: memref<72x32xf32, #tpu.memory_space<vmem>>) attributes {dimension_semantics = [], scalar_prefetch = 0 : i64, scratch_operands = 5 : i64, tpu.core_type = #tpu.core_type<tc>} {
    %c0 = arith.constant 0 : index
    %c0_0 = arith.constant 0 : index
    %0 = vector.load %arg0[%c0, %c0_0] : memref<64x1xi32, #tpu.memory_space<vmem>>, vector<64x1xi32>
    %1 = tpu.iota {dimensions = array<i32: 1>} : vector<64x50xi32>
    %2 = vector.broadcast %0 : vector<64x1xi32> to vector<64x50xi32>
    %3 = arith.cmpi eq, %1, %2 : vector<64x50xi32>
    %4 = arith.extui %3 : vector<64x50xi1> to vector<64x50xi32>
    %5 = arith.sitofp %4 : vector<64x50xi32> to vector<64x50xf32>
    %6 = arith.truncf %5 : vector<64x50xf32> to vector<64x50xbf16>
    %c0_1 = arith.constant 0 : index
    %c0_2 = arith.constant 0 : index
    %7 = vector.load %arg1[%c0_1, %c0_2] : memref<50x32xbf16, #tpu.memory_space<vmem>>, vector<50x32xbf16>
    %cst = arith.constant dense<0.000000e+00> : vector<64x32xf32>
    %8 = tpu.matmul %6, %7, %cst {dimension_numbers = #tpu.dot_dimension_numbers<[1], [0], [0], [1], [0, 0, 1, 1], [], []>} : vector<64x50xbf16>, vector<50x32xbf16>, vector<64x32xf32> -> vector<64x32xf32>
    %c8 = arith.constant 8 : index
    %c0_3 = arith.constant 0 : index
    %9 = vector.load %arg9[%c8, %c0_3] : memref<72x32xf32, #tpu.memory_space<vmem>>, vector<64x32xf32>
    tpu.vector_store %arg9[%c8, %c0_3], %8 {strides = array<i32>} : memref<72x32xf32, #tpu.memory_space<vmem>>, vector<64x32xf32>,
    %cst_4 = arith.constant 0.000000e+00 : f32
    %10 = vector.broadcast %cst_4 : f32 to vector<8x32xf32>
    %c0_5 = arith.constant 0 : index
    %c0_6 = arith.constant 0 : index
    %11 = vector.load %arg2[%c0_5, %c0_6] : memref<192x128xbf16, #tpu.memory_space<vmem>>, vector<32x128xbf16>
    %c32 = arith.constant 32 : index
    %c0_7 = arith.constant 0 : index
    %12 = vector.load %arg2[%c32, %c0_7] : memref<192x128xbf16, #tpu.memory_space<vmem>>, vector<32x128xbf16>
    %13 = arith.truncf %8 : vector<64x32xf32> to vector<64x32xbf16>
    %cst_8 = arith.constant dense<0.000000e+00> : vector<64x128xf32>
    %14 = tpu.matmul %13, %11, %cst_8 {dimension_numbers = #tpu.dot_dimension_numbers<[1], [0], [0], [1], [0, 0, 1, 1], [], []>} : vector<64x32xbf16>, vector<32x128xbf16>, vector<64x128xf32> -> vector<64x128xf32>
    %cst_9 = arith.constant 0.000000e+00 : f32
    %15 = vector.broadcast %cst_9 : f32 to vector<8x32xf32>
    %cst_10 = arith.constant 0.000000e+00 : f32
    %16 = vector.broadcast %cst_10 : f32 to vector<8x32xf32>
    %17 = vector.extract_strided_slice %14 {offsets = [0, 0], sizes = [8, 128], strides = [1, 1]} : vector<64x128xf32> to vector<8x128xf32>
    %18 = arith.truncf %15 : vector<8x32xf32> to vector<8x32xbf16>
    %cst_11 = arith.constant dense<0.000000e+00> : vector<8x128xf32>
    %19 = tpu.matmul %18, %12, %cst_11 {dimension_numbers = #tpu.dot_dimension_numbers<[1], [0], [0], [1], [0, 0, 1, 1], [], []>} : vector<8x32xbf16>, vector<32x128xbf16>, vector<8x128xf32> -> vector<8x128xf32>
    %20 = arith.addf %17, %19 : vector<8x128xf32>
    %21 = arith.negf %20 : vector<8x128xf32>
    %22 = math.exp %21 : vector<8x128xf32>
    %cst_12 = arith.constant 1.000000e+00 : f32
    %23 = vector.broadcast %cst_12 : f32 to vector<8x128xf32>
    %24 = arith.addf %23, %22 : vector<8x128xf32>
    %25 = arith.divf %23, %24 : vector<8x128xf32>
    %26 = vector.extract_strided_slice %25 {offsets = [0, 0], sizes = [8, 32], strides = [1, 1]} : vector<8x128xf32> to vector<8x32xf32>
    %27 = vector.extract_strided_slice %25 {offsets = [0, 32], sizes = [8, 32], strides = [1, 1]} : vector<8x128xf32> to vector<8x32xf32>
    %28 = vector.extract_strided_slice %25 {offsets = [0, 96], sizes = [8, 32], strides = [1, 1]} : vector<8x128xf32> to vector<8x32xf32>
    %29 = vector.extract_strided_slice %20 {offsets = [0, 64], sizes = [8, 32], strides = [1, 1]} : vector<8x128xf32> to vector<8x32xf32>
    %30 = math.tanh %29 : vector<8x32xf32>
    %31 = arith.mulf %27, %16 : vector<8x32xf32>
    %32 = arith.mulf %26, %30 : vector<8x32xf32>
    %33 = arith.addf %31, %32 : vector<8x32xf32>
    %34 = math.tanh %33 : vector<8x32xf32>
    %35 = arith.mulf %28, %34 : vector<8x32xf32>
    %c0_13 = arith.constant 0 : index
    %c0_14 = arith.constant 0 : index
    %36 = vector.load %arg10[%c0_13, %c0_14] : memref<64x32xf32, #tpu.memory_space<vmem>>, vector<8x32xf32>
    tpu.vector_store %arg10[%c0_13, %c0_14], %35 {strides = array<i32>} : memref<64x32xf32, #tpu.memory_space<vmem>>, vector<8x32xf32>,
    %37 = vector.extract_strided_slice %14 {offsets = [8, 0], sizes = [8, 128], strides = [1, 1]} : vector<64x128xf32> to vector<8x128xf32>
    %38 = arith.truncf %35 : vector<8x32xf32> to vector<8x32xbf16>
    %cst_15 = arith.constant dense<0.000000e+00> : vector<8x128xf32>
    %39 = tpu.matmul %38, %12, %cst_15 {dimension_numbers = #tpu.dot_dimension_numbers<[1], [0], [0], [1], [0, 0, 1, 1], [], []>} : vector<8x32xbf16>, vector<32x128xbf16>, vector<8x128xf32> -> vector<8x128xf32>
    %40 = arith.addf %37, %39 : vector<8x128xf32>
    %41 = arith.negf %40 : vector<8x128xf32>
    %42 = math.exp %41 : vector<8x128xf32>
    %cst_16 = arith.constant 1.000000e+00 : f32
    %43 = vector.broadcast %cst_16 : f32 to vector<8x128xf32>
    %44 = arith.addf %43, %42 : vector<8x128xf32>
    %45 = arith.divf %43, %44 : vector<8x128xf32>
    %46 = vector.extract_strided_slice %45 {offsets = [0, 0], sizes = [8, 32], strides = [1, 1]} : vector<8x128xf32> to vector<8x32xf32>
    %47 = vector.extract_strided_slice %45 {offsets = [0, 32], sizes = [8, 32], strides = [1, 1]} : vector<8x128xf32> to vector<8x32xf32>
    %48 = vector.extract_strided_slice %45 {offsets = [0, 96], sizes = [8, 32], strides = [1, 1]} : vector<8x128xf32> to vector<8x32xf32>
    %49 = vector.extract_strided_slice %40 {offsets = [0, 64], sizes = [8, 32], strides = [1, 1]} : vector<8x128xf32> to vector<8x32xf32>
    %50 = math.tanh %49 : vector<8x32xf32>
    %51 = arith.mulf %47, %33 : vector<8x32xf32>
    %52 = arith.mulf %46, %50 : vector<8x32xf32>
    %53 = arith.addf %51, %52 : vector<8x32xf32>
    %54 = math.tanh %53 : vector<8x32xf32>
    %55 = arith.mulf %48, %54 : vector<8x32xf32>
    %c8_17 = arith.constant 8 : index
    %c0_18 = arith.constant 0 : index
    %56 = vector.load %arg10[%c8_17, %c0_18] : memref<64x32xf32, #tpu.memory_space<vmem>>, vector<8x32xf32>
    tpu.vector_store %arg10[%c8_17, %c0_18], %55 {strides = array<i32>} : memref<64x32xf32, #tpu.memory_space<vmem>>, vector<8x32xf32>,
    %57 = vector.extract_strided_slice %14 {offsets = [16, 0], sizes = [8, 128], strides = [1, 1]} : vector<64x128xf32> to vector<8x128xf32>
    %58 = arith.truncf %55 : vector<8x32xf32> to vector<8x32xbf16>
    %cst_19 = arith.constant dense<0.000000e+00> : vector<8x128xf32>
    %59 = tpu.matmul %58, %12, %cst_19 {dimension_numbers = #tpu.dot_dimension_numbers<[1], [0], [0], [1], [0, 0, 1, 1], [], []>} : vector<8x32xbf16>, vector<32x128xbf16>, vector<8x128xf32> -> vector<8x128xf32>
    %60 = arith.addf %57, %59 : vector<8x128xf32>
    %61 = arith.negf %60 : vector<8x128xf32>
    %62 = math.exp %61 : vector<8x128xf32>
    %cst_20 = arith.constant 1.000000e+00 : f32
    %63 = vector.broadcast %cst_20 : f32 to vector<8x128xf32>
    %64 = arith.addf %63, %62 : vector<8x128xf32>
    %65 = arith.divf %63, %64 : vector<8x128xf32>
    %66 = vector.extract_strided_slice %65 {offsets = [0, 0], sizes = [8, 32], strides = [1, 1]} : vector<8x128xf32> to vector<8x32xf32>
    %67 = vector.extract_strided_slice %65 {offsets = [0, 32], sizes = [8, 32], strides = [1, 1]} : vector<8x128xf32> to vector<8x32xf32>
    %68 = vector.extract_strided_slice %65 {offsets = [0, 96], sizes = [8, 32], strides = [1, 1]} : vector<8x128xf32> to vector<8x32xf32>
    %69 = vector.extract_strided_slice %60 {offsets = [0, 64], sizes = [8, 32], strides = [1, 1]} : vector<8x128xf32> to vector<8x32xf32>
    %70 = math.tanh %69 : vector<8x32xf32>
    %71 = arith.mulf %67, %53 : vector<8x32xf32>
    %72 = arith.mulf %66, %70 : vector<8x32xf32>
    %73 = arith.addf %71, %72 : vector<8x32xf32>
    %74 = math.tanh %73 : vector<8x32xf32>
    %75 = arith.mulf %68, %74 : vector<8x32xf32>
    %c16 = arith.constant 16 : index
    %c0_21 = arith.constant 0 : index
    %76 = vector.load %arg10[%c16, %c0_21] : memref<64x32xf32, #tpu.memory_space<vmem>>, vector<8x32xf32>
    tpu.vector_store %arg10[%c16, %c0_21], %75 {strides = array<i32>} : memref<64x32xf32, #tpu.memory_space<vmem>>, vector<8x32xf32>,
    %77 = vector.extract_strided_slice %14 {offsets = [24, 0], sizes = [8, 128], strides = [1, 1]} : vector<64x128xf32> to vector<8x128xf32>
    %78 = arith.truncf %75 : vector<8x32xf32> to vector<8x32xbf16>
    %cst_22 = arith.constant dense<0.000000e+00> : vector<8x128xf32>
    %79 = tpu.matmul %78, %12, %cst_22 {dimension_numbers = #tpu.dot_dimension_numbers<[1], [0], [0], [1], [0, 0, 1, 1], [], []>} : vector<8x32xbf16>, vector<32x128xbf16>, vector<8x128xf32> -> vector<8x128xf32>
    %80 = arith.addf %77, %79 : vector<8x128xf32>
    %81 = arith.negf %80 : vector<8x128xf32>
    %82 = math.exp %81 : vector<8x128xf32>
    %cst_23 = arith.constant 1.000000e+00 : f32
    %83 = vector.broadcast %cst_23 : f32 to vector<8x128xf32>
    %84 = arith.addf %83, %82 : vector<8x128xf32>
    %85 = arith.divf %83, %84 : vector<8x128xf32>
    %86 = vector.extract_strided_slice %85 {offsets = [0, 0], sizes = [8, 32], strides = [1, 1]} : vector<8x128xf32> to vector<8x32xf32>
    %87 = vector.extract_strided_slice %85 {offsets = [0, 32], sizes = [8, 32], strides = [1, 1]} : vector<8x128xf32> to vector<8x32xf32>
    %88 = vector.extract_strided_slice %85 {offsets = [0, 96], sizes = [8, 32], strides = [1, 1]} : vector<8x128xf32> to vector<8x32xf32>
    %89 = vector.extract_strided_slice %80 {offsets = [0, 64], sizes = [8, 32], strides = [1, 1]} : vector<8x128xf32> to vector<8x32xf32>
    %90 = math.tanh %89 : vector<8x32xf32>
    %91 = arith.mulf %87, %73 : vector<8x32xf32>
    %92 = arith.mulf %86, %90 : vector<8x32xf32>
    %93 = arith.addf %91, %92 : vector<8x32xf32>
    %94 = math.tanh %93 : vector<8x32xf32>
    %95 = arith.mulf %88, %94 : vector<8x32xf32>
    %c24 = arith.constant 24 : index
    %c0_24 = arith.constant 0 : index
    %96 = vector.load %arg10[%c24, %c0_24] : memref<64x32xf32, #tpu.memory_space<vmem>>, vector<8x32xf32>
    tpu.vector_store %arg10[%c24, %c0_24], %95 {strides = array<i32>} : memref<64x32xf32, #tpu.memory_space<vmem>>, vector<8x32xf32>,
    %97 = vector.extract_strided_slice %14 {offsets = [32, 0], sizes = [8, 128], strides = [1, 1]} : vector<64x128xf32> to vector<8x128xf32>
    %98 = arith.truncf %95 : vector<8x32xf32> to vector<8x32xbf16>
    %cst_25 = arith.constant dense<0.000000e+00> : vector<8x128xf32>
    %99 = tpu.matmul %98, %12, %cst_25 {dimension_numbers = #tpu.dot_dimension_numbers<[1], [0], [0], [1], [0, 0, 1, 1], [], []>} : vector<8x32xbf16>, vector<32x128xbf16>, vector<8x128xf32> -> vector<8x128xf32>
    %100 = arith.addf %97, %99 : vector<8x128xf32>
    %101 = arith.negf %100 : vector<8x128xf32>
    %102 = math.exp %101 : vector<8x128xf32>
    %cst_26 = arith.constant 1.000000e+00 : f32
    %103 = vector.broadcast %cst_26 : f32 to vector<8x128xf32>
    %104 = arith.addf %103, %102 : vector<8x128xf32>
    %105 = arith.divf %103, %104 : vector<8x128xf32>
    %106 = vector.extract_strided_slice %105 {offsets = [0, 0], sizes = [8, 32], strides = [1, 1]} : vector<8x128xf32> to vector<8x32xf32>
    %107 = vector.extract_strided_slice %105 {offsets = [0, 32], sizes = [8, 32], strides = [1, 1]} : vector<8x128xf32> to vector<8x32xf32>
    %108 = vector.extract_strided_slice %105 {offsets = [0, 96], sizes = [8, 32], strides = [1, 1]} : vector<8x128xf32> to vector<8x32xf32>
    %109 = vector.extract_strided_slice %100 {offsets = [0, 64], sizes = [8, 32], strides = [1, 1]} : vector<8x128xf32> to vector<8x32xf32>
    %110 = math.tanh %109 : vector<8x32xf32>
    %111 = arith.mulf %107, %93 : vector<8x32xf32>
    %112 = arith.mulf %106, %110 : vector<8x32xf32>
    %113 = arith.addf %111, %112 : vector<8x32xf32>
    %114 = math.tanh %113 : vector<8x32xf32>
    %115 = arith.mulf %108, %114 : vector<8x32xf32>
    %c32_27 = arith.constant 32 : index
    %c0_28 = arith.constant 0 : index
    %116 = vector.load %arg10[%c32_27, %c0_28] : memref<64x32xf32, #tpu.memory_space<vmem>>, vector<8x32xf32>
    tpu.vector_store %arg10[%c32_27, %c0_28], %115 {strides = array<i32>} : memref<64x32xf32, #tpu.memory_space<vmem>>, vector<8x32xf32>,
    %117 = vector.extract_strided_slice %14 {offsets = [40, 0], sizes = [8, 128], strides = [1, 1]} : vector<64x128xf32> to vector<8x128xf32>
    %118 = arith.truncf %115 : vector<8x32xf32> to vector<8x32xbf16>
    %cst_29 = arith.constant dense<0.000000e+00> : vector<8x128xf32>
    %119 = tpu.matmul %118, %12, %cst_29 {dimension_numbers = #tpu.dot_dimension_numbers<[1], [0], [0], [1], [0, 0, 1, 1], [], []>} : vector<8x32xbf16>, vector<32x128xbf16>, vector<8x128xf32> -> vector<8x128xf32>
    %120 = arith.addf %117, %119 : vector<8x128xf32>
    %121 = arith.negf %120 : vector<8x128xf32>
    %122 = math.exp %121 : vector<8x128xf32>
    %cst_30 = arith.constant 1.000000e+00 : f32
    %123 = vector.broadcast %cst_30 : f32 to vector<8x128xf32>
    %124 = arith.addf %123, %122 : vector<8x128xf32>
    %125 = arith.divf %123, %124 : vector<8x128xf32>
    %126 = vector.extract_strided_slice %125 {offsets = [0, 0], sizes = [8, 32], strides = [1, 1]} : vector<8x128xf32> to vector<8x32xf32>
    %127 = vector.extract_strided_slice %125 {offsets = [0, 32], sizes = [8, 32], strides = [1, 1]} : vector<8x128xf32> to vector<8x32xf32>
    %128 = vector.extract_strided_slice %125 {offsets = [0, 96], sizes = [8, 32], strides = [1, 1]} : vector<8x128xf32> to vector<8x32xf32>
    %129 = vector.extract_strided_slice %120 {offsets = [0, 64], sizes = [8, 32], strides = [1, 1]} : vector<8x128xf32> to vector<8x32xf32>
    %130 = math.tanh %129 : vector<8x32xf32>
    %131 = arith.mulf %127, %113 : vector<8x32xf32>
    %132 = arith.mulf %126, %130 : vector<8x32xf32>
    %133 = arith.addf %131, %132 : vector<8x32xf32>
    %134 = math.tanh %133 : vector<8x32xf32>
    %135 = arith.mulf %128, %134 : vector<8x32xf32>
    %c40 = arith.constant 40 : index
    %c0_31 = arith.constant 0 : index
    %136 = vector.load %arg10[%c40, %c0_31] : memref<64x32xf32, #tpu.memory_space<vmem>>, vector<8x32xf32>
    tpu.vector_store %arg10[%c40, %c0_31], %135 {strides = array<i32>} : memref<64x32xf32, #tpu.memory_space<vmem>>, vector<8x32xf32>,
    %137 = vector.extract_strided_slice %14 {offsets = [48, 0], sizes = [8, 128], strides = [1, 1]} : vector<64x128xf32> to vector<8x128xf32>
    %138 = arith.truncf %135 : vector<8x32xf32> to vector<8x32xbf16>
    %cst_32 = arith.constant dense<0.000000e+00> : vector<8x128xf32>
    %139 = tpu.matmul %138, %12, %cst_32 {dimension_numbers = #tpu.dot_dimension_numbers<[1], [0], [0], [1], [0, 0, 1, 1], [], []>} : vector<8x32xbf16>, vector<32x128xbf16>, vector<8x128xf32> -> vector<8x128xf32>
    %140 = arith.addf %137, %139 : vector<8x128xf32>
    %141 = arith.negf %140 : vector<8x128xf32>
    %142 = math.exp %141 : vector<8x128xf32>
    %cst_33 = arith.constant 1.000000e+00 : f32
    %143 = vector.broadcast %cst_33 : f32 to vector<8x128xf32>
    %144 = arith.addf %143, %142 : vector<8x128xf32>
    %145 = arith.divf %143, %144 : vector<8x128xf32>
    %146 = vector.extract_strided_slice %145 {offsets = [0, 0], sizes = [8, 32], strides = [1, 1]} : vector<8x128xf32> to vector<8x32xf32>
    %147 = vector.extract_strided_slice %145 {offsets = [0, 32], sizes = [8, 32], strides = [1, 1]} : vector<8x128xf32> to vector<8x32xf32>
    %148 = vector.extract_strided_slice %145 {offsets = [0, 96], sizes = [8, 32], strides = [1, 1]} : vector<8x128xf32> to vector<8x32xf32>
    %149 = vector.extract_strided_slice %140 {offsets = [0, 64], sizes = [8, 32], strides = [1, 1]} : vector<8x128xf32> to vector<8x32xf32>
    %150 = math.tanh %149 : vector<8x32xf32>
    %151 = arith.mulf %147, %133 : vector<8x32xf32>
    %152 = arith.mulf %146, %150 : vector<8x32xf32>
    %153 = arith.addf %151, %152 : vector<8x32xf32>
    %154 = math.tanh %153 : vector<8x32xf32>
    %155 = arith.mulf %148, %154 : vector<8x32xf32>
    %c48 = arith.constant 48 : index
    %c0_34 = arith.constant 0 : index
    %156 = vector.load %arg10[%c48, %c0_34] : memref<64x32xf32, #tpu.memory_space<vmem>>, vector<8x32xf32>
    tpu.vector_store %arg10[%c48, %c0_34], %155 {strides = array<i32>} : memref<64x32xf32, #tpu.memory_space<vmem>>, vector<8x32xf32>,
    %157 = vector.extract_strided_slice %14 {offsets = [56, 0], sizes = [8, 128], strides = [1, 1]} : vector<64x128xf32> to vector<8x128xf32>
    %158 = arith.truncf %155 : vector<8x32xf32> to vector<8x32xbf16>
    %cst_35 = arith.constant dense<0.000000e+00> : vector<8x128xf32>
    %159 = tpu.matmul %158, %12, %cst_35 {dimension_numbers = #tpu.dot_dimension_numbers<[1], [0], [0], [1], [0, 0, 1, 1], [], []>} : vector<8x32xbf16>, vector<32x128xbf16>, vector<8x128xf32> -> vector<8x128xf32>
    %160 = arith.addf %157, %159 : vector<8x128xf32>
    %161 = arith.negf %160 : vector<8x128xf32>
    %162 = math.exp %161 : vector<8x128xf32>
    %cst_36 = arith.constant 1.000000e+00 : f32
    %163 = vector.broadcast %cst_36 : f32 to vector<8x128xf32>
    %164 = arith.addf %163, %162 : vector<8x128xf32>
    %165 = arith.divf %163, %164 : vector<8x128xf32>
    %166 = vector.extract_strided_slice %165 {offsets = [0, 0], sizes = [8, 32], strides = [1, 1]} : vector<8x128xf32> to vector<8x32xf32>
    %167 = vector.extract_strided_slice %165 {offsets = [0, 32], sizes = [8, 32], strides = [1, 1]} : vector<8x128xf32> to vector<8x32xf32>
    %168 = vector.extract_strided_slice %165 {offsets = [0, 96], sizes = [8, 32], strides = [1, 1]} : vector<8x128xf32> to vector<8x32xf32>
    %169 = vector.extract_strided_slice %160 {offsets = [0, 64], sizes = [8, 32], strides = [1, 1]} : vector<8x128xf32> to vector<8x32xf32>
    %170 = math.tanh %169 : vector<8x32xf32>
    %171 = arith.mulf %167, %153 : vector<8x32xf32>
    %172 = arith.mulf %166, %170 : vector<8x32xf32>
    %173 = arith.addf %171, %172 : vector<8x32xf32>
    %174 = math.tanh %173 : vector<8x32xf32>
    %175 = arith.mulf %168, %174 : vector<8x32xf32>
    %c56 = arith.constant 56 : index
    %c0_37 = arith.constant 0 : index
    %176 = vector.load %arg10[%c56, %c0_37] : memref<64x32xf32, #tpu.memory_space<vmem>>, vector<8x32xf32>
    tpu.vector_store %arg10[%c56, %c0_37], %175 {strides = array<i32>} : memref<64x32xf32, #tpu.memory_space<vmem>>, vector<8x32xf32>,
    %177 = arith.addf %10, %175 : vector<8x32xf32>
    %c0_38 = arith.constant 0 : index
    %c0_39 = arith.constant 0 : index
    %178 = vector.load %arg10[%c0_38, %c0_39] : memref<64x32xf32, #tpu.memory_space<vmem>>, vector<64x32xf32>
    %c64 = arith.constant 64 : index
    %c0_40 = arith.constant 0 : index
    %179 = vector.load %arg2[%c64, %c0_40] : memref<192x128xbf16, #tpu.memory_space<vmem>>, vector<32x128xbf16>
    %c96 = arith.constant 96 : index
    %c0_41 = arith.constant 0 : index
    %180 = vector.load %arg2[%c96, %c0_41] : memref<192x128xbf16, #tpu.memory_space<vmem>>, vector<32x128xbf16>
    %181 = arith.truncf %178 : vector<64x32xf32> to vector<64x32xbf16>
    %cst_42 = arith.constant dense<0.000000e+00> : vector<64x128xf32>
    %182 = tpu.matmul %181, %179, %cst_42 {dimension_numbers = #tpu.dot_dimension_numbers<[1], [0], [0], [1], [0, 0, 1, 1], [], []>} : vector<64x32xbf16>, vector<32x128xbf16>, vector<64x128xf32> -> vector<64x128xf32>
    %cst_43 = arith.constant 0.000000e+00 : f32
    %183 = vector.broadcast %cst_43 : f32 to vector<8x32xf32>
    %cst_44 = arith.constant 0.000000e+00 : f32
    %184 = vector.broadcast %cst_44 : f32 to vector<8x32xf32>
    %185 = vector.extract_strided_slice %182 {offsets = [0, 0], sizes = [8, 128], strides = [1, 1]} : vector<64x128xf32> to vector<8x128xf32>
    %186 = arith.truncf %183 : vector<8x32xf32> to vector<8x32xbf16>
    %cst_45 = arith.constant dense<0.000000e+00> : vector<8x128xf32>
    %187 = tpu.matmul %186, %180, %cst_45 {dimension_numbers = #tpu.dot_dimension_numbers<[1], [0], [0], [1], [0, 0, 1, 1], [], []>} : vector<8x32xbf16>, vector<32x128xbf16>, vector<8x128xf32> -> vector<8x128xf32>
    %188 = arith.addf %185, %187 : vector<8x128xf32>
    %189 = arith.negf %188 : vector<8x128xf32>
    %190 = math.exp %189 : vector<8x128xf32>
    %cst_46 = arith.constant 1.000000e+00 : f32
    %191 = vector.broadcast %cst_46 : f32 to vector<8x128xf32>
    %192 = arith.addf %191, %190 : vector<8x128xf32>
    %193 = arith.divf %191, %192 : vector<8x128xf32>
    %194 = vector.extract_strided_slice %193 {offsets = [0, 0], sizes = [8, 32], strides = [1, 1]} : vector<8x128xf32> to vector<8x32xf32>
    %195 = vector.extract_strided_slice %193 {offsets = [0, 32], sizes = [8, 32], strides = [1, 1]} : vector<8x128xf32> to vector<8x32xf32>
    %196 = vector.extract_strided_slice %193 {offsets = [0, 96], sizes = [8, 32], strides = [1, 1]} : vector<8x128xf32> to vector<8x32xf32>
    %197 = vector.extract_strided_slice %188 {offsets = [0, 64], sizes = [8, 32], strides = [1, 1]} : vector<8x128xf32> to vector<8x32xf32>
    %198 = math.tanh %197 : vector<8x32xf32>
    %199 = arith.mulf %195, %184 : vector<8x32xf32>
    %200 = arith.mulf %194, %198 : vector<8x32xf32>
    %201 = arith.addf %199, %200 : vector<8x32xf32>
    %202 = math.tanh %201 : vector<8x32xf32>
    %203 = arith.mulf %196, %202 : vector<8x32xf32>
    %c0_47 = arith.constant 0 : index
    %c0_48 = arith.constant 0 : index
    %204 = vector.load %arg11[%c0_47, %c0_48] : memref<64x32xf32, #tpu.memory_space<vmem>>, vector<8x32xf32>
    tpu.vector_store %arg11[%c0_47, %c0_48], %203 {strides = array<i32>} : memref<64x32xf32, #tpu.memory_space<vmem>>, vector<8x32xf32>,
    %205 = vector.extract_strided_slice %182 {offsets = [8, 0], sizes = [8, 128], strides = [1, 1]} : vector<64x128xf32> to vector<8x128xf32>
    %206 = arith.truncf %203 : vector<8x32xf32> to vector<8x32xbf16>
    %cst_49 = arith.constant dense<0.000000e+00> : vector<8x128xf32>
    %207 = tpu.matmul %206, %180, %cst_49 {dimension_numbers = #tpu.dot_dimension_numbers<[1], [0], [0], [1], [0, 0, 1, 1], [], []>} : vector<8x32xbf16>, vector<32x128xbf16>, vector<8x128xf32> -> vector<8x128xf32>
    %208 = arith.addf %205, %207 : vector<8x128xf32>
    %209 = arith.negf %208 : vector<8x128xf32>
    %210 = math.exp %209 : vector<8x128xf32>
    %cst_50 = arith.constant 1.000000e+00 : f32
    %211 = vector.broadcast %cst_50 : f32 to vector<8x128xf32>
    %212 = arith.addf %211, %210 : vector<8x128xf32>
    %213 = arith.divf %211, %212 : vector<8x128xf32>
    %214 = vector.extract_strided_slice %213 {offsets = [0, 0], sizes = [8, 32], strides = [1, 1]} : vector<8x128xf32> to vector<8x32xf32>
    %215 = vector.extract_strided_slice %213 {offsets = [0, 32], sizes = [8, 32], strides = [1, 1]} : vector<8x128xf32> to vector<8x32xf32>
    %216 = vector.extract_strided_slice %213 {offsets = [0, 96], sizes = [8, 32], strides = [1, 1]} : vector<8x128xf32> to vector<8x32xf32>
    %217 = vector.extract_strided_slice %208 {offsets = [0, 64], sizes = [8, 32], strides = [1, 1]} : vector<8x128xf32> to vector<8x32xf32>
    %218 = math.tanh %217 : vector<8x32xf32>
    %219 = arith.mulf %215, %201 : vector<8x32xf32>
    %220 = arith.mulf %214, %218 : vector<8x32xf32>
    %221 = arith.addf %219, %220 : vector<8x32xf32>
    %222 = math.tanh %221 : vector<8x32xf32>
    %223 = arith.mulf %216, %222 : vector<8x32xf32>
    %c8_51 = arith.constant 8 : index
    %c0_52 = arith.constant 0 : index
    %224 = vector.load %arg11[%c8_51, %c0_52] : memref<64x32xf32, #tpu.memory_space<vmem>>, vector<8x32xf32>
    tpu.vector_store %arg11[%c8_51, %c0_52], %223 {strides = array<i32>} : memref<64x32xf32, #tpu.memory_space<vmem>>, vector<8x32xf32>,
    %225 = vector.extract_strided_slice %182 {offsets = [16, 0], sizes = [8, 128], strides = [1, 1]} : vector<64x128xf32> to vector<8x128xf32>
    %226 = arith.truncf %223 : vector<8x32xf32> to vector<8x32xbf16>
    %cst_53 = arith.constant dense<0.000000e+00> : vector<8x128xf32>
    %227 = tpu.matmul %226, %180, %cst_53 {dimension_numbers = #tpu.dot_dimension_numbers<[1], [0], [0], [1], [0, 0, 1, 1], [], []>} : vector<8x32xbf16>, vector<32x128xbf16>, vector<8x128xf32> -> vector<8x128xf32>
    %228 = arith.addf %225, %227 : vector<8x128xf32>
    %229 = arith.negf %228 : vector<8x128xf32>
    %230 = math.exp %229 : vector<8x128xf32>
    %cst_54 = arith.constant 1.000000e+00 : f32
    %231 = vector.broadcast %cst_54 : f32 to vector<8x128xf32>
    %232 = arith.addf %231, %230 : vector<8x128xf32>
    %233 = arith.divf %231, %232 : vector<8x128xf32>
    %234 = vector.extract_strided_slice %233 {offsets = [0, 0], sizes = [8, 32], strides = [1, 1]} : vector<8x128xf32> to vector<8x32xf32>
    %235 = vector.extract_strided_slice %233 {offsets = [0, 32], sizes = [8, 32], strides = [1, 1]} : vector<8x128xf32> to vector<8x32xf32>
    %236 = vector.extract_strided_slice %233 {offsets = [0, 96], sizes = [8, 32], strides = [1, 1]} : vector<8x128xf32> to vector<8x32xf32>
    %237 = vector.extract_strided_slice %228 {offsets = [0, 64], sizes = [8, 32], strides = [1, 1]} : vector<8x128xf32> to vector<8x32xf32>
    %238 = math.tanh %237 : vector<8x32xf32>
    %239 = arith.mulf %235, %221 : vector<8x32xf32>
    %240 = arith.mulf %234, %238 : vector<8x32xf32>
    %241 = arith.addf %239, %240 : vector<8x32xf32>
    %242 = math.tanh %241 : vector<8x32xf32>
    %243 = arith.mulf %236, %242 : vector<8x32xf32>
    %c16_55 = arith.constant 16 : index
    %c0_56 = arith.constant 0 : index
    %244 = vector.load %arg11[%c16_55, %c0_56] : memref<64x32xf32, #tpu.memory_space<vmem>>, vector<8x32xf32>
    tpu.vector_store %arg11[%c16_55, %c0_56], %243 {strides = array<i32>} : memref<64x32xf32, #tpu.memory_space<vmem>>, vector<8x32xf32>,
    %245 = vector.extract_strided_slice %182 {offsets = [24, 0], sizes = [8, 128], strides = [1, 1]} : vector<64x128xf32> to vector<8x128xf32>
    %246 = arith.truncf %243 : vector<8x32xf32> to vector<8x32xbf16>
    %cst_57 = arith.constant dense<0.000000e+00> : vector<8x128xf32>
    %247 = tpu.matmul %246, %180, %cst_57 {dimension_numbers = #tpu.dot_dimension_numbers<[1], [0], [0], [1], [0, 0, 1, 1], [], []>} : vector<8x32xbf16>, vector<32x128xbf16>, vector<8x128xf32> -> vector<8x128xf32>
    %248 = arith.addf %245, %247 : vector<8x128xf32>
    %249 = arith.negf %248 : vector<8x128xf32>
    %250 = math.exp %249 : vector<8x128xf32>
    %cst_58 = arith.constant 1.000000e+00 : f32
    %251 = vector.broadcast %cst_58 : f32 to vector<8x128xf32>
    %252 = arith.addf %251, %250 : vector<8x128xf32>
    %253 = arith.divf %251, %252 : vector<8x128xf32>
    %254 = vector.extract_strided_slice %253 {offsets = [0, 0], sizes = [8, 32], strides = [1, 1]} : vector<8x128xf32> to vector<8x32xf32>
    %255 = vector.extract_strided_slice %253 {offsets = [0, 32], sizes = [8, 32], strides = [1, 1]} : vector<8x128xf32> to vector<8x32xf32>
    %256 = vector.extract_strided_slice %253 {offsets = [0, 96], sizes = [8, 32], strides = [1, 1]} : vector<8x128xf32> to vector<8x32xf32>
    %257 = vector.extract_strided_slice %248 {offsets = [0, 64], sizes = [8, 32], strides = [1, 1]} : vector<8x128xf32> to vector<8x32xf32>
    %258 = math.tanh %257 : vector<8x32xf32>
    %259 = arith.mulf %255, %241 : vector<8x32xf32>
    %260 = arith.mulf %254, %258 : vector<8x32xf32>
    %261 = arith.addf %259, %260 : vector<8x32xf32>
    %262 = math.tanh %261 : vector<8x32xf32>
    %263 = arith.mulf %256, %262 : vector<8x32xf32>
    %c24_59 = arith.constant 24 : index
    %c0_60 = arith.constant 0 : index
    %264 = vector.load %arg11[%c24_59, %c0_60] : memref<64x32xf32, #tpu.memory_space<vmem>>, vector<8x32xf32>
    tpu.vector_store %arg11[%c24_59, %c0_60], %263 {strides = array<i32>} : memref<64x32xf32, #tpu.memory_space<vmem>>, vector<8x32xf32>,
    %265 = vector.extract_strided_slice %182 {offsets = [32, 0], sizes = [8, 128], strides = [1, 1]} : vector<64x128xf32> to vector<8x128xf32>
    %266 = arith.truncf %263 : vector<8x32xf32> to vector<8x32xbf16>
    %cst_61 = arith.constant dense<0.000000e+00> : vector<8x128xf32>
    %267 = tpu.matmul %266, %180, %cst_61 {dimension_numbers = #tpu.dot_dimension_numbers<[1], [0], [0], [1], [0, 0, 1, 1], [], []>} : vector<8x32xbf16>, vector<32x128xbf16>, vector<8x128xf32> -> vector<8x128xf32>
    %268 = arith.addf %265, %267 : vector<8x128xf32>
    %269 = arith.negf %268 : vector<8x128xf32>
    %270 = math.exp %269 : vector<8x128xf32>
    %cst_62 = arith.constant 1.000000e+00 : f32
    %271 = vector.broadcast %cst_62 : f32 to vector<8x128xf32>
    %272 = arith.addf %271, %270 : vector<8x128xf32>
    %273 = arith.divf %271, %272 : vector<8x128xf32>
    %274 = vector.extract_strided_slice %273 {offsets = [0, 0], sizes = [8, 32], strides = [1, 1]} : vector<8x128xf32> to vector<8x32xf32>
    %275 = vector.extract_strided_slice %273 {offsets = [0, 32], sizes = [8, 32], strides = [1, 1]} : vector<8x128xf32> to vector<8x32xf32>
    %276 = vector.extract_strided_slice %273 {offsets = [0, 96], sizes = [8, 32], strides = [1, 1]} : vector<8x128xf32> to vector<8x32xf32>
    %277 = vector.extract_strided_slice %268 {offsets = [0, 64], sizes = [8, 32], strides = [1, 1]} : vector<8x128xf32> to vector<8x32xf32>
    %278 = math.tanh %277 : vector<8x32xf32>
    %279 = arith.mulf %275, %261 : vector<8x32xf32>
    %280 = arith.mulf %274, %278 : vector<8x32xf32>
    %281 = arith.addf %279, %280 : vector<8x32xf32>
    %282 = math.tanh %281 : vector<8x32xf32>
    %283 = arith.mulf %276, %282 : vector<8x32xf32>
    %c32_63 = arith.constant 32 : index
    %c0_64 = arith.constant 0 : index
    %284 = vector.load %arg11[%c32_63, %c0_64] : memref<64x32xf32, #tpu.memory_space<vmem>>, vector<8x32xf32>
    tpu.vector_store %arg11[%c32_63, %c0_64], %283 {strides = array<i32>} : memref<64x32xf32, #tpu.memory_space<vmem>>, vector<8x32xf32>,
    %285 = vector.extract_strided_slice %182 {offsets = [40, 0], sizes = [8, 128], strides = [1, 1]} : vector<64x128xf32> to vector<8x128xf32>
    %286 = arith.truncf %283 : vector<8x32xf32> to vector<8x32xbf16>
    %cst_65 = arith.constant dense<0.000000e+00> : vector<8x128xf32>
    %287 = tpu.matmul %286, %180, %cst_65 {dimension_numbers = #tpu.dot_dimension_numbers<[1], [0], [0], [1], [0, 0, 1, 1], [], []>} : vector<8x32xbf16>, vector<32x128xbf16>, vector<8x128xf32> -> vector<8x128xf32>
    %288 = arith.addf %285, %287 : vector<8x128xf32>
    %289 = arith.negf %288 : vector<8x128xf32>
    %290 = math.exp %289 : vector<8x128xf32>
    %cst_66 = arith.constant 1.000000e+00 : f32
    %291 = vector.broadcast %cst_66 : f32 to vector<8x128xf32>
    %292 = arith.addf %291, %290 : vector<8x128xf32>
    %293 = arith.divf %291, %292 : vector<8x128xf32>
    %294 = vector.extract_strided_slice %293 {offsets = [0, 0], sizes = [8, 32], strides = [1, 1]} : vector<8x128xf32> to vector<8x32xf32>
    %295 = vector.extract_strided_slice %293 {offsets = [0, 32], sizes = [8, 32], strides = [1, 1]} : vector<8x128xf32> to vector<8x32xf32>
    %296 = vector.extract_strided_slice %293 {offsets = [0, 96], sizes = [8, 32], strides = [1, 1]} : vector<8x128xf32> to vector<8x32xf32>
    %297 = vector.extract_strided_slice %288 {offsets = [0, 64], sizes = [8, 32], strides = [1, 1]} : vector<8x128xf32> to vector<8x32xf32>
    %298 = math.tanh %297 : vector<8x32xf32>
    %299 = arith.mulf %295, %281 : vector<8x32xf32>
    %300 = arith.mulf %294, %298 : vector<8x32xf32>
    %301 = arith.addf %299, %300 : vector<8x32xf32>
    %302 = math.tanh %301 : vector<8x32xf32>
    %303 = arith.mulf %296, %302 : vector<8x32xf32>
    %c40_67 = arith.constant 40 : index
    %c0_68 = arith.constant 0 : index
    %304 = vector.load %arg11[%c40_67, %c0_68] : memref<64x32xf32, #tpu.memory_space<vmem>>, vector<8x32xf32>
    tpu.vector_store %arg11[%c40_67, %c0_68], %303 {strides = array<i32>} : memref<64x32xf32, #tpu.memory_space<vmem>>, vector<8x32xf32>,
    %305 = vector.extract_strided_slice %182 {offsets = [48, 0], sizes = [8, 128], strides = [1, 1]} : vector<64x128xf32> to vector<8x128xf32>
    %306 = arith.truncf %303 : vector<8x32xf32> to vector<8x32xbf16>
    %cst_69 = arith.constant dense<0.000000e+00> : vector<8x128xf32>
    %307 = tpu.matmul %306, %180, %cst_69 {dimension_numbers = #tpu.dot_dimension_numbers<[1], [0], [0], [1], [0, 0, 1, 1], [], []>} : vector<8x32xbf16>, vector<32x128xbf16>, vector<8x128xf32> -> vector<8x128xf32>
    %308 = arith.addf %305, %307 : vector<8x128xf32>
    %309 = arith.negf %308 : vector<8x128xf32>
    %310 = math.exp %309 : vector<8x128xf32>
    %cst_70 = arith.constant 1.000000e+00 : f32
    %311 = vector.broadcast %cst_70 : f32 to vector<8x128xf32>
    %312 = arith.addf %311, %310 : vector<8x128xf32>
    %313 = arith.divf %311, %312 : vector<8x128xf32>
    %314 = vector.extract_strided_slice %313 {offsets = [0, 0], sizes = [8, 32], strides = [1, 1]} : vector<8x128xf32> to vector<8x32xf32>
    %315 = vector.extract_strided_slice %313 {offsets = [0, 32], sizes = [8, 32], strides = [1, 1]} : vector<8x128xf32> to vector<8x32xf32>
    %316 = vector.extract_strided_slice %313 {offsets = [0, 96], sizes = [8, 32], strides = [1, 1]} : vector<8x128xf32> to vector<8x32xf32>
    %317 = vector.extract_strided_slice %308 {offsets = [0, 64], sizes = [8, 32], strides = [1, 1]} : vector<8x128xf32> to vector<8x32xf32>
    %318 = math.tanh %317 : vector<8x32xf32>
    %319 = arith.mulf %315, %301 : vector<8x32xf32>
    %320 = arith.mulf %314, %318 : vector<8x32xf32>
    %321 = arith.addf %319, %320 : vector<8x32xf32>
    %322 = math.tanh %321 : vector<8x32xf32>
    %323 = arith.mulf %316, %322 : vector<8x32xf32>
    %c48_71 = arith.constant 48 : index
    %c0_72 = arith.constant 0 : index
    %324 = vector.load %arg11[%c48_71, %c0_72] : memref<64x32xf32, #tpu.memory_space<vmem>>, vector<8x32xf32>
    tpu.vector_store %arg11[%c48_71, %c0_72], %323 {strides = array<i32>} : memref<64x32xf32, #tpu.memory_space<vmem>>, vector<8x32xf32>,
    %325 = vector.extract_strided_slice %182 {offsets = [56, 0], sizes = [8, 128], strides = [1, 1]} : vector<64x128xf32> to vector<8x128xf32>
    %326 = arith.truncf %323 : vector<8x32xf32> to vector<8x32xbf16>
    %cst_73 = arith.constant dense<0.000000e+00> : vector<8x128xf32>
    %327 = tpu.matmul %326, %180, %cst_73 {dimension_numbers = #tpu.dot_dimension_numbers<[1], [0], [0], [1], [0, 0, 1, 1], [], []>} : vector<8x32xbf16>, vector<32x128xbf16>, vector<8x128xf32> -> vector<8x128xf32>
    %328 = arith.addf %325, %327 : vector<8x128xf32>
    %329 = arith.negf %328 : vector<8x128xf32>
    %330 = math.exp %329 : vector<8x128xf32>
    %cst_74 = arith.constant 1.000000e+00 : f32
    %331 = vector.broadcast %cst_74 : f32 to vector<8x128xf32>
    %332 = arith.addf %331, %330 : vector<8x128xf32>
    %333 = arith.divf %331, %332 : vector<8x128xf32>
    %334 = vector.extract_strided_slice %333 {offsets = [0, 0], sizes = [8, 32], strides = [1, 1]} : vector<8x128xf32> to vector<8x32xf32>
    %335 = vector.extract_strided_slice %333 {offsets = [0, 32], sizes = [8, 32], strides = [1, 1]} : vector<8x128xf32> to vector<8x32xf32>
    %336 = vector.extract_strided_slice %333 {offsets = [0, 96], sizes = [8, 32], strides = [1, 1]} : vector<8x128xf32> to vector<8x32xf32>
    %337 = vector.extract_strided_slice %328 {offsets = [0, 64], sizes = [8, 32], strides = [1, 1]} : vector<8x128xf32> to vector<8x32xf32>
    %338 = math.tanh %337 : vector<8x32xf32>
    %339 = arith.mulf %335, %321 : vector<8x32xf32>
    %340 = arith.mulf %334, %338 : vector<8x32xf32>
    %341 = arith.addf %339, %340 : vector<8x32xf32>
    %342 = math.tanh %341 : vector<8x32xf32>
    %343 = arith.mulf %336, %342 : vector<8x32xf32>
    %c56_75 = arith.constant 56 : index
    %c0_76 = arith.constant 0 : index
    %344 = vector.load %arg11[%c56_75, %c0_76] : memref<64x32xf32, #tpu.memory_space<vmem>>, vector<8x32xf32>
    tpu.vector_store %arg11[%c56_75, %c0_76], %343 {strides = array<i32>} : memref<64x32xf32, #tpu.memory_space<vmem>>, vector<8x32xf32>,
    %345 = arith.addf %177, %343 : vector<8x32xf32>
    %c0_77 = arith.constant 0 : index
    %c0_78 = arith.constant 0 : index
    %346 = vector.load %arg11[%c0_77, %c0_78] : memref<64x32xf32, #tpu.memory_space<vmem>>, vector<64x32xf32>
    %c128 = arith.constant 128 : index
    %c0_79 = arith.constant 0 : index
    %347 = vector.load %arg2[%c128, %c0_79] : memref<192x128xbf16, #tpu.memory_space<vmem>>, vector<32x128xbf16>
    %c160 = arith.constant 160 : index
    %c0_80 = arith.constant 0 : index
    %348 = vector.load %arg2[%c160, %c0_80] : memref<192x128xbf16, #tpu.memory_space<vmem>>, vector<32x128xbf16>
    %349 = arith.truncf %346 : vector<64x32xf32> to vector<64x32xbf16>
    %cst_81 = arith.constant dense<0.000000e+00> : vector<64x128xf32>
    %350 = tpu.matmul %349, %347, %cst_81 {dimension_numbers = #tpu.dot_dimension_numbers<[1], [0], [0], [1], [0, 0, 1, 1], [], []>} : vector<64x32xbf16>, vector<32x128xbf16>, vector<64x128xf32> -> vector<64x128xf32>
    %cst_82 = arith.constant 0.000000e+00 : f32
    %351 = vector.broadcast %cst_82 : f32 to vector<8x32xf32>
    %cst_83 = arith.constant 0.000000e+00 : f32
    %352 = vector.broadcast %cst_83 : f32 to vector<8x32xf32>
    %353 = vector.extract_strided_slice %350 {offsets = [0, 0], sizes = [8, 128], strides = [1, 1]} : vector<64x128xf32> to vector<8x128xf32>
    %354 = arith.truncf %351 : vector<8x32xf32> to vector<8x32xbf16>
    %cst_84 = arith.constant dense<0.000000e+00> : vector<8x128xf32>
    %355 = tpu.matmul %354, %348, %cst_84 {dimension_numbers = #tpu.dot_dimension_numbers<[1], [0], [0], [1], [0, 0, 1, 1], [], []>} : vector<8x32xbf16>, vector<32x128xbf16>, vector<8x128xf32> -> vector<8x128xf32>
    %356 = arith.addf %353, %355 : vector<8x128xf32>
    %357 = arith.negf %356 : vector<8x128xf32>
    %358 = math.exp %357 : vector<8x128xf32>
    %cst_85 = arith.constant 1.000000e+00 : f32
    %359 = vector.broadcast %cst_85 : f32 to vector<8x128xf32>
    %360 = arith.addf %359, %358 : vector<8x128xf32>
    %361 = arith.divf %359, %360 : vector<8x128xf32>
    %362 = vector.extract_strided_slice %361 {offsets = [0, 0], sizes = [8, 32], strides = [1, 1]} : vector<8x128xf32> to vector<8x32xf32>
    %363 = vector.extract_strided_slice %361 {offsets = [0, 32], sizes = [8, 32], strides = [1, 1]} : vector<8x128xf32> to vector<8x32xf32>
    %364 = vector.extract_strided_slice %361 {offsets = [0, 96], sizes = [8, 32], strides = [1, 1]} : vector<8x128xf32> to vector<8x32xf32>
    %365 = vector.extract_strided_slice %356 {offsets = [0, 64], sizes = [8, 32], strides = [1, 1]} : vector<8x128xf32> to vector<8x32xf32>
    %366 = math.tanh %365 : vector<8x32xf32>
    %367 = arith.mulf %363, %352 : vector<8x32xf32>
    %368 = arith.mulf %362, %366 : vector<8x32xf32>
    %369 = arith.addf %367, %368 : vector<8x32xf32>
    %370 = math.tanh %369 : vector<8x32xf32>
    %371 = arith.mulf %364, %370 : vector<8x32xf32>
    %c0_86 = arith.constant 0 : index
    %c0_87 = arith.constant 0 : index
    %372 = vector.load %arg10[%c0_86, %c0_87] : memref<64x32xf32, #tpu.memory_space<vmem>>, vector<8x32xf32>
    tpu.vector_store %arg10[%c0_86, %c0_87], %371 {strides = array<i32>} : memref<64x32xf32, #tpu.memory_space<vmem>>, vector<8x32xf32>,
    %373 = vector.extract_strided_slice %350 {offsets = [8, 0], sizes = [8, 128], strides = [1, 1]} : vector<64x128xf32> to vector<8x128xf32>
    %374 = arith.truncf %371 : vector<8x32xf32> to vector<8x32xbf16>
    %cst_88 = arith.constant dense<0.000000e+00> : vector<8x128xf32>
    %375 = tpu.matmul %374, %348, %cst_88 {dimension_numbers = #tpu.dot_dimension_numbers<[1], [0], [0], [1], [0, 0, 1, 1], [], []>} : vector<8x32xbf16>, vector<32x128xbf16>, vector<8x128xf32> -> vector<8x128xf32>
    %376 = arith.addf %373, %375 : vector<8x128xf32>
    %377 = arith.negf %376 : vector<8x128xf32>
    %378 = math.exp %377 : vector<8x128xf32>
    %cst_89 = arith.constant 1.000000e+00 : f32
    %379 = vector.broadcast %cst_89 : f32 to vector<8x128xf32>
    %380 = arith.addf %379, %378 : vector<8x128xf32>
    %381 = arith.divf %379, %380 : vector<8x128xf32>
    %382 = vector.extract_strided_slice %381 {offsets = [0, 0], sizes = [8, 32], strides = [1, 1]} : vector<8x128xf32> to vector<8x32xf32>
    %383 = vector.extract_strided_slice %381 {offsets = [0, 32], sizes = [8, 32], strides = [1, 1]} : vector<8x128xf32> to vector<8x32xf32>
    %384 = vector.extract_strided_slice %381 {offsets = [0, 96], sizes = [8, 32], strides = [1, 1]} : vector<8x128xf32> to vector<8x32xf32>
    %385 = vector.extract_strided_slice %376 {offsets = [0, 64], sizes = [8, 32], strides = [1, 1]} : vector<8x128xf32> to vector<8x32xf32>
    %386 = math.tanh %385 : vector<8x32xf32>
    %387 = arith.mulf %383, %369 : vector<8x32xf32>
    %388 = arith.mulf %382, %386 : vector<8x32xf32>
    %389 = arith.addf %387, %388 : vector<8x32xf32>
    %390 = math.tanh %389 : vector<8x32xf32>
    %391 = arith.mulf %384, %390 : vector<8x32xf32>
    %c8_90 = arith.constant 8 : index
    %c0_91 = arith.constant 0 : index
    %392 = vector.load %arg10[%c8_90, %c0_91] : memref<64x32xf32, #tpu.memory_space<vmem>>, vector<8x32xf32>
    tpu.vector_store %arg10[%c8_90, %c0_91], %391 {strides = array<i32>} : memref<64x32xf32, #tpu.memory_space<vmem>>, vector<8x32xf32>,
    %393 = vector.extract_strided_slice %350 {offsets = [16, 0], sizes = [8, 128], strides = [1, 1]} : vector<64x128xf32> to vector<8x128xf32>
    %394 = arith.truncf %391 : vector<8x32xf32> to vector<8x32xbf16>
    %cst_92 = arith.constant dense<0.000000e+00> : vector<8x128xf32>
    %395 = tpu.matmul %394, %348, %cst_92 {dimension_numbers = #tpu.dot_dimension_numbers<[1], [0], [0], [1], [0, 0, 1, 1], [], []>} : vector<8x32xbf16>, vector<32x128xbf16>, vector<8x128xf32> -> vector<8x128xf32>
    %396 = arith.addf %393, %395 : vector<8x128xf32>
    %397 = arith.negf %396 : vector<8x128xf32>
    %398 = math.exp %397 : vector<8x128xf32>
    %cst_93 = arith.constant 1.000000e+00 : f32
    %399 = vector.broadcast %cst_93 : f32 to vector<8x128xf32>
    %400 = arith.addf %399, %398 : vector<8x128xf32>
    %401 = arith.divf %399, %400 : vector<8x128xf32>
    %402 = vector.extract_strided_slice %401 {offsets = [0, 0], sizes = [8, 32], strides = [1, 1]} : vector<8x128xf32> to vector<8x32xf32>
    %403 = vector.extract_strided_slice %401 {offsets = [0, 32], sizes = [8, 32], strides = [1, 1]} : vector<8x128xf32> to vector<8x32xf32>
    %404 = vector.extract_strided_slice %401 {offsets = [0, 96], sizes = [8, 32], strides = [1, 1]} : vector<8x128xf32> to vector<8x32xf32>
    %405 = vector.extract_strided_slice %396 {offsets = [0, 64], sizes = [8, 32], strides = [1, 1]} : vector<8x128xf32> to vector<8x32xf32>
    %406 = math.tanh %405 : vector<8x32xf32>
    %407 = arith.mulf %403, %389 : vector<8x32xf32>
    %408 = arith.mulf %402, %406 : vector<8x32xf32>
    %409 = arith.addf %407, %408 : vector<8x32xf32>
    %410 = math.tanh %409 : vector<8x32xf32>
    %411 = arith.mulf %404, %410 : vector<8x32xf32>
    %c16_94 = arith.constant 16 : index
    %c0_95 = arith.constant 0 : index
    %412 = vector.load %arg10[%c16_94, %c0_95] : memref<64x32xf32, #tpu.memory_space<vmem>>, vector<8x32xf32>
    tpu.vector_store %arg10[%c16_94, %c0_95], %411 {strides = array<i32>} : memref<64x32xf32, #tpu.memory_space<vmem>>, vector<8x32xf32>,
    %413 = vector.extract_strided_slice %350 {offsets = [24, 0], sizes = [8, 128], strides = [1, 1]} : vector<64x128xf32> to vector<8x128xf32>
    %414 = arith.truncf %411 : vector<8x32xf32> to vector<8x32xbf16>
    %cst_96 = arith.constant dense<0.000000e+00> : vector<8x128xf32>
    %415 = tpu.matmul %414, %348, %cst_96 {dimension_numbers = #tpu.dot_dimension_numbers<[1], [0], [0], [1], [0, 0, 1, 1], [], []>} : vector<8x32xbf16>, vector<32x128xbf16>, vector<8x128xf32> -> vector<8x128xf32>
    %416 = arith.addf %413, %415 : vector<8x128xf32>
    %417 = arith.negf %416 : vector<8x128xf32>
    %418 = math.exp %417 : vector<8x128xf32>
    %cst_97 = arith.constant 1.000000e+00 : f32
    %419 = vector.broadcast %cst_97 : f32 to vector<8x128xf32>
    %420 = arith.addf %419, %418 : vector<8x128xf32>
    %421 = arith.divf %419, %420 : vector<8x128xf32>
    %422 = vector.extract_strided_slice %421 {offsets = [0, 0], sizes = [8, 32], strides = [1, 1]} : vector<8x128xf32> to vector<8x32xf32>
    %423 = vector.extract_strided_slice %421 {offsets = [0, 32], sizes = [8, 32], strides = [1, 1]} : vector<8x128xf32> to vector<8x32xf32>
    %424 = vector.extract_strided_slice %421 {offsets = [0, 96], sizes = [8, 32], strides = [1, 1]} : vector<8x128xf32> to vector<8x32xf32>
    %425 = vector.extract_strided_slice %416 {offsets = [0, 64], sizes = [8, 32], strides = [1, 1]} : vector<8x128xf32> to vector<8x32xf32>
    %426 = math.tanh %425 : vector<8x32xf32>
    %427 = arith.mulf %423, %409 : vector<8x32xf32>
    %428 = arith.mulf %422, %426 : vector<8x32xf32>
    %429 = arith.addf %427, %428 : vector<8x32xf32>
    %430 = math.tanh %429 : vector<8x32xf32>
    %431 = arith.mulf %424, %430 : vector<8x32xf32>
    %c24_98 = arith.constant 24 : index
    %c0_99 = arith.constant 0 : index
    %432 = vector.load %arg10[%c24_98, %c0_99] : memref<64x32xf32, #tpu.memory_space<vmem>>, vector<8x32xf32>
    tpu.vector_store %arg10[%c24_98, %c0_99], %431 {strides = array<i32>} : memref<64x32xf32, #tpu.memory_space<vmem>>, vector<8x32xf32>,
    %433 = vector.extract_strided_slice %350 {offsets = [32, 0], sizes = [8, 128], strides = [1, 1]} : vector<64x128xf32> to vector<8x128xf32>
    %434 = arith.truncf %431 : vector<8x32xf32> to vector<8x32xbf16>
    %cst_100 = arith.constant dense<0.000000e+00> : vector<8x128xf32>
    %435 = tpu.matmul %434, %348, %cst_100 {dimension_numbers = #tpu.dot_dimension_numbers<[1], [0], [0], [1], [0, 0, 1, 1], [], []>} : vector<8x32xbf16>, vector<32x128xbf16>, vector<8x128xf32> -> vector<8x128xf32>
    %436 = arith.addf %433, %435 : vector<8x128xf32>
    %437 = arith.negf %436 : vector<8x128xf32>
    %438 = math.exp %437 : vector<8x128xf32>
    %cst_101 = arith.constant 1.000000e+00 : f32
    %439 = vector.broadcast %cst_101 : f32 to vector<8x128xf32>
    %440 = arith.addf %439, %438 : vector<8x128xf32>
    %441 = arith.divf %439, %440 : vector<8x128xf32>
    %442 = vector.extract_strided_slice %441 {offsets = [0, 0], sizes = [8, 32], strides = [1, 1]} : vector<8x128xf32> to vector<8x32xf32>
    %443 = vector.extract_strided_slice %441 {offsets = [0, 32], sizes = [8, 32], strides = [1, 1]} : vector<8x128xf32> to vector<8x32xf32>
    %444 = vector.extract_strided_slice %441 {offsets = [0, 96], sizes = [8, 32], strides = [1, 1]} : vector<8x128xf32> to vector<8x32xf32>
    %445 = vector.extract_strided_slice %436 {offsets = [0, 64], sizes = [8, 32], strides = [1, 1]} : vector<8x128xf32> to vector<8x32xf32>
    %446 = math.tanh %445 : vector<8x32xf32>
    %447 = arith.mulf %443, %429 : vector<8x32xf32>
    %448 = arith.mulf %442, %446 : vector<8x32xf32>
    %449 = arith.addf %447, %448 : vector<8x32xf32>
    %450 = math.tanh %449 : vector<8x32xf32>
    %451 = arith.mulf %444, %450 : vector<8x32xf32>
    %c32_102 = arith.constant 32 : index
    %c0_103 = arith.constant 0 : index
    %452 = vector.load %arg10[%c32_102, %c0_103] : memref<64x32xf32, #tpu.memory_space<vmem>>, vector<8x32xf32>
    tpu.vector_store %arg10[%c32_102, %c0_103], %451 {strides = array<i32>} : memref<64x32xf32, #tpu.memory_space<vmem>>, vector<8x32xf32>,
    %453 = vector.extract_strided_slice %350 {offsets = [40, 0], sizes = [8, 128], strides = [1, 1]} : vector<64x128xf32> to vector<8x128xf32>
    %454 = arith.truncf %451 : vector<8x32xf32> to vector<8x32xbf16>
    %cst_104 = arith.constant dense<0.000000e+00> : vector<8x128xf32>
    %455 = tpu.matmul %454, %348, %cst_104 {dimension_numbers = #tpu.dot_dimension_numbers<[1], [0], [0], [1], [0, 0, 1, 1], [], []>} : vector<8x32xbf16>, vector<32x128xbf16>, vector<8x128xf32> -> vector<8x128xf32>
    %456 = arith.addf %453, %455 : vector<8x128xf32>
    %457 = arith.negf %456 : vector<8x128xf32>
    %458 = math.exp %457 : vector<8x128xf32>
    %cst_105 = arith.constant 1.000000e+00 : f32
    %459 = vector.broadcast %cst_105 : f32 to vector<8x128xf32>
    %460 = arith.addf %459, %458 : vector<8x128xf32>
    %461 = arith.divf %459, %460 : vector<8x128xf32>
    %462 = vector.extract_strided_slice %461 {offsets = [0, 0], sizes = [8, 32], strides = [1, 1]} : vector<8x128xf32> to vector<8x32xf32>
    %463 = vector.extract_strided_slice %461 {offsets = [0, 32], sizes = [8, 32], strides = [1, 1]} : vector<8x128xf32> to vector<8x32xf32>
    %464 = vector.extract_strided_slice %461 {offsets = [0, 96], sizes = [8, 32], strides = [1, 1]} : vector<8x128xf32> to vector<8x32xf32>
    %465 = vector.extract_strided_slice %456 {offsets = [0, 64], sizes = [8, 32], strides = [1, 1]} : vector<8x128xf32> to vector<8x32xf32>
    %466 = math.tanh %465 : vector<8x32xf32>
    %467 = arith.mulf %463, %449 : vector<8x32xf32>
    %468 = arith.mulf %462, %466 : vector<8x32xf32>
    %469 = arith.addf %467, %468 : vector<8x32xf32>
    %470 = math.tanh %469 : vector<8x32xf32>
    %471 = arith.mulf %464, %470 : vector<8x32xf32>
    %c40_106 = arith.constant 40 : index
    %c0_107 = arith.constant 0 : index
    %472 = vector.load %arg10[%c40_106, %c0_107] : memref<64x32xf32, #tpu.memory_space<vmem>>, vector<8x32xf32>
    tpu.vector_store %arg10[%c40_106, %c0_107], %471 {strides = array<i32>} : memref<64x32xf32, #tpu.memory_space<vmem>>, vector<8x32xf32>,
    %473 = vector.extract_strided_slice %350 {offsets = [48, 0], sizes = [8, 128], strides = [1, 1]} : vector<64x128xf32> to vector<8x128xf32>
    %474 = arith.truncf %471 : vector<8x32xf32> to vector<8x32xbf16>
    %cst_108 = arith.constant dense<0.000000e+00> : vector<8x128xf32>
    %475 = tpu.matmul %474, %348, %cst_108 {dimension_numbers = #tpu.dot_dimension_numbers<[1], [0], [0], [1], [0, 0, 1, 1], [], []>} : vector<8x32xbf16>, vector<32x128xbf16>, vector<8x128xf32> -> vector<8x128xf32>
    %476 = arith.addf %473, %475 : vector<8x128xf32>
    %477 = arith.negf %476 : vector<8x128xf32>
    %478 = math.exp %477 : vector<8x128xf32>
    %cst_109 = arith.constant 1.000000e+00 : f32
    %479 = vector.broadcast %cst_109 : f32 to vector<8x128xf32>
    %480 = arith.addf %479, %478 : vector<8x128xf32>
    %481 = arith.divf %479, %480 : vector<8x128xf32>
    %482 = vector.extract_strided_slice %481 {offsets = [0, 0], sizes = [8, 32], strides = [1, 1]} : vector<8x128xf32> to vector<8x32xf32>
    %483 = vector.extract_strided_slice %481 {offsets = [0, 32], sizes = [8, 32], strides = [1, 1]} : vector<8x128xf32> to vector<8x32xf32>
    %484 = vector.extract_strided_slice %481 {offsets = [0, 96], sizes = [8, 32], strides = [1, 1]} : vector<8x128xf32> to vector<8x32xf32>
    %485 = vector.extract_strided_slice %476 {offsets = [0, 64], sizes = [8, 32], strides = [1, 1]} : vector<8x128xf32> to vector<8x32xf32>
    %486 = math.tanh %485 : vector<8x32xf32>
    %487 = arith.mulf %483, %469 : vector<8x32xf32>
    %488 = arith.mulf %482, %486 : vector<8x32xf32>
    %489 = arith.addf %487, %488 : vector<8x32xf32>
    %490 = math.tanh %489 : vector<8x32xf32>
    %491 = arith.mulf %484, %490 : vector<8x32xf32>
    %c48_110 = arith.constant 48 : index
    %c0_111 = arith.constant 0 : index
    %492 = vector.load %arg10[%c48_110, %c0_111] : memref<64x32xf32, #tpu.memory_space<vmem>>, vector<8x32xf32>
    tpu.vector_store %arg10[%c48_110, %c0_111], %491 {strides = array<i32>} : memref<64x32xf32, #tpu.memory_space<vmem>>, vector<8x32xf32>,
    %493 = vector.extract_strided_slice %350 {offsets = [56, 0], sizes = [8, 128], strides = [1, 1]} : vector<64x128xf32> to vector<8x128xf32>
    %494 = arith.truncf %491 : vector<8x32xf32> to vector<8x32xbf16>
    %cst_112 = arith.constant dense<0.000000e+00> : vector<8x128xf32>
    %495 = tpu.matmul %494, %348, %cst_112 {dimension_numbers = #tpu.dot_dimension_numbers<[1], [0], [0], [1], [0, 0, 1, 1], [], []>} : vector<8x32xbf16>, vector<32x128xbf16>, vector<8x128xf32> -> vector<8x128xf32>
    %496 = arith.addf %493, %495 : vector<8x128xf32>
    %497 = arith.negf %496 : vector<8x128xf32>
    %498 = math.exp %497 : vector<8x128xf32>
    %cst_113 = arith.constant 1.000000e+00 : f32
    %499 = vector.broadcast %cst_113 : f32 to vector<8x128xf32>
    %500 = arith.addf %499, %498 : vector<8x128xf32>
    %501 = arith.divf %499, %500 : vector<8x128xf32>
    %502 = vector.extract_strided_slice %501 {offsets = [0, 0], sizes = [8, 32], strides = [1, 1]} : vector<8x128xf32> to vector<8x32xf32>
    %503 = vector.extract_strided_slice %501 {offsets = [0, 32], sizes = [8, 32], strides = [1, 1]} : vector<8x128xf32> to vector<8x32xf32>
    %504 = vector.extract_strided_slice %501 {offsets = [0, 96], sizes = [8, 32], strides = [1, 1]} : vector<8x128xf32> to vector<8x32xf32>
    %505 = vector.extract_strided_slice %496 {offsets = [0, 64], sizes = [8, 32], strides = [1, 1]} : vector<8x128xf32> to vector<8x32xf32>
    %506 = math.tanh %505 : vector<8x32xf32>
    %507 = arith.mulf %503, %489 : vector<8x32xf32>
    %508 = arith.mulf %502, %506 : vector<8x32xf32>
    %509 = arith.addf %507, %508 : vector<8x32xf32>
    %510 = math.tanh %509 : vector<8x32xf32>
    %511 = arith.mulf %504, %510 : vector<8x32xf32>
    %c56_114 = arith.constant 56 : index
    %c0_115 = arith.constant 0 : index
    %512 = vector.load %arg10[%c56_114, %c0_115] : memref<64x32xf32, #tpu.memory_space<vmem>>, vector<8x32xf32>
    tpu.vector_store %arg10[%c56_114, %c0_115], %511 {strides = array<i32>} : memref<64x32xf32, #tpu.memory_space<vmem>>, vector<8x32xf32>,
    %513 = arith.addf %345, %511 : vector<8x32xf32>
    %c0_116 = arith.constant 0 : index
    %c0_117 = arith.constant 0 : index
    %514 = vector.load %arg10[%c0_116, %c0_117] : memref<64x32xf32, #tpu.memory_space<vmem>>, vector<64x32xf32>
    %cst_118 = arith.constant 0.333333343 : f32
    %515 = vector.broadcast %cst_118 : f32 to vector<8x32xf32>
    %516 = arith.mulf %513, %515 : vector<8x32xf32>
    %c0_119 = arith.constant 0 : index
    %c0_120 = arith.constant 0 : index
    %517 = vector.load %arg4[%c0_119, %c0_120] : memref<64x32xbf16, #tpu.memory_space<vmem>>, vector<32x32xbf16>
    %c32_121 = arith.constant 32 : index
    %c0_122 = arith.constant 0 : index
    %518 = vector.load %arg4[%c32_121, %c0_122] : memref<64x32xbf16, #tpu.memory_space<vmem>>, vector<32x32xbf16>
    %c0_123 = arith.constant 0 : index
    %c0_124 = arith.constant 0 : index
    %519 = vector.load %arg5[%c0_123, %c0_124] : memref<8x32xf32, #tpu.memory_space<vmem>>, vector<1x32xf32>
    %c1 = arith.constant 1 : index
    %c0_125 = arith.constant 0 : index
    %520 = vector.load %arg5[%c1, %c0_125] : memref<8x32xf32, #tpu.memory_space<vmem>>, vector<1x32xf32>
    %c2 = arith.constant 2 : index
    %c0_126 = arith.constant 0 : index
    %521 = vector.load %arg5[%c2, %c0_126] : memref<8x32xf32, #tpu.memory_space<vmem>>, vector<1x32xf32>
    %522 = arith.truncf %514 : vector<64x32xf32> to vector<64x32xbf16>
    %cst_127 = arith.constant dense<0.000000e+00> : vector<64x32xf32>
    %523 = tpu.matmul %522, %517, %cst_127 {dimension_numbers = #tpu.dot_dimension_numbers<[1], [0], [0], [1], [0, 0, 1, 1], [], []>} : vector<64x32xbf16>, vector<32x32xbf16>, vector<64x32xf32> -> vector<64x32xf32>
    %524 = vector.broadcast %519 : vector<1x32xf32> to vector<64x32xf32>
    %525 = arith.addf %523, %524 : vector<64x32xf32>
    %526 = arith.truncf %516 : vector<8x32xf32> to vector<8x32xbf16>
    %cst_128 = arith.constant dense<0.000000e+00> : vector<8x32xf32>
    %527 = tpu.matmul %526, %518, %cst_128 {dimension_numbers = #tpu.dot_dimension_numbers<[1], [0], [0], [1], [0, 0, 1, 1], [], []>} : vector<8x32xbf16>, vector<32x32xbf16>, vector<8x32xf32> -> vector<8x32xf32>
    %528 = vector.broadcast %520 : vector<1x32xf32> to vector<8x32xf32>
    %529 = arith.addf %527, %528 : vector<8x32xf32>
    %530 = tpu.concatenate %529, %529, %529, %529, %529, %529, %529, %529 in 0 : vector<8x32xf32>, vector<8x32xf32>, vector<8x32xf32>, vector<8x32xf32>, vector<8x32xf32>, vector<8x32xf32>, vector<8x32xf32>, vector<8x32xf32> -> vector<64x32xf32>
    %531 = arith.addf %525, %530 : vector<64x32xf32>
    %532 = math.tanh %531 : vector<64x32xf32>
    %533 = vector.broadcast %521 : vector<1x32xf32> to vector<64x32xf32>
    %534 = arith.mulf %532, %533 : vector<64x32xf32>
    %cst_129 = arith.constant dense<0.000000e+00> : vector<64xf32>
    %535 = vector.multi_reduction <add>, %534, %cst_129 [1] : vector<64x32xf32> to vector<64xf32>
    %536 = vector.shape_cast %535 : vector<64xf32> to vector<64x1xf32>
    %537 = vector.extract_strided_slice %536 {offsets = [0, 0], sizes = [8, 1], strides = [1, 1]} : vector<64x1xf32> to vector<8x1xf32>
    %538 = vector.extract_strided_slice %536 {offsets = [8, 0], sizes = [8, 1], strides = [1, 1]} : vector<64x1xf32> to vector<8x1xf32>
    %539 = vector.extract_strided_slice %536 {offsets = [16, 0], sizes = [8, 1], strides = [1, 1]} : vector<64x1xf32> to vector<8x1xf32>
    %540 = vector.extract_strided_slice %536 {offsets = [24, 0], sizes = [8, 1], strides = [1, 1]} : vector<64x1xf32> to vector<8x1xf32>
    %541 = vector.extract_strided_slice %536 {offsets = [32, 0], sizes = [8, 1], strides = [1, 1]} : vector<64x1xf32> to vector<8x1xf32>
    %542 = vector.extract_strided_slice %536 {offsets = [40, 0], sizes = [8, 1], strides = [1, 1]} : vector<64x1xf32> to vector<8x1xf32>
    %543 = vector.extract_strided_slice %536 {offsets = [48, 0], sizes = [8, 1], strides = [1, 1]} : vector<64x1xf32> to vector<8x1xf32>
    %544 = vector.extract_strided_slice %536 {offsets = [56, 0], sizes = [8, 1], strides = [1, 1]} : vector<64x1xf32> to vector<8x1xf32>
    %545 = arith.maximumf %537, %538 : vector<8x1xf32>
    %546 = arith.maximumf %545, %539 : vector<8x1xf32>
    %547 = arith.maximumf %546, %540 : vector<8x1xf32>
    %548 = arith.maximumf %547, %541 : vector<8x1xf32>
    %549 = arith.maximumf %548, %542 : vector<8x1xf32>
    %550 = arith.maximumf %549, %543 : vector<8x1xf32>
    %551 = arith.maximumf %550, %544 : vector<8x1xf32>
    %552 = tpu.concatenate %551, %551, %551, %551, %551, %551, %551, %551 in 0 : vector<8x1xf32>, vector<8x1xf32>, vector<8x1xf32>, vector<8x1xf32>, vector<8x1xf32>, vector<8x1xf32>, vector<8x1xf32>, vector<8x1xf32> -> vector<64x1xf32>
    %553 = arith.subf %536, %552 : vector<64x1xf32>
    %554 = math.exp %553 : vector<64x1xf32>
    %555 = vector.extract_strided_slice %554 {offsets = [0, 0], sizes = [8, 1], strides = [1, 1]} : vector<64x1xf32> to vector<8x1xf32>
    %556 = vector.extract_strided_slice %554 {offsets = [8, 0], sizes = [8, 1], strides = [1, 1]} : vector<64x1xf32> to vector<8x1xf32>
    %557 = vector.extract_strided_slice %554 {offsets = [16, 0], sizes = [8, 1], strides = [1, 1]} : vector<64x1xf32> to vector<8x1xf32>
    %558 = vector.extract_strided_slice %554 {offsets = [24, 0], sizes = [8, 1], strides = [1, 1]} : vector<64x1xf32> to vector<8x1xf32>
    %559 = vector.extract_strided_slice %554 {offsets = [32, 0], sizes = [8, 1], strides = [1, 1]} : vector<64x1xf32> to vector<8x1xf32>
    %560 = vector.extract_strided_slice %554 {offsets = [40, 0], sizes = [8, 1], strides = [1, 1]} : vector<64x1xf32> to vector<8x1xf32>
    %561 = vector.extract_strided_slice %554 {offsets = [48, 0], sizes = [8, 1], strides = [1, 1]} : vector<64x1xf32> to vector<8x1xf32>
    %562 = vector.extract_strided_slice %554 {offsets = [56, 0], sizes = [8, 1], strides = [1, 1]} : vector<64x1xf32> to vector<8x1xf32>
    %563 = arith.addf %555, %556 : vector<8x1xf32>
    %564 = arith.addf %563, %557 : vector<8x1xf32>
    %565 = arith.addf %564, %558 : vector<8x1xf32>
    %566 = arith.addf %565, %559 : vector<8x1xf32>
    %567 = arith.addf %566, %560 : vector<8x1xf32>
    %568 = arith.addf %567, %561 : vector<8x1xf32>
    %569 = arith.addf %568, %562 : vector<8x1xf32>
    %570 = vector.broadcast %554 : vector<64x1xf32> to vector<64x32xf32>
    %571 = arith.mulf %514, %570 : vector<64x32xf32>
    %572 = vector.extract_strided_slice %571 {offsets = [0, 0], sizes = [8, 32], strides = [1, 1]} : vector<64x32xf32> to vector<8x32xf32>
    %573 = vector.extract_strided_slice %571 {offsets = [8, 0], sizes = [8, 32], strides = [1, 1]} : vector<64x32xf32> to vector<8x32xf32>
    %574 = vector.extract_strided_slice %571 {offsets = [16, 0], sizes = [8, 32], strides = [1, 1]} : vector<64x32xf32> to vector<8x32xf32>
    %575 = vector.extract_strided_slice %571 {offsets = [24, 0], sizes = [8, 32], strides = [1, 1]} : vector<64x32xf32> to vector<8x32xf32>
    %576 = vector.extract_strided_slice %571 {offsets = [32, 0], sizes = [8, 32], strides = [1, 1]} : vector<64x32xf32> to vector<8x32xf32>
    %577 = vector.extract_strided_slice %571 {offsets = [40, 0], sizes = [8, 32], strides = [1, 1]} : vector<64x32xf32> to vector<8x32xf32>
    %578 = vector.extract_strided_slice %571 {offsets = [48, 0], sizes = [8, 32], strides = [1, 1]} : vector<64x32xf32> to vector<8x32xf32>
    %579 = vector.extract_strided_slice %571 {offsets = [56, 0], sizes = [8, 32], strides = [1, 1]} : vector<64x32xf32> to vector<8x32xf32>
    %580 = arith.addf %572, %573 : vector<8x32xf32>
    %581 = arith.addf %580, %574 : vector<8x32xf32>
    %582 = arith.addf %581, %575 : vector<8x32xf32>
    %583 = arith.addf %582, %576 : vector<8x32xf32>
    %584 = arith.addf %583, %577 : vector<8x32xf32>
    %585 = arith.addf %584, %578 : vector<8x32xf32>
    %586 = arith.addf %585, %579 : vector<8x32xf32>
    %587 = tpu.reciprocal %569 {approx = true} : vector<8x1xf32> -> vector<8x1xf32>
    %588 = vector.broadcast %587 : vector<8x1xf32> to vector<8x32xf32>
    %589 = arith.mulf %586, %588 : vector<8x32xf32>
    %c0_130 = arith.constant 0 : index
    %c0_131 = arith.constant 0 : index
    %590 = vector.load %arg9[%c0_130, %c0_131] : memref<72x32xf32, #tpu.memory_space<vmem>>, vector<8x32xf32>
    tpu.vector_store %arg9[%c0_130, %c0_131], %589 {strides = array<i32>} : memref<72x32xf32, #tpu.memory_space<vmem>>, vector<8x32xf32>,
    %c0_132 = arith.constant 0 : index
    %c0_133 = arith.constant 0 : index
    %591 = vector.load %arg9[%c0_132, %c0_133] : memref<72x32xf32, #tpu.memory_space<vmem>>, vector<72x32xf32>
    %c0_134 = arith.constant 0 : index
    %c0_135 = arith.constant 0 : index
    %592 = vector.load %arg3[%c0_134, %c0_135] : memref<320x128xbf16, #tpu.memory_space<vmem>>, vector<32x128xbf16>
    %593 = arith.truncf %591 : vector<72x32xf32> to vector<72x32xbf16>
    %cst_136 = arith.constant dense<0.000000e+00> : vector<72x128xf32>
    %594 = tpu.matmul %593, %592, %cst_136 {dimension_numbers = #tpu.dot_dimension_numbers<[1], [0], [0], [1], [0, 0, 1, 1], [], []>} : vector<72x32xbf16>, vector<32x128xbf16>, vector<72x128xf32> -> vector<72x128xf32>
    %c32_137 = arith.constant 32 : index
    %c0_138 = arith.constant 0 : index
    %595 = vector.load %arg3[%c32_137, %c0_138] : memref<320x128xbf16, #tpu.memory_space<vmem>>, vector<32x128xbf16>
    %596 = arith.truncf %591 : vector<72x32xf32> to vector<72x32xbf16>
    %cst_139 = arith.constant dense<0.000000e+00> : vector<72x128xf32>
    %597 = tpu.matmul %596, %595, %cst_139 {dimension_numbers = #tpu.dot_dimension_numbers<[1], [0], [0], [1], [0, 0, 1, 1], [], []>} : vector<72x32xbf16>, vector<32x128xbf16>, vector<72x128xf32> -> vector<72x128xf32>
    %c64_140 = arith.constant 64 : index
    %c0_141 = arith.constant 0 : index
    %598 = vector.load %arg3[%c64_140, %c0_141] : memref<320x128xbf16, #tpu.memory_space<vmem>>, vector<32x128xbf16>
    %c96_142 = arith.constant 96 : index
    %c0_143 = arith.constant 0 : index
    %599 = vector.load %arg3[%c96_142, %c0_143] : memref<320x128xbf16, #tpu.memory_space<vmem>>, vector<32x128xbf16>
    %cst_144 = arith.constant 0.000000e+00 : f32
    %600 = vector.broadcast %cst_144 : f32 to vector<8x32xf32>
    %cst_145 = arith.constant 0.000000e+00 : f32
    %601 = vector.broadcast %cst_145 : f32 to vector<8x32xf32>
    %cst_146 = arith.constant 0.000000e+00 : f32
    %602 = vector.broadcast %cst_146 : f32 to vector<8x32xf32>
    %cst_147 = arith.constant 0.000000e+00 : f32
    %603 = vector.broadcast %cst_147 : f32 to vector<8x32xf32>
    %604 = vector.extract_strided_slice %594 {offsets = [0, 0], sizes = [8, 128], strides = [1, 1]} : vector<72x128xf32> to vector<8x128xf32>
    %605 = arith.truncf %600 : vector<8x32xf32> to vector<8x32xbf16>
    %cst_148 = arith.constant dense<0.000000e+00> : vector<8x128xf32>
    %606 = tpu.matmul %605, %598, %cst_148 {dimension_numbers = #tpu.dot_dimension_numbers<[1], [0], [0], [1], [0, 0, 1, 1], [], []>} : vector<8x32xbf16>, vector<32x128xbf16>, vector<8x128xf32> -> vector<8x128xf32>
    %607 = arith.addf %604, %606 : vector<8x128xf32>
    %608 = vector.extract_strided_slice %597 {offsets = [64, 0], sizes = [8, 128], strides = [1, 1]} : vector<72x128xf32> to vector<8x128xf32>
    %609 = arith.truncf %602 : vector<8x32xf32> to vector<8x32xbf16>
    %cst_149 = arith.constant dense<0.000000e+00> : vector<8x128xf32>
    %610 = tpu.matmul %609, %599, %cst_149 {dimension_numbers = #tpu.dot_dimension_numbers<[1], [0], [0], [1], [0, 0, 1, 1], [], []>} : vector<8x32xbf16>, vector<32x128xbf16>, vector<8x128xf32> -> vector<8x128xf32>
    %611 = arith.addf %608, %610 : vector<8x128xf32>
    %612 = arith.negf %607 : vector<8x128xf32>
    %613 = math.exp %612 : vector<8x128xf32>
    %cst_150 = arith.constant 1.000000e+00 : f32
    %614 = vector.broadcast %cst_150 : f32 to vector<8x128xf32>
    %615 = arith.addf %614, %613 : vector<8x128xf32>
    %616 = arith.divf %614, %615 : vector<8x128xf32>
    %617 = vector.extract_strided_slice %616 {offsets = [0, 0], sizes = [8, 32], strides = [1, 1]} : vector<8x128xf32> to vector<8x32xf32>
    %618 = vector.extract_strided_slice %616 {offsets = [0, 32], sizes = [8, 32], strides = [1, 1]} : vector<8x128xf32> to vector<8x32xf32>
    %619 = vector.extract_strided_slice %616 {offsets = [0, 96], sizes = [8, 32], strides = [1, 1]} : vector<8x128xf32> to vector<8x32xf32>
    %620 = vector.extract_strided_slice %607 {offsets = [0, 64], sizes = [8, 32], strides = [1, 1]} : vector<8x128xf32> to vector<8x32xf32>
    %621 = math.tanh %620 : vector<8x32xf32>
    %622 = arith.mulf %618, %601 : vector<8x32xf32>
    %623 = arith.mulf %617, %621 : vector<8x32xf32>
    %624 = arith.addf %622, %623 : vector<8x32xf32>
    %625 = math.tanh %624 : vector<8x32xf32>
    %626 = arith.mulf %619, %625 : vector<8x32xf32>
    %627 = arith.negf %611 : vector<8x128xf32>
    %628 = math.exp %627 : vector<8x128xf32>
    %cst_151 = arith.constant 1.000000e+00 : f32
    %629 = vector.broadcast %cst_151 : f32 to vector<8x128xf32>
    %630 = arith.addf %629, %628 : vector<8x128xf32>
    %631 = arith.divf %629, %630 : vector<8x128xf32>
    %632 = vector.extract_strided_slice %631 {offsets = [0, 0], sizes = [8, 32], strides = [1, 1]} : vector<8x128xf32> to vector<8x32xf32>
    %633 = vector.extract_strided_slice %631 {offsets = [0, 32], sizes = [8, 32], strides = [1, 1]} : vector<8x128xf32> to vector<8x32xf32>
    %634 = vector.extract_strided_slice %631 {offsets = [0, 96], sizes = [8, 32], strides = [1, 1]} : vector<8x128xf32> to vector<8x32xf32>
    %635 = vector.extract_strided_slice %611 {offsets = [0, 64], sizes = [8, 32], strides = [1, 1]} : vector<8x128xf32> to vector<8x32xf32>
    %636 = math.tanh %635 : vector<8x32xf32>
    %637 = arith.mulf %633, %603 : vector<8x32xf32>
    %638 = arith.mulf %632, %636 : vector<8x32xf32>
    %639 = arith.addf %637, %638 : vector<8x32xf32>
    %640 = math.tanh %639 : vector<8x32xf32>
    %641 = arith.mulf %634, %640 : vector<8x32xf32>
    %c0_152 = arith.constant 0 : index
    %c0_153 = arith.constant 0 : index
    %642 = vector.load %arg12[%c0_152, %c0_153] : memref<72x32xf32, #tpu.memory_space<vmem>>, vector<8x32xf32>
    tpu.vector_store %arg12[%c0_152, %c0_153], %626 {strides = array<i32>} : memref<72x32xf32, #tpu.memory_space<vmem>>, vector<8x32xf32>,
    %c64_154 = arith.constant 64 : index
    %c0_155 = arith.constant 0 : index
    %643 = vector.load %arg13[%c64_154, %c0_155] : memref<72x32xf32, #tpu.memory_space<vmem>>, vector<8x32xf32>
    tpu.vector_store %arg13[%c64_154, %c0_155], %641 {strides = array<i32>} : memref<72x32xf32, #tpu.memory_space<vmem>>, vector<8x32xf32>,
    %644 = vector.extract_strided_slice %594 {offsets = [8, 0], sizes = [8, 128], strides = [1, 1]} : vector<72x128xf32> to vector<8x128xf32>
    %645 = arith.truncf %626 : vector<8x32xf32> to vector<8x32xbf16>
    %cst_156 = arith.constant dense<0.000000e+00> : vector<8x128xf32>
    %646 = tpu.matmul %645, %598, %cst_156 {dimension_numbers = #tpu.dot_dimension_numbers<[1], [0], [0], [1], [0, 0, 1, 1], [], []>} : vector<8x32xbf16>, vector<32x128xbf16>, vector<8x128xf32> -> vector<8x128xf32>
    %647 = arith.addf %644, %646 : vector<8x128xf32>
    %648 = vector.extract_strided_slice %597 {offsets = [56, 0], sizes = [8, 128], strides = [1, 1]} : vector<72x128xf32> to vector<8x128xf32>
    %649 = arith.truncf %641 : vector<8x32xf32> to vector<8x32xbf16>
    %cst_157 = arith.constant dense<0.000000e+00> : vector<8x128xf32>
    %650 = tpu.matmul %649, %599, %cst_157 {dimension_numbers = #tpu.dot_dimension_numbers<[1], [0], [0], [1], [0, 0, 1, 1], [], []>} : vector<8x32xbf16>, vector<32x128xbf16>, vector<8x128xf32> -> vector<8x128xf32>
    %651 = arith.addf %648, %650 : vector<8x128xf32>
    %652 = arith.negf %647 : vector<8x128xf32>
    %653 = math.exp %652 : vector<8x128xf32>
    %cst_158 = arith.constant 1.000000e+00 : f32
    %654 = vector.broadcast %cst_158 : f32 to vector<8x128xf32>
    %655 = arith.addf %654, %653 : vector<8x128xf32>
    %656 = arith.divf %654, %655 : vector<8x128xf32>
    %657 = vector.extract_strided_slice %656 {offsets = [0, 0], sizes = [8, 32], strides = [1, 1]} : vector<8x128xf32> to vector<8x32xf32>
    %658 = vector.extract_strided_slice %656 {offsets = [0, 32], sizes = [8, 32], strides = [1, 1]} : vector<8x128xf32> to vector<8x32xf32>
    %659 = vector.extract_strided_slice %656 {offsets = [0, 96], sizes = [8, 32], strides = [1, 1]} : vector<8x128xf32> to vector<8x32xf32>
    %660 = vector.extract_strided_slice %647 {offsets = [0, 64], sizes = [8, 32], strides = [1, 1]} : vector<8x128xf32> to vector<8x32xf32>
    %661 = math.tanh %660 : vector<8x32xf32>
    %662 = arith.mulf %658, %624 : vector<8x32xf32>
    %663 = arith.mulf %657, %661 : vector<8x32xf32>
    %664 = arith.addf %662, %663 : vector<8x32xf32>
    %665 = math.tanh %664 : vector<8x32xf32>
    %666 = arith.mulf %659, %665 : vector<8x32xf32>
    %667 = arith.negf %651 : vector<8x128xf32>
    %668 = math.exp %667 : vector<8x128xf32>
    %cst_159 = arith.constant 1.000000e+00 : f32
    %669 = vector.broadcast %cst_159 : f32 to vector<8x128xf32>
    %670 = arith.addf %669, %668 : vector<8x128xf32>
    %671 = arith.divf %669, %670 : vector<8x128xf32>
    %672 = vector.extract_strided_slice %671 {offsets = [0, 0], sizes = [8, 32], strides = [1, 1]} : vector<8x128xf32> to vector<8x32xf32>
    %673 = vector.extract_strided_slice %671 {offsets = [0, 32], sizes = [8, 32], strides = [1, 1]} : vector<8x128xf32> to vector<8x32xf32>
    %674 = vector.extract_strided_slice %671 {offsets = [0, 96], sizes = [8, 32], strides = [1, 1]} : vector<8x128xf32> to vector<8x32xf32>
    %675 = vector.extract_strided_slice %651 {offsets = [0, 64], sizes = [8, 32], strides = [1, 1]} : vector<8x128xf32> to vector<8x32xf32>
    %676 = math.tanh %675 : vector<8x32xf32>
    %677 = arith.mulf %673, %639 : vector<8x32xf32>
    %678 = arith.mulf %672, %676 : vector<8x32xf32>
    %679 = arith.addf %677, %678 : vector<8x32xf32>
    %680 = math.tanh %679 : vector<8x32xf32>
    %681 = arith.mulf %674, %680 : vector<8x32xf32>
    %c8_160 = arith.constant 8 : index
    %c0_161 = arith.constant 0 : index
    %682 = vector.load %arg12[%c8_160, %c0_161] : memref<72x32xf32, #tpu.memory_space<vmem>>, vector<8x32xf32>
    tpu.vector_store %arg12[%c8_160, %c0_161], %666 {strides = array<i32>} : memref<72x32xf32, #tpu.memory_space<vmem>>, vector<8x32xf32>,
    %c56_162 = arith.constant 56 : index
    %c0_163 = arith.constant 0 : index
    %683 = vector.load %arg13[%c56_162, %c0_163] : memref<72x32xf32, #tpu.memory_space<vmem>>, vector<8x32xf32>
    tpu.vector_store %arg13[%c56_162, %c0_163], %681 {strides = array<i32>} : memref<72x32xf32, #tpu.memory_space<vmem>>, vector<8x32xf32>,
    %684 = vector.extract_strided_slice %594 {offsets = [16, 0], sizes = [8, 128], strides = [1, 1]} : vector<72x128xf32> to vector<8x128xf32>
    %685 = arith.truncf %666 : vector<8x32xf32> to vector<8x32xbf16>
    %cst_164 = arith.constant dense<0.000000e+00> : vector<8x128xf32>
    %686 = tpu.matmul %685, %598, %cst_164 {dimension_numbers = #tpu.dot_dimension_numbers<[1], [0], [0], [1], [0, 0, 1, 1], [], []>} : vector<8x32xbf16>, vector<32x128xbf16>, vector<8x128xf32> -> vector<8x128xf32>
    %687 = arith.addf %684, %686 : vector<8x128xf32>
    %688 = vector.extract_strided_slice %597 {offsets = [48, 0], sizes = [8, 128], strides = [1, 1]} : vector<72x128xf32> to vector<8x128xf32>
    %689 = arith.truncf %681 : vector<8x32xf32> to vector<8x32xbf16>
    %cst_165 = arith.constant dense<0.000000e+00> : vector<8x128xf32>
    %690 = tpu.matmul %689, %599, %cst_165 {dimension_numbers = #tpu.dot_dimension_numbers<[1], [0], [0], [1], [0, 0, 1, 1], [], []>} : vector<8x32xbf16>, vector<32x128xbf16>, vector<8x128xf32> -> vector<8x128xf32>
    %691 = arith.addf %688, %690 : vector<8x128xf32>
    %692 = arith.negf %687 : vector<8x128xf32>
    %693 = math.exp %692 : vector<8x128xf32>
    %cst_166 = arith.constant 1.000000e+00 : f32
    %694 = vector.broadcast %cst_166 : f32 to vector<8x128xf32>
    %695 = arith.addf %694, %693 : vector<8x128xf32>
    %696 = arith.divf %694, %695 : vector<8x128xf32>
    %697 = vector.extract_strided_slice %696 {offsets = [0, 0], sizes = [8, 32], strides = [1, 1]} : vector<8x128xf32> to vector<8x32xf32>
    %698 = vector.extract_strided_slice %696 {offsets = [0, 32], sizes = [8, 32], strides = [1, 1]} : vector<8x128xf32> to vector<8x32xf32>
    %699 = vector.extract_strided_slice %696 {offsets = [0, 96], sizes = [8, 32], strides = [1, 1]} : vector<8x128xf32> to vector<8x32xf32>
    %700 = vector.extract_strided_slice %687 {offsets = [0, 64], sizes = [8, 32], strides = [1, 1]} : vector<8x128xf32> to vector<8x32xf32>
    %701 = math.tanh %700 : vector<8x32xf32>
    %702 = arith.mulf %698, %664 : vector<8x32xf32>
    %703 = arith.mulf %697, %701 : vector<8x32xf32>
    %704 = arith.addf %702, %703 : vector<8x32xf32>
    %705 = math.tanh %704 : vector<8x32xf32>
    %706 = arith.mulf %699, %705 : vector<8x32xf32>
    %707 = arith.negf %691 : vector<8x128xf32>
    %708 = math.exp %707 : vector<8x128xf32>
    %cst_167 = arith.constant 1.000000e+00 : f32
    %709 = vector.broadcast %cst_167 : f32 to vector<8x128xf32>
    %710 = arith.addf %709, %708 : vector<8x128xf32>
    %711 = arith.divf %709, %710 : vector<8x128xf32>
    %712 = vector.extract_strided_slice %711 {offsets = [0, 0], sizes = [8, 32], strides = [1, 1]} : vector<8x128xf32> to vector<8x32xf32>
    %713 = vector.extract_strided_slice %711 {offsets = [0, 32], sizes = [8, 32], strides = [1, 1]} : vector<8x128xf32> to vector<8x32xf32>
    %714 = vector.extract_strided_slice %711 {offsets = [0, 96], sizes = [8, 32], strides = [1, 1]} : vector<8x128xf32> to vector<8x32xf32>
    %715 = vector.extract_strided_slice %691 {offsets = [0, 64], sizes = [8, 32], strides = [1, 1]} : vector<8x128xf32> to vector<8x32xf32>
    %716 = math.tanh %715 : vector<8x32xf32>
    %717 = arith.mulf %713, %679 : vector<8x32xf32>
    %718 = arith.mulf %712, %716 : vector<8x32xf32>
    %719 = arith.addf %717, %718 : vector<8x32xf32>
    %720 = math.tanh %719 : vector<8x32xf32>
    %721 = arith.mulf %714, %720 : vector<8x32xf32>
    %c16_168 = arith.constant 16 : index
    %c0_169 = arith.constant 0 : index
    %722 = vector.load %arg12[%c16_168, %c0_169] : memref<72x32xf32, #tpu.memory_space<vmem>>, vector<8x32xf32>
    tpu.vector_store %arg12[%c16_168, %c0_169], %706 {strides = array<i32>} : memref<72x32xf32, #tpu.memory_space<vmem>>, vector<8x32xf32>,
    %c48_170 = arith.constant 48 : index
    %c0_171 = arith.constant 0 : index
    %723 = vector.load %arg13[%c48_170, %c0_171] : memref<72x32xf32, #tpu.memory_space<vmem>>, vector<8x32xf32>
    tpu.vector_store %arg13[%c48_170, %c0_171], %721 {strides = array<i32>} : memref<72x32xf32, #tpu.memory_space<vmem>>, vector<8x32xf32>,
    %724 = vector.extract_strided_slice %594 {offsets = [24, 0], sizes = [8, 128], strides = [1, 1]} : vector<72x128xf32> to vector<8x128xf32>
    %725 = arith.truncf %706 : vector<8x32xf32> to vector<8x32xbf16>
    %cst_172 = arith.constant dense<0.000000e+00> : vector<8x128xf32>
    %726 = tpu.matmul %725, %598, %cst_172 {dimension_numbers = #tpu.dot_dimension_numbers<[1], [0], [0], [1], [0, 0, 1, 1], [], []>} : vector<8x32xbf16>, vector<32x128xbf16>, vector<8x128xf32> -> vector<8x128xf32>
    %727 = arith.addf %724, %726 : vector<8x128xf32>
    %728 = vector.extract_strided_slice %597 {offsets = [40, 0], sizes = [8, 128], strides = [1, 1]} : vector<72x128xf32> to vector<8x128xf32>
    %729 = arith.truncf %721 : vector<8x32xf32> to vector<8x32xbf16>
    %cst_173 = arith.constant dense<0.000000e+00> : vector<8x128xf32>
    %730 = tpu.matmul %729, %599, %cst_173 {dimension_numbers = #tpu.dot_dimension_numbers<[1], [0], [0], [1], [0, 0, 1, 1], [], []>} : vector<8x32xbf16>, vector<32x128xbf16>, vector<8x128xf32> -> vector<8x128xf32>
    %731 = arith.addf %728, %730 : vector<8x128xf32>
    %732 = arith.negf %727 : vector<8x128xf32>
    %733 = math.exp %732 : vector<8x128xf32>
    %cst_174 = arith.constant 1.000000e+00 : f32
    %734 = vector.broadcast %cst_174 : f32 to vector<8x128xf32>
    %735 = arith.addf %734, %733 : vector<8x128xf32>
    %736 = arith.divf %734, %735 : vector<8x128xf32>
    %737 = vector.extract_strided_slice %736 {offsets = [0, 0], sizes = [8, 32], strides = [1, 1]} : vector<8x128xf32> to vector<8x32xf32>
    %738 = vector.extract_strided_slice %736 {offsets = [0, 32], sizes = [8, 32], strides = [1, 1]} : vector<8x128xf32> to vector<8x32xf32>
    %739 = vector.extract_strided_slice %736 {offsets = [0, 96], sizes = [8, 32], strides = [1, 1]} : vector<8x128xf32> to vector<8x32xf32>
    %740 = vector.extract_strided_slice %727 {offsets = [0, 64], sizes = [8, 32], strides = [1, 1]} : vector<8x128xf32> to vector<8x32xf32>
    %741 = math.tanh %740 : vector<8x32xf32>
    %742 = arith.mulf %738, %704 : vector<8x32xf32>
    %743 = arith.mulf %737, %741 : vector<8x32xf32>
    %744 = arith.addf %742, %743 : vector<8x32xf32>
    %745 = math.tanh %744 : vector<8x32xf32>
    %746 = arith.mulf %739, %745 : vector<8x32xf32>
    %747 = arith.negf %731 : vector<8x128xf32>
    %748 = math.exp %747 : vector<8x128xf32>
    %cst_175 = arith.constant 1.000000e+00 : f32
    %749 = vector.broadcast %cst_175 : f32 to vector<8x128xf32>
    %750 = arith.addf %749, %748 : vector<8x128xf32>
    %751 = arith.divf %749, %750 : vector<8x128xf32>
    %752 = vector.extract_strided_slice %751 {offsets = [0, 0], sizes = [8, 32], strides = [1, 1]} : vector<8x128xf32> to vector<8x32xf32>
    %753 = vector.extract_strided_slice %751 {offsets = [0, 32], sizes = [8, 32], strides = [1, 1]} : vector<8x128xf32> to vector<8x32xf32>
    %754 = vector.extract_strided_slice %751 {offsets = [0, 96], sizes = [8, 32], strides = [1, 1]} : vector<8x128xf32> to vector<8x32xf32>
    %755 = vector.extract_strided_slice %731 {offsets = [0, 64], sizes = [8, 32], strides = [1, 1]} : vector<8x128xf32> to vector<8x32xf32>
    %756 = math.tanh %755 : vector<8x32xf32>
    %757 = arith.mulf %753, %719 : vector<8x32xf32>
    %758 = arith.mulf %752, %756 : vector<8x32xf32>
    %759 = arith.addf %757, %758 : vector<8x32xf32>
    %760 = math.tanh %759 : vector<8x32xf32>
    %761 = arith.mulf %754, %760 : vector<8x32xf32>
    %c24_176 = arith.constant 24 : index
    %c0_177 = arith.constant 0 : index
    %762 = vector.load %arg12[%c24_176, %c0_177] : memref<72x32xf32, #tpu.memory_space<vmem>>, vector<8x32xf32>
    tpu.vector_store %arg12[%c24_176, %c0_177], %746 {strides = array<i32>} : memref<72x32xf32, #tpu.memory_space<vmem>>, vector<8x32xf32>,
    %c40_178 = arith.constant 40 : index
    %c0_179 = arith.constant 0 : index
    %763 = vector.load %arg13[%c40_178, %c0_179] : memref<72x32xf32, #tpu.memory_space<vmem>>, vector<8x32xf32>
    tpu.vector_store %arg13[%c40_178, %c0_179], %761 {strides = array<i32>} : memref<72x32xf32, #tpu.memory_space<vmem>>, vector<8x32xf32>,
    %764 = vector.extract_strided_slice %594 {offsets = [32, 0], sizes = [8, 128], strides = [1, 1]} : vector<72x128xf32> to vector<8x128xf32>
    %765 = arith.truncf %746 : vector<8x32xf32> to vector<8x32xbf16>
    %cst_180 = arith.constant dense<0.000000e+00> : vector<8x128xf32>
    %766 = tpu.matmul %765, %598, %cst_180 {dimension_numbers = #tpu.dot_dimension_numbers<[1], [0], [0], [1], [0, 0, 1, 1], [], []>} : vector<8x32xbf16>, vector<32x128xbf16>, vector<8x128xf32> -> vector<8x128xf32>
    %767 = arith.addf %764, %766 : vector<8x128xf32>
    %768 = vector.extract_strided_slice %597 {offsets = [32, 0], sizes = [8, 128], strides = [1, 1]} : vector<72x128xf32> to vector<8x128xf32>
    %769 = arith.truncf %761 : vector<8x32xf32> to vector<8x32xbf16>
    %cst_181 = arith.constant dense<0.000000e+00> : vector<8x128xf32>
    %770 = tpu.matmul %769, %599, %cst_181 {dimension_numbers = #tpu.dot_dimension_numbers<[1], [0], [0], [1], [0, 0, 1, 1], [], []>} : vector<8x32xbf16>, vector<32x128xbf16>, vector<8x128xf32> -> vector<8x128xf32>
    %771 = arith.addf %768, %770 : vector<8x128xf32>
    %772 = arith.negf %767 : vector<8x128xf32>
    %773 = math.exp %772 : vector<8x128xf32>
    %cst_182 = arith.constant 1.000000e+00 : f32
    %774 = vector.broadcast %cst_182 : f32 to vector<8x128xf32>
    %775 = arith.addf %774, %773 : vector<8x128xf32>
    %776 = arith.divf %774, %775 : vector<8x128xf32>
    %777 = vector.extract_strided_slice %776 {offsets = [0, 0], sizes = [8, 32], strides = [1, 1]} : vector<8x128xf32> to vector<8x32xf32>
    %778 = vector.extract_strided_slice %776 {offsets = [0, 32], sizes = [8, 32], strides = [1, 1]} : vector<8x128xf32> to vector<8x32xf32>
    %779 = vector.extract_strided_slice %776 {offsets = [0, 96], sizes = [8, 32], strides = [1, 1]} : vector<8x128xf32> to vector<8x32xf32>
    %780 = vector.extract_strided_slice %767 {offsets = [0, 64], sizes = [8, 32], strides = [1, 1]} : vector<8x128xf32> to vector<8x32xf32>
    %781 = math.tanh %780 : vector<8x32xf32>
    %782 = arith.mulf %778, %744 : vector<8x32xf32>
    %783 = arith.mulf %777, %781 : vector<8x32xf32>
    %784 = arith.addf %782, %783 : vector<8x32xf32>
    %785 = math.tanh %784 : vector<8x32xf32>
    %786 = arith.mulf %779, %785 : vector<8x32xf32>
    %787 = arith.negf %771 : vector<8x128xf32>
    %788 = math.exp %787 : vector<8x128xf32>
    %cst_183 = arith.constant 1.000000e+00 : f32
    %789 = vector.broadcast %cst_183 : f32 to vector<8x128xf32>
    %790 = arith.addf %789, %788 : vector<8x128xf32>
    %791 = arith.divf %789, %790 : vector<8x128xf32>
    %792 = vector.extract_strided_slice %791 {offsets = [0, 0], sizes = [8, 32], strides = [1, 1]} : vector<8x128xf32> to vector<8x32xf32>
    %793 = vector.extract_strided_slice %791 {offsets = [0, 32], sizes = [8, 32], strides = [1, 1]} : vector<8x128xf32> to vector<8x32xf32>
    %794 = vector.extract_strided_slice %791 {offsets = [0, 96], sizes = [8, 32], strides = [1, 1]} : vector<8x128xf32> to vector<8x32xf32>
    %795 = vector.extract_strided_slice %771 {offsets = [0, 64], sizes = [8, 32], strides = [1, 1]} : vector<8x128xf32> to vector<8x32xf32>
    %796 = math.tanh %795 : vector<8x32xf32>
    %797 = arith.mulf %793, %759 : vector<8x32xf32>
    %798 = arith.mulf %792, %796 : vector<8x32xf32>
    %799 = arith.addf %797, %798 : vector<8x32xf32>
    %800 = math.tanh %799 : vector<8x32xf32>
    %801 = arith.mulf %794, %800 : vector<8x32xf32>
    %c32_184 = arith.constant 32 : index
    %c0_185 = arith.constant 0 : index
    %802 = vector.load %arg12[%c32_184, %c0_185] : memref<72x32xf32, #tpu.memory_space<vmem>>, vector<8x32xf32>
    tpu.vector_store %arg12[%c32_184, %c0_185], %786 {strides = array<i32>} : memref<72x32xf32, #tpu.memory_space<vmem>>, vector<8x32xf32>,
    %c32_186 = arith.constant 32 : index
    %c0_187 = arith.constant 0 : index
    %803 = vector.load %arg13[%c32_186, %c0_187] : memref<72x32xf32, #tpu.memory_space<vmem>>, vector<8x32xf32>
    tpu.vector_store %arg13[%c32_186, %c0_187], %801 {strides = array<i32>} : memref<72x32xf32, #tpu.memory_space<vmem>>, vector<8x32xf32>,
    %804 = vector.extract_strided_slice %594 {offsets = [40, 0], sizes = [8, 128], strides = [1, 1]} : vector<72x128xf32> to vector<8x128xf32>
    %805 = arith.truncf %786 : vector<8x32xf32> to vector<8x32xbf16>
    %cst_188 = arith.constant dense<0.000000e+00> : vector<8x128xf32>
    %806 = tpu.matmul %805, %598, %cst_188 {dimension_numbers = #tpu.dot_dimension_numbers<[1], [0], [0], [1], [0, 0, 1, 1], [], []>} : vector<8x32xbf16>, vector<32x128xbf16>, vector<8x128xf32> -> vector<8x128xf32>
    %807 = arith.addf %804, %806 : vector<8x128xf32>
    %808 = vector.extract_strided_slice %597 {offsets = [24, 0], sizes = [8, 128], strides = [1, 1]} : vector<72x128xf32> to vector<8x128xf32>
    %809 = arith.truncf %801 : vector<8x32xf32> to vector<8x32xbf16>
    %cst_189 = arith.constant dense<0.000000e+00> : vector<8x128xf32>
    %810 = tpu.matmul %809, %599, %cst_189 {dimension_numbers = #tpu.dot_dimension_numbers<[1], [0], [0], [1], [0, 0, 1, 1], [], []>} : vector<8x32xbf16>, vector<32x128xbf16>, vector<8x128xf32> -> vector<8x128xf32>
    %811 = arith.addf %808, %810 : vector<8x128xf32>
    %812 = arith.negf %807 : vector<8x128xf32>
    %813 = math.exp %812 : vector<8x128xf32>
    %cst_190 = arith.constant 1.000000e+00 : f32
    %814 = vector.broadcast %cst_190 : f32 to vector<8x128xf32>
    %815 = arith.addf %814, %813 : vector<8x128xf32>
    %816 = arith.divf %814, %815 : vector<8x128xf32>
    %817 = vector.extract_strided_slice %816 {offsets = [0, 0], sizes = [8, 32], strides = [1, 1]} : vector<8x128xf32> to vector<8x32xf32>
    %818 = vector.extract_strided_slice %816 {offsets = [0, 32], sizes = [8, 32], strides = [1, 1]} : vector<8x128xf32> to vector<8x32xf32>
    %819 = vector.extract_strided_slice %816 {offsets = [0, 96], sizes = [8, 32], strides = [1, 1]} : vector<8x128xf32> to vector<8x32xf32>
    %820 = vector.extract_strided_slice %807 {offsets = [0, 64], sizes = [8, 32], strides = [1, 1]} : vector<8x128xf32> to vector<8x32xf32>
    %821 = math.tanh %820 : vector<8x32xf32>
    %822 = arith.mulf %818, %784 : vector<8x32xf32>
    %823 = arith.mulf %817, %821 : vector<8x32xf32>
    %824 = arith.addf %822, %823 : vector<8x32xf32>
    %825 = math.tanh %824 : vector<8x32xf32>
    %826 = arith.mulf %819, %825 : vector<8x32xf32>
    %827 = arith.negf %811 : vector<8x128xf32>
    %828 = math.exp %827 : vector<8x128xf32>
    %cst_191 = arith.constant 1.000000e+00 : f32
    %829 = vector.broadcast %cst_191 : f32 to vector<8x128xf32>
    %830 = arith.addf %829, %828 : vector<8x128xf32>
    %831 = arith.divf %829, %830 : vector<8x128xf32>
    %832 = vector.extract_strided_slice %831 {offsets = [0, 0], sizes = [8, 32], strides = [1, 1]} : vector<8x128xf32> to vector<8x32xf32>
    %833 = vector.extract_strided_slice %831 {offsets = [0, 32], sizes = [8, 32], strides = [1, 1]} : vector<8x128xf32> to vector<8x32xf32>
    %834 = vector.extract_strided_slice %831 {offsets = [0, 96], sizes = [8, 32], strides = [1, 1]} : vector<8x128xf32> to vector<8x32xf32>
    %835 = vector.extract_strided_slice %811 {offsets = [0, 64], sizes = [8, 32], strides = [1, 1]} : vector<8x128xf32> to vector<8x32xf32>
    %836 = math.tanh %835 : vector<8x32xf32>
    %837 = arith.mulf %833, %799 : vector<8x32xf32>
    %838 = arith.mulf %832, %836 : vector<8x32xf32>
    %839 = arith.addf %837, %838 : vector<8x32xf32>
    %840 = math.tanh %839 : vector<8x32xf32>
    %841 = arith.mulf %834, %840 : vector<8x32xf32>
    %c40_192 = arith.constant 40 : index
    %c0_193 = arith.constant 0 : index
    %842 = vector.load %arg12[%c40_192, %c0_193] : memref<72x32xf32, #tpu.memory_space<vmem>>, vector<8x32xf32>
    tpu.vector_store %arg12[%c40_192, %c0_193], %826 {strides = array<i32>} : memref<72x32xf32, #tpu.memory_space<vmem>>, vector<8x32xf32>,
    %c24_194 = arith.constant 24 : index
    %c0_195 = arith.constant 0 : index
    %843 = vector.load %arg13[%c24_194, %c0_195] : memref<72x32xf32, #tpu.memory_space<vmem>>, vector<8x32xf32>
    tpu.vector_store %arg13[%c24_194, %c0_195], %841 {strides = array<i32>} : memref<72x32xf32, #tpu.memory_space<vmem>>, vector<8x32xf32>,
    %844 = vector.extract_strided_slice %594 {offsets = [48, 0], sizes = [8, 128], strides = [1, 1]} : vector<72x128xf32> to vector<8x128xf32>
    %845 = arith.truncf %826 : vector<8x32xf32> to vector<8x32xbf16>
    %cst_196 = arith.constant dense<0.000000e+00> : vector<8x128xf32>
    %846 = tpu.matmul %845, %598, %cst_196 {dimension_numbers = #tpu.dot_dimension_numbers<[1], [0], [0], [1], [0, 0, 1, 1], [], []>} : vector<8x32xbf16>, vector<32x128xbf16>, vector<8x128xf32> -> vector<8x128xf32>
    %847 = arith.addf %844, %846 : vector<8x128xf32>
    %848 = vector.extract_strided_slice %597 {offsets = [16, 0], sizes = [8, 128], strides = [1, 1]} : vector<72x128xf32> to vector<8x128xf32>
    %849 = arith.truncf %841 : vector<8x32xf32> to vector<8x32xbf16>
    %cst_197 = arith.constant dense<0.000000e+00> : vector<8x128xf32>
    %850 = tpu.matmul %849, %599, %cst_197 {dimension_numbers = #tpu.dot_dimension_numbers<[1], [0], [0], [1], [0, 0, 1, 1], [], []>} : vector<8x32xbf16>, vector<32x128xbf16>, vector<8x128xf32> -> vector<8x128xf32>
    %851 = arith.addf %848, %850 : vector<8x128xf32>
    %852 = arith.negf %847 : vector<8x128xf32>
    %853 = math.exp %852 : vector<8x128xf32>
    %cst_198 = arith.constant 1.000000e+00 : f32
    %854 = vector.broadcast %cst_198 : f32 to vector<8x128xf32>
    %855 = arith.addf %854, %853 : vector<8x128xf32>
    %856 = arith.divf %854, %855 : vector<8x128xf32>
    %857 = vector.extract_strided_slice %856 {offsets = [0, 0], sizes = [8, 32], strides = [1, 1]} : vector<8x128xf32> to vector<8x32xf32>
    %858 = vector.extract_strided_slice %856 {offsets = [0, 32], sizes = [8, 32], strides = [1, 1]} : vector<8x128xf32> to vector<8x32xf32>
    %859 = vector.extract_strided_slice %856 {offsets = [0, 96], sizes = [8, 32], strides = [1, 1]} : vector<8x128xf32> to vector<8x32xf32>
    %860 = vector.extract_strided_slice %847 {offsets = [0, 64], sizes = [8, 32], strides = [1, 1]} : vector<8x128xf32> to vector<8x32xf32>
    %861 = math.tanh %860 : vector<8x32xf32>
    %862 = arith.mulf %858, %824 : vector<8x32xf32>
    %863 = arith.mulf %857, %861 : vector<8x32xf32>
    %864 = arith.addf %862, %863 : vector<8x32xf32>
    %865 = math.tanh %864 : vector<8x32xf32>
    %866 = arith.mulf %859, %865 : vector<8x32xf32>
    %867 = arith.negf %851 : vector<8x128xf32>
    %868 = math.exp %867 : vector<8x128xf32>
    %cst_199 = arith.constant 1.000000e+00 : f32
    %869 = vector.broadcast %cst_199 : f32 to vector<8x128xf32>
    %870 = arith.addf %869, %868 : vector<8x128xf32>
    %871 = arith.divf %869, %870 : vector<8x128xf32>
    %872 = vector.extract_strided_slice %871 {offsets = [0, 0], sizes = [8, 32], strides = [1, 1]} : vector<8x128xf32> to vector<8x32xf32>
    %873 = vector.extract_strided_slice %871 {offsets = [0, 32], sizes = [8, 32], strides = [1, 1]} : vector<8x128xf32> to vector<8x32xf32>
    %874 = vector.extract_strided_slice %871 {offsets = [0, 96], sizes = [8, 32], strides = [1, 1]} : vector<8x128xf32> to vector<8x32xf32>
    %875 = vector.extract_strided_slice %851 {offsets = [0, 64], sizes = [8, 32], strides = [1, 1]} : vector<8x128xf32> to vector<8x32xf32>
    %876 = math.tanh %875 : vector<8x32xf32>
    %877 = arith.mulf %873, %839 : vector<8x32xf32>
    %878 = arith.mulf %872, %876 : vector<8x32xf32>
    %879 = arith.addf %877, %878 : vector<8x32xf32>
    %880 = math.tanh %879 : vector<8x32xf32>
    %881 = arith.mulf %874, %880 : vector<8x32xf32>
    %c48_200 = arith.constant 48 : index
    %c0_201 = arith.constant 0 : index
    %882 = vector.load %arg12[%c48_200, %c0_201] : memref<72x32xf32, #tpu.memory_space<vmem>>, vector<8x32xf32>
    tpu.vector_store %arg12[%c48_200, %c0_201], %866 {strides = array<i32>} : memref<72x32xf32, #tpu.memory_space<vmem>>, vector<8x32xf32>,
    %c16_202 = arith.constant 16 : index
    %c0_203 = arith.constant 0 : index
    %883 = vector.load %arg13[%c16_202, %c0_203] : memref<72x32xf32, #tpu.memory_space<vmem>>, vector<8x32xf32>
    tpu.vector_store %arg13[%c16_202, %c0_203], %881 {strides = array<i32>} : memref<72x32xf32, #tpu.memory_space<vmem>>, vector<8x32xf32>,
    %884 = vector.extract_strided_slice %594 {offsets = [56, 0], sizes = [8, 128], strides = [1, 1]} : vector<72x128xf32> to vector<8x128xf32>
    %885 = arith.truncf %866 : vector<8x32xf32> to vector<8x32xbf16>
    %cst_204 = arith.constant dense<0.000000e+00> : vector<8x128xf32>
    %886 = tpu.matmul %885, %598, %cst_204 {dimension_numbers = #tpu.dot_dimension_numbers<[1], [0], [0], [1], [0, 0, 1, 1], [], []>} : vector<8x32xbf16>, vector<32x128xbf16>, vector<8x128xf32> -> vector<8x128xf32>
    %887 = arith.addf %884, %886 : vector<8x128xf32>
    %888 = vector.extract_strided_slice %597 {offsets = [8, 0], sizes = [8, 128], strides = [1, 1]} : vector<72x128xf32> to vector<8x128xf32>
    %889 = arith.truncf %881 : vector<8x32xf32> to vector<8x32xbf16>
    %cst_205 = arith.constant dense<0.000000e+00> : vector<8x128xf32>
    %890 = tpu.matmul %889, %599, %cst_205 {dimension_numbers = #tpu.dot_dimension_numbers<[1], [0], [0], [1], [0, 0, 1, 1], [], []>} : vector<8x32xbf16>, vector<32x128xbf16>, vector<8x128xf32> -> vector<8x128xf32>
    %891 = arith.addf %888, %890 : vector<8x128xf32>
    %892 = arith.negf %887 : vector<8x128xf32>
    %893 = math.exp %892 : vector<8x128xf32>
    %cst_206 = arith.constant 1.000000e+00 : f32
    %894 = vector.broadcast %cst_206 : f32 to vector<8x128xf32>
    %895 = arith.addf %894, %893 : vector<8x128xf32>
    %896 = arith.divf %894, %895 : vector<8x128xf32>
    %897 = vector.extract_strided_slice %896 {offsets = [0, 0], sizes = [8, 32], strides = [1, 1]} : vector<8x128xf32> to vector<8x32xf32>
    %898 = vector.extract_strided_slice %896 {offsets = [0, 32], sizes = [8, 32], strides = [1, 1]} : vector<8x128xf32> to vector<8x32xf32>
    %899 = vector.extract_strided_slice %896 {offsets = [0, 96], sizes = [8, 32], strides = [1, 1]} : vector<8x128xf32> to vector<8x32xf32>
    %900 = vector.extract_strided_slice %887 {offsets = [0, 64], sizes = [8, 32], strides = [1, 1]} : vector<8x128xf32> to vector<8x32xf32>
    %901 = math.tanh %900 : vector<8x32xf32>
    %902 = arith.mulf %898, %864 : vector<8x32xf32>
    %903 = arith.mulf %897, %901 : vector<8x32xf32>
    %904 = arith.addf %902, %903 : vector<8x32xf32>
    %905 = math.tanh %904 : vector<8x32xf32>
    %906 = arith.mulf %899, %905 : vector<8x32xf32>
    %907 = arith.negf %891 : vector<8x128xf32>
    %908 = math.exp %907 : vector<8x128xf32>
    %cst_207 = arith.constant 1.000000e+00 : f32
    %909 = vector.broadcast %cst_207 : f32 to vector<8x128xf32>
    %910 = arith.addf %909, %908 : vector<8x128xf32>
    %911 = arith.divf %909, %910 : vector<8x128xf32>
    %912 = vector.extract_strided_slice %911 {offsets = [0, 0], sizes = [8, 32], strides = [1, 1]} : vector<8x128xf32> to vector<8x32xf32>
    %913 = vector.extract_strided_slice %911 {offsets = [0, 32], sizes = [8, 32], strides = [1, 1]} : vector<8x128xf32> to vector<8x32xf32>
    %914 = vector.extract_strided_slice %911 {offsets = [0, 96], sizes = [8, 32], strides = [1, 1]} : vector<8x128xf32> to vector<8x32xf32>
    %915 = vector.extract_strided_slice %891 {offsets = [0, 64], sizes = [8, 32], strides = [1, 1]} : vector<8x128xf32> to vector<8x32xf32>
    %916 = math.tanh %915 : vector<8x32xf32>
    %917 = arith.mulf %913, %879 : vector<8x32xf32>
    %918 = arith.mulf %912, %916 : vector<8x32xf32>
    %919 = arith.addf %917, %918 : vector<8x32xf32>
    %920 = math.tanh %919 : vector<8x32xf32>
    %921 = arith.mulf %914, %920 : vector<8x32xf32>
    %c56_208 = arith.constant 56 : index
    %c0_209 = arith.constant 0 : index
    %922 = vector.load %arg12[%c56_208, %c0_209] : memref<72x32xf32, #tpu.memory_space<vmem>>, vector<8x32xf32>
    tpu.vector_store %arg12[%c56_208, %c0_209], %906 {strides = array<i32>} : memref<72x32xf32, #tpu.memory_space<vmem>>, vector<8x32xf32>,
    %c8_210 = arith.constant 8 : index
    %c0_211 = arith.constant 0 : index
    %923 = vector.load %arg13[%c8_210, %c0_211] : memref<72x32xf32, #tpu.memory_space<vmem>>, vector<8x32xf32>
    tpu.vector_store %arg13[%c8_210, %c0_211], %921 {strides = array<i32>} : memref<72x32xf32, #tpu.memory_space<vmem>>, vector<8x32xf32>,
    %924 = vector.extract_strided_slice %594 {offsets = [64, 0], sizes = [8, 128], strides = [1, 1]} : vector<72x128xf32> to vector<8x128xf32>
    %925 = arith.truncf %906 : vector<8x32xf32> to vector<8x32xbf16>
    %cst_212 = arith.constant dense<0.000000e+00> : vector<8x128xf32>
    %926 = tpu.matmul %925, %598, %cst_212 {dimension_numbers = #tpu.dot_dimension_numbers<[1], [0], [0], [1], [0, 0, 1, 1], [], []>} : vector<8x32xbf16>, vector<32x128xbf16>, vector<8x128xf32> -> vector<8x128xf32>
    %927 = arith.addf %924, %926 : vector<8x128xf32>
    %928 = vector.extract_strided_slice %597 {offsets = [0, 0], sizes = [8, 128], strides = [1, 1]} : vector<72x128xf32> to vector<8x128xf32>
    %929 = arith.truncf %921 : vector<8x32xf32> to vector<8x32xbf16>
    %cst_213 = arith.constant dense<0.000000e+00> : vector<8x128xf32>
    %930 = tpu.matmul %929, %599, %cst_213 {dimension_numbers = #tpu.dot_dimension_numbers<[1], [0], [0], [1], [0, 0, 1, 1], [], []>} : vector<8x32xbf16>, vector<32x128xbf16>, vector<8x128xf32> -> vector<8x128xf32>
    %931 = arith.addf %928, %930 : vector<8x128xf32>
    %932 = arith.negf %927 : vector<8x128xf32>
    %933 = math.exp %932 : vector<8x128xf32>
    %cst_214 = arith.constant 1.000000e+00 : f32
    %934 = vector.broadcast %cst_214 : f32 to vector<8x128xf32>
    %935 = arith.addf %934, %933 : vector<8x128xf32>
    %936 = arith.divf %934, %935 : vector<8x128xf32>
    %937 = vector.extract_strided_slice %936 {offsets = [0, 0], sizes = [8, 32], strides = [1, 1]} : vector<8x128xf32> to vector<8x32xf32>
    %938 = vector.extract_strided_slice %936 {offsets = [0, 32], sizes = [8, 32], strides = [1, 1]} : vector<8x128xf32> to vector<8x32xf32>
    %939 = vector.extract_strided_slice %936 {offsets = [0, 96], sizes = [8, 32], strides = [1, 1]} : vector<8x128xf32> to vector<8x32xf32>
    %940 = vector.extract_strided_slice %927 {offsets = [0, 64], sizes = [8, 32], strides = [1, 1]} : vector<8x128xf32> to vector<8x32xf32>
    %941 = math.tanh %940 : vector<8x32xf32>
    %942 = arith.mulf %938, %904 : vector<8x32xf32>
    %943 = arith.mulf %937, %941 : vector<8x32xf32>
    %944 = arith.addf %942, %943 : vector<8x32xf32>
    %945 = math.tanh %944 : vector<8x32xf32>
    %946 = arith.mulf %939, %945 : vector<8x32xf32>
    %947 = arith.negf %931 : vector<8x128xf32>
    %948 = math.exp %947 : vector<8x128xf32>
    %cst_215 = arith.constant 1.000000e+00 : f32
    %949 = vector.broadcast %cst_215 : f32 to vector<8x128xf32>
    %950 = arith.addf %949, %948 : vector<8x128xf32>
    %951 = arith.divf %949, %950 : vector<8x128xf32>
    %952 = vector.extract_strided_slice %951 {offsets = [0, 0], sizes = [8, 32], strides = [1, 1]} : vector<8x128xf32> to vector<8x32xf32>
    %953 = vector.extract_strided_slice %951 {offsets = [0, 32], sizes = [8, 32], strides = [1, 1]} : vector<8x128xf32> to vector<8x32xf32>
    %954 = vector.extract_strided_slice %951 {offsets = [0, 96], sizes = [8, 32], strides = [1, 1]} : vector<8x128xf32> to vector<8x32xf32>
    %955 = vector.extract_strided_slice %931 {offsets = [0, 64], sizes = [8, 32], strides = [1, 1]} : vector<8x128xf32> to vector<8x32xf32>
    %956 = math.tanh %955 : vector<8x32xf32>
    %957 = arith.mulf %953, %919 : vector<8x32xf32>
    %958 = arith.mulf %952, %956 : vector<8x32xf32>
    %959 = arith.addf %957, %958 : vector<8x32xf32>
    %960 = math.tanh %959 : vector<8x32xf32>
    %961 = arith.mulf %954, %960 : vector<8x32xf32>
    %c64_216 = arith.constant 64 : index
    %c0_217 = arith.constant 0 : index
    %962 = vector.load %arg12[%c64_216, %c0_217] : memref<72x32xf32, #tpu.memory_space<vmem>>, vector<8x32xf32>
    tpu.vector_store %arg12[%c64_216, %c0_217], %946 {strides = array<i32>} : memref<72x32xf32, #tpu.memory_space<vmem>>, vector<8x32xf32>,
    %c0_218 = arith.constant 0 : index
    %c0_219 = arith.constant 0 : index
    %963 = vector.load %arg13[%c0_218, %c0_219] : memref<72x32xf32, #tpu.memory_space<vmem>>, vector<8x32xf32>
    tpu.vector_store %arg13[%c0_218, %c0_219], %961 {strides = array<i32>} : memref<72x32xf32, #tpu.memory_space<vmem>>, vector<8x32xf32>,
    %c0_220 = arith.constant 0 : index
    %c0_221 = arith.constant 0 : index
    %964 = vector.load %arg12[%c0_220, %c0_221] : memref<72x32xf32, #tpu.memory_space<vmem>>, vector<72x32xf32>
    %c0_222 = arith.constant 0 : index
    %c0_223 = arith.constant 0 : index
    %965 = vector.load %arg13[%c0_222, %c0_223] : memref<72x32xf32, #tpu.memory_space<vmem>>, vector<72x32xf32>
    %c128_224 = arith.constant 128 : index
    %c0_225 = arith.constant 0 : index
    %966 = vector.load %arg3[%c128_224, %c0_225] : memref<320x128xbf16, #tpu.memory_space<vmem>>, vector<32x128xbf16>
    %967 = arith.truncf %964 : vector<72x32xf32> to vector<72x32xbf16>
    %cst_226 = arith.constant dense<0.000000e+00> : vector<72x128xf32>
    %968 = tpu.matmul %967, %966, %cst_226 {dimension_numbers = #tpu.dot_dimension_numbers<[1], [0], [0], [1], [0, 0, 1, 1], [], []>} : vector<72x32xbf16>, vector<32x128xbf16>, vector<72x128xf32> -> vector<72x128xf32>
    %c160_227 = arith.constant 160 : index
    %c0_228 = arith.constant 0 : index
    %969 = vector.load %arg3[%c160_227, %c0_228] : memref<320x128xbf16, #tpu.memory_space<vmem>>, vector<32x128xbf16>
    %970 = arith.truncf %965 : vector<72x32xf32> to vector<72x32xbf16>
    %cst_229 = arith.constant dense<0.000000e+00> : vector<72x128xf32>
    %971 = tpu.matmul %970, %969, %cst_229 {dimension_numbers = #tpu.dot_dimension_numbers<[1], [0], [0], [1], [0, 0, 1, 1], [], []>} : vector<72x32xbf16>, vector<32x128xbf16>, vector<72x128xf32> -> vector<72x128xf32>
    %972 = arith.addf %968, %971 : vector<72x128xf32>
    %c192 = arith.constant 192 : index
    %c0_230 = arith.constant 0 : index
    %973 = vector.load %arg3[%c192, %c0_230] : memref<320x128xbf16, #tpu.memory_space<vmem>>, vector<32x128xbf16>
    %974 = arith.truncf %964 : vector<72x32xf32> to vector<72x32xbf16>
    %cst_231 = arith.constant dense<0.000000e+00> : vector<72x128xf32>
    %975 = tpu.matmul %974, %973, %cst_231 {dimension_numbers = #tpu.dot_dimension_numbers<[1], [0], [0], [1], [0, 0, 1, 1], [], []>} : vector<72x32xbf16>, vector<32x128xbf16>, vector<72x128xf32> -> vector<72x128xf32>
    %c224 = arith.constant 224 : index
    %c0_232 = arith.constant 0 : index
    %976 = vector.load %arg3[%c224, %c0_232] : memref<320x128xbf16, #tpu.memory_space<vmem>>, vector<32x128xbf16>
    %977 = arith.truncf %965 : vector<72x32xf32> to vector<72x32xbf16>
    %cst_233 = arith.constant dense<0.000000e+00> : vector<72x128xf32>
    %978 = tpu.matmul %977, %976, %cst_233 {dimension_numbers = #tpu.dot_dimension_numbers<[1], [0], [0], [1], [0, 0, 1, 1], [], []>} : vector<72x32xbf16>, vector<32x128xbf16>, vector<72x128xf32> -> vector<72x128xf32>
    %979 = arith.addf %975, %978 : vector<72x128xf32>
    %c256 = arith.constant 256 : index
    %c0_234 = arith.constant 0 : index
    %980 = vector.load %arg3[%c256, %c0_234] : memref<320x128xbf16, #tpu.memory_space<vmem>>, vector<32x128xbf16>
    %c288 = arith.constant 288 : index
    %c0_235 = arith.constant 0 : index
    %981 = vector.load %arg3[%c288, %c0_235] : memref<320x128xbf16, #tpu.memory_space<vmem>>, vector<32x128xbf16>
    %cst_236 = arith.constant 0.000000e+00 : f32
    %982 = vector.broadcast %cst_236 : f32 to vector<8x32xf32>
    %cst_237 = arith.constant 0.000000e+00 : f32
    %983 = vector.broadcast %cst_237 : f32 to vector<8x32xf32>
    %cst_238 = arith.constant 0.000000e+00 : f32
    %984 = vector.broadcast %cst_238 : f32 to vector<8x32xf32>
    %cst_239 = arith.constant 0.000000e+00 : f32
    %985 = vector.broadcast %cst_239 : f32 to vector<8x32xf32>
    %cst_240 = arith.constant 0.000000e+00 : f32
    %986 = vector.broadcast %cst_240 : f32 to vector<8x32xf32>
    %cst_241 = arith.constant 0.000000e+00 : f32
    %987 = vector.broadcast %cst_241 : f32 to vector<8x32xf32>
    %988 = vector.extract_strided_slice %972 {offsets = [0, 0], sizes = [8, 128], strides = [1, 1]} : vector<72x128xf32> to vector<8x128xf32>
    %989 = arith.truncf %982 : vector<8x32xf32> to vector<8x32xbf16>
    %cst_242 = arith.constant dense<0.000000e+00> : vector<8x128xf32>
    %990 = tpu.matmul %989, %980, %cst_242 {dimension_numbers = #tpu.dot_dimension_numbers<[1], [0], [0], [1], [0, 0, 1, 1], [], []>} : vector<8x32xbf16>, vector<32x128xbf16>, vector<8x128xf32> -> vector<8x128xf32>
    %991 = arith.addf %988, %990 : vector<8x128xf32>
    %992 = vector.extract_strided_slice %979 {offsets = [64, 0], sizes = [8, 128], strides = [1, 1]} : vector<72x128xf32> to vector<8x128xf32>
    %993 = arith.truncf %984 : vector<8x32xf32> to vector<8x32xbf16>
    %cst_243 = arith.constant dense<0.000000e+00> : vector<8x128xf32>
    %994 = tpu.matmul %993, %981, %cst_243 {dimension_numbers = #tpu.dot_dimension_numbers<[1], [0], [0], [1], [0, 0, 1, 1], [], []>} : vector<8x32xbf16>, vector<32x128xbf16>, vector<8x128xf32> -> vector<8x128xf32>
    %995 = arith.addf %992, %994 : vector<8x128xf32>
    %996 = arith.negf %991 : vector<8x128xf32>
    %997 = math.exp %996 : vector<8x128xf32>
    %cst_244 = arith.constant 1.000000e+00 : f32
    %998 = vector.broadcast %cst_244 : f32 to vector<8x128xf32>
    %999 = arith.addf %998, %997 : vector<8x128xf32>
    %1000 = arith.divf %998, %999 : vector<8x128xf32>
    %1001 = vector.extract_strided_slice %1000 {offsets = [0, 0], sizes = [8, 32], strides = [1, 1]} : vector<8x128xf32> to vector<8x32xf32>
    %1002 = vector.extract_strided_slice %1000 {offsets = [0, 32], sizes = [8, 32], strides = [1, 1]} : vector<8x128xf32> to vector<8x32xf32>
    %1003 = vector.extract_strided_slice %1000 {offsets = [0, 96], sizes = [8, 32], strides = [1, 1]} : vector<8x128xf32> to vector<8x32xf32>
    %1004 = vector.extract_strided_slice %991 {offsets = [0, 64], sizes = [8, 32], strides = [1, 1]} : vector<8x128xf32> to vector<8x32xf32>
    %1005 = math.tanh %1004 : vector<8x32xf32>
    %1006 = arith.mulf %1002, %983 : vector<8x32xf32>
    %1007 = arith.mulf %1001, %1005 : vector<8x32xf32>
    %1008 = arith.addf %1006, %1007 : vector<8x32xf32>
    %1009 = math.tanh %1008 : vector<8x32xf32>
    %1010 = arith.mulf %1003, %1009 : vector<8x32xf32>
    %1011 = arith.negf %995 : vector<8x128xf32>
    %1012 = math.exp %1011 : vector<8x128xf32>
    %cst_245 = arith.constant 1.000000e+00 : f32
    %1013 = vector.broadcast %cst_245 : f32 to vector<8x128xf32>
    %1014 = arith.addf %1013, %1012 : vector<8x128xf32>
    %1015 = arith.divf %1013, %1014 : vector<8x128xf32>
    %1016 = vector.extract_strided_slice %1015 {offsets = [0, 0], sizes = [8, 32], strides = [1, 1]} : vector<8x128xf32> to vector<8x32xf32>
    %1017 = vector.extract_strided_slice %1015 {offsets = [0, 32], sizes = [8, 32], strides = [1, 1]} : vector<8x128xf32> to vector<8x32xf32>
    %1018 = vector.extract_strided_slice %1015 {offsets = [0, 96], sizes = [8, 32], strides = [1, 1]} : vector<8x128xf32> to vector<8x32xf32>
    %1019 = vector.extract_strided_slice %995 {offsets = [0, 64], sizes = [8, 32], strides = [1, 1]} : vector<8x128xf32> to vector<8x32xf32>
    %1020 = math.tanh %1019 : vector<8x32xf32>
    %1021 = arith.mulf %1017, %985 : vector<8x32xf32>
    %1022 = arith.mulf %1016, %1020 : vector<8x32xf32>
    %1023 = arith.addf %1021, %1022 : vector<8x32xf32>
    %1024 = math.tanh %1023 : vector<8x32xf32>
    %1025 = arith.mulf %1018, %1024 : vector<8x32xf32>
    %1026 = arith.addf %986, %1010 : vector<8x32xf32>
    %1027 = arith.addf %987, %1025 : vector<8x32xf32>
    %1028 = vector.extract_strided_slice %972 {offsets = [8, 0], sizes = [8, 128], strides = [1, 1]} : vector<72x128xf32> to vector<8x128xf32>
    %1029 = arith.truncf %1010 : vector<8x32xf32> to vector<8x32xbf16>
    %cst_246 = arith.constant dense<0.000000e+00> : vector<8x128xf32>
    %1030 = tpu.matmul %1029, %980, %cst_246 {dimension_numbers = #tpu.dot_dimension_numbers<[1], [0], [0], [1], [0, 0, 1, 1], [], []>} : vector<8x32xbf16>, vector<32x128xbf16>, vector<8x128xf32> -> vector<8x128xf32>
    %1031 = arith.addf %1028, %1030 : vector<8x128xf32>
    %1032 = vector.extract_strided_slice %979 {offsets = [56, 0], sizes = [8, 128], strides = [1, 1]} : vector<72x128xf32> to vector<8x128xf32>
    %1033 = arith.truncf %1025 : vector<8x32xf32> to vector<8x32xbf16>
    %cst_247 = arith.constant dense<0.000000e+00> : vector<8x128xf32>
    %1034 = tpu.matmul %1033, %981, %cst_247 {dimension_numbers = #tpu.dot_dimension_numbers<[1], [0], [0], [1], [0, 0, 1, 1], [], []>} : vector<8x32xbf16>, vector<32x128xbf16>, vector<8x128xf32> -> vector<8x128xf32>
    %1035 = arith.addf %1032, %1034 : vector<8x128xf32>
    %1036 = arith.negf %1031 : vector<8x128xf32>
    %1037 = math.exp %1036 : vector<8x128xf32>
    %cst_248 = arith.constant 1.000000e+00 : f32
    %1038 = vector.broadcast %cst_248 : f32 to vector<8x128xf32>
    %1039 = arith.addf %1038, %1037 : vector<8x128xf32>
    %1040 = arith.divf %1038, %1039 : vector<8x128xf32>
    %1041 = vector.extract_strided_slice %1040 {offsets = [0, 0], sizes = [8, 32], strides = [1, 1]} : vector<8x128xf32> to vector<8x32xf32>
    %1042 = vector.extract_strided_slice %1040 {offsets = [0, 32], sizes = [8, 32], strides = [1, 1]} : vector<8x128xf32> to vector<8x32xf32>
    %1043 = vector.extract_strided_slice %1040 {offsets = [0, 96], sizes = [8, 32], strides = [1, 1]} : vector<8x128xf32> to vector<8x32xf32>
    %1044 = vector.extract_strided_slice %1031 {offsets = [0, 64], sizes = [8, 32], strides = [1, 1]} : vector<8x128xf32> to vector<8x32xf32>
    %1045 = math.tanh %1044 : vector<8x32xf32>
    %1046 = arith.mulf %1042, %1008 : vector<8x32xf32>
    %1047 = arith.mulf %1041, %1045 : vector<8x32xf32>
    %1048 = arith.addf %1046, %1047 : vector<8x32xf32>
    %1049 = math.tanh %1048 : vector<8x32xf32>
    %1050 = arith.mulf %1043, %1049 : vector<8x32xf32>
    %1051 = arith.negf %1035 : vector<8x128xf32>
    %1052 = math.exp %1051 : vector<8x128xf32>
    %cst_249 = arith.constant 1.000000e+00 : f32
    %1053 = vector.broadcast %cst_249 : f32 to vector<8x128xf32>
    %1054 = arith.addf %1053, %1052 : vector<8x128xf32>
    %1055 = arith.divf %1053, %1054 : vector<8x128xf32>
    %1056 = vector.extract_strided_slice %1055 {offsets = [0, 0], sizes = [8, 32], strides = [1, 1]} : vector<8x128xf32> to vector<8x32xf32>
    %1057 = vector.extract_strided_slice %1055 {offsets = [0, 32], sizes = [8, 32], strides = [1, 1]} : vector<8x128xf32> to vector<8x32xf32>
    %1058 = vector.extract_strided_slice %1055 {offsets = [0, 96], sizes = [8, 32], strides = [1, 1]} : vector<8x128xf32> to vector<8x32xf32>
    %1059 = vector.extract_strided_slice %1035 {offsets = [0, 64], sizes = [8, 32], strides = [1, 1]} : vector<8x128xf32> to vector<8x32xf32>
    %1060 = math.tanh %1059 : vector<8x32xf32>
    %1061 = arith.mulf %1057, %1023 : vector<8x32xf32>
    %1062 = arith.mulf %1056, %1060 : vector<8x32xf32>
    %1063 = arith.addf %1061, %1062 : vector<8x32xf32>
    %1064 = math.tanh %1063 : vector<8x32xf32>
    %1065 = arith.mulf %1058, %1064 : vector<8x32xf32>
    %1066 = arith.addf %1026, %1050 : vector<8x32xf32>
    %1067 = arith.addf %1027, %1065 : vector<8x32xf32>
    %1068 = vector.extract_strided_slice %972 {offsets = [16, 0], sizes = [8, 128], strides = [1, 1]} : vector<72x128xf32> to vector<8x128xf32>
    %1069 = arith.truncf %1050 : vector<8x32xf32> to vector<8x32xbf16>
    %cst_250 = arith.constant dense<0.000000e+00> : vector<8x128xf32>
    %1070 = tpu.matmul %1069, %980, %cst_250 {dimension_numbers = #tpu.dot_dimension_numbers<[1], [0], [0], [1], [0, 0, 1, 1], [], []>} : vector<8x32xbf16>, vector<32x128xbf16>, vector<8x128xf32> -> vector<8x128xf32>
    %1071 = arith.addf %1068, %1070 : vector<8x128xf32>
    %1072 = vector.extract_strided_slice %979 {offsets = [48, 0], sizes = [8, 128], strides = [1, 1]} : vector<72x128xf32> to vector<8x128xf32>
    %1073 = arith.truncf %1065 : vector<8x32xf32> to vector<8x32xbf16>
    %cst_251 = arith.constant dense<0.000000e+00> : vector<8x128xf32>
    %1074 = tpu.matmul %1073, %981, %cst_251 {dimension_numbers = #tpu.dot_dimension_numbers<[1], [0], [0], [1], [0, 0, 1, 1], [], []>} : vector<8x32xbf16>, vector<32x128xbf16>, vector<8x128xf32> -> vector<8x128xf32>
    %1075 = arith.addf %1072, %1074 : vector<8x128xf32>
    %1076 = arith.negf %1071 : vector<8x128xf32>
    %1077 = math.exp %1076 : vector<8x128xf32>
    %cst_252 = arith.constant 1.000000e+00 : f32
    %1078 = vector.broadcast %cst_252 : f32 to vector<8x128xf32>
    %1079 = arith.addf %1078, %1077 : vector<8x128xf32>
    %1080 = arith.divf %1078, %1079 : vector<8x128xf32>
    %1081 = vector.extract_strided_slice %1080 {offsets = [0, 0], sizes = [8, 32], strides = [1, 1]} : vector<8x128xf32> to vector<8x32xf32>
    %1082 = vector.extract_strided_slice %1080 {offsets = [0, 32], sizes = [8, 32], strides = [1, 1]} : vector<8x128xf32> to vector<8x32xf32>
    %1083 = vector.extract_strided_slice %1080 {offsets = [0, 96], sizes = [8, 32], strides = [1, 1]} : vector<8x128xf32> to vector<8x32xf32>
    %1084 = vector.extract_strided_slice %1071 {offsets = [0, 64], sizes = [8, 32], strides = [1, 1]} : vector<8x128xf32> to vector<8x32xf32>
    %1085 = math.tanh %1084 : vector<8x32xf32>
    %1086 = arith.mulf %1082, %1048 : vector<8x32xf32>
    %1087 = arith.mulf %1081, %1085 : vector<8x32xf32>
    %1088 = arith.addf %1086, %1087 : vector<8x32xf32>
    %1089 = math.tanh %1088 : vector<8x32xf32>
    %1090 = arith.mulf %1083, %1089 : vector<8x32xf32>
    %1091 = arith.negf %1075 : vector<8x128xf32>
    %1092 = math.exp %1091 : vector<8x128xf32>
    %cst_253 = arith.constant 1.000000e+00 : f32
    %1093 = vector.broadcast %cst_253 : f32 to vector<8x128xf32>
    %1094 = arith.addf %1093, %1092 : vector<8x128xf32>
    %1095 = arith.divf %1093, %1094 : vector<8x128xf32>
    %1096 = vector.extract_strided_slice %1095 {offsets = [0, 0], sizes = [8, 32], strides = [1, 1]} : vector<8x128xf32> to vector<8x32xf32>
    %1097 = vector.extract_strided_slice %1095 {offsets = [0, 32], sizes = [8, 32], strides = [1, 1]} : vector<8x128xf32> to vector<8x32xf32>
    %1098 = vector.extract_strided_slice %1095 {offsets = [0, 96], sizes = [8, 32], strides = [1, 1]} : vector<8x128xf32> to vector<8x32xf32>
    %1099 = vector.extract_strided_slice %1075 {offsets = [0, 64], sizes = [8, 32], strides = [1, 1]} : vector<8x128xf32> to vector<8x32xf32>
    %1100 = math.tanh %1099 : vector<8x32xf32>
    %1101 = arith.mulf %1097, %1063 : vector<8x32xf32>
    %1102 = arith.mulf %1096, %1100 : vector<8x32xf32>
    %1103 = arith.addf %1101, %1102 : vector<8x32xf32>
    %1104 = math.tanh %1103 : vector<8x32xf32>
    %1105 = arith.mulf %1098, %1104 : vector<8x32xf32>
    %1106 = arith.addf %1066, %1090 : vector<8x32xf32>
    %1107 = arith.addf %1067, %1105 : vector<8x32xf32>
    %1108 = vector.extract_strided_slice %972 {offsets = [24, 0], sizes = [8, 128], strides = [1, 1]} : vector<72x128xf32> to vector<8x128xf32>
    %1109 = arith.truncf %1090 : vector<8x32xf32> to vector<8x32xbf16>
    %cst_254 = arith.constant dense<0.000000e+00> : vector<8x128xf32>
    %1110 = tpu.matmul %1109, %980, %cst_254 {dimension_numbers = #tpu.dot_dimension_numbers<[1], [0], [0], [1], [0, 0, 1, 1], [], []>} : vector<8x32xbf16>, vector<32x128xbf16>, vector<8x128xf32> -> vector<8x128xf32>
    %1111 = arith.addf %1108, %1110 : vector<8x128xf32>
    %1112 = vector.extract_strided_slice %979 {offsets = [40, 0], sizes = [8, 128], strides = [1, 1]} : vector<72x128xf32> to vector<8x128xf32>
    %1113 = arith.truncf %1105 : vector<8x32xf32> to vector<8x32xbf16>
    %cst_255 = arith.constant dense<0.000000e+00> : vector<8x128xf32>
    %1114 = tpu.matmul %1113, %981, %cst_255 {dimension_numbers = #tpu.dot_dimension_numbers<[1], [0], [0], [1], [0, 0, 1, 1], [], []>} : vector<8x32xbf16>, vector<32x128xbf16>, vector<8x128xf32> -> vector<8x128xf32>
    %1115 = arith.addf %1112, %1114 : vector<8x128xf32>
    %1116 = arith.negf %1111 : vector<8x128xf32>
    %1117 = math.exp %1116 : vector<8x128xf32>
    %cst_256 = arith.constant 1.000000e+00 : f32
    %1118 = vector.broadcast %cst_256 : f32 to vector<8x128xf32>
    %1119 = arith.addf %1118, %1117 : vector<8x128xf32>
    %1120 = arith.divf %1118, %1119 : vector<8x128xf32>
    %1121 = vector.extract_strided_slice %1120 {offsets = [0, 0], sizes = [8, 32], strides = [1, 1]} : vector<8x128xf32> to vector<8x32xf32>
    %1122 = vector.extract_strided_slice %1120 {offsets = [0, 32], sizes = [8, 32], strides = [1, 1]} : vector<8x128xf32> to vector<8x32xf32>
    %1123 = vector.extract_strided_slice %1120 {offsets = [0, 96], sizes = [8, 32], strides = [1, 1]} : vector<8x128xf32> to vector<8x32xf32>
    %1124 = vector.extract_strided_slice %1111 {offsets = [0, 64], sizes = [8, 32], strides = [1, 1]} : vector<8x128xf32> to vector<8x32xf32>
    %1125 = math.tanh %1124 : vector<8x32xf32>
    %1126 = arith.mulf %1122, %1088 : vector<8x32xf32>
    %1127 = arith.mulf %1121, %1125 : vector<8x32xf32>
    %1128 = arith.addf %1126, %1127 : vector<8x32xf32>
    %1129 = math.tanh %1128 : vector<8x32xf32>
    %1130 = arith.mulf %1123, %1129 : vector<8x32xf32>
    %1131 = arith.negf %1115 : vector<8x128xf32>
    %1132 = math.exp %1131 : vector<8x128xf32>
    %cst_257 = arith.constant 1.000000e+00 : f32
    %1133 = vector.broadcast %cst_257 : f32 to vector<8x128xf32>
    %1134 = arith.addf %1133, %1132 : vector<8x128xf32>
    %1135 = arith.divf %1133, %1134 : vector<8x128xf32>
    %1136 = vector.extract_strided_slice %1135 {offsets = [0, 0], sizes = [8, 32], strides = [1, 1]} : vector<8x128xf32> to vector<8x32xf32>
    %1137 = vector.extract_strided_slice %1135 {offsets = [0, 32], sizes = [8, 32], strides = [1, 1]} : vector<8x128xf32> to vector<8x32xf32>
    %1138 = vector.extract_strided_slice %1135 {offsets = [0, 96], sizes = [8, 32], strides = [1, 1]} : vector<8x128xf32> to vector<8x32xf32>
    %1139 = vector.extract_strided_slice %1115 {offsets = [0, 64], sizes = [8, 32], strides = [1, 1]} : vector<8x128xf32> to vector<8x32xf32>
    %1140 = math.tanh %1139 : vector<8x32xf32>
    %1141 = arith.mulf %1137, %1103 : vector<8x32xf32>
    %1142 = arith.mulf %1136, %1140 : vector<8x32xf32>
    %1143 = arith.addf %1141, %1142 : vector<8x32xf32>
    %1144 = math.tanh %1143 : vector<8x32xf32>
    %1145 = arith.mulf %1138, %1144 : vector<8x32xf32>
    %1146 = arith.addf %1106, %1130 : vector<8x32xf32>
    %1147 = arith.addf %1107, %1145 : vector<8x32xf32>
    %1148 = vector.extract_strided_slice %972 {offsets = [32, 0], sizes = [8, 128], strides = [1, 1]} : vector<72x128xf32> to vector<8x128xf32>
    %1149 = arith.truncf %1130 : vector<8x32xf32> to vector<8x32xbf16>
    %cst_258 = arith.constant dense<0.000000e+00> : vector<8x128xf32>
    %1150 = tpu.matmul %1149, %980, %cst_258 {dimension_numbers = #tpu.dot_dimension_numbers<[1], [0], [0], [1], [0, 0, 1, 1], [], []>} : vector<8x32xbf16>, vector<32x128xbf16>, vector<8x128xf32> -> vector<8x128xf32>
    %1151 = arith.addf %1148, %1150 : vector<8x128xf32>
    %1152 = vector.extract_strided_slice %979 {offsets = [32, 0], sizes = [8, 128], strides = [1, 1]} : vector<72x128xf32> to vector<8x128xf32>
    %1153 = arith.truncf %1145 : vector<8x32xf32> to vector<8x32xbf16>
    %cst_259 = arith.constant dense<0.000000e+00> : vector<8x128xf32>
    %1154 = tpu.matmul %1153, %981, %cst_259 {dimension_numbers = #tpu.dot_dimension_numbers<[1], [0], [0], [1], [0, 0, 1, 1], [], []>} : vector<8x32xbf16>, vector<32x128xbf16>, vector<8x128xf32> -> vector<8x128xf32>
    %1155 = arith.addf %1152, %1154 : vector<8x128xf32>
    %1156 = arith.negf %1151 : vector<8x128xf32>
    %1157 = math.exp %1156 : vector<8x128xf32>
    %cst_260 = arith.constant 1.000000e+00 : f32
    %1158 = vector.broadcast %cst_260 : f32 to vector<8x128xf32>
    %1159 = arith.addf %1158, %1157 : vector<8x128xf32>
    %1160 = arith.divf %1158, %1159 : vector<8x128xf32>
    %1161 = vector.extract_strided_slice %1160 {offsets = [0, 0], sizes = [8, 32], strides = [1, 1]} : vector<8x128xf32> to vector<8x32xf32>
    %1162 = vector.extract_strided_slice %1160 {offsets = [0, 32], sizes = [8, 32], strides = [1, 1]} : vector<8x128xf32> to vector<8x32xf32>
    %1163 = vector.extract_strided_slice %1160 {offsets = [0, 96], sizes = [8, 32], strides = [1, 1]} : vector<8x128xf32> to vector<8x32xf32>
    %1164 = vector.extract_strided_slice %1151 {offsets = [0, 64], sizes = [8, 32], strides = [1, 1]} : vector<8x128xf32> to vector<8x32xf32>
    %1165 = math.tanh %1164 : vector<8x32xf32>
    %1166 = arith.mulf %1162, %1128 : vector<8x32xf32>
    %1167 = arith.mulf %1161, %1165 : vector<8x32xf32>
    %1168 = arith.addf %1166, %1167 : vector<8x32xf32>
    %1169 = math.tanh %1168 : vector<8x32xf32>
    %1170 = arith.mulf %1163, %1169 : vector<8x32xf32>
    %1171 = arith.negf %1155 : vector<8x128xf32>
    %1172 = math.exp %1171 : vector<8x128xf32>
    %cst_261 = arith.constant 1.000000e+00 : f32
    %1173 = vector.broadcast %cst_261 : f32 to vector<8x128xf32>
    %1174 = arith.addf %1173, %1172 : vector<8x128xf32>
    %1175 = arith.divf %1173, %1174 : vector<8x128xf32>
    %1176 = vector.extract_strided_slice %1175 {offsets = [0, 0], sizes = [8, 32], strides = [1, 1]} : vector<8x128xf32> to vector<8x32xf32>
    %1177 = vector.extract_strided_slice %1175 {offsets = [0, 32], sizes = [8, 32], strides = [1, 1]} : vector<8x128xf32> to vector<8x32xf32>
    %1178 = vector.extract_strided_slice %1175 {offsets = [0, 96], sizes = [8, 32], strides = [1, 1]} : vector<8x128xf32> to vector<8x32xf32>
    %1179 = vector.extract_strided_slice %1155 {offsets = [0, 64], sizes = [8, 32], strides = [1, 1]} : vector<8x128xf32> to vector<8x32xf32>
    %1180 = math.tanh %1179 : vector<8x32xf32>
    %1181 = arith.mulf %1177, %1143 : vector<8x32xf32>
    %1182 = arith.mulf %1176, %1180 : vector<8x32xf32>
    %1183 = arith.addf %1181, %1182 : vector<8x32xf32>
    %1184 = math.tanh %1183 : vector<8x32xf32>
    %1185 = arith.mulf %1178, %1184 : vector<8x32xf32>
    %1186 = arith.addf %1146, %1170 : vector<8x32xf32>
    %1187 = arith.addf %1147, %1185 : vector<8x32xf32>
    %1188 = vector.extract_strided_slice %972 {offsets = [40, 0], sizes = [8, 128], strides = [1, 1]} : vector<72x128xf32> to vector<8x128xf32>
    %1189 = arith.truncf %1170 : vector<8x32xf32> to vector<8x32xbf16>
    %cst_262 = arith.constant dense<0.000000e+00> : vector<8x128xf32>
    %1190 = tpu.matmul %1189, %980, %cst_262 {dimension_numbers = #tpu.dot_dimension_numbers<[1], [0], [0], [1], [0, 0, 1, 1], [], []>} : vector<8x32xbf16>, vector<32x128xbf16>, vector<8x128xf32> -> vector<8x128xf32>
    %1191 = arith.addf %1188, %1190 : vector<8x128xf32>
    %1192 = vector.extract_strided_slice %979 {offsets = [24, 0], sizes = [8, 128], strides = [1, 1]} : vector<72x128xf32> to vector<8x128xf32>
    %1193 = arith.truncf %1185 : vector<8x32xf32> to vector<8x32xbf16>
    %cst_263 = arith.constant dense<0.000000e+00> : vector<8x128xf32>
    %1194 = tpu.matmul %1193, %981, %cst_263 {dimension_numbers = #tpu.dot_dimension_numbers<[1], [0], [0], [1], [0, 0, 1, 1], [], []>} : vector<8x32xbf16>, vector<32x128xbf16>, vector<8x128xf32> -> vector<8x128xf32>
    %1195 = arith.addf %1192, %1194 : vector<8x128xf32>
    %1196 = arith.negf %1191 : vector<8x128xf32>
    %1197 = math.exp %1196 : vector<8x128xf32>
    %cst_264 = arith.constant 1.000000e+00 : f32
    %1198 = vector.broadcast %cst_264 : f32 to vector<8x128xf32>
    %1199 = arith.addf %1198, %1197 : vector<8x128xf32>
    %1200 = arith.divf %1198, %1199 : vector<8x128xf32>
    %1201 = vector.extract_strided_slice %1200 {offsets = [0, 0], sizes = [8, 32], strides = [1, 1]} : vector<8x128xf32> to vector<8x32xf32>
    %1202 = vector.extract_strided_slice %1200 {offsets = [0, 32], sizes = [8, 32], strides = [1, 1]} : vector<8x128xf32> to vector<8x32xf32>
    %1203 = vector.extract_strided_slice %1200 {offsets = [0, 96], sizes = [8, 32], strides = [1, 1]} : vector<8x128xf32> to vector<8x32xf32>
    %1204 = vector.extract_strided_slice %1191 {offsets = [0, 64], sizes = [8, 32], strides = [1, 1]} : vector<8x128xf32> to vector<8x32xf32>
    %1205 = math.tanh %1204 : vector<8x32xf32>
    %1206 = arith.mulf %1202, %1168 : vector<8x32xf32>
    %1207 = arith.mulf %1201, %1205 : vector<8x32xf32>
    %1208 = arith.addf %1206, %1207 : vector<8x32xf32>
    %1209 = math.tanh %1208 : vector<8x32xf32>
    %1210 = arith.mulf %1203, %1209 : vector<8x32xf32>
    %1211 = arith.negf %1195 : vector<8x128xf32>
    %1212 = math.exp %1211 : vector<8x128xf32>
    %cst_265 = arith.constant 1.000000e+00 : f32
    %1213 = vector.broadcast %cst_265 : f32 to vector<8x128xf32>
    %1214 = arith.addf %1213, %1212 : vector<8x128xf32>
    %1215 = arith.divf %1213, %1214 : vector<8x128xf32>
    %1216 = vector.extract_strided_slice %1215 {offsets = [0, 0], sizes = [8, 32], strides = [1, 1]} : vector<8x128xf32> to vector<8x32xf32>
    %1217 = vector.extract_strided_slice %1215 {offsets = [0, 32], sizes = [8, 32], strides = [1, 1]} : vector<8x128xf32> to vector<8x32xf32>
    %1218 = vector.extract_strided_slice %1215 {offsets = [0, 96], sizes = [8, 32], strides = [1, 1]} : vector<8x128xf32> to vector<8x32xf32>
    %1219 = vector.extract_strided_slice %1195 {offsets = [0, 64], sizes = [8, 32], strides = [1, 1]} : vector<8x128xf32> to vector<8x32xf32>
    %1220 = math.tanh %1219 : vector<8x32xf32>
    %1221 = arith.mulf %1217, %1183 : vector<8x32xf32>
    %1222 = arith.mulf %1216, %1220 : vector<8x32xf32>
    %1223 = arith.addf %1221, %1222 : vector<8x32xf32>
    %1224 = math.tanh %1223 : vector<8x32xf32>
    %1225 = arith.mulf %1218, %1224 : vector<8x32xf32>
    %1226 = arith.addf %1186, %1210 : vector<8x32xf32>
    %1227 = arith.addf %1187, %1225 : vector<8x32xf32>
    %1228 = vector.extract_strided_slice %972 {offsets = [48, 0], sizes = [8, 128], strides = [1, 1]} : vector<72x128xf32> to vector<8x128xf32>
    %1229 = arith.truncf %1210 : vector<8x32xf32> to vector<8x32xbf16>
    %cst_266 = arith.constant dense<0.000000e+00> : vector<8x128xf32>
    %1230 = tpu.matmul %1229, %980, %cst_266 {dimension_numbers = #tpu.dot_dimension_numbers<[1], [0], [0], [1], [0, 0, 1, 1], [], []>} : vector<8x32xbf16>, vector<32x128xbf16>, vector<8x128xf32> -> vector<8x128xf32>
    %1231 = arith.addf %1228, %1230 : vector<8x128xf32>
    %1232 = vector.extract_strided_slice %979 {offsets = [16, 0], sizes = [8, 128], strides = [1, 1]} : vector<72x128xf32> to vector<8x128xf32>
    %1233 = arith.truncf %1225 : vector<8x32xf32> to vector<8x32xbf16>
    %cst_267 = arith.constant dense<0.000000e+00> : vector<8x128xf32>
    %1234 = tpu.matmul %1233, %981, %cst_267 {dimension_numbers = #tpu.dot_dimension_numbers<[1], [0], [0], [1], [0, 0, 1, 1], [], []>} : vector<8x32xbf16>, vector<32x128xbf16>, vector<8x128xf32> -> vector<8x128xf32>
    %1235 = arith.addf %1232, %1234 : vector<8x128xf32>
    %1236 = arith.negf %1231 : vector<8x128xf32>
    %1237 = math.exp %1236 : vector<8x128xf32>
    %cst_268 = arith.constant 1.000000e+00 : f32
    %1238 = vector.broadcast %cst_268 : f32 to vector<8x128xf32>
    %1239 = arith.addf %1238, %1237 : vector<8x128xf32>
    %1240 = arith.divf %1238, %1239 : vector<8x128xf32>
    %1241 = vector.extract_strided_slice %1240 {offsets = [0, 0], sizes = [8, 32], strides = [1, 1]} : vector<8x128xf32> to vector<8x32xf32>
    %1242 = vector.extract_strided_slice %1240 {offsets = [0, 32], sizes = [8, 32], strides = [1, 1]} : vector<8x128xf32> to vector<8x32xf32>
    %1243 = vector.extract_strided_slice %1240 {offsets = [0, 96], sizes = [8, 32], strides = [1, 1]} : vector<8x128xf32> to vector<8x32xf32>
    %1244 = vector.extract_strided_slice %1231 {offsets = [0, 64], sizes = [8, 32], strides = [1, 1]} : vector<8x128xf32> to vector<8x32xf32>
    %1245 = math.tanh %1244 : vector<8x32xf32>
    %1246 = arith.mulf %1242, %1208 : vector<8x32xf32>
    %1247 = arith.mulf %1241, %1245 : vector<8x32xf32>
    %1248 = arith.addf %1246, %1247 : vector<8x32xf32>
    %1249 = math.tanh %1248 : vector<8x32xf32>
    %1250 = arith.mulf %1243, %1249 : vector<8x32xf32>
    %1251 = arith.negf %1235 : vector<8x128xf32>
    %1252 = math.exp %1251 : vector<8x128xf32>
    %cst_269 = arith.constant 1.000000e+00 : f32
    %1253 = vector.broadcast %cst_269 : f32 to vector<8x128xf32>
    %1254 = arith.addf %1253, %1252 : vector<8x128xf32>
    %1255 = arith.divf %1253, %1254 : vector<8x128xf32>
    %1256 = vector.extract_strided_slice %1255 {offsets = [0, 0], sizes = [8, 32], strides = [1, 1]} : vector<8x128xf32> to vector<8x32xf32>
    %1257 = vector.extract_strided_slice %1255 {offsets = [0, 32], sizes = [8, 32], strides = [1, 1]} : vector<8x128xf32> to vector<8x32xf32>
    %1258 = vector.extract_strided_slice %1255 {offsets = [0, 96], sizes = [8, 32], strides = [1, 1]} : vector<8x128xf32> to vector<8x32xf32>
    %1259 = vector.extract_strided_slice %1235 {offsets = [0, 64], sizes = [8, 32], strides = [1, 1]} : vector<8x128xf32> to vector<8x32xf32>
    %1260 = math.tanh %1259 : vector<8x32xf32>
    %1261 = arith.mulf %1257, %1223 : vector<8x32xf32>
    %1262 = arith.mulf %1256, %1260 : vector<8x32xf32>
    %1263 = arith.addf %1261, %1262 : vector<8x32xf32>
    %1264 = math.tanh %1263 : vector<8x32xf32>
    %1265 = arith.mulf %1258, %1264 : vector<8x32xf32>
    %1266 = arith.addf %1226, %1250 : vector<8x32xf32>
    %1267 = arith.addf %1227, %1265 : vector<8x32xf32>
    %1268 = vector.extract_strided_slice %972 {offsets = [56, 0], sizes = [8, 128], strides = [1, 1]} : vector<72x128xf32> to vector<8x128xf32>
    %1269 = arith.truncf %1250 : vector<8x32xf32> to vector<8x32xbf16>
    %cst_270 = arith.constant dense<0.000000e+00> : vector<8x128xf32>
    %1270 = tpu.matmul %1269, %980, %cst_270 {dimension_numbers = #tpu.dot_dimension_numbers<[1], [0], [0], [1], [0, 0, 1, 1], [], []>} : vector<8x32xbf16>, vector<32x128xbf16>, vector<8x128xf32> -> vector<8x128xf32>
    %1271 = arith.addf %1268, %1270 : vector<8x128xf32>
    %1272 = vector.extract_strided_slice %979 {offsets = [8, 0], sizes = [8, 128], strides = [1, 1]} : vector<72x128xf32> to vector<8x128xf32>
    %1273 = arith.truncf %1265 : vector<8x32xf32> to vector<8x32xbf16>
    %cst_271 = arith.constant dense<0.000000e+00> : vector<8x128xf32>
    %1274 = tpu.matmul %1273, %981, %cst_271 {dimension_numbers = #tpu.dot_dimension_numbers<[1], [0], [0], [1], [0, 0, 1, 1], [], []>} : vector<8x32xbf16>, vector<32x128xbf16>, vector<8x128xf32> -> vector<8x128xf32>
    %1275 = arith.addf %1272, %1274 : vector<8x128xf32>
    %1276 = arith.negf %1271 : vector<8x128xf32>
    %1277 = math.exp %1276 : vector<8x128xf32>
    %cst_272 = arith.constant 1.000000e+00 : f32
    %1278 = vector.broadcast %cst_272 : f32 to vector<8x128xf32>
    %1279 = arith.addf %1278, %1277 : vector<8x128xf32>
    %1280 = arith.divf %1278, %1279 : vector<8x128xf32>
    %1281 = vector.extract_strided_slice %1280 {offsets = [0, 0], sizes = [8, 32], strides = [1, 1]} : vector<8x128xf32> to vector<8x32xf32>
    %1282 = vector.extract_strided_slice %1280 {offsets = [0, 32], sizes = [8, 32], strides = [1, 1]} : vector<8x128xf32> to vector<8x32xf32>
    %1283 = vector.extract_strided_slice %1280 {offsets = [0, 96], sizes = [8, 32], strides = [1, 1]} : vector<8x128xf32> to vector<8x32xf32>
    %1284 = vector.extract_strided_slice %1271 {offsets = [0, 64], sizes = [8, 32], strides = [1, 1]} : vector<8x128xf32> to vector<8x32xf32>
    %1285 = math.tanh %1284 : vector<8x32xf32>
    %1286 = arith.mulf %1282, %1248 : vector<8x32xf32>
    %1287 = arith.mulf %1281, %1285 : vector<8x32xf32>
    %1288 = arith.addf %1286, %1287 : vector<8x32xf32>
    %1289 = math.tanh %1288 : vector<8x32xf32>
    %1290 = arith.mulf %1283, %1289 : vector<8x32xf32>
    %1291 = arith.negf %1275 : vector<8x128xf32>
    %1292 = math.exp %1291 : vector<8x128xf32>
    %cst_273 = arith.constant 1.000000e+00 : f32
    %1293 = vector.broadcast %cst_273 : f32 to vector<8x128xf32>
    %1294 = arith.addf %1293, %1292 : vector<8x128xf32>
    %1295 = arith.divf %1293, %1294 : vector<8x128xf32>
    %1296 = vector.extract_strided_slice %1295 {offsets = [0, 0], sizes = [8, 32], strides = [1, 1]} : vector<8x128xf32> to vector<8x32xf32>
    %1297 = vector.extract_strided_slice %1295 {offsets = [0, 32], sizes = [8, 32], strides = [1, 1]} : vector<8x128xf32> to vector<8x32xf32>
    %1298 = vector.extract_strided_slice %1295 {offsets = [0, 96], sizes = [8, 32], strides = [1, 1]} : vector<8x128xf32> to vector<8x32xf32>
    %1299 = vector.extract_strided_slice %1275 {offsets = [0, 64], sizes = [8, 32], strides = [1, 1]} : vector<8x128xf32> to vector<8x32xf32>
    %1300 = math.tanh %1299 : vector<8x32xf32>
    %1301 = arith.mulf %1297, %1263 : vector<8x32xf32>
    %1302 = arith.mulf %1296, %1300 : vector<8x32xf32>
    %1303 = arith.addf %1301, %1302 : vector<8x32xf32>
    %1304 = math.tanh %1303 : vector<8x32xf32>
    %1305 = arith.mulf %1298, %1304 : vector<8x32xf32>
    %1306 = arith.addf %1266, %1290 : vector<8x32xf32>
    %1307 = arith.addf %1267, %1305 : vector<8x32xf32>
    %1308 = vector.extract_strided_slice %972 {offsets = [64, 0], sizes = [8, 128], strides = [1, 1]} : vector<72x128xf32> to vector<8x128xf32>
    %1309 = arith.truncf %1290 : vector<8x32xf32> to vector<8x32xbf16>
    %cst_274 = arith.constant dense<0.000000e+00> : vector<8x128xf32>
    %1310 = tpu.matmul %1309, %980, %cst_274 {dimension_numbers = #tpu.dot_dimension_numbers<[1], [0], [0], [1], [0, 0, 1, 1], [], []>} : vector<8x32xbf16>, vector<32x128xbf16>, vector<8x128xf32> -> vector<8x128xf32>
    %1311 = arith.addf %1308, %1310 : vector<8x128xf32>
    %1312 = vector.extract_strided_slice %979 {offsets = [0, 0], sizes = [8, 128], strides = [1, 1]} : vector<72x128xf32> to vector<8x128xf32>
    %1313 = arith.truncf %1305 : vector<8x32xf32> to vector<8x32xbf16>
    %cst_275 = arith.constant dense<0.000000e+00> : vector<8x128xf32>
    %1314 = tpu.matmul %1313, %981, %cst_275 {dimension_numbers = #tpu.dot_dimension_numbers<[1], [0], [0], [1], [0, 0, 1, 1], [], []>} : vector<8x32xbf16>, vector<32x128xbf16>, vector<8x128xf32> -> vector<8x128xf32>
    %1315 = arith.addf %1312, %1314 : vector<8x128xf32>
    %1316 = arith.negf %1311 : vector<8x128xf32>
    %1317 = math.exp %1316 : vector<8x128xf32>
    %cst_276 = arith.constant 1.000000e+00 : f32
    %1318 = vector.broadcast %cst_276 : f32 to vector<8x128xf32>
    %1319 = arith.addf %1318, %1317 : vector<8x128xf32>
    %1320 = arith.divf %1318, %1319 : vector<8x128xf32>
    %1321 = vector.extract_strided_slice %1320 {offsets = [0, 0], sizes = [8, 32], strides = [1, 1]} : vector<8x128xf32> to vector<8x32xf32>
    %1322 = vector.extract_strided_slice %1320 {offsets = [0, 32], sizes = [8, 32], strides = [1, 1]} : vector<8x128xf32> to vector<8x32xf32>
    %1323 = vector.extract_strided_slice %1320 {offsets = [0, 96], sizes = [8, 32], strides = [1, 1]} : vector<8x128xf32> to vector<8x32xf32>
    %1324 = vector.extract_strided_slice %1311 {offsets = [0, 64], sizes = [8, 32], strides = [1, 1]} : vector<8x128xf32> to vector<8x32xf32>
    %1325 = math.tanh %1324 : vector<8x32xf32>
    %1326 = arith.mulf %1322, %1288 : vector<8x32xf32>
    %1327 = arith.mulf %1321, %1325 : vector<8x32xf32>
    %1328 = arith.addf %1326, %1327 : vector<8x32xf32>
    %1329 = math.tanh %1328 : vector<8x32xf32>
    %1330 = arith.mulf %1323, %1329 : vector<8x32xf32>
    %1331 = arith.negf %1315 : vector<8x128xf32>
    %1332 = math.exp %1331 : vector<8x128xf32>
    %cst_277 = arith.constant 1.000000e+00 : f32
    %1333 = vector.broadcast %cst_277 : f32 to vector<8x128xf32>
    %1334 = arith.addf %1333, %1332 : vector<8x128xf32>
    %1335 = arith.divf %1333, %1334 : vector<8x128xf32>
    %1336 = vector.extract_strided_slice %1335 {offsets = [0, 0], sizes = [8, 32], strides = [1, 1]} : vector<8x128xf32> to vector<8x32xf32>
    %1337 = vector.extract_strided_slice %1335 {offsets = [0, 32], sizes = [8, 32], strides = [1, 1]} : vector<8x128xf32> to vector<8x32xf32>
    %1338 = vector.extract_strided_slice %1335 {offsets = [0, 96], sizes = [8, 32], strides = [1, 1]} : vector<8x128xf32> to vector<8x32xf32>
    %1339 = vector.extract_strided_slice %1315 {offsets = [0, 64], sizes = [8, 32], strides = [1, 1]} : vector<8x128xf32> to vector<8x32xf32>
    %1340 = math.tanh %1339 : vector<8x32xf32>
    %1341 = arith.mulf %1337, %1303 : vector<8x32xf32>
    %1342 = arith.mulf %1336, %1340 : vector<8x32xf32>
    %1343 = arith.addf %1341, %1342 : vector<8x32xf32>
    %1344 = math.tanh %1343 : vector<8x32xf32>
    %1345 = arith.mulf %1338, %1344 : vector<8x32xf32>
    %1346 = arith.addf %1306, %1330 : vector<8x32xf32>
    %1347 = arith.addf %1307, %1345 : vector<8x32xf32>
    %cst_278 = arith.constant 0.111111112 : f32
    %1348 = vector.broadcast %cst_278 : f32 to vector<8x32xf32>
    %1349 = arith.mulf %1346, %1348 : vector<8x32xf32>
    %c0_279 = arith.constant 0 : index
    %c0_280 = arith.constant 0 : index
    %1350 = vector.load %arg6[%c0_279, %c0_280] : memref<64x5xbf16, #tpu.memory_space<vmem>>, vector<32x5xbf16>
    %1351 = arith.truncf %1349 : vector<8x32xf32> to vector<8x32xbf16>
    %cst_281 = arith.constant dense<0.000000e+00> : vector<8x5xf32>
    %1352 = tpu.matmul %1351, %1350, %cst_281 {dimension_numbers = #tpu.dot_dimension_numbers<[1], [0], [0], [1], [0, 0, 1, 1], [], []>} : vector<8x32xbf16>, vector<32x5xbf16>, vector<8x5xf32> -> vector<8x5xf32>
    %cst_282 = arith.constant 0.111111112 : f32
    %1353 = vector.broadcast %cst_282 : f32 to vector<8x32xf32>
    %1354 = arith.mulf %1347, %1353 : vector<8x32xf32>
    %c32_283 = arith.constant 32 : index
    %c0_284 = arith.constant 0 : index
    %1355 = vector.load %arg6[%c32_283, %c0_284] : memref<64x5xbf16, #tpu.memory_space<vmem>>, vector<32x5xbf16>
    %1356 = arith.truncf %1354 : vector<8x32xf32> to vector<8x32xbf16>
    %cst_285 = arith.constant dense<0.000000e+00> : vector<8x5xf32>
    %1357 = tpu.matmul %1356, %1355, %cst_285 {dimension_numbers = #tpu.dot_dimension_numbers<[1], [0], [0], [1], [0, 0, 1, 1], [], []>} : vector<8x32xbf16>, vector<32x5xbf16>, vector<8x5xf32> -> vector<8x5xf32>
    %1358 = arith.addf %1352, %1357 : vector<8x5xf32>
    %c0_286 = arith.constant 0 : index
    %c0_287 = arith.constant 0 : index
    %1359 = vector.load %arg7[%c0_286, %c0_287] : memref<1x5xf32, #tpu.memory_space<vmem>>, vector<1x5xf32>
    %1360 = vector.broadcast %1359 : vector<1x5xf32> to vector<8x5xf32>
    %1361 = arith.addf %1358, %1360 : vector<8x5xf32>
    %c0_288 = arith.constant 0 : index
    %c0_289 = arith.constant 0 : index
    %1362 = vector.load %arg8[%c0_288, %c0_289] : memref<8x5xf32, #tpu.memory_space<vmem>>, vector<8x5xf32>
    tpu.vector_store %arg8[%c0_288, %c0_289], %1361 {strides = array<i32>} : memref<8x5xf32, #tpu.memory_space<vmem>>, vector<8x5xf32>,
    return
  }
}

</mosaic_0001>

<bundles_post_ra>
// kernel: _lambda_.1
= control target key start
LH: loop header
LB: loop body
LE: loop exit
PB: predicated region body
PF: predicated region fallthrough
CT: control target
= control target key end

     0   :  { %13 = vsyncpa [#allocation8], 0  ;;  %s8035_s27 = smov [#allocation7]   ;;  %s9755_s0 = inlined_call_operand.vmem [shape: s32[64,1], index: 0, kind: input, shape index: {}]   ;;  %s9756_s1 = inlined_call_operand.vmem [shape: bf16[50,32], index: 1, kind: input, shape index: {}]   ;;  %s9757_s2 = inlined_call_operand.hbm [shape: bf16[192,128], index: 2, kind: input, shape index: {}]   ;;  %s9758_s3 = inlined_call_operand.vmem [shape: bf16[320,128], index: 3, kind: input, shape index: {}]   ;;  %s9759_s4 = inlined_call_operand.vmem [shape: bf16[64,32], index: 4, kind: input, shape index: {}]   ;;  %s9760_s5 = inlined_call_operand.vmem [shape: f32[8,32], index: 5, kind: input, shape index: {}]   ;;  %s9761_s6 = inlined_call_operand.vmem [shape: bf16[64,5], index: 6, kind: input, shape index: {}]   ;;  %s9762_s7 = inlined_call_operand.vmem [shape: f32[1,5], index: 7, kind: input, shape index: {}]   ;;  %s9763_s8 = inlined_call_operand.vmem [shape: f32[8,5], index: 8, kind: output, shape index: {}]  }
   0x1   :  { %s23_s28 = sshll.u32 %s8035_s27, 4  ;;  %s24_s28 = int_to_ptr.vmem [resolvable:$true] %s23_s28 }
   0x2   :  { %s8021_s29 = scalar_lea.vmem %s24_s28, 1536  ;;  %p8026_p1 = scmp.lt.s32.totalorder %s24_s28, %s24_s28 }
   0x3   :  { %p8022_p0 = scmp.ne.s32.totalorder %s24_s28, %s8021_s29  ;;  %p8027_p2 = scmp.lt.s32.totalorder %s8021_s29, %s8021_s29 }
   0x5   :  { %p8028_p3 = por %p8027_p2, %p8026_p1 }
   0x7   :  { %p8029_p4 = pnand %p8028_p3, %p8022_p0 }
   0x9   :  { %8032 = shalt.err (!%p8029_p4)
}
   0xa   :  { %s8036_s30 = smov 64   ;;  %s8037_s9 = smov 4  }
   0xb   :  { %29 = dma.hbm_to_vmem [thread:$0]  %s9757_s2, 1536, %s24_s28, [#allocation8], %s8036_s30, %s8036_s30, %s8037_s9  }
   0xc   :  { %8033 = dma.done.wait [#allocation8], 1536  }
   0xd   :  { %8034 = vsyncadd [#allocation8], 4294965760  ;;  %v8038_v0 = vmov 0   ;;  %v46_v1 = vld [vmem:[%s9755_s0 + $0x10] sm:$0xff]  ;;  %v44_v2 = vld [vmem:[%s9755_s0] sm:$0xff]  ;;  %vm147_vm0 = vcmask 1040384   ;;  %v52_v15 = vlaneseq }
   0xe   :  { %7446 = vset.pattern.permute.xlu1 %v8038_v0  ;;  %7445 = vset.pattern.permute.xlu0 %v8038_v0  ;;  %v47_v3 = vld [vmem:[%s9755_s0 + $0x18] sm:$0xff]  ;;  %v45_v4 = vld [vmem:[%s9755_s0 + $0x8] sm:$0xff]  ;;  %v7448_v6 = vld [vmem:[%s9756_s1 + $0x10] sm:$0xff]   ;;  %v8039_v14 = vmov 0.0   ;;  %vm134_vm5 = vcmask 408576   ;;  %vm8040_vm10 = vmmov 0  }
   0xf   :  { %61 = vperm.xlu1 %7446, %v46_v1   ;;  %55 = vperm.xlu0 %7445, %v44_v2   ;;  %v7447_v5 = vld [vmem:[%s9756_s1 + $0x18] ss:$0 sps:$4 sm:$0x11]   ;;  %v49_v7 = vld [vmem:[%s9755_s0 + $0x28] sm:$0xff]  ;;  %v48_v8 = vld [vmem:[%s9755_s0 + $0x20] sm:$0xff]  ;;  %v53_v16 = vand.u32 127, %v52_v15 }
  0x10   :  { %v149_v9 = vsel %vm147_vm0, %v7447_v5, 0  ;;  %7437 = vmatprep.subr.msk.bf16.mxu0 %vm147_vm0, %v7447_v5  ;;  %v7449_v10 = vld [vmem:[%s9756_s1 + $0x8] sm:$0xff]   ;;  %v51_v11 = vld [vmem:[%s9755_s0 + $0x38] sm:$0xff]  ;;  %v50_v12 = vld [vmem:[%s9755_s0 + $0x30] sm:$0xff]  ;;  %vm216_vm11 = vcmask 261120   ;;  %s8041_s0 = smov 32  }
  0x11   :  { %6726 = vmatpush3.bf16.msra.mxu0 %v149_v9  ;;  %v7450_v13 = vld [vmem:[%s9756_s1] sm:$0xff]   ;;  %v7452_v38 = vld [vmem:[#allocation7] sm:$0xff]   ;;  %v8144_v39 = vld [vmem:[#allocation7 + $0x18] sm:$0xff]   ;;  %vm6233_vm12 = vcmask 39936  }
  0x12   :  { %6727 = vmatprep.subr.bf16.mxu0 %v7448_v6  ;;  %v7451_v37 = vld [vmem:[#allocation7 + $0x8] sm:$0xff]   ;;  %v8148_v40 = vld [vmem:[#allocation7 + $0x10] sm:$0xff]  }
  0x13   :  { %64 = vperm.xlu1 %7446, %v47_v3   ;;  %58 = vperm.xlu0 %7445, %v45_v4  }
  0x14   :  { %6741 = vmatprep.subr.bf16.mxu1 %v7451_v37 }
  0x15   :  { %6728 = vmatpush3.bf16.msra.mxu0 %v7448_v6  ;;  %6742 = vmatpush3.bf16.msra.mxu1 %v7451_v37 }
  0x16   :  { %6729 = vmatprep.subr.bf16.mxu0 %v7449_v10  ;;  %6743 = vmatprep.subr.bf16.mxu1 %v7452_v38 }
  0x17   :  { %70 = vperm.xlu1 %7446, %v49_v7   ;;  %67 = vperm.xlu0 %7445, %v48_v8  }
  0x19   :  { %6730 = vmatpush3.bf16.msra.mxu0 %v7449_v10  ;;  %6744 = vmatpush3.bf16.msra.mxu1 %v7452_v38 }
  0x1a   :  { %6731 = vmatprep.subr.bf16.mxu0 %v7450_v13  ;;  %6753 = vmatprep.subr.bf16.mxu1 %v8039_v14 }
  0x1b   :  { %76 = vperm.xlu1 %7446, %v51_v11   ;;  %73 = vperm.xlu0 %7445, %v50_v12  }
  0x1d   :  { %6732 = vmatpush3.bf16.msra.mxu0 %v7450_v13 }
  0x1e   :  { %6761 = vmatprep.subr.bf16.mxu0 %v8039_v14 }
  0x8a   :  { %v62_v17 = vpop.permute.xlu1 %61  ;;  %v56_v18 = vpop.permute.xlu0 %55 }
  0x8b   :  { %vm80_vm1 = vcmp.eq.s32.totalorder %v53_v16, %v62_v17  ;;  %vm78_vm2 = vcmp.eq.s32.totalorder %v53_v16, %v56_v18 }
  0x8c   :  { %v6242_v21 = vsel %vm80_vm1, 1.0, %v8039_v14  ;;  %v6240_v23 = vsel %vm78_vm2, 1.0, %v8039_v14 }
  0x8e   :  { %v65_v19 = vpop.permute.xlu1 %64  ;;  %v59_v20 = vpop.permute.xlu0 %58 }
  0x8f   :  { %vm81_vm3 = vcmp.eq.s32.totalorder %v53_v16, %v65_v19  ;;  %vm79_vm4 = vcmp.eq.s32.totalorder %v53_v16, %v59_v20 }
  0x90   :  { %v6243_v22 = vsel %vm81_vm3, 1.0, %v8039_v14  ;;  %v6241_v24 = vsel %vm79_vm4, 1.0, %v8039_v14 }
  0x91   :  { %v103_v25 = vpack.c.bf16 %v6243_v22, %v6242_v21  ;;  %v102_v26 = vpack.c.bf16 %v6241_v24, %v6240_v23 }
  0x92   :  { %v71_v27 = vpop.permute.xlu1 %70  ;;  %v68_v28 = vpop.permute.xlu0 %67 }
  0x93   :  { %vm83_vm6 = vcmp.eq.s32.totalorder %v53_v16, %v71_v27  ;;  %vm82_vm7 = vcmp.eq.s32.totalorder %v53_v16, %v68_v28  ;;  %6733 = vmatprep.mubr.msk.bf16.mxu0 %vm134_vm5, %v102_v26 }
  0x94   :  { %v6245_v29 = vsel %vm83_vm6, 1.0, %v8039_v14  ;;  %v6244_v30 = vsel %vm82_vm7, 1.0, %v8039_v14  ;;  %6734 = vmatmul.mubr.msk.bf16.vlgmr.msra.gmra.mxu0 %vm134_vm5, %v103_v25 }
  0x95   :  { %v104_v31 = vpack.c.bf16 %v6245_v29, %v6244_v30  ;;  %6762 = vmatpush3.bf16.msra.mxu0 %v8144_v39 }
  0x96   :  { %v77_v32 = vpop.permute.xlu1 %76  ;;  %v74_v33 = vpop.permute.xlu0 %73  ;;  %6763 = vmatprep.subr.bf16.mxu0 %v8039_v14 }
  0x97   :  { %vm85_vm8 = vcmp.eq.s32.totalorder %v53_v16, %v77_v32  ;;  %vm84_vm9 = vcmp.eq.s32.totalorder %v53_v16, %v74_v33  ;;  %6737 = vmatprep.mubr.msk.bf16.mxu0 %vm134_vm5, %v104_v31 }
  0x98   :  { %v6247_v34 = vsel %vm85_vm8, 1.0, %v8039_v14  ;;  %v6246_v35 = vsel %vm84_vm9, 1.0, %v8039_v14 }
  0x99   :  { %v105_v36 = vpack.c.bf16 %v6247_v34, %v6246_v35  ;;  %6764 = vmatpush3.bf16.msra.mxu0 %v8148_v40 }
  0x9a   :  { %6777 = vmatprep.subr.bf16.mxu0 %v8039_v14 }
  0x9c   :  { %6738 = vmatmul.mubr.msk.bf16.gmra.mxu0 %vm134_vm5, %v105_v36 }
  0x9d   :  { %6765 = vmatprep.mubr.msk.bf16.mxu0 %vm8040_vm10, %v8039_v14 }
 0x154   :  { %v6735_v41 = vpop.f32.mrf.mxu0 }
 0x155   :  { %219 = vst.msk [vmem:[#allocation2 + $0x18] sm:$0xff] %vm216_vm11, %v6735_v41 }
 0x156   :  { %v185_v42 = vpop.f32.mrf.mxu0 }
 0x157   :  { %217 = vst.msk [vmem:[#allocation2 + $0x8] sm:$0xff] %vm216_vm11, %v185_v42 }
 0x158   :  { %v6736_v43 = vpop.f32.mrf.mxu0 }
 0x159   :  { %220 = vst.msk [vmem:[#allocation2 + $0x20] sm:$0xff] %vm216_vm11, %v6736_v43  ;;  %v234_v46 = vpack.c.bf16 %v6736_v43, %v6735_v41 }
 0x15a   :  { %v188_v44 = vpop.f32.mrf.mxu0 }
 0x15b   :  { %218 = vst.msk [vmem:[#allocation2 + $0x10] sm:$0xff] %vm216_vm11, %v188_v44  ;;  %v233_v45 = vpack.c.bf16 %v188_v44, %v185_v42 }
 0x15c   :  { %v6739_v47 = vpop.f32.mrf.mxu0 }
 0x15d   :  { %223 = vst.msk [vmem:[#allocation2 + $0x38] sm:$0xff] %vm216_vm11, %v6739_v47  ;;  %6745 = vmatprep.mubr.msk.bf16.mxu1 %vm216_vm11, %v233_v45 }
 0x15e   :  { %v201_v48 = vpop.f32.mrf.mxu0  ;;  %6746 = vmatmul.mubr.msk.bf16.vlgmr.msra.gmra.mxu1 %vm216_vm11, %v234_v46 }
 0x15f   :  { %221 = vst.msk [vmem:[#allocation2 + $0x28] sm:$0xff] %vm216_vm11, %v201_v48  ;;  %6754 = vmatpush3.bf16.msra.mxu1 %v8144_v39 }
 0x160   :  { %v6740_v49 = vpop.f32.mrf.mxu0  ;;  %6755 = vmatprep.subr.bf16.mxu1 %v8039_v14 }
 0x161   :  { %224 = vst.msk [vmem:[#allocation2 + $0x40] sm:$0xff] %vm216_vm11, %v6740_v49  ;;  %v236_v52 = vpack.c.bf16 %v6740_v49, %v6739_v47 }
 0x162   :  { %v204_v50 = vpop.f32.mrf.mxu0 }
 0x163   :  { %222 = vst.msk [vmem:[#allocation2 + $0x30] sm:$0xff] %vm216_vm11, %v204_v50  ;;  %v235_v51 = vpack.c.bf16 %v204_v50, %v201_v48  ;;  %6756 = vmatpush3.bf16.msra.mxu1 %v8148_v40 }
 0x164   :  { %6769 = vmatprep.subr.bf16.mxu1 %v8039_v14 }
 0x165   :  { %6749 = vmatprep.mubr.msk.bf16.mxu1 %vm216_vm11, %v235_v51 }
 0x166   :  { %6750 = vmatmul.mubr.msk.bf16.gmra.mxu1 %vm216_vm11, %v236_v52 }
 0x167   :  { %6757 = vmatprep.mubr.msk.bf16.mxu1 %vm8040_vm10, %v8039_v14 }
 0x16e   :  { %6758 = vmatmul.mubr.bf16.vlgmr.msra.gmra.mxu1 %v8038_v0 }
 0x16f   :  { %6770 = vmatpush3.bf16.msra.mxu1 %v8144_v39  ;;  %6773 = vmatprep.mubr.msk.bf16.mxu1 %vm8040_vm10, %v8039_v14 }
 0x170   :  { %6771 = vmatprep.subr.bf16.mxu1 %v8039_v14 }
 0x173   :  { %6772 = vmatpush3.bf16.msra.mxu1 %v8148_v40 }
 0x174   :  { %6785 = vmatprep.subr.bf16.mxu1 %v8039_v14 }
 0x21e   :  { %v8179_v53 = vpop.f32.mrf.mxu1 }
 0x220   :  { %v295_v54 = vpop.f32.mrf.mxu1 }
 0x222   :  { %v8181_v55 = vpop.f32.mrf.mxu1 }
 0x224   :  { %v298_v56 = vpop.f32.mrf.mxu1 }
 0x226   :  { %v8183_v57 = vpop.f32.mrf.mxu1 }
 0x228   :  { %v8185_v58 = vpop.f32.mrf.mxu1 }
 0x22a   :  { %v8187_v59 = vpop.f32.mrf.mxu1 }
 0x22c   :  { %v8189_v60 = vpop.f32.mrf.mxu1 }
 0x22e   :  { %v375_v61 = vpop.f32.mrf.mxu1 }
 0x22f   :  { %v381_v62 = vadd.f32 %v375_v61, %v295_v54 }
 0x230   :  { %v6759_v63 = vpop.f32.mrf.mxu1 }
 0x231   :  { %7491 = vtanh.f32 %v381_v62  ;;  %v6264_v4 = vmul.f32 -1.442695, %v381_v62 }
 0x232   :  { %v378_v1 = vpop.f32.mrf.mxu1 }
 0x233   :  { %7493 = vpow2.f32 %v6264_v4 }
 0x234   :  { %v6760_v2 = vpop.f32.mrf.mxu1 }
 0x23e   :  { %v7492_v3 = vpop.eup %7491 }
 0x23f   :  { %391 = vrot.lane.b32.xlu0 %v7492_v3, %s8036_s30 }
 0x240   :  { %v7494_v5 = vpop.eup %7493 }
 0x241   :  { %v385_v6 = vadd.f32 1.0, %v7494_v5 }
 0x243   :  { %7495 = vrcp.f32 %v385_v6 }
 0x250   :  { %v7496_v7 = vpop.eup %7495 }
 0x251   :  { %v389_v10 = vmul.f32 0.0, %v7496_v7 }
 0x2b1   :  { %v392_v8 = vpop.permute.xlu0 %391 }
 0x2b2   :  { %v394_v9 = vmul.f32 %v7496_v7, %v392_v8 }
 0x2b4   :  { %396 = vrot.lane.b32.xlu1 %v394_v9, %s8041_s0 }
 0x326   :  { %v397_v11 = vpop.permute.xlu1 %396 }
 0x327   :  { %v399_v12 = vadd.f32 %v397_v11, %v389_v10 }
 0x329   :  { %7497 = vtanh.f32 %v399_v12 }
 0x336   :  { %v7498_v13 = vpop.eup %7497 }
 0x337   :  { %402 = vrot.lane.b32.xlu0 %v7498_v13, %s8036_s30 }
 0x3a9   :  { %v403_v15 = vpop.permute.xlu0 %402 }
 0x3aa   :  { %v8194_v16 = vmul.f32 %v7496_v7, %v403_v15 }
 0x3ac   :  { %v411_v17 = vpack.c.bf16 %v8194_v16, %v8194_v16 }
 0x3ae   :  { %413 = vrot.lane.b32.xlu1 %v411_v17, %s8041_s0 }
 0x420   :  { %v414_v18 = vpop.permute.xlu1 %413 }
 0x421   :  { %6766 = vmatmul.mubr.msk.bf16.vlgmr.msra.gmra.mxu0 %vm216_vm11, %v414_v18 }
 0x422   :  { %6778 = vmatpush3.bf16.msra.mxu0 %v8144_v39  ;;  %6781 = vmatprep.mubr.msk.bf16.mxu0 %vm8040_vm10, %v8039_v14 }
 0x423   :  { %6779 = vmatprep.subr.bf16.mxu0 %v8039_v14 }
 0x426   :  { %6780 = vmatpush3.bf16.msra.mxu0 %v8148_v40 }
 0x427   :  { %6793 = vmatprep.subr.bf16.mxu0 %v8039_v14 }
 0x4e1   :  { %v452_v19 = vpop.f32.mrf.mxu0 }
 0x4e2   :  { %v458_v20 = vadd.f32 %v452_v19, %v298_v56 }
 0x4e3   :  { %v6767_v21 = vpop.f32.mrf.mxu0 }
 0x4e4   :  { %7499 = vtanh.f32 %v458_v20  ;;  %v6266_v25 = vmul.f32 -1.442695, %v458_v20 }
 0x4e5   :  { %v455_v22 = vpop.f32.mrf.mxu0 }
 0x4e6   :  { %7501 = vpow2.f32 %v6266_v25 }
 0x4e7   :  { %v6768_v23 = vpop.f32.mrf.mxu0 }
 0x4f1   :  { %v7500_v24 = vpop.eup %7499 }
 0x4f2   :  { %468 = vrot.lane.b32.xlu0 %v7500_v24, %s8036_s30 }
 0x4f3   :  { %v7502_v26 = vpop.eup %7501 }
 0x4f4   :  { %v462_v27 = vadd.f32 1.0, %v7502_v26 }
 0x4f6   :  { %7503 = vrcp.f32 %v462_v27 }
 0x503   :  { %v7504_v28 = vpop.eup %7503 }
 0x504   :  { %v466_v31 = vmul.f32 %v7504_v28, %v399_v12 }
 0x564   :  { %v469_v29 = vpop.permute.xlu0 %468 }
 0x565   :  { %v471_v30 = vmul.f32 %v7504_v28, %v469_v29 }
 0x567   :  { %473 = vrot.lane.b32.xlu1 %v471_v30, %s8041_s0 }
 0x5d9   :  { %v474_v32 = vpop.permute.xlu1 %473 }
 0x5da   :  { %v476_v33 = vadd.f32 %v474_v32, %v466_v31 }
 0x5dc   :  { %7505 = vtanh.f32 %v476_v33 }
 0x5e9   :  { %v7506_v34 = vpop.eup %7505 }
 0x5ea   :  { %479 = vrot.lane.b32.xlu0 %v7506_v34, %s8036_s30 }
 0x65c   :  { %v480_v35 = vpop.permute.xlu0 %479 }
 0x65d   :  { %v8209_v36 = vmul.f32 %v7504_v28, %v480_v35 }
 0x65f   :  { %v488_v37 = vpack.c.bf16 %v8209_v36, %v8209_v36 }
 0x661   :  { %490 = vrot.lane.b32.xlu1 %v488_v37, %s8041_s0 }
 0x6d3   :  { %v491_v38 = vpop.permute.xlu1 %490 }
 0x6d4   :  { %6774 = vmatmul.mubr.msk.bf16.vlgmr.msra.gmra.mxu1 %vm216_vm11, %v491_v38 }
 0x6d5   :  { %6786 = vmatpush3.bf16.msra.mxu1 %v8144_v39  ;;  %6789 = vmatprep.mubr.msk.bf16.mxu1 %vm8040_vm10, %v8039_v14 }
 0x6d6   :  { %6787 = vmatprep.subr.bf16.mxu1 %v8039_v14 }
 0x6d9   :  { %6788 = vmatpush3.bf16.msra.mxu1 %v8148_v40 }
 0x6da   :  { %6801 = vmatprep.subr.bf16.mxu1 %v8039_v14 }
 0x794   :  { %v529_v41 = vpop.f32.mrf.mxu1 }
 0x795   :  { %v535_v42 = vadd.f32 %v8179_v53, %v529_v41 }
 0x796   :  { %v6775_v43 = vpop.f32.mrf.mxu1 }
 0x797   :  { %7507 = vtanh.f32 %v535_v42  ;;  %v6268_v47 = vmul.f32 -1.442695, %v535_v42 }
 0x798   :  { %v532_v44 = vpop.f32.mrf.mxu1 }
 0x799   :  { %7509 = vpow2.f32 %v6268_v47 }
 0x79a   :  { %v6776_v45 = vpop.f32.mrf.mxu1 }
 0x7a4   :  { %v7508_v46 = vpop.eup %7507 }
 0x7a5   :  { %545 = vrot.lane.b32.xlu0 %v7508_v46, %s8036_s30 }
 0x7a6   :  { %v7510_v48 = vpop.eup %7509 }
 0x7a7   :  { %v539_v49 = vadd.f32 1.0, %v7510_v48 }
 0x7a9   :  { %7511 = vrcp.f32 %v539_v49 }
 0x7b6   :  { %v7512_v50 = vpop.eup %7511 }
 0x7b7   :  { %v543_v54 = vmul.f32 %v7512_v50, %v476_v33 }
 0x817   :  { %v546_v51 = vpop.permute.xlu0 %545 }
 0x818   :  { %v548_v52 = vmul.f32 %v7512_v50, %v546_v51 }
 0x81a   :  { %550 = vrot.lane.b32.xlu1 %v548_v52, %s8041_s0 }
 0x88c   :  { %v551_v56 = vpop.permute.xlu1 %550 }
 0x88d   :  { %v553_v53 = vadd.f32 %v551_v56, %v543_v54 }
 0x88f   :  { %7513 = vtanh.f32 %v553_v53 }
 0x89c   :  { %v7514_v61 = vpop.eup %7513 }
 0x89d   :  { %556 = vrot.lane.b32.xlu0 %v7514_v61, %s8036_s30 }
 0x90f   :  { %v557_v62 = vpop.permute.xlu0 %556 }
 0x910   :  { %v8225_v63 = vmul.f32 %v7512_v50, %v557_v62 }
 0x912   :  { %v565_v1 = vpack.c.bf16 %v8225_v63, %v8225_v63 }
 0x914   :  { %567 = vrot.lane.b32.xlu1 %v565_v1, %s8041_s0 }
 0x986   :  { %v568_v2 = vpop.permute.xlu1 %567 }
 0x987   :  { %6782 = vmatmul.mubr.msk.bf16.vlgmr.msra.gmra.mxu0 %vm216_vm11, %v568_v2 }
 0x988   :  { %6794 = vmatpush3.bf16.msra.mxu0 %v8144_v39  ;;  %6797 = vmatprep.mubr.msk.bf16.mxu0 %vm8040_vm10, %v8039_v14 }
 0x989   :  { %6795 = vmatprep.subr.bf16.mxu0 %v8039_v14 }
 0x98c   :  { %6796 = vmatpush3.bf16.msra.mxu0 %v8148_v40 }
 0x98d   :  { %6809 = vmatprep.subr.bf16.mxu0 %v8039_v14 }
 0xa47   :  { %v606_v3 = vpop.f32.mrf.mxu0 }
 0xa48   :  { %v612_v4 = vadd.f32 %v8181_v55, %v606_v3 }
 0xa49   :  { %v6783_v5 = vpop.f32.mrf.mxu0 }
 0xa4a   :  { %7515 = vtanh.f32 %v612_v4  ;;  %v6270_v9 = vmul.f32 -1.442695, %v612_v4 }
 0xa4b   :  { %v609_v6 = vpop.f32.mrf.mxu0 }
 0xa4c   :  { %7517 = vpow2.f32 %v6270_v9 }
 0xa4d   :  { %v6784_v7 = vpop.f32.mrf.mxu0 }
 0xa57   :  { %v7516_v8 = vpop.eup %7515 }
 0xa58   :  { %622 = vrot.lane.b32.xlu0 %v7516_v8, %s8036_s30 }
 0xa59   :  { %v7518_v10 = vpop.eup %7517 }
 0xa5a   :  { %v616_v11 = vadd.f32 1.0, %v7518_v10 }
 0xa5c   :  { %7519 = vrcp.f32 %v616_v11 }
 0xa69   :  { %v7520_v12 = vpop.eup %7519 }
 0xa6a   :  { %v620_v17 = vmul.f32 %v7520_v12, %v553_v53 }
 0xaca   :  { %v623_v13 = vpop.permute.xlu0 %622 }
 0xacb   :  { %v625_v15 = vmul.f32 %v7520_v12, %v623_v13 }
 0xacd   :  { %627 = vrot.lane.b32.xlu1 %v625_v15, %s8041_s0 }
 0xb3f   :  { %v628_v18 = vpop.permute.xlu1 %627 }
 0xb40   :  { %v630_v55 = vadd.f32 %v628_v18, %v620_v17 }
 0xb42   :  { %7521 = vtanh.f32 %v630_v55 }
 0xb4f   :  { %v7522_v19 = vpop.eup %7521 }
 0xb50   :  { %633 = vrot.lane.b32.xlu0 %v7522_v19, %s8036_s30 }
 0xbc2   :  { %v634_v20 = vpop.permute.xlu0 %633 }
 0xbc3   :  { %v8241_v21 = vmul.f32 %v7520_v12, %v634_v20 }
 0xbc5   :  { %v642_v22 = vpack.c.bf16 %v8241_v21, %v8241_v21 }
 0xbc7   :  { %644 = vrot.lane.b32.xlu1 %v642_v22, %s8041_s0 }
 0xc39   :  { %v645_v23 = vpop.permute.xlu1 %644 }
 0xc3a   :  { %6790 = vmatmul.mubr.msk.bf16.vlgmr.msra.gmra.mxu1 %vm216_vm11, %v645_v23 }
 0xc3b   :  { %6802 = vmatpush3.bf16.msra.mxu1 %v8144_v39  ;;  %6805 = vmatprep.mubr.msk.bf16.mxu1 %vm8040_vm10, %v8039_v14 }
 0xc3c   :  { %6803 = vmatprep.subr.bf16.mxu1 %v8039_v14 }
 0xc3f   :  { %6804 = vmatpush3.bf16.msra.mxu1 %v8148_v40 }
 0xcfa   :  { %v683_v24 = vpop.f32.mrf.mxu1 }
 0xcfb   :  { %v689_v25 = vadd.f32 %v683_v24, %v8185_v58  ;;  %v7455_v24 = vld [vmem:[#allocation7 + $0x28] sm:$0xff]  }
 0xcfc   :  { %v6791_v26 = vpop.f32.mrf.mxu1  ;;  %6817 = vmatprep.subr.bf16.mxu1 %v7455_v24 }
 0xcfd   :  { %7523 = vtanh.f32 %v689_v25  ;;  %v6272_v30 = vmul.f32 -1.442695, %v689_v25  ;;  %v7456_v25 = vld [vmem:[#allocation7 + $0x20] sm:$0xff]  }
 0xcfe   :  { %v686_v27 = vpop.f32.mrf.mxu1 }
 0xcff   :  { %7525 = vpow2.f32 %v6272_v30 }
 0xd00   :  { %v6792_v28 = vpop.f32.mrf.mxu1 }
 0xd0a   :  { %v7524_v29 = vpop.eup %7523 }
 0xd0b   :  { %699 = vrot.lane.b32.xlu0 %v7524_v29, %s8036_s30 }
 0xd0c   :  { %v7526_v31 = vpop.eup %7525 }
 0xd0d   :  { %v693_v32 = vadd.f32 1.0, %v7526_v31 }
 0xd0f   :  { %7527 = vrcp.f32 %v693_v32 }
 0xd1c   :  { %v7528_v33 = vpop.eup %7527 }
 0xd1d   :  { %v697_v37 = vmul.f32 %v7528_v33, %v630_v55 }
 0xd7d   :  { %v700_v34 = vpop.permute.xlu0 %699 }
 0xd7e   :  { %v702_v35 = vmul.f32 %v7528_v33, %v700_v34  ;;  %v8304_v34 = vld [vmem:[#allocation7 + $0x38] sm:$0xff]  }
 0xd80   :  { %704 = vrot.lane.b32.xlu1 %v702_v35, %s8041_s0  ;;  %v8309_v35 = vld [vmem:[#allocation7 + $0x30] sm:$0xff]  }
 0xdf2   :  { %v705_v38 = vpop.permute.xlu1 %704 }
 0xdf3   :  { %v707_v58 = vadd.f32 %v705_v38, %v697_v37 }
 0xdf5   :  { %7529 = vtanh.f32 %v707_v58 }
 0xe02   :  { %v7530_v41 = vpop.eup %7529 }
 0xe03   :  { %710 = vrot.lane.b32.xlu0 %v7530_v41, %s8036_s30 }
 0xe75   :  { %v711_v42 = vpop.permute.xlu0 %710 }
 0xe76   :  { %v8256_v43 = vmul.f32 %v7528_v33, %v711_v42 }
 0xe78   :  { %v719_v44 = vpack.c.bf16 %v8256_v43, %v8256_v43 }
 0xe7a   :  { %721 = vrot.lane.b32.xlu1 %v719_v44, %s8041_s0 }
 0xeec   :  { %v722_v45 = vpop.permute.xlu1 %721 }
 0xeed   :  { %6798 = vmatmul.mubr.msk.bf16.vlgmr.msra.gmra.mxu0 %vm216_vm11, %v722_v45 }
 0xeee   :  { %6810 = vmatpush3.bf16.msra.mxu0 %v8144_v39  ;;  %6813 = vmatprep.mubr.msk.bf16.mxu0 %vm8040_vm10, %v8039_v14 }
 0xeef   :  { %6811 = vmatprep.subr.bf16.mxu0 %v8039_v14 }
 0xef2   :  { %6812 = vmatpush3.bf16.msra.mxu0 %v8148_v40 }
 0xef3   :  { %6829 = vmatprep.subr.bf16.mxu0 %v8039_v14 }
 0xfad   :  { %v760_v46 = vpop.f32.mrf.mxu0 }
 0xfae   :  { %v766_v47 = vadd.f32 %v760_v46, %v8189_v60 }
 0xfaf   :  { %v6799_v48 = vpop.f32.mrf.mxu0 }
 0xfb0   :  { %7531 = vtanh.f32 %v766_v47  ;;  %v6274_v39 = vmul.f32 -1.442695, %v766_v47 }
 0xfb1   :  { %v763_v49 = vpop.f32.mrf.mxu0 }
 0xfb2   :  { %7533 = vpow2.f32 %v6274_v39 }
 0xfb3   :  { %v6800_v50 = vpop.f32.mrf.mxu0 }
 0xfbd   :  { %v7532_v51 = vpop.eup %7531 }
 0xfbe   :  { %776 = vrot.lane.b32.xlu0 %v7532_v51, %s8036_s30 }
 0xfbf   :  { %v7534_v52 = vpop.eup %7533 }
 0xfc0   :  { %v770_v54 = vadd.f32 1.0, %v7534_v52 }
 0xfc2   :  { %7535 = vrcp.f32 %v770_v54 }
 0xfcf   :  { %v7536_v56 = vpop.eup %7535 }
 0xfd0   :  { %v774_v61 = vmul.f32 %v7536_v56, %v707_v58 }
0x1030   :  { %v777_v53 = vpop.permute.xlu0 %776 }
0x1031   :  { %v779_v40 = vmul.f32 %v7536_v56, %v777_v53 }
0x1033   :  { %781 = vrot.lane.b32.xlu1 %v779_v40, %s8041_s0 }
0x10a5   :  { %v782_v62 = vpop.permute.xlu1 %781 }
0x10a6   :  { %v784_v60 = vadd.f32 %v782_v62, %v774_v61 }
0x10a8   :  { %7537 = vtanh.f32 %v784_v60 }
0x10b5   :  { %v7538_v1 = vpop.eup %7537 }
0x10b6   :  { %787 = vrot.lane.b32.xlu0 %v7538_v1, %s8036_s30 }
0x1128   :  { %v788_v2 = vpop.permute.xlu0 %787 }
0x1129   :  { %v8272_v3 = vmul.f32 %v7536_v56, %v788_v2 }
0x112b   :  { %v796_v4 = vpack.c.bf16 %v8272_v3, %v8272_v3 }
0x112d   :  { %798 = vrot.lane.b32.xlu1 %v796_v4, %s8041_s0 }
0x119f   :  { %v799_v5 = vpop.permute.xlu1 %798 }
0x11a0   :  { %6806 = vmatmul.mubr.msk.bf16.vlgmr.msra.gmra.mxu1 %vm216_vm11, %v799_v5 }
0x11a1   :  { %6818 = vmatpush3.bf16.msra.mxu1 %v7455_v24 }
0x11a2   :  { %6819 = vmatprep.subr.bf16.mxu1 %v7456_v25 }
0x11a5   :  { %6820 = vmatpush3.bf16.msra.mxu1 %v7456_v25 }
0x11a6   :  { %6845 = vmatprep.subr.bf16.mxu1 %v8039_v14 }
0x1260   :  { %v837_v6 = vpop.f32.mrf.mxu1 }
0x1261   :  { %v843_v7 = vadd.f32 %v8183_v57, %v837_v6 }
0x1262   :  { %v6807_v8 = vpop.f32.mrf.mxu1 }
0x1263   :  { %7539 = vtanh.f32 %v843_v7  ;;  %v6276_v12 = vmul.f32 -1.442695, %v843_v7 }
0x1264   :  { %v840_v9 = vpop.f32.mrf.mxu1 }
0x1265   :  { %7541 = vpow2.f32 %v6276_v12 }
0x1266   :  { %v6808_v10 = vpop.f32.mrf.mxu1 }
0x1270   :  { %v7540_v11 = vpop.eup %7539 }
0x1271   :  { %853 = vrot.lane.b32.xlu0 %v7540_v11, %s8036_s30 }
0x1272   :  { %v7542_v13 = vpop.eup %7541 }
0x1273   :  { %v847_v15 = vadd.f32 1.0, %v7542_v13 }
0x1275   :  { %7543 = vrcp.f32 %v847_v15 }
0x1282   :  { %v7544_v17 = vpop.eup %7543 }
0x1283   :  { %v851_v57 = vmul.f32 %v7544_v17, %v784_v60 }
0x12e3   :  { %v854_v18 = vpop.permute.xlu0 %853 }
0x12e4   :  { %v856_v55 = vmul.f32 %v7544_v17, %v854_v18 }
0x12e6   :  { %858 = vrot.lane.b32.xlu1 %v856_v55, %s8041_s0 }
0x12ea   :  { %407 = vrot.lane.b32.xlu1 %v8194_v16, %s8041_s0 }
0x12ee   :  { %561 = vrot.lane.b32.xlu1 %v8225_v63, %s8041_s0 }
0x1358   :  { %v859_v19 = vpop.permute.xlu1 %858 }
0x1359   :  { %v8285_v20 = vadd.f32 %v859_v19, %v851_v57 }
0x135b   :  { %7545 = vtanh.f32 %v8285_v20 }
0x135c   :  { %v408_v22 = vpop.permute.xlu1 %407 }
0x135d   :  { %410 = vst.msk [vmem:[#allocation3] sm:$0xff] %vm216_vm11, %v408_v22 }
0x1360   :  { %v562_v23 = vpop.permute.xlu1 %561 }
0x1361   :  { %564 = vst.msk [vmem:[#allocation3 + $0x10] sm:$0xff] %vm216_vm11, %v562_v23 }
0x1364   :  { %v951_v30 = vld [vmem:[#allocation3] sm:$0xff] }
0x1368   :  { %v7546_v16 = vpop.eup %7545 }
0x1369   :  { %864 = vrot.lane.b32.xlu0 %v7546_v16, %s8036_s30 }
0x136d   :  { %484 = vrot.lane.b32.xlu0 %v8209_v36, %s8041_s0 }
0x1371   :  { %638 = vrot.lane.b32.xlu0 %v8241_v21, %s8041_s0  ;;  %v953_v21 = vld [vmem:[#allocation3 + $0x10] sm:$0xff] }
0x13db   :  { %v865_v63 = vpop.permute.xlu0 %864 }
0x13dc   :  { %v8296_v26 = vmul.f32 %v7544_v17, %v865_v63 }
0x13de   :  { %v873_v27 = vpack.c.bf16 %v8296_v26, %v8296_v26 }
0x13df   :  { %v485_v28 = vpop.permute.xlu0 %484 }
0x13e0   :  { %487 = vst.msk [vmem:[#allocation3 + $0x8] sm:$0xff] %vm216_vm11, %v485_v28  ;;  %875 = vrot.lane.b32.xlu1 %v873_v27, %s8041_s0 }
0x13e3   :  { %v639_v29 = vpop.permute.xlu0 %638 }
0x13e4   :  { %641 = vst.msk [vmem:[#allocation3 + $0x18] sm:$0xff] %vm216_vm11, %v639_v29 }
0x13e7   :  { %v952_v31 = vld [vmem:[#allocation3 + $0x8] sm:$0xff] }
0x13e8   :  { %v967_v36 = vpack.c.bf16 %v952_v31, %v951_v30 }
0x13ea   :  { %6821 = vmatprep.mubr.msk.bf16.mxu1 %vm216_vm11, %v967_v36 }
0x13eb   :  { %v954_v32 = vld [vmem:[#allocation3 + $0x18] sm:$0xff] }
0x13ec   :  { %v968_v33 = vpack.c.bf16 %v954_v32, %v953_v21 }
0x13ee   :  { %6822 = vmatmul.mubr.msk.bf16.vlgmr.msra.gmra.mxu1 %vm216_vm11, %v968_v33 }
0x13ef   :  { %6846 = vmatpush3.bf16.msra.mxu1 %v8304_v34 }
0x13f0   :  { %6847 = vmatprep.subr.bf16.mxu1 %v8039_v14 }
0x13f3   :  { %6848 = vmatpush3.bf16.msra.mxu1 %v8309_v35 }
0x13f4   :  { %6861 = vmatprep.subr.bf16.mxu1 %v8039_v14 }
0x1452   :  { %v876_v37 = vpop.permute.xlu1 %875 }
0x1453   :  { %6814 = vmatmul.mubr.msk.bf16.vlgmr.msra.gmra.mxu0 %vm216_vm11, %v876_v37 }
0x1454   :  { %6830 = vmatpush3.bf16.msra.mxu0 %v8304_v34  ;;  %6833 = vmatprep.mubr.msk.bf16.mxu0 %vm8040_vm10, %v8039_v14 }
0x1455   :  { %6831 = vmatprep.subr.bf16.mxu0 %v8039_v14 }
0x1458   :  { %6832 = vmatpush3.bf16.msra.mxu0 %v8309_v35 }
0x1459   :  { %6837 = vmatprep.subr.bf16.mxu0 %v8039_v14 }
0x145b   :  { %6834 = vmatmul.mubr.bf16.vlgmr.msra.gmra.mxu0 %v8038_v0 }
0x145c   :  { %6838 = vmatpush3.bf16.msra.mxu0 %v8304_v34  ;;  %6841 = vmatprep.mubr.msk.bf16.mxu0 %vm8040_vm10, %v8039_v14 }
0x145d   :  { %6839 = vmatprep.subr.bf16.mxu0 %v8039_v14 }
0x1460   :  { %6840 = vmatpush3.bf16.msra.mxu0 %v8309_v35 }
0x1461   :  { %6853 = vmatprep.subr.bf16.mxu0 %v8039_v14 }
0x14ae   :  { %v8327_v41 = vpop.f32.mrf.mxu1 }
0x14b0   :  { %v1029_v45 = vpop.f32.mrf.mxu1 }
0x14b2   :  { %v8355_v22 = vpop.f32.mrf.mxu1 }
0x14b4   :  { %v1032_v23 = vpop.f32.mrf.mxu1 }
0x1513   :  { %v914_v38 = vpop.f32.mrf.mxu0 }
0x1514   :  { %v920_v1 = vadd.f32 %v8187_v59, %v914_v38 }
0x1515   :  { %v6815_v58 = vpop.f32.mrf.mxu0 }
0x1516   :  { %v6278_v5 = vmul.f32 -1.442695, %v920_v1 }
0x1517   :  { %v917_v42 = vpop.f32.mrf.mxu0 }
0x1519   :  { %v6816_v44 = vpop.f32.mrf.mxu0 }
0x151b   :  { %v1106_v46 = vpop.f32.mrf.mxu0 }
0x151c   :  { %v1112_v47 = vadd.f32 %v1106_v46, %v1029_v45 }
0x151d   :  { %v6835_v48 = vpop.f32.mrf.mxu0 }
0x151e   :  { %7547 = vtanh.f32 %v1112_v47  ;;  %v6287_v39 = vmul.f32 -1.442695, %v1112_v47 }
0x151f   :  { %v1109_v49 = vpop.f32.mrf.mxu0 }
0x1520   :  { %7549 = vpow2.f32 %v6287_v39 }
0x1521   :  { %v6836_v50 = vpop.f32.mrf.mxu0 }
0x152b   :  { %v7548_v51 = vpop.eup %7547 }
0x152c   :  { %1122 = vrot.lane.b32.xlu0 %v7548_v51, %s8036_s30 }
0x152d   :  { %v7550_v52 = vpop.eup %7549 }
0x152e   :  { %v1116_v54 = vadd.f32 1.0, %v7550_v52 }
0x1530   :  { %7551 = vrcp.f32 %v1116_v54 }
0x153d   :  { %v7552_v56 = vpop.eup %7551 }
0x153e   :  { %v1120_v61 = vmul.f32 0.0, %v7552_v56 }
0x159e   :  { %v1123_v53 = vpop.permute.xlu0 %1122 }
0x159f   :  { %v1125_v40 = vmul.f32 %v7552_v56, %v1123_v53 }
0x15a1   :  { %1127 = vrot.lane.b32.xlu1 %v1125_v40, %s8041_s0 }
0x1613   :  { %v1128_v62 = vpop.permute.xlu1 %1127 }
0x1614   :  { %v1130_v60 = vadd.f32 %v1128_v62, %v1120_v61 }
0x1616   :  { %7553 = vtanh.f32 %v1130_v60 }
0x1617   :  { %7555 = vtanh.f32 %v920_v1 }
0x1618   :  { %7557 = vpow2.f32 %v6278_v5 }
0x1623   :  { %v7554_v2 = vpop.eup %7553 }
0x1624   :  { %1133 = vrot.lane.b32.xlu0 %v7554_v2, %s8036_s30  ;;  %v7556_v4 = vpop.eup %7555 }
0x1625   :  { %v7558_v6 = vpop.eup %7557 }
0x1626   :  { %v924_v7 = vadd.f32 1.0, %v7558_v6 }
0x1628   :  { %930 = vrot.lane.b32.xlu0 %v7556_v4, %s8036_s30  ;;  %7559 = vrcp.f32 %v924_v7 }
0x1635   :  { %v7560_v59 = vpop.eup %7559 }
0x1636   :  { %v928_v15 = vmul.f32 %v7560_v59, %v8285_v20 }
0x1696   :  { %v1134_v8 = vpop.permute.xlu0 %1133 }
0x1697   :  { %v8334_v9 = vmul.f32 %v7552_v56, %v1134_v8 }
0x1699   :  { %v1142_v10 = vpack.c.bf16 %v8334_v9, %v8334_v9 }
0x169a   :  { %v931_v11 = vpop.permute.xlu0 %930 }
0x169b   :  { %v933_v12 = vmul.f32 %v7560_v59, %v931_v11  ;;  %1144 = vrot.lane.b32.xlu1 %v1142_v10, %s8041_s0 }
0x169d   :  { %935 = vrot.lane.b32.xlu0 %v933_v12, %s8041_s0 }
0x170d   :  { %v1145_v13 = vpop.permute.xlu1 %1144 }
0x170e   :  { %6842 = vmatmul.mubr.msk.bf16.vlgmr.msra.gmra.mxu0 %vm216_vm11, %v1145_v13 }
0x170f   :  { %v936_v17 = vpop.permute.xlu0 %935  ;;  %6854 = vmatpush3.bf16.msra.mxu0 %v8304_v34  ;;  %6857 = vmatprep.mubr.msk.bf16.mxu0 %vm8040_vm10, %v8039_v14 }
0x1710   :  { %v938_v18 = vadd.f32 %v936_v17, %v928_v15  ;;  %6855 = vmatprep.subr.bf16.mxu0 %v8039_v14 }
0x1712   :  { %7561 = vtanh.f32 %v938_v18 }
0x1713   :  { %6856 = vmatpush3.bf16.msra.mxu0 %v8309_v35 }
0x1714   :  { %6869 = vmatprep.subr.bf16.mxu0 %v8039_v14 }
0x171f   :  { %v7562_v55 = vpop.eup %7561 }
0x1720   :  { %941 = vrot.lane.b32.xlu0 %v7562_v55, %s8036_s30 }
0x1724   :  { %715 = vrot.lane.b32.xlu0 %v8256_v43, %s8041_s0 }
0x1728   :  { %869 = vrot.lane.b32.xlu0 %v8296_v26, %s8041_s0 }
0x1792   :  { %v942_v57 = vpop.permute.xlu0 %941 }
0x1793   :  { %v8362_v38 = vmul.f32 %v7560_v59, %v942_v57 }
0x1796   :  { %v716_v19 = vpop.permute.xlu0 %715 }
0x1797   :  { %718 = vst.msk [vmem:[#allocation3 + $0x20] sm:$0xff] %vm216_vm11, %v716_v19 }
0x179a   :  { %v870_v20 = vpop.permute.xlu0 %869 }
0x179b   :  { %872 = vst.msk [vmem:[#allocation3 + $0x30] sm:$0xff] %vm216_vm11, %v870_v20 }
0x17a2   :  { %v957_v49 = vld [vmem:[#allocation3 + $0x30] sm:$0xff] }
0x17ce   :  { %v1183_v24 = vpop.f32.mrf.mxu0 }
0x17cf   :  { %v1189_v25 = vadd.f32 %v1183_v24, %v1032_v23 }
0x17d0   :  { %v6843_v16 = vpop.f32.mrf.mxu0 }
0x17d1   :  { %7563 = vtanh.f32 %v1189_v25  ;;  %v6289_v26 = vmul.f32 -1.442695, %v1189_v25 }
0x17d2   :  { %v1186_v63 = vpop.f32.mrf.mxu0 }
0x17d3   :  { %7565 = vpow2.f32 %v6289_v26 }
0x17d4   :  { %v6844_v27 = vpop.f32.mrf.mxu0 }
0x17de   :  { %v7564_v43 = vpop.eup %7563 }
0x17df   :  { %1199 = vrot.lane.b32.xlu1 %v7564_v43, %s8036_s30 }
0x17e0   :  { %v7566_v28 = vpop.eup %7565 }
0x17e1   :  { %v1193_v29 = vadd.f32 1.0, %v7566_v28 }
0x17e3   :  { %7567 = vrcp.f32 %v1193_v29 }
0x17f0   :  { %v7568_v30 = vpop.eup %7567 }
0x17f1   :  { %v1197_v21 = vmul.f32 %v7568_v30, %v1130_v60 }
0x1851   :  { %v1200_v31 = vpop.permute.xlu1 %1199 }
0x1852   :  { %v1202_v36 = vmul.f32 %v7568_v30, %v1200_v31 }
0x1854   :  { %1204 = vrot.lane.b32.xlu1 %v1202_v36, %s8041_s0 }
0x18c6   :  { %v1205_v32 = vpop.permute.xlu1 %1204 }
0x18c7   :  { %v1207_v33 = vadd.f32 %v1205_v32, %v1197_v21 }
0x18c9   :  { %7569 = vtanh.f32 %v1207_v33 }
0x18d6   :  { %v7570_v37 = vpop.eup %7569 }
0x18d7   :  { %1210 = vrot.lane.b32.xlu1 %v7570_v37, %s8036_s30 }
0x18db   :  { %792 = vrot.lane.b32.xlu1 %v8272_v3, %s8041_s0  ;;  %v955_v3 = vld [vmem:[#allocation3 + $0x20] sm:$0xff] }
0x18df   :  { %946 = vrot.lane.b32.xlu1 %v8362_v38, %s8041_s0 }
0x1949   :  { %v1211_v58 = vpop.permute.xlu1 %1210 }
0x194a   :  { %v8366_v42 = vmul.f32 %v7568_v30, %v1211_v58 }
0x194c   :  { %v1219_v44 = vpack.c.bf16 %v8366_v42, %v8366_v42 }
0x194d   :  { %v793_v45 = vpop.permute.xlu1 %792 }
0x194e   :  { %795 = vst.msk [vmem:[#allocation3 + $0x28] sm:$0xff] %vm216_vm11, %v793_v45  ;;  %1221 = vrot.lane.b32.xlu0 %v1219_v44, %s8041_s0 }
0x1951   :  { %v947_v46 = vpop.permute.xlu1 %946 }
0x1952   :  { %949 = vst.msk [vmem:[#allocation3 + $0x38] sm:$0xff] %vm216_vm11, %v947_v46 }
0x1955   :  { %v956_v47 = vld [vmem:[#allocation3 + $0x28] sm:$0xff] }
0x1956   :  { %v969_v48 = vpack.c.bf16 %v956_v47, %v955_v3 }
0x1958   :  { %6825 = vmatprep.mubr.msk.bf16.mxu1 %vm216_vm11, %v969_v48 }
0x1959   :  { %v958_v50 = vld [vmem:[#allocation3 + $0x38] sm:$0xff] }
0x195a   :  { %v970_v51 = vpack.c.bf16 %v958_v50, %v957_v49 }
0x195c   :  { %6826 = vmatmul.mubr.msk.bf16.gmra.mxu1 %vm216_vm11, %v970_v51 }
0x195d   :  { %6849 = vmatprep.mubr.msk.bf16.mxu1 %vm8040_vm10, %v8039_v14 }
0x19c0   :  { %v1222_v39 = vpop.permute.xlu0 %1221 }
0x19c1   :  { %6850 = vmatmul.mubr.msk.bf16.vlgmr.msra.gmra.mxu1 %vm216_vm11, %v1222_v39 }
0x19c2   :  { %6862 = vmatpush3.bf16.msra.mxu1 %v8304_v34  ;;  %6865 = vmatprep.mubr.msk.bf16.mxu1 %vm8040_vm10, %v8039_v14 }
0x19c3   :  { %6863 = vmatprep.subr.bf16.mxu1 %v8039_v14 }
0x19c6   :  { %6864 = vmatpush3.bf16.msra.mxu1 %v8309_v35 }
0x19c7   :  { %6877 = vmatprep.subr.bf16.mxu1 %v8039_v14 }
0x1a1c   :  { %v8384_v52 = vpop.f32.mrf.mxu1 }
0x1a1e   :  { %v8386_v54 = vpop.f32.mrf.mxu1 }
0x1a20   :  { %v8388_v56 = vpop.f32.mrf.mxu1 }
0x1a22   :  { %v8390_v53 = vpop.f32.mrf.mxu1 }
0x1a81   :  { %v1260_v40 = vpop.f32.mrf.mxu1 }
0x1a82   :  { %v1266_v61 = vadd.f32 %v8327_v41, %v1260_v40 }
0x1a83   :  { %v6851_v62 = vpop.f32.mrf.mxu1 }
0x1a84   :  { %7571 = vtanh.f32 %v1266_v61  ;;  %v6291_v4 = vmul.f32 -1.442695, %v1266_v61 }
0x1a85   :  { %v1263_v60 = vpop.f32.mrf.mxu1 }
0x1a86   :  { %7573 = vpow2.f32 %v6291_v4 }
0x1a87   :  { %v6852_v1 = vpop.f32.mrf.mxu1 }
0x1a91   :  { %v7572_v2 = vpop.eup %7571 }
0x1a92   :  { %1276 = vrot.lane.b32.xlu1 %v7572_v2, %s8036_s30 }
0x1a93   :  { %v7574_v5 = vpop.eup %7573 }
0x1a94   :  { %v1270_v6 = vadd.f32 1.0, %v7574_v5 }
0x1a96   :  { %7575 = vrcp.f32 %v1270_v6 }
0x1aa3   :  { %v7576_v7 = vpop.eup %7575 }
0x1aa4   :  { %v1274_v59 = vmul.f32 %v7576_v7, %v1207_v33 }
0x1b04   :  { %v1277_v8 = vpop.permute.xlu1 %1276 }
0x1b05   :  { %v1279_v10 = vmul.f32 %v7576_v7, %v1277_v8 }
0x1b07   :  { %1281 = vrot.lane.b32.xlu0 %v1279_v10, %s8041_s0 }
0x1b79   :  { %v1282_v11 = vpop.permute.xlu0 %1281 }
0x1b7a   :  { %v1284_v41 = vadd.f32 %v1282_v11, %v1274_v59 }
0x1b7c   :  { %7577 = vtanh.f32 %v1284_v41 }
0x1b89   :  { %v7578_v12 = vpop.eup %7577 }
0x1b8a   :  { %1287 = vrot.lane.b32.xlu1 %v7578_v12, %s8036_s30 }
0x1bfc   :  { %v1288_v13 = vpop.permute.xlu1 %1287 }
0x1bfd   :  { %v8396_v15 = vmul.f32 %v7576_v7, %v1288_v13 }
0x1bff   :  { %v1296_v17 = vpack.c.bf16 %v8396_v15, %v8396_v15 }
0x1c01   :  { %1298 = vrot.lane.b32.xlu0 %v1296_v17, %s8041_s0 }
0x1c73   :  { %v1299_v18 = vpop.permute.xlu0 %1298 }
0x1c74   :  { %6858 = vmatmul.mubr.msk.bf16.vlgmr.msra.gmra.mxu0 %vm216_vm11, %v1299_v18 }
0x1c75   :  { %6870 = vmatpush3.bf16.msra.mxu0 %v8304_v34  ;;  %6873 = vmatprep.mubr.msk.bf16.mxu0 %vm8040_vm10, %v8039_v14 }
0x1c76   :  { %6871 = vmatprep.subr.bf16.mxu0 %v8039_v14 }
0x1c79   :  { %6872 = vmatpush3.bf16.msra.mxu0 %v8309_v35 }
0x1c7a   :  { %6885 = vmatprep.subr.bf16.mxu0 %v8039_v14 }
0x1d34   :  { %v1337_v55 = vpop.f32.mrf.mxu0 }
0x1d35   :  { %v1343_v57 = vadd.f32 %v8355_v22, %v1337_v55 }
0x1d36   :  { %v6859_v19 = vpop.f32.mrf.mxu0 }
0x1d37   :  { %7579 = vtanh.f32 %v1343_v57  ;;  %v6293_v25 = vmul.f32 -1.442695, %v1343_v57 }
0x1d38   :  { %v1340_v20 = vpop.f32.mrf.mxu0 }
0x1d39   :  { %7581 = vpow2.f32 %v6293_v25 }
0x1d3a   :  { %v6860_v23 = vpop.f32.mrf.mxu0 }
0x1d44   :  { %v7580_v24 = vpop.eup %7579 }
0x1d45   :  { %1353 = vrot.lane.b32.xlu1 %v7580_v24, %s8036_s30 }
0x1d46   :  { %v7582_v16 = vpop.eup %7581 }
0x1d47   :  { %v1347_v63 = vadd.f32 1.0, %v7582_v16 }
0x1d49   :  { %7583 = vrcp.f32 %v1347_v63 }
0x1d56   :  { %v7584_v27 = vpop.eup %7583 }
0x1d57   :  { %v1351_v28 = vmul.f32 %v7584_v27, %v1284_v41 }
0x1db7   :  { %v1354_v43 = vpop.permute.xlu1 %1353 }
0x1db8   :  { %v1356_v26 = vmul.f32 %v7584_v27, %v1354_v43 }
0x1dba   :  { %1358 = vrot.lane.b32.xlu0 %v1356_v26, %s8041_s0 }
0x1e2c   :  { %v1359_v29 = vpop.permute.xlu0 %1358 }
0x1e2d   :  { %v1361_v22 = vadd.f32 %v1359_v29, %v1351_v28 }
0x1e2f   :  { %7585 = vtanh.f32 %v1361_v22 }
0x1e3c   :  { %v7586_v30 = vpop.eup %7585 }
0x1e3d   :  { %1364 = vrot.lane.b32.xlu1 %v7586_v30, %s8036_s30 }
0x1eaf   :  { %v1365_v31 = vpop.permute.xlu1 %1364 }
0x1eb0   :  { %v8412_v36 = vmul.f32 %v7584_v27, %v1365_v31 }
0x1eb2   :  { %v1373_v21 = vpack.c.bf16 %v8412_v36, %v8412_v36 }
0x1eb4   :  { %1375 = vrot.lane.b32.xlu0 %v1373_v21, %s8041_s0 }
0x1f26   :  { %v1376_v32 = vpop.permute.xlu0 %1375 }
0x1f27   :  { %6866 = vmatmul.mubr.msk.bf16.vlgmr.msra.gmra.mxu1 %vm216_vm11, %v1376_v32 }
0x1f28   :  { %6878 = vmatpush3.bf16.msra.mxu1 %v8304_v34  ;;  %6881 = vmatprep.mubr.msk.bf16.mxu1 %vm8040_vm10, %v8039_v14 }
0x1f29   :  { %6879 = vmatprep.subr.bf16.mxu1 %v8039_v14 }
0x1f2c   :  { %6880 = vmatpush3.bf16.msra.mxu1 %v8309_v35 }
0x1fe7   :  { %v1414_v33 = vpop.f32.mrf.mxu1 }
0x1fe8   :  { %v1420_v37 = vadd.f32 %v1414_v33, %v8386_v54 }
0x1fe9   :  { %v6867_v58 = vpop.f32.mrf.mxu1 }
0x1fea   :  { %7587 = vtanh.f32 %v1420_v37  ;;  %v6295_v3 = vmul.f32 -1.442695, %v1420_v37  ;;  %v7459_v37 = vld [vmem:[#allocation7 + $0x48] sm:$0xff]   ;;  %v7460_v58 = vld [vmem:[#allocation7 + $0x40] sm:$0xff]  }
0x1feb   :  { %v1417_v44 = vpop.f32.mrf.mxu1  ;;  %6893 = vmatprep.subr.bf16.mxu1 %v7459_v37 }
0x1fec   :  { %7589 = vpow2.f32 %v6295_v3 }
0x1fed   :  { %v6868_v45 = vpop.f32.mrf.mxu1 }
0x1ff7   :  { %v7588_v46 = vpop.eup %7587 }
0x1ff8   :  { %1430 = vrot.lane.b32.xlu1 %v7588_v46, %s8036_s30 }
0x1ff9   :  { %v7590_v47 = vpop.eup %7589 }
0x1ffa   :  { %v1424_v48 = vadd.f32 1.0, %v7590_v47 }
0x1ffc   :  { %7591 = vrcp.f32 %v1424_v48 }
0x2009   :  { %v7592_v49 = vpop.eup %7591 }
0x200a   :  { %v1428_v39 = vmul.f32 %v7592_v49, %v1361_v22 }
0x206a   :  { %v1431_v50 = vpop.permute.xlu1 %1430 }
0x206b   :  { %v1433_v51 = vmul.f32 %v7592_v49, %v1431_v50 }
0x206d   :  { %1435 = vrot.lane.b32.xlu0 %v1433_v51, %s8041_s0  ;;  %v8475_v51 = vld [vmem:[#allocation7 + $0x58] sm:$0xff]  }
0x20df   :  { %v1436_v40 = vpop.permute.xlu0 %1435 }
0x20e0   :  { %v1438_v54 = vadd.f32 %v1436_v40, %v1428_v39  ;;  %v8480_v39 = vld [vmem:[#allocation7 + $0x50] sm:$0xff]  }
0x20e2   :  { %7593 = vtanh.f32 %v1438_v54 }
0x20ef   :  { %v7594_v61 = vpop.eup %7593 }
0x20f0   :  { %1441 = vrot.lane.b32.xlu1 %v7594_v61, %s8036_s30 }
0x2162   :  { %v1442_v62 = vpop.permute.xlu1 %1441 }
0x2163   :  { %v8427_v60 = vmul.f32 %v7592_v49, %v1442_v62 }
0x2165   :  { %v1450_v1 = vpack.c.bf16 %v8427_v60, %v8427_v60 }
0x2167   :  { %1452 = vrot.lane.b32.xlu0 %v1450_v1, %s8041_s0 }
0x21d9   :  { %v1453_v2 = vpop.permute.xlu0 %1452 }
0x21da   :  { %6874 = vmatmul.mubr.msk.bf16.vlgmr.msra.gmra.mxu0 %vm216_vm11, %v1453_v2 }
0x21db   :  { %6886 = vmatpush3.bf16.msra.mxu0 %v8304_v34  ;;  %6889 = vmatprep.mubr.msk.bf16.mxu0 %vm8040_vm10, %v8039_v14 }
0x21dc   :  { %6887 = vmatprep.subr.bf16.mxu0 %v8039_v14 }
0x21df   :  { %6888 = vmatpush3.bf16.msra.mxu0 %v8309_v35 }
0x21e0   :  { %6905 = vmatprep.subr.bf16.mxu0 %v8039_v14 }
0x229a   :  { %v1491_v4 = vpop.f32.mrf.mxu0 }
0x229b   :  { %v1497_v5 = vadd.f32 %v1491_v4, %v8390_v53 }
0x229c   :  { %v6875_v6 = vpop.f32.mrf.mxu0 }
0x229d   :  { %7595 = vtanh.f32 %v1497_v5  ;;  %v6297_v34 = vmul.f32 -1.442695, %v1497_v5 }
0x229e   :  { %v1494_v7 = vpop.f32.mrf.mxu0 }
0x229f   :  { %7597 = vpow2.f32 %v6297_v34 }
0x22a0   :  { %v6876_v8 = vpop.f32.mrf.mxu0 }
0x22aa   :  { %v7596_v10 = vpop.eup %7595 }
0x22ab   :  { %1507 = vrot.lane.b32.xlu1 %v7596_v10, %s8036_s30 }
0x22ac   :  { %v7598_v59 = vpop.eup %7597 }
0x22ad   :  { %v1501_v11 = vadd.f32 1.0, %v7598_v59 }
0x22af   :  { %7599 = vrcp.f32 %v1501_v11 }
0x22bc   :  { %v7600_v41 = vpop.eup %7599 }
0x22bd   :  { %v1505_v13 = vmul.f32 %v7600_v41, %v1438_v54 }
0x231d   :  { %v1508_v12 = vpop.permute.xlu1 %1507 }
0x231e   :  { %v1510_v35 = vmul.f32 %v7600_v41, %v1508_v12 }
0x2320   :  { %1512 = vrot.lane.b32.xlu0 %v1510_v35, %s8041_s0 }
0x2392   :  { %v1513_v17 = vpop.permute.xlu0 %1512 }
0x2393   :  { %v1515_v53 = vadd.f32 %v1513_v17, %v1505_v13 }
0x2395   :  { %7601 = vtanh.f32 %v1515_v53 }
0x23a2   :  { %v7602_v18 = vpop.eup %7601 }
0x23a3   :  { %1518 = vrot.lane.b32.xlu1 %v7602_v18, %s8036_s30 }
0x2415   :  { %v1519_v55 = vpop.permute.xlu1 %1518 }
0x2416   :  { %v8443_v57 = vmul.f32 %v7600_v41, %v1519_v55 }
0x2418   :  { %v1527_v19 = vpack.c.bf16 %v8443_v57, %v8443_v57 }
0x241a   :  { %1529 = vrot.lane.b32.xlu0 %v1527_v19, %s8041_s0 }
0x248c   :  { %v1530_v20 = vpop.permute.xlu0 %1529 }
0x248d   :  { %6882 = vmatmul.mubr.msk.bf16.vlgmr.msra.gmra.mxu1 %vm216_vm11, %v1530_v20 }
0x248e   :  { %6894 = vmatpush3.bf16.msra.mxu1 %v7459_v37 }
0x248f   :  { %6895 = vmatprep.subr.bf16.mxu1 %v7460_v58 }
0x2492   :  { %6896 = vmatpush3.bf16.msra.mxu1 %v7460_v58 }
0x2493   :  { %6921 = vmatprep.subr.bf16.mxu1 %v8039_v14 }
0x254d   :  { %v1568_v23 = vpop.f32.mrf.mxu1 }
0x254e   :  { %v1574_v24 = vadd.f32 %v8384_v52, %v1568_v23 }
0x254f   :  { %v6883_v25 = vpop.f32.mrf.mxu1 }
0x2550   :  { %7603 = vtanh.f32 %v1574_v24  ;;  %v6299_v43 = vmul.f32 -1.442695, %v1574_v24 }
0x2551   :  { %v1571_v16 = vpop.f32.mrf.mxu1 }
0x2552   :  { %7605 = vpow2.f32 %v6299_v43 }
0x2553   :  { %v6884_v63 = vpop.f32.mrf.mxu1 }
0x255d   :  { %v7604_v27 = vpop.eup %7603 }
0x255e   :  { %1584 = vrot.lane.b32.xlu1 %v7604_v27, %s8036_s30 }
0x255f   :  { %v7606_v26 = vpop.eup %7605 }
0x2560   :  { %v1578_v28 = vadd.f32 1.0, %v7606_v26 }
0x2562   :  { %7607 = vrcp.f32 %v1578_v28 }
0x256f   :  { %v7608_v29 = vpop.eup %7607 }
0x2570   :  { %v1582_v52 = vmul.f32 %v7608_v29, %v1515_v53 }
0x25d0   :  { %v1585_v22 = vpop.permute.xlu1 %1584 }
0x25d1   :  { %v1587_v30 = vmul.f32 %v7608_v29, %v1585_v22 }
0x25d3   :  { %1589 = vrot.lane.b32.xlu0 %v1587_v30, %s8041_s0 }
0x25d7   :  { %1138 = vrot.lane.b32.xlu0 %v8334_v9, %s8041_s0 }
0x25db   :  { %1292 = vrot.lane.b32.xlu0 %v8396_v15, %s8041_s0 }
0x2645   :  { %v1590_v31 = vpop.permute.xlu0 %1589 }
0x2646   :  { %v8456_v21 = vadd.f32 %v1590_v31, %v1582_v52 }
0x2648   :  { %7609 = vtanh.f32 %v8456_v21 }
0x2649   :  { %v1139_v32 = vpop.permute.xlu0 %1138 }
0x264a   :  { %1141 = vst.msk [vmem:[#allocation4] sm:$0xff] %vm216_vm11, %v1139_v32 }
0x264d   :  { %v1293_v33 = vpop.permute.xlu0 %1292 }
0x264e   :  { %1295 = vst.msk [vmem:[#allocation4 + $0x10] sm:$0xff] %vm216_vm11, %v1293_v33 }
0x2651   :  { %v1682_v47 = vld [vmem:[#allocation4] sm:$0xff] }
0x2655   :  { %v7610_v9 = vpop.eup %7609 }
0x2656   :  { %1595 = vrot.lane.b32.xlu1 %v7610_v9, %s8036_s30 }
0x265a   :  { %1215 = vrot.lane.b32.xlu1 %v8366_v42, %s8041_s0 }
0x265e   :  { %1369 = vrot.lane.b32.xlu1 %v8412_v36, %s8041_s0  ;;  %v1684_v36 = vld [vmem:[#allocation4 + $0x10] sm:$0xff] }
0x26c8   :  { %v1596_v15 = vpop.permute.xlu1 %1595 }
0x26c9   :  { %v8467_v44 = vmul.f32 %v7608_v29, %v1596_v15 }
0x26cb   :  { %v1604_v45 = vpack.c.bf16 %v8467_v44, %v8467_v44 }
0x26cc   :  { %v1216_v46 = vpop.permute.xlu1 %1215 }
0x26cd   :  { %1218 = vst.msk [vmem:[#allocation4 + $0x8] sm:$0xff] %vm216_vm11, %v1216_v46  ;;  %1606 = vrot.lane.b32.xlu0 %v1604_v45, %s8041_s0 }
0x26d0   :  { %v1370_v3 = vpop.permute.xlu1 %1369 }
0x26d1   :  { %1372 = vst.msk [vmem:[#allocation4 + $0x18] sm:$0xff] %vm216_vm11, %v1370_v3 }
0x26d4   :  { %v1683_v48 = vld [vmem:[#allocation4 + $0x8] sm:$0xff] }
0x26d5   :  { %v1698_v42 = vpack.c.bf16 %v1683_v48, %v1682_v47 }
0x26d7   :  { %6897 = vmatprep.mubr.msk.bf16.mxu1 %vm216_vm11, %v1698_v42 }
0x26d8   :  { %v1685_v49 = vld [vmem:[#allocation4 + $0x18] sm:$0xff] }
0x26d9   :  { %v1699_v50 = vpack.c.bf16 %v1685_v49, %v1684_v36 }
0x26db   :  { %6898 = vmatmul.mubr.msk.bf16.vlgmr.msra.gmra.mxu1 %vm216_vm11, %v1699_v50 }
0x26dc   :  { %6922 = vmatpush3.bf16.msra.mxu1 %v8475_v51 }
0x26dd   :  { %6923 = vmatprep.subr.bf16.mxu1 %v8039_v14 }
0x26e0   :  { %6924 = vmatpush3.bf16.msra.mxu1 %v8480_v39 }
0x26e1   :  { %6937 = vmatprep.subr.bf16.mxu1 %v8039_v14 }
0x273f   :  { %v1607_v40 = vpop.permute.xlu0 %1606 }
0x2740   :  { %6890 = vmatmul.mubr.msk.bf16.vlgmr.msra.gmra.mxu0 %vm216_vm11, %v1607_v40 }
0x2741   :  { %6906 = vmatpush3.bf16.msra.mxu0 %v8475_v51  ;;  %6909 = vmatprep.mubr.msk.bf16.mxu0 %vm8040_vm10, %v8039_v14 }
0x2742   :  { %6907 = vmatprep.subr.bf16.mxu0 %v8039_v14 }
0x2745   :  { %6908 = vmatpush3.bf16.msra.mxu0 %v8480_v39 }
0x2746   :  { %6913 = vmatprep.subr.bf16.mxu0 %v8039_v14 }
0x2748   :  { %6910 = vmatmul.mubr.bf16.vlgmr.msra.gmra.mxu0 %v8038_v0 }
0x2749   :  { %6914 = vmatpush3.bf16.msra.mxu0 %v8475_v51  ;;  %6917 = vmatprep.mubr.msk.bf16.mxu0 %vm8040_vm10, %v8039_v14 }
0x274a   :  { %6915 = vmatprep.subr.bf16.mxu0 %v8039_v14 }
0x274d   :  { %6916 = vmatpush3.bf16.msra.mxu0 %v8480_v39 }
0x274e   :  { %6929 = vmatprep.subr.bf16.mxu0 %v8039_v14 }
0x279b   :  { %v8498_v62 = vpop.f32.mrf.mxu1 }
0x279d   :  { %v1760_v4 = vpop.f32.mrf.mxu1 }
0x279f   :  { %v8526_v33 = vpop.f32.mrf.mxu1 }
0x27a1   :  { %v1763_v37 = vpop.f32.mrf.mxu1 }
0x2800   :  { %v1645_v54 = vpop.f32.mrf.mxu0 }
0x2801   :  { %v1651_v55 = vadd.f32 %v8388_v56, %v1645_v54 }
0x2802   :  { %v6891_v61 = vpop.f32.mrf.mxu0 }
0x2803   :  { %v6301_v23 = vmul.f32 -1.442695, %v1651_v55 }
0x2804   :  { %v1648_v1 = vpop.f32.mrf.mxu0 }
0x2806   :  { %v6892_v2 = vpop.f32.mrf.mxu0 }
0x2808   :  { %v1837_v5 = vpop.f32.mrf.mxu0 }
0x2809   :  { %v1843_v6 = vadd.f32 %v1837_v5, %v1760_v4 }
0x280a   :  { %v6911_v7 = vpop.f32.mrf.mxu0 }
0x280b   :  { %7611 = vtanh.f32 %v1843_v6  ;;  %v6310_v59 = vmul.f32 -1.442695, %v1843_v6 }
0x280c   :  { %v1840_v8 = vpop.f32.mrf.mxu0 }
0x280d   :  { %7613 = vpow2.f32 %v6310_v59 }
0x280e   :  { %v6912_v10 = vpop.f32.mrf.mxu0 }
0x2818   :  { %v7612_v34 = vpop.eup %7611 }
0x2819   :  { %1853 = vrot.lane.b32.xlu1 %v7612_v34, %s8036_s30 }
0x281a   :  { %v7614_v11 = vpop.eup %7613 }
0x281b   :  { %v1847_v41 = vadd.f32 1.0, %v7614_v11 }
0x281d   :  { %7615 = vrcp.f32 %v1847_v41 }
0x282a   :  { %v7616_v12 = vpop.eup %7615 }
0x282b   :  { %v1851_v17 = vmul.f32 0.0, %v7616_v12 }
0x288b   :  { %v1854_v35 = vpop.permute.xlu1 %1853 }
0x288c   :  { %v1856_v13 = vmul.f32 %v7616_v12, %v1854_v35 }
0x288e   :  { %1858 = vrot.lane.b32.xlu0 %v1856_v13, %s8041_s0 }
0x2900   :  { %v1859_v53 = vpop.permute.xlu0 %1858 }
0x2901   :  { %v1861_v18 = vadd.f32 %v1859_v53, %v1851_v17 }
0x2903   :  { %7617 = vtanh.f32 %v1861_v18 }
0x2904   :  { %7619 = vtanh.f32 %v1651_v55 }
0x2905   :  { %7621 = vpow2.f32 %v6301_v23 }
0x2910   :  { %v7618_v19 = vpop.eup %7617 }
0x2911   :  { %1864 = vrot.lane.b32.xlu1 %v7618_v19, %s8036_s30  ;;  %v7620_v20 = vpop.eup %7619 }
0x2912   :  { %v7622_v24 = vpop.eup %7621 }
0x2913   :  { %v1655_v25 = vadd.f32 1.0, %v7622_v24 }
0x2915   :  { %1661 = vrot.lane.b32.xlu1 %v7620_v20, %s8036_s30  ;;  %7623 = vrcp.f32 %v1655_v25 }
0x2922   :  { %v7624_v56 = vpop.eup %7623 }
0x2923   :  { %v1659_v29 = vmul.f32 %v7624_v56, %v8456_v21 }
0x2983   :  { %v1865_v16 = vpop.permute.xlu1 %1864 }
0x2984   :  { %v8505_v63 = vmul.f32 %v7616_v12, %v1865_v16 }
0x2986   :  { %v1873_v27 = vpack.c.bf16 %v8505_v63, %v8505_v63 }
0x2987   :  { %v1662_v43 = vpop.permute.xlu1 %1661 }
0x2988   :  { %v1664_v26 = vmul.f32 %v7624_v56, %v1662_v43  ;;  %1875 = vrot.lane.b32.xlu0 %v1873_v27, %s8041_s0 }
0x298a   :  { %1666 = vrot.lane.b32.xlu1 %v1664_v26, %s8041_s0 }
0x29fa   :  { %v1876_v28 = vpop.permute.xlu0 %1875 }
0x29fb   :  { %6918 = vmatmul.mubr.msk.bf16.vlgmr.msra.gmra.mxu0 %vm216_vm11, %v1876_v28 }
0x29fc   :  { %v1667_v22 = vpop.permute.xlu1 %1666  ;;  %6930 = vmatpush3.bf16.msra.mxu0 %v8475_v51  ;;  %6933 = vmatprep.mubr.msk.bf16.mxu0 %vm8040_vm10, %v8039_v14 }
0x29fd   :  { %v1669_v30 = vadd.f32 %v1667_v22, %v1659_v29  ;;  %6931 = vmatprep.subr.bf16.mxu0 %v8039_v14 }
0x29ff   :  { %7625 = vtanh.f32 %v1669_v30 }
0x2a00   :  { %6932 = vmatpush3.bf16.msra.mxu0 %v8480_v39 }
0x2a01   :  { %6945 = vmatprep.subr.bf16.mxu0 %v8039_v14 }
0x2a0c   :  { %v7626_v52 = vpop.eup %7625 }
0x2a0d   :  { %1672 = vrot.lane.b32.xlu1 %v7626_v52, %s8036_s30 }
0x2a11   :  { %1446 = vrot.lane.b32.xlu1 %v8427_v60, %s8041_s0 }
0x2a15   :  { %1600 = vrot.lane.b32.xlu1 %v8467_v44, %s8041_s0 }
0x2a7f   :  { %v1673_v31 = vpop.permute.xlu1 %1672 }
0x2a80   :  { %v8533_v61 = vmul.f32 %v7624_v56, %v1673_v31 }
0x2a83   :  { %v1447_v21 = vpop.permute.xlu1 %1446 }
0x2a84   :  { %1449 = vst.msk [vmem:[#allocation4 + $0x20] sm:$0xff] %vm216_vm11, %v1447_v21 }
0x2a87   :  { %v1601_v32 = vpop.permute.xlu1 %1600 }
0x2a88   :  { %1603 = vst.msk [vmem:[#allocation4 + $0x30] sm:$0xff] %vm216_vm11, %v1601_v32 }
0x2a8f   :  { %v1688_v10 = vld [vmem:[#allocation4 + $0x30] sm:$0xff] }
0x2abb   :  { %v1914_v58 = vpop.f32.mrf.mxu0 }
0x2abc   :  { %v1920_v9 = vadd.f32 %v1914_v58, %v1763_v37 }
0x2abd   :  { %v6919_v15 = vpop.f32.mrf.mxu0 }
0x2abe   :  { %7627 = vtanh.f32 %v1920_v9  ;;  %v6312_v44 = vmul.f32 -1.442695, %v1920_v9 }
0x2abf   :  { %v1917_v45 = vpop.f32.mrf.mxu0 }
0x2ac0   :  { %7629 = vpow2.f32 %v6312_v44 }
0x2ac1   :  { %v6920_v46 = vpop.f32.mrf.mxu0 }
0x2acb   :  { %v7628_v60 = vpop.eup %7627 }
0x2acc   :  { %1930 = vrot.lane.b32.xlu0 %v7628_v60, %s8036_s30 }
0x2acd   :  { %v7630_v3 = vpop.eup %7629 }
0x2ace   :  { %v1924_v47 = vadd.f32 1.0, %v7630_v3 }
0x2ad0   :  { %7631 = vrcp.f32 %v1924_v47 }
0x2add   :  { %v7632_v48 = vpop.eup %7631 }
0x2ade   :  { %v1928_v49 = vmul.f32 %v7632_v48, %v1861_v18 }
0x2b3e   :  { %v1931_v42 = vpop.permute.xlu0 %1930 }
0x2b3f   :  { %v1933_v36 = vmul.f32 %v7632_v48, %v1931_v42 }
0x2b41   :  { %1935 = vrot.lane.b32.xlu0 %v1933_v36, %s8041_s0 }
0x2bb3   :  { %v1936_v50 = vpop.permute.xlu0 %1935 }
0x2bb4   :  { %v1938_v40 = vadd.f32 %v1936_v50, %v1928_v49 }
0x2bb6   :  { %7633 = vtanh.f32 %v1938_v40 }
0x2bc3   :  { %v7634_v54 = vpop.eup %7633 }
0x2bc4   :  { %1941 = vrot.lane.b32.xlu0 %v7634_v54, %s8036_s30 }
0x2bc8   :  { %1523 = vrot.lane.b32.xlu0 %v8443_v57, %s8041_s0  ;;  %v1686_v57 = vld [vmem:[#allocation4 + $0x20] sm:$0xff] }
0x2bcc   :  { %1677 = vrot.lane.b32.xlu0 %v8533_v61, %s8041_s0 }
0x2c36   :  { %v1942_v1 = vpop.permute.xlu0 %1941 }
0x2c37   :  { %v8537_v2 = vmul.f32 %v7632_v48, %v1942_v1 }
0x2c39   :  { %v1950_v4 = vpack.c.bf16 %v8537_v2, %v8537_v2 }
0x2c3a   :  { %v1524_v5 = vpop.permute.xlu0 %1523 }
0x2c3b   :  { %1526 = vst.msk [vmem:[#allocation4 + $0x28] sm:$0xff] %vm216_vm11, %v1524_v5  ;;  %1952 = vrot.lane.b32.xlu1 %v1950_v4, %s8041_s0 }
0x2c3e   :  { %v1678_v6 = vpop.permute.xlu0 %1677 }
0x2c3f   :  { %1680 = vst.msk [vmem:[#allocation4 + $0x38] sm:$0xff] %vm216_vm11, %v1678_v6 }
0x2c42   :  { %v1687_v7 = vld [vmem:[#allocation4 + $0x28] sm:$0xff] }
0x2c43   :  { %v1700_v8 = vpack.c.bf16 %v1687_v7, %v1686_v57 }
0x2c45   :  { %6901 = vmatprep.mubr.msk.bf16.mxu1 %vm216_vm11, %v1700_v8 }
0x2c46   :  { %v1689_v34 = vld [vmem:[#allocation4 + $0x38] sm:$0xff] }
0x2c47   :  { %v1701_v59 = vpack.c.bf16 %v1689_v34, %v1688_v10 }
0x2c49   :  { %6902 = vmatmul.mubr.msk.bf16.gmra.mxu1 %vm216_vm11, %v1701_v59 }
0x2c4a   :  { %6925 = vmatprep.mubr.msk.bf16.mxu1 %vm8040_vm10, %v8039_v14 }
0x2cad   :  { %v1953_v11 = vpop.permute.xlu1 %1952 }
0x2cae   :  { %6926 = vmatmul.mubr.msk.bf16.vlgmr.msra.gmra.mxu1 %vm216_vm11, %v1953_v11 }
0x2caf   :  { %6938 = vmatpush3.bf16.msra.mxu1 %v8475_v51  ;;  %6941 = vmatprep.mubr.msk.bf16.mxu1 %vm8040_vm10, %v8039_v14 }
0x2cb0   :  { %6939 = vmatprep.subr.bf16.mxu1 %v8039_v14 }
0x2cb3   :  { %6940 = vmatpush3.bf16.msra.mxu1 %v8480_v39 }
0x2cb4   :  { %6953 = vmatprep.subr.bf16.mxu1 %v8039_v14 }
0x2d09   :  { %v8555_v41 = vpop.f32.mrf.mxu1 }
0x2d0b   :  { %v8557_v12 = vpop.f32.mrf.mxu1 }
0x2d0d   :  { %v8559_v35 = vpop.f32.mrf.mxu1 }
0x2d0f   :  { %v8561_v13 = vpop.f32.mrf.mxu1 }
0x2d6e   :  { %v1991_v17 = vpop.f32.mrf.mxu1 }
0x2d6f   :  { %v1997_v53 = vadd.f32 %v8498_v62, %v1991_v17 }
0x2d70   :  { %v6927_v18 = vpop.f32.mrf.mxu1 }
0x2d71   :  { %7635 = vtanh.f32 %v1997_v53  ;;  %v6314_v23 = vmul.f32 -1.442695, %v1997_v53 }
0x2d72   :  { %v1994_v55 = vpop.f32.mrf.mxu1 }
0x2d73   :  { %7637 = vpow2.f32 %v6314_v23 }
0x2d74   :  { %v6928_v19 = vpop.f32.mrf.mxu1 }
0x2d7e   :  { %v7636_v20 = vpop.eup %7635 }
0x2d7f   :  { %2007 = vrot.lane.b32.xlu0 %v7636_v20, %s8036_s30 }
0x2d80   :  { %v7638_v24 = vpop.eup %7637 }
0x2d81   :  { %v2001_v25 = vadd.f32 1.0, %v7638_v24 }
0x2d83   :  { %7639 = vrcp.f32 %v2001_v25 }
0x2d90   :  { %v7640_v16 = vpop.eup %7639 }
0x2d91   :  { %v2005_v43 = vmul.f32 %v7640_v16, %v1938_v40 }
0x2df1   :  { %v2008_v27 = vpop.permute.xlu0 %2007 }
0x2df2   :  { %v2010_v56 = vmul.f32 %v7640_v16, %v2008_v27 }
0x2df4   :  { %2012 = vrot.lane.b32.xlu1 %v2010_v56, %s8041_s0 }
0x2e66   :  { %v2013_v26 = vpop.permute.xlu1 %2012 }
0x2e67   :  { %v2015_v62 = vadd.f32 %v2013_v26, %v2005_v43 }
0x2e69   :  { %7641 = vtanh.f32 %v2015_v62 }
0x2e76   :  { %v7642_v28 = vpop.eup %7641 }
0x2e77   :  { %2018 = vrot.lane.b32.xlu0 %v7642_v28, %s8036_s30 }
0x2ee9   :  { %v2019_v29 = vpop.permute.xlu0 %2018 }
0x2eea   :  { %v8567_v22 = vmul.f32 %v7640_v16, %v2019_v29 }
0x2eec   :  { %v2027_v30 = vpack.c.bf16 %v8567_v22, %v8567_v22 }
0x2eee   :  { %2029 = vrot.lane.b32.xlu1 %v2027_v30, %s8041_s0 }
0x2f60   :  { %v2030_v52 = vpop.permute.xlu1 %2029 }
0x2f61   :  { %6934 = vmatmul.mubr.msk.bf16.vlgmr.msra.gmra.mxu0 %vm216_vm11, %v2030_v52 }
0x2f62   :  { %6946 = vmatpush3.bf16.msra.mxu0 %v8475_v51  ;;  %6949 = vmatprep.mubr.msk.bf16.mxu0 %vm8040_vm10, %v8039_v14 }
0x2f63   :  { %6947 = vmatprep.subr.bf16.mxu0 %v8039_v14 }
0x2f66   :  { %6948 = vmatpush3.bf16.msra.mxu0 %v8480_v39 }
0x2f67   :  { %6961 = vmatprep.subr.bf16.mxu0 %v8039_v14 }
0x3021   :  { %v2068_v31 = vpop.f32.mrf.mxu0 }
0x3022   :  { %v2074_v21 = vadd.f32 %v8526_v33, %v2068_v31 }
0x3023   :  { %v6935_v32 = vpop.f32.mrf.mxu0 }
0x3024   :  { %7643 = vtanh.f32 %v2074_v21  ;;  %v6316_v15 = vmul.f32 -1.442695, %v2074_v21 }
0x3025   :  { %v2071_v37 = vpop.f32.mrf.mxu0 }
0x3026   :  { %7645 = vpow2.f32 %v6316_v15 }
0x3027   :  { %v6936_v58 = vpop.f32.mrf.mxu0 }
0x3031   :  { %v7644_v9 = vpop.eup %7643 }
0x3032   :  { %2084 = vrot.lane.b32.xlu0 %v7644_v9, %s8036_s30 }
0x3033   :  { %v7646_v45 = vpop.eup %7645 }
0x3034   :  { %v2078_v46 = vadd.f32 1.0, %v7646_v45 }
0x3036   :  { %7647 = vrcp.f32 %v2078_v46 }
0x3043   :  { %v7648_v60 = vpop.eup %7647 }
0x3044   :  { %v2082_v47 = vmul.f32 %v7648_v60, %v2015_v62 }
0x30a4   :  { %v2085_v44 = vpop.permute.xlu0 %2084 }
0x30a5   :  { %v2087_v3 = vmul.f32 %v7648_v60, %v2085_v44 }
0x30a7   :  { %2089 = vrot.lane.b32.xlu1 %v2087_v3, %s8041_s0 }
0x3119   :  { %v2090_v48 = vpop.permute.xlu1 %2089 }
0x311a   :  { %v2092_v33 = vadd.f32 %v2090_v48, %v2082_v47 }
0x311c   :  { %7649 = vtanh.f32 %v2092_v33 }
0x3129   :  { %v7650_v42 = vpop.eup %7649 }
0x312a   :  { %2095 = vrot.lane.b32.xlu0 %v7650_v42, %s8036_s30 }
0x319c   :  { %v2096_v36 = vpop.permute.xlu0 %2095 }
0x319d   :  { %v8583_v49 = vmul.f32 %v7648_v60, %v2096_v36 }
0x319f   :  { %v2104_v50 = vpack.c.bf16 %v8583_v49, %v8583_v49 }
0x31a1   :  { %2106 = vrot.lane.b32.xlu1 %v2104_v50, %s8041_s0 }
0x3213   :  { %v2107_v40 = vpop.permute.xlu1 %2106 }
0x3214   :  { %6942 = vmatmul.mubr.msk.bf16.vlgmr.msra.gmra.mxu1 %vm216_vm11, %v2107_v40 }
0x3215   :  { %6954 = vmatpush3.bf16.msra.mxu1 %v8475_v51  ;;  %6957 = vmatprep.mubr.msk.bf16.mxu1 %vm8040_vm10, %v8039_v14 }
0x3216   :  { %6955 = vmatprep.subr.bf16.mxu1 %v8039_v14 }
0x3219   :  { %6956 = vmatpush3.bf16.msra.mxu1 %v8480_v39 }
0x32d4   :  { %v2145_v54 = vpop.f32.mrf.mxu1 }
0x32d5   :  { %v2151_v1 = vadd.f32 %v2145_v54, %v8557_v12 }
0x32d6   :  { %v6943_v4 = vpop.f32.mrf.mxu1 }
0x32d7   :  { %7651 = vtanh.f32 %v2151_v1  ;;  %v6318_v7 = vmul.f32 -1.442695, %v2151_v1 }
0x32d8   :  { %v2148_v5 = vpop.f32.mrf.mxu1 }
0x32d9   :  { %7653 = vpow2.f32 %v6318_v7 }
0x32da   :  { %v6944_v6 = vpop.f32.mrf.mxu1 }
0x32e4   :  { %v7652_v57 = vpop.eup %7651 }
0x32e5   :  { %2161 = vrot.lane.b32.xlu0 %v7652_v57, %s8036_s30 }
0x32e6   :  { %v7654_v8 = vpop.eup %7653 }
0x32e7   :  { %v2155_v10 = vadd.f32 1.0, %v7654_v8 }
0x32e9   :  { %7655 = vrcp.f32 %v2155_v10 }
0x32f6   :  { %v7656_v34 = vpop.eup %7655 }
0x32f7   :  { %v2159_v17 = vmul.f32 %v7656_v34, %v2092_v33 }
0x3357   :  { %v2162_v59 = vpop.permute.xlu0 %2161 }
0x3358   :  { %v2164_v11 = vmul.f32 %v7656_v34, %v2162_v59 }
0x335a   :  { %2166 = vrot.lane.b32.xlu1 %v2164_v11, %s8041_s0 }
0x33cc   :  { %v2167_v53 = vpop.permute.xlu1 %2166 }
0x33cd   :  { %v2169_v12 = vadd.f32 %v2167_v53, %v2159_v17 }
0x33cf   :  { %7657 = vtanh.f32 %v2169_v12 }
0x33dc   :  { %v7658_v18 = vpop.eup %7657 }
0x33dd   :  { %2172 = vrot.lane.b32.xlu0 %v7658_v18, %s8036_s30 }
0x344f   :  { %v2173_v55 = vpop.permute.xlu0 %2172 }
0x3450   :  { %v8598_v19 = vmul.f32 %v7656_v34, %v2173_v55 }
0x3452   :  { %v2181_v20 = vpack.c.bf16 %v8598_v19, %v8598_v19 }
0x3454   :  { %2183 = vrot.lane.b32.xlu1 %v2181_v20, %s8041_s0 }
0x34c6   :  { %v2184_v23 = vpop.permute.xlu1 %2183 }
0x34c7   :  { %6950 = vmatmul.mubr.msk.bf16.vlgmr.msra.gmra.mxu0 %vm216_vm11, %v2184_v23 }
0x34c8   :  { %6962 = vmatpush3.bf16.msra.mxu0 %v8475_v51  ;;  %6965 = vmatprep.mubr.msk.bf16.mxu0 %vm8040_vm10, %v8039_v14 }
0x34c9   :  { %6963 = vmatprep.subr.bf16.mxu0 %v8039_v14 }
0x34cc   :  { %6964 = vmatpush3.bf16.msra.mxu0 %v8480_v39 }
0x34cd   :  { %6981 = vmatprep.subr.bf16.mxu0 %v8039_v14 }
0x3587   :  { %v2222_v24 = vpop.f32.mrf.mxu0 }
0x3588   :  { %v2228_v25 = vadd.f32 %v2222_v24, %v8561_v13 }
0x3589   :  { %v6951_v16 = vpop.f32.mrf.mxu0 }
0x358a   :  { %7659 = vtanh.f32 %v2228_v25  ;;  %v6320_v51 = vmul.f32 -1.442695, %v2228_v25 }
0x358b   :  { %v2225_v27 = vpop.f32.mrf.mxu0 }
0x358c   :  { %7661 = vpow2.f32 %v6320_v51  ;;  %v7464_v27 = vld [vmem:[%s9759_s4] sm:$0xff]  }
0x358d   :  { %v6952_v56 = vpop.f32.mrf.mxu0 }
0x358e   :  { %v7465_v56 = vld [vmem:[%s9759_s4 + $0x18] sm:$0xff]  }
0x3597   :  { %v7660_v43 = vpop.eup %7659 }
0x3598   :  { %2238 = vrot.lane.b32.xlu0 %v7660_v43, %s8036_s30  ;;  %v7466_v43 = vld [vmem:[%s9759_s4 + $0x10] sm:$0xff]  }
0x3599   :  { %v7662_v26 = vpop.eup %7661 }
0x359a   :  { %v2232_v62 = vadd.f32 1.0, %v7662_v26 }
0x359c   :  { %7663 = vrcp.f32 %v2232_v62 }
0x35a9   :  { %v7664_v28 = vpop.eup %7663 }
0x35aa   :  { %v2236_v30 = vmul.f32 %v7664_v28, %v2169_v12 }
0x360a   :  { %v2239_v29 = vpop.permute.xlu0 %2238 }
0x360b   :  { %v2241_v39 = vmul.f32 %v7664_v28, %v2239_v29 }
0x360d   :  { %2243 = vrot.lane.b32.xlu1 %v2241_v39, %s8041_s0 }
0x367f   :  { %v2244_v52 = vpop.permute.xlu1 %2243 }
0x3680   :  { %v2246_v13 = vadd.f32 %v2244_v52, %v2236_v30 }
0x3682   :  { %7665 = vtanh.f32 %v2246_v13 }
0x368f   :  { %v7666_v31 = vpop.eup %7665 }
0x3690   :  { %2249 = vrot.lane.b32.xlu0 %v7666_v31, %s8036_s30 }
0x3702   :  { %v2250_v21 = vpop.permute.xlu0 %2249 }
0x3703   :  { %v8614_v32 = vmul.f32 %v7664_v28, %v2250_v21 }
0x3705   :  { %v2258_v37 = vpack.c.bf16 %v8614_v32, %v8614_v32 }
0x3707   :  { %2260 = vrot.lane.b32.xlu1 %v2258_v37, %s8041_s0 }
0x3779   :  { %v2261_v58 = vpop.permute.xlu1 %2260 }
0x377a   :  { %6958 = vmatmul.mubr.msk.bf16.vlgmr.msra.gmra.mxu1 %vm216_vm11, %v2261_v58 }
0x383a   :  { %v2299_v9 = vpop.f32.mrf.mxu1 }
0x383b   :  { %v2305_v15 = vadd.f32 %v8555_v41, %v2299_v9 }
0x383c   :  { %v6959_v45 = vpop.f32.mrf.mxu1 }
0x383d   :  { %7667 = vtanh.f32 %v2305_v15  ;;  %v6322_v3 = vmul.f32 -1.442695, %v2305_v15 }
0x383e   :  { %v2302_v46 = vpop.f32.mrf.mxu1 }
0x383f   :  { %7669 = vpow2.f32 %v6322_v3 }
0x3840   :  { %v6960_v60 = vpop.f32.mrf.mxu1 }
0x384a   :  { %v7668_v44 = vpop.eup %7667 }
0x384b   :  { %2315 = vrot.lane.b32.xlu0 %v7668_v44, %s8036_s30 }
0x384c   :  { %v7670_v47 = vpop.eup %7669 }
0x384d   :  { %v2309_v48 = vadd.f32 1.0, %v7670_v47 }
0x384f   :  { %7671 = vrcp.f32 %v2309_v48  ;;  %v6325_v48 = vld [vmem:[%s9760_s5] ss:$0 sm:$0xff] }
0x385c   :  { %v7672_v33 = vpop.eup %7671 }
0x385d   :  { %v2313_v50 = vmul.f32 %v7672_v33, %v2246_v13 }
0x38bd   :  { %v2316_v42 = vpop.permute.xlu0 %2315 }
0x38be   :  { %v2318_v36 = vmul.f32 %v7672_v33, %v2316_v42  ;;  %v6332_v42 = vld [vmem:[%s9760_s5 + $0x1] ss:$0 sm:$0xff] }
0x38c0   :  { %2320 = vrot.lane.b32.xlu1 %v2318_v36, %s8041_s0 }
0x3932   :  { %v2321_v40 = vpop.permute.xlu1 %2320 }
0x3933   :  { %v2323_v41 = vadd.f32 %v2321_v40, %v2313_v50 }
0x3935   :  { %7673 = vtanh.f32 %v2323_v41 }
0x3942   :  { %v7674_v54 = vpop.eup %7673 }
0x3943   :  { %2326 = vrot.lane.b32.xlu0 %v7674_v54, %s8036_s30 }
0x39b5   :  { %v2327_v1 = vpop.permute.xlu0 %2326 }
0x39b6   :  { %v2329_v4 = vmul.f32 %v7672_v33, %v2327_v1 }
0x39b8   :  { %v2335_v5 = vpack.c.bf16 %v2329_v4, %v2329_v4 }
0x39ba   :  { %2337 = vrot.lane.b32.xlu1 %v2335_v5, %s8041_s0 }
0x3a2c   :  { %v2338_v6 = vpop.permute.xlu1 %2337 }
0x3a2d   :  { %6966 = vmatmul.mubr.msk.bf16.vlgmr.msra.gmra.mxu0 %vm216_vm11, %v2338_v6 }
0x3a2e   :  { %6985 = vmatprep.mubr.msk.bf16.mxu0 %vm8040_vm10, %v8039_v14  ;;  %6982 = vmatpush3.bf16.msra.mxu0 %v7465_v56 }
0x3a2f   :  { %6983 = vmatprep.subr.bf16.mxu0 %v8039_v14 }
0x3a32   :  { %6984 = vmatpush3.bf16.msra.mxu0 %v7466_v43 }
0x3a33   :  { %6989 = vmatprep.subr.bf16.mxu0 %v8039_v14 }
0x3aed   :  { %v2376_v57 = vpop.f32.mrf.mxu0 }
0x3aee   :  { %v2382_v7 = vadd.f32 %v8559_v35, %v2376_v57 }
0x3aef   :  { %v6967_v8 = vpop.f32.mrf.mxu0 }
0x3af0   :  { %7675 = vtanh.f32 %v2382_v7  ;;  %v6324_v11 = vmul.f32 -1.442695, %v2382_v7 }
0x3af1   :  { %v2379_v10 = vpop.f32.mrf.mxu0 }
0x3af2   :  { %7677 = vpow2.f32 %v6324_v11 }
0x3af3   :  { %v6968_v34 = vpop.f32.mrf.mxu0 }
0x3afd   :  { %v7676_v59 = vpop.eup %7675 }
0x3afe   :  { %2392 = vrot.lane.b32.xlu0 %v7676_v59, %s8036_s30 }
0x3aff   :  { %v7678_v17 = vpop.eup %7677 }
0x3b00   :  { %v2386_v53 = vadd.f32 1.0, %v7678_v17 }
0x3b02   :  { %7679 = vrcp.f32 %v2386_v53 }
0x3b0f   :  { %v7680_v12 = vpop.eup %7679 }
0x3b10   :  { %v2390_v35 = vmul.f32 %v7680_v12, %v2323_v41 }
0x3b70   :  { %v2393_v18 = vpop.permute.xlu0 %2392 }
0x3b71   :  { %v2395_v55 = vmul.f32 %v7680_v12, %v2393_v18 }
0x3b73   :  { %2397 = vrot.lane.b32.xlu1 %v2395_v55, %s8041_s0 }
0x3b77   :  { %1869 = vrot.lane.b32.xlu1 %v8505_v63, %s8041_s0  ;;  %v7463_v63 = vld [vmem:[%s9759_s4 + $0x8] sm:$0xff]  }
0x3b78   :  { %6969 = vmatprep.subr.bf16.mxu1 %v7463_v63 }
0x3b79   :  { %6970 = vmatpush3.bf16.msra.mxu1 %v7463_v63 }
0x3b7a   :  { %6971 = vmatprep.subr.bf16.mxu1 %v7464_v27 }
0x3b7b   :  { %2023 = vrot.lane.b32.xlu1 %v8567_v22, %s8041_s0 }
0x3b7d   :  { %6972 = vmatpush3.bf16.msra.mxu1 %v7464_v27 }
0x3b7e   :  { %7013 = vmatprep.subr.bf16.mxu1 %v8039_v14 }
0x3b7f   :  { %2177 = vrot.lane.b32.xlu1 %v8598_v19, %s8041_s0 }
0x3b83   :  { %2331 = vrot.lane.b32.xlu1 %v2329_v4, %s8041_s0 }
0x3be5   :  { %v2398_v20 = vpop.permute.xlu1 %2397 }
0x3be6   :  { %v2400_v23 = vadd.f32 %v2398_v20, %v2390_v35 }
0x3be8   :  { %7681 = vtanh.f32 %v2400_v23 }
0x3be9   :  { %v1870_v24 = vpop.permute.xlu1 %1869 }
0x3bea   :  { %1872 = vst.msk [vmem:[#allocation3] sm:$0xff] %vm216_vm11, %v1870_v24 }
0x3bed   :  { %v2024_v25 = vpop.permute.xlu1 %2023 }
0x3bee   :  { %2026 = vst.msk [vmem:[#allocation3 + $0x10] sm:$0xff] %vm216_vm11, %v2024_v25  ;;  %v6336_v25 = vld [vmem:[%s9760_s5 + $0x2] ss:$0 sm:$0xff] }
0x3bf1   :  { %v2178_v16 = vpop.permute.xlu1 %2177  ;;  %v8670_v52 = vld [vmem:[#allocation3] sm:$0xff] }
0x3bf2   :  { %2180 = vst.msk [vmem:[#allocation3 + $0x20] sm:$0xff] %vm216_vm11, %v2178_v16 }
0x3bf5   :  { %v7682_v22 = vpop.eup %7681  ;;  %v2332_v19 = vpop.permute.xlu1 %2331 }
0x3bf6   :  { %2334 = vst.msk [vmem:[#allocation3 + $0x30] sm:$0xff] %vm216_vm11, %v2332_v19  ;;  %2403 = vrot.lane.b32.xlu0 %v7682_v22, %s8036_s30 }
0x3bfa   :  { %1946 = vrot.lane.b32.xlu0 %v8537_v2, %s8041_s0 }
0x3bfd   :  { %v8694_v45 = vld [vmem:[#allocation3 + $0x30] sm:$0xff] }
0x3bfe   :  { %2100 = vrot.lane.b32.xlu0 %v8583_v49, %s8041_s0  ;;  %v1681_v49 = vadd.f32 %v8533_v61, %v8362_v38  ;;  %v8678_v61 = vld [vmem:[#allocation3 + $0x10] sm:$0xff] }
0x3c02   :  { %2254 = vrot.lane.b32.xlu0 %v8614_v32, %s8041_s0  ;;  %v8685_v32 = vld [vmem:[#allocation3 + $0x20] sm:$0xff] }
0x3c68   :  { %v2404_v2 = vpop.permute.xlu0 %2403 }
0x3c69   :  { %v2406_v51 = vmul.f32 %v7680_v12, %v2404_v2 }
0x3c6b   :  { %v2412_v26 = vadd.f32 %v2406_v51, %v1681_v49  ;;  %2408 = vrot.lane.b32.xlu0 %v2406_v51, %s8041_s0 }
0x3c6c   :  { %v1947_v62 = vpop.permute.xlu0 %1946 }
0x3c6d   :  { %v2421_v28 = vmul.f32 0.33333334, %v2412_v26  ;;  %1949 = vst.msk [vmem:[#allocation3 + $0x8] sm:$0xff] %vm216_vm11, %v1947_v62 }
0x3c6f   :  { %v2530_v29 = vpack.c.bf16 %v2421_v28, %v2421_v28 }
0x3c70   :  { %v2101_v39 = vpop.permute.xlu0 %2100 }
0x3c71   :  { %2103 = vst.msk [vmem:[#allocation3 + $0x18] sm:$0xff] %vm216_vm11, %v2101_v39  ;;  %2536 = vrot.lane.b32.xlu1 %v2530_v29, %s8041_s0 }
0x3c74   :  { %v2255_v30 = vpop.permute.xlu0 %2254  ;;  %v8672_v13 = vld [vmem:[#allocation3 + $0x8] sm:$0xff] }
0x3c75   :  { %2257 = vst.msk [vmem:[#allocation3 + $0x28] sm:$0xff] %vm216_vm11, %v2255_v30  ;;  %v2433_v38 = vpack.c.bf16 %v8672_v13, %v8670_v52 }
0x3c77   :  { %6973 = vmatprep.mubr.msk.bf16.mxu1 %vm216_vm11, %v2433_v38 }
0x3c78   :  { %v8680_v31 = vld [vmem:[#allocation3 + $0x18] sm:$0xff] }
0x3c79   :  { %v2434_v21 = vpack.c.bf16 %v8680_v31, %v8678_v61 }
0x3c7b   :  { %6974 = vmatmul.mubr.msk.bf16.vlgmr.msra.gmra.mxu1 %vm216_vm11, %v2434_v21 }
0x3c7c   :  { %v8687_v37 = vld [vmem:[#allocation3 + $0x28] sm:$0xff] }
0x3c7d   :  { %v2435_v58 = vpack.c.bf16 %v8687_v37, %v8685_v32 }
0x3c7f   :  { %6977 = vmatprep.mubr.msk.bf16.mxu1 %vm216_vm11, %v2435_v58 }
0x3cdd   :  { %v2409_v9 = vpop.permute.xlu0 %2408 }
0x3cde   :  { %2411 = vst.msk [vmem:[#allocation3 + $0x38] sm:$0xff] %vm216_vm11, %v2409_v9 }
0x3ce3   :  { %v2537_v15 = vpop.permute.xlu1 %2536 }
0x3ce4   :  { %6986 = vmatmul.mubr.msk.bf16.vlgmr.msra.gmra.mxu0 %vm216_vm11, %v2537_v15 }
0x3ce5   :  { %v8696_v46 = vld [vmem:[#allocation3 + $0x38] sm:$0xff]  ;;  %6993 = vmatprep.mubr.msk.bf16.mxu0 %vm8040_vm10, %v8039_v14 }
0x3ce6   :  { %v2436_v60 = vpack.c.bf16 %v8696_v46, %v8694_v45 }
0x3ce8   :  { %6978 = vmatmul.mubr.msk.bf16.gmra.mxu1 %vm216_vm11, %v2436_v60 }
0x3ce9   :  { %7017 = vmatprep.mubr.msk.bf16.mxu1 %vm8040_vm10, %v8039_v14 }
0x3d3b   :  { %v6975_v44 = vpop.f32.mrf.mxu1 }
0x3d3c   :  { %v2508_v50 = vadd.f32 %v6975_v44, %v6325_v48 }
0x3d3d   :  { %v2499_v3 = vpop.f32.mrf.mxu1 }
0x3d3e   :  { %v2500_v40 = vadd.f32 %v6325_v48, %v2499_v3 }
0x3d3f   :  { %v6976_v47 = vpop.f32.mrf.mxu1 }
0x3d40   :  { %v2511_v4 = vadd.f32 %v6976_v47, %v6325_v48 }
0x3d41   :  { %v2502_v33 = vpop.f32.mrf.mxu1 }
0x3d42   :  { %v2503_v41 = vadd.f32 %v6325_v48, %v2502_v33 }
0x3da4   :  { %v2587_v36 = vpop.f32.mrf.mxu0 }
0x3da5   :  { %v2588_v54 = vadd.f32 %v6332_v42, %v2587_v36 }
0x3da6   :  { %v6987_v1 = vpop.f32.mrf.mxu0 }
0x3da7   :  { %v2594_v5 = vadd.f32 %v2588_v54, %v2503_v41  ;;  %v2593_v6 = vadd.f32 %v2588_v54, %v2500_v40  ;;  %v2595_v57 = vadd.f32 %v2588_v54, %v2508_v50  ;;  %v2596_v34 = vadd.f32 %v2588_v54, %v2511_v4 }
0x3da8   :  { %v6979_v7 = vpop.f32.mrf.mxu1  ;;  %v2590_v8 = vpop.f32.mrf.mxu0 }
0x3da9   :  { %v2524_v10 = vadd.f32 %v6979_v7, %v6325_v48  ;;  %7683 = vtanh.f32 %v2594_v5 }
0x3daa   :  { %v2515_v59 = vpop.f32.mrf.mxu1  ;;  %v6988_v11 = vpop.f32.mrf.mxu0  ;;  %7685 = vtanh.f32 %v2593_v6 }
0x3dab   :  { %v2599_v17 = vadd.f32 %v2588_v54, %v2524_v10  ;;  %v2516_v53 = vadd.f32 %v6325_v48, %v2515_v59  ;;  %7687 = vtanh.f32 %v2595_v57 }
0x3dac   :  { %v6980_v12 = vpop.f32.mrf.mxu1  ;;  %7689 = vtanh.f32 %v2596_v34 }
0x3dad   :  { %v2597_v18 = vadd.f32 %v2588_v54, %v2516_v53  ;;  %7691 = vtanh.f32 %v2599_v17  ;;  %v2527_v55 = vadd.f32 %v6980_v12, %v6325_v48 }
0x3dae   :  { %v2518_v35 = vpop.f32.mrf.mxu1 }
0x3daf   :  { %7693 = vtanh.f32 %v2597_v18  ;;  %v2519_v20 = vadd.f32 %v6325_v48, %v2518_v35  ;;  %v2600_v24 = vadd.f32 %v2588_v54, %v2527_v55 }
0x3db1   :  { %v2598_v23 = vadd.f32 %v2588_v54, %v2519_v20 }
0x3db3   :  { %7695 = vtanh.f32 %v2598_v23 }
0x3db4   :  { %7697 = vtanh.f32 %v2600_v24 }
0x3db6   :  { %v7684_v16 = vpop.eup %7683 }
0x3db7   :  { %v7686_v63 = vpop.eup %7685  ;;  %v2614_v22 = vmul.f32 %v7684_v16, %v6336_v25 }
0x3db8   :  { %v7688_v19 = vpop.eup %7687  ;;  %v2613_v27 = vmul.f32 %v7686_v63, %v6336_v25 }
0x3db9   :  { %v2624_v56 = vsel %vm216_vm11, %v2614_v22, 0.0  ;;  %v7690_v43 = vpop.eup %7689  ;;  %v2615_v49 = vmul.f32 %v7688_v19, %v6336_v25 }
0x3dba   :  { %2625 = vadd.xlane.f32.xlu1 %v2624_v56  ;;  %v2621_v2 = vsel %vm216_vm11, %v2613_v27, 0.0  ;;  %v7692_v51 = vpop.eup %7691  ;;  %v2616_v29 = vmul.f32 %v7690_v43, %v6336_v25 }
0x3dbb   :  { %2622 = vadd.xlane.f32.xlu0 %v2621_v2  ;;  %v2627_v28 = vsel %vm216_vm11, %v2615_v49, 0.0  ;;  %v2619_v30 = vmul.f32 %v7692_v51, %v6336_v25 }
0x3dbc   :  { %v7694_v26 = vpop.eup %7693  ;;  %v2630_v21 = vsel %vm216_vm11, %v2616_v29, 0.0 }
0x3dbd   :  { %v2617_v62 = vmul.f32 %v7694_v26, %v6336_v25  ;;  %v2639_v15 = vsel %vm216_vm11, %v2619_v30, 0.0  ;;  %v7467_v30 = vld [vmem:[%s9758_s3 + $0x18] sm:$0xff]  }
0x3dbe   :  { %7014 = vmatpush3.bf16.msra.mxu1 %v7467_v30 }
0x3dbf   :  { %2628 = vadd.xlane.f32.xlu0 %v2627_v28  ;;  %v2633_v39 = vsel %vm216_vm11, %v2617_v62, 0.0  ;;  %7015 = vmatprep.subr.bf16.mxu1 %v8039_v14 }
0x3dc0   :  { %v7696_v38 = vpop.eup %7695  ;;  %2634 = vadd.xlane.f32.xlu1 %v2633_v39 }
0x3dc1   :  { %v2618_v58 = vmul.f32 %v7696_v38, %v6336_v25  ;;  %v7698_v9 = vpop.eup %7697 }
0x3dc2   :  { %v2620_v44 = vmul.f32 %v7698_v9, %v6336_v25 }
0x3dc3   :  { %2631 = vadd.xlane.f32.xlu0 %v2630_v21  ;;  %v2636_v60 = vsel %vm216_vm11, %v2618_v58, 0.0  ;;  %v7468_v21 = vld [vmem:[%s9758_s3 + $0x10] sm:$0xff]   ;;  %v7469_v58 = vld [vmem:[%s9758_s3 + $0x8] sm:$0xff]  }
0x3dc4   :  { %2640 = vadd.xlane.f32.xlu1 %v2639_v15  ;;  %v2642_v3 = vsel %vm216_vm11, %v2620_v44, 0.0  ;;  %7016 = vmatpush3.bf16.msra.mxu1 %v7468_v21  ;;  %v7470_v15 = vld [vmem:[%s9758_s3] sm:$0xff]  }
0x3dc5   :  { %6990 = vmatpush3.bf16.msra.mxu0 %v7469_v58  ;;  %7045 = vmatprep.subr.bf16.mxu1 %v8039_v14 }
0x3dc6   :  { %6991 = vmatprep.subr.bf16.mxu0 %v8039_v14 }
0x3dc7   :  { %2637 = vadd.xlane.f32.xlu0 %v2636_v60 }
0x3dc9   :  { %6992 = vmatpush3.bf16.msra.mxu0 %v7470_v15 }
0x3dca   :  { %7037 = vmatprep.subr.bf16.mxu0 %v8039_v14 }
0x3dcb   :  { %2643 = vadd.xlane.f32.xlu0 %v2642_v3 }
0x3e43   :  { %v2626_v48 = vpop.xlane.xlu1 %2625 }
0x3e44   :  { %v2623_v47 = vpop.xlane.xlu0 %2622 }
0x3e45   :  { %v2645_v42 = vmax.f32 %v2623_v47, %v2626_v48 }
0x3e48   :  { %v2629_v33 = vpop.xlane.xlu0 %2628 }
0x3e49   :  { %v2646_v36 = vmax.f32 %v2645_v42, %v2629_v33  ;;  %v2635_v50 = vpop.xlane.xlu1 %2634 }
0x3e4c   :  { %v2632_v40 = vpop.xlane.xlu0 %2631 }
0x3e4d   :  { %v2647_v41 = vmax.f32 %v2646_v36, %v2632_v40  ;;  %v2641_v5 = vpop.xlane.xlu1 %2640 }
0x3e4f   :  { %v2648_v54 = vmax.f32 %v2647_v41, %v2635_v50 }
0x3e50   :  { %v2638_v1 = vpop.xlane.xlu0 %2637 }
0x3e51   :  { %v2649_v4 = vmax.f32 %v2648_v54, %v2638_v1 }
0x3e53   :  { %v2650_v6 = vmax.f32 %v2649_v4, %v2641_v5 }
0x3e54   :  { %v2644_v57 = vpop.xlane.xlu0 %2643 }
0x3e55   :  { %v2651_v7 = vmax.f32 %v2650_v6, %v2644_v57 }
0x3e57   :  { %v2652_v8 = vsub.f32 %v2623_v47, %v2651_v7  ;;  %v2653_v10 = vsub.f32 %v2626_v48, %v2651_v7  ;;  %v2654_v34 = vsub.f32 %v2629_v33, %v2651_v7  ;;  %v2655_v59 = vsub.f32 %v2632_v40, %v2651_v7 }
0x3e58   :  { %v2656_v11 = vsub.f32 %v2635_v50, %v2651_v7  ;;  %v2657_v18 = vsub.f32 %v2638_v1, %v2651_v7  ;;  %v2658_v35 = vsub.f32 %v2641_v5, %v2651_v7  ;;  %v2659_v24 = vsub.f32 %v2644_v57, %v2651_v7 }
0x3e59   :  { %v2660_v17 = vmul.f32 1.442695, %v2652_v8  ;;  %v2662_v53 = vmul.f32 1.442695, %v2653_v10  ;;  %v2664_v12 = vmul.f32 1.442695, %v2654_v34 }
0x3e5a   :  { %v2666_v55 = vmul.f32 1.442695, %v2655_v59  ;;  %v2668_v20 = vmul.f32 1.442695, %v2656_v11  ;;  %v2670_v23 = vmul.f32 1.442695, %v2657_v18 }
0x3e5b   :  { %7699 = vpow2.f32 %v2660_v17  ;;  %v2672_v25 = vmul.f32 1.442695, %v2658_v35  ;;  %v2674_v16 = vmul.f32 1.442695, %v2659_v24  ;;  %v2747_v11 = vld [vmem:[#allocation2 + $0x8] sm:$0xff]  ;;  %v2748_v17 = vld [vmem:[#allocation2 + $0x10] sm:$0xff] }
0x3e5c   :  { %7701 = vpow2.f32 %v2662_v53  ;;  %v8774_v53 = vld [vmem:[%s9758_s3 + $0x20] sm:$0xff]   ;;  %v2753_v24 = vld [vmem:[#allocation2 + $0x38] sm:$0xff] }
0x3e5d   :  { %7703 = vpow2.f32 %v2664_v12  ;;  %v2749_v12 = vld [vmem:[#allocation2 + $0x18] sm:$0xff]  ;;  %v2750_v35 = vld [vmem:[#allocation2 + $0x20] sm:$0xff] }
0x3e5e   :  { %7705 = vpow2.f32 %v2666_v55  ;;  %v2760_v18 = vpack.c.bf16 %v2749_v12, %v2748_v17  ;;  %v2751_v55 = vld [vmem:[#allocation2 + $0x28] sm:$0xff] }
0x3e5f   :  { %7707 = vpow2.f32 %v2668_v20  ;;  %v2761_v20 = vpack.c.bf16 %v2751_v55, %v2750_v35 }
0x3e60   :  { %7709 = vpow2.f32 %v2670_v23  ;;  %v2752_v23 = vld [vmem:[#allocation2 + $0x30] sm:$0xff] }
0x3e61   :  { %7711 = vpow2.f32 %v2672_v25  ;;  %v2762_v25 = vpack.c.bf16 %v2753_v24, %v2752_v23 }
0x3e62   :  { %7713 = vpow2.f32 %v2674_v16  ;;  %v2754_v16 = vld [vmem:[#allocation2 + $0x40] sm:$0xff] }
0x3e68   :  { %v7700_v63 = vpop.eup %7699 }
0x3e69   :  { %v7702_v22 = vpop.eup %7701  ;;  %2685 = vperm.xlu1 %7446, %v7700_v63  }
0x3e6a   :  { %v2676_v19 = vadd.f32 %v7702_v22, %v7700_v63  ;;  %2690 = vperm.xlu0 %7445, %v7702_v22   ;;  %v7704_v27 = vpop.eup %7703  ;;  %v2763_v63 = vpack.c.bf16 %v2754_v16, %v2754_v16 }
0x3e6b   :  { %v7706_v56 = vpop.eup %7705 }
0x3e6c   :  { %v2677_v43 = vadd.f32 %v7704_v27, %v2676_v19  ;;  %v7708_v2 = vpop.eup %7707 }
0x3e6d   :  { %2695 = vperm.xlu1 %7446, %v7704_v27   ;;  %v7710_v51 = vpop.eup %7709 }
0x3e6e   :  { %v2678_v49 = vadd.f32 %v7706_v56, %v2677_v43  ;;  %2705 = vperm.xlu0 %7445, %v7708_v2   ;;  %v7712_v62 = vpop.eup %7711 }
0x3e6f   :  { %v7714_v39 = vpop.eup %7713 }
0x3e70   :  { %v2679_v26 = vadd.f32 %v7708_v2, %v2678_v49 }
0x3e71   :  { %2700 = vperm.xlu1 %7446, %v7706_v56  }
0x3e72   :  { %v2680_v28 = vadd.f32 %v7710_v51, %v2679_v26  ;;  %2715 = vperm.xlu0 %7445, %v7712_v62  }
0x3e74   :  { %v2681_v29 = vadd.f32 %v7712_v62, %v2680_v28 }
0x3e75   :  { %2710 = vperm.xlu1 %7446, %v7710_v51  }
0x3e76   :  { %v2682_v38 = vadd.f32 %v7714_v39, %v2681_v29 }
0x3e78   :  { %7715 = vrcp.f32 %v2682_v38 }
0x3e79   :  { %2720 = vperm.xlu1 %7446, %v7714_v39  }
0x3e85   :  { %v7716_v9 = vpop.eup %7715 }
0x3e86   :  { %2741 = vperm.xlu0 %7445, %v7716_v9  }
0x3ee4   :  { %v2686_v60 = vpop.permute.xlu1 %2685 }
0x3ee5   :  { %v2691_v44 = vpop.permute.xlu0 %2690  ;;  %v2723_v47 = vmul.f32 %v2686_v60, %v8670_v52 }
0x3ee6   :  { %v2724_v3 = vmul.f32 %v2691_v44, %v8672_v13 }
0x3ee8   :  { %v2696_v48 = vpop.permute.xlu1 %2695  ;;  %v2731_v42 = vadd.f32 %v2724_v3, %v2723_v47 }
0x3ee9   :  { %v2725_v33 = vmul.f32 %v2696_v48, %v8678_v61  ;;  %v2706_v41 = vpop.permute.xlu0 %2705 }
0x3eea   :  { %v2727_v4 = vmul.f32 %v2706_v41, %v8685_v32  ;;  %v8750_v32 = vld [vmem:[%s9758_s3 + $0x38] sm:$0xff]  }
0x3eeb   :  { %v2732_v40 = vadd.f32 %v2731_v42, %v2725_v33 }
0x3eec   :  { %v2701_v36 = vpop.permute.xlu1 %2700 }
0x3eed   :  { %v2726_v50 = vmul.f32 %v2701_v36, %v8680_v31  ;;  %v2716_v57 = vpop.permute.xlu0 %2715 }
0x3eee   :  { %v2729_v52 = vmul.f32 %v2716_v57, %v8694_v45  ;;  %v8755_v45 = vld [vmem:[%s9758_s3 + $0x28] sm:$0xff]  }
0x3eef   :  { %v2733_v54 = vadd.f32 %v2732_v40, %v2726_v50 }
0x3ef0   :  { %v2711_v1 = vpop.permute.xlu1 %2710 }
0x3ef1   :  { %v2734_v5 = vadd.f32 %v2733_v54, %v2727_v4  ;;  %v2728_v6 = vmul.f32 %v2711_v1, %v8687_v37 }
0x3ef3   :  { %v2735_v13 = vadd.f32 %v2734_v5, %v2728_v6 }
0x3ef4   :  { %v2721_v7 = vpop.permute.xlu1 %2720 }
0x3ef5   :  { %v2730_v61 = vmul.f32 %v2721_v7, %v8696_v46  ;;  %v2736_v8 = vadd.f32 %v2735_v13, %v2729_v52  ;;  %v8765_v46 = vld [vmem:[%s9758_s3 + $0x30] sm:$0xff]  }
0x3ef7   :  { %v2737_v10 = vadd.f32 %v2736_v8, %v2730_v61 }
0x3f01   :  { %v2742_v34 = vpop.permute.xlu0 %2741 }
0x3f02   :  { %v2744_v31 = vmul.f32 %v2742_v34, %v2737_v10 }
0x3f04   :  { %2745 = vst.msk [vmem:[#allocation2] sm:$0xff] %vm216_vm11, %v2744_v31 }
0x3f0b   :  { %v2746_v59 = vld [vmem:[#allocation2] sm:$0xff] }
0x3f0c   :  { %v2759_v37 = vpack.c.bf16 %v2747_v11, %v2746_v59 }
0x3f0e   :  { %6994 = vmatmul.mubr.msk.bf16.vlgmr.msra.gmra.mxu0 %vm216_vm11, %v2759_v37  ;;  %7018 = vmatmul.mubr.msk.bf16.vlgmr.msra.gmra.mxu1 %vm216_vm11, %v2759_v37 }
0x3f0f   :  { %7046 = vmatpush3.bf16.msra.mxu1 %v8750_v32  ;;  %6997 = vmatprep.mubr.msk.bf16.mxu0 %vm8040_vm10, %v8039_v14 }
0x3f10   :  { %7021 = vmatprep.mubr.msk.bf16.mxu1 %vm8040_vm10, %v8039_v14  ;;  %7047 = vmatprep.subr.bf16.mxu1 %v8039_v14 }
0x3f11   :  { %7038 = vmatpush3.bf16.msra.mxu0 %v8755_v45 }
0x3f12   :  { %7039 = vmatprep.subr.bf16.mxu0 %v8039_v14 }
0x3f13   :  { %7048 = vmatpush3.bf16.msra.mxu1 %v8765_v46 }
0x3f14   :  { %7061 = vmatprep.subr.bf16.mxu1 %v8039_v14 }
0x3f15   :  { %7040 = vmatpush3.bf16.msra.mxu0 %v8774_v53 }
0x3f16   :  { %6998 = vmatmul.mubr.msk.bf16.gmra.mxu0 %vm216_vm11, %v2760_v18  ;;  %7022 = vmatmul.mubr.msk.bf16.gmra.mxu1 %vm216_vm11, %v2760_v18 }
0x3f17   :  { %7001 = vmatprep.mubr.msk.bf16.mxu0 %vm8040_vm10, %v8039_v14  ;;  %7025 = vmatprep.mubr.msk.bf16.mxu1 %vm8040_vm10, %v8039_v14 }
0x3f18   :  { %7053 = vmatprep.subr.bf16.mxu0 %v8039_v14 }
0x3f1e   :  { %7002 = vmatmul.mubr.msk.bf16.gmra.mxu0 %vm216_vm11, %v2761_v20  ;;  %7026 = vmatmul.mubr.msk.bf16.gmra.mxu1 %vm216_vm11, %v2761_v20 }
0x3f1f   :  { %7005 = vmatprep.mubr.msk.bf16.mxu0 %vm8040_vm10, %v8039_v14  ;;  %7029 = vmatprep.mubr.msk.bf16.mxu1 %vm8040_vm10, %v8039_v14 }
0x3f26   :  { %7006 = vmatmul.mubr.msk.bf16.gmra.mxu0 %vm216_vm11, %v2762_v25  ;;  %7030 = vmatmul.mubr.msk.bf16.gmra.mxu1 %vm216_vm11, %v2762_v25 }
0x3f27   :  { %7009 = vmatprep.mubr.msk.bf16.mxu0 %vm8040_vm10, %v8039_v14  ;;  %7033 = vmatprep.mubr.msk.bf16.mxu1 %vm8040_vm10, %v8039_v14 }
0x3f2e   :  { %7010 = vmatmul.mubr.msk.bf16.gmra.mxu0 %vm216_vm11, %v2763_v63  ;;  %7034 = vmatmul.mubr.msk.bf16.gmra.mxu1 %vm216_vm11, %v2763_v63 }
0x3f2f   :  { %7041 = vmatprep.mubr.msk.bf16.mxu0 %vm8040_vm10, %v8039_v14  ;;  %7049 = vmatprep.mubr.msk.bf16.mxu1 %vm8040_vm10, %v8039_v14 }
0x3f36   :  { %7042 = vmatmul.mubr.bf16.vlgmr.msra.gmra.mxu0 %v8038_v0  ;;  %7050 = vmatmul.mubr.bf16.vlgmr.msra.gmra.mxu1 %v8038_v0 }
0x3f37   :  { %7062 = vmatpush3.bf16.msra.mxu1 %v8750_v32  ;;  %7054 = vmatpush3.bf16.msra.mxu0 %v8755_v45 }
0x3f38   :  { %7063 = vmatprep.subr.bf16.mxu1 %v8039_v14  ;;  %7055 = vmatprep.subr.bf16.mxu0 %v8039_v14 }
0x3f39   :  { %7065 = vmatprep.mubr.msk.bf16.mxu1 %vm8040_vm10, %v8039_v14  ;;  %7057 = vmatprep.mubr.msk.bf16.mxu0 %vm8040_vm10, %v8039_v14 }
0x3f3b   :  { %7064 = vmatpush3.bf16.msra.mxu1 %v8765_v46  ;;  %7056 = vmatpush3.bf16.msra.mxu0 %v8774_v53 }
0x3f3c   :  { %7077 = vmatprep.subr.bf16.mxu1 %v8039_v14  ;;  %7069 = vmatprep.subr.bf16.mxu0 %v8039_v14 }
0x3fce   :  { %v2825_v22 = vpop.f32.mrf.mxu0  ;;  %v8819_v19 = vpop.f32.mrf.mxu1 }
0x3fd0   :  { %v6995_v27 = vpop.f32.mrf.mxu0  ;;  %v7019_v56 = vpop.f32.mrf.mxu1 }
0x3fd2   :  { %v8821_v43 = vpop.f32.mrf.mxu0  ;;  %v8823_v2 = vpop.f32.mrf.mxu1 }
0x3fd4   :  { %v6996_v49 = vpop.f32.mrf.mxu0  ;;  %v7020_v51 = vpop.f32.mrf.mxu1 }
0x3fd6   :  { %v8825_v26 = vpop.f32.mrf.mxu0  ;;  %v8827_v62 = vpop.f32.mrf.mxu1 }
0x3fd8   :  { %v6999_v28 = vpop.f32.mrf.mxu0  ;;  %v7023_v29 = vpop.f32.mrf.mxu1 }
0x3fda   :  { %v8829_v39 = vpop.f32.mrf.mxu0  ;;  %v8831_v30 = vpop.f32.mrf.mxu1 }
0x3fdc   :  { %v7000_v38 = vpop.f32.mrf.mxu0  ;;  %v7024_v21 = vpop.f32.mrf.mxu1 }
0x3fde   :  { %v8833_v58 = vpop.f32.mrf.mxu0  ;;  %v8835_v9 = vpop.f32.mrf.mxu1 }
0x3fe0   :  { %v7003_v15 = vpop.f32.mrf.mxu0  ;;  %v7027_v60 = vpop.f32.mrf.mxu1 }
0x3fe2   :  { %v8837_v44 = vpop.f32.mrf.mxu0  ;;  %v8839_v3 = vpop.f32.mrf.mxu1 }
0x3fe4   :  { %v7004_v47 = vpop.f32.mrf.mxu0  ;;  %v7028_v48 = vpop.f32.mrf.mxu1 }
0x3fe6   :  { %v8841_v33 = vpop.f32.mrf.mxu0  ;;  %v8843_v42 = vpop.f32.mrf.mxu1 }
0x3fe8   :  { %v7007_v36 = vpop.f32.mrf.mxu0  ;;  %v7031_v50 = vpop.f32.mrf.mxu1 }
0x3fea   :  { %v8845_v40 = vpop.f32.mrf.mxu0  ;;  %v8847_v41 = vpop.f32.mrf.mxu1 }
0x3fec   :  { %v7008_v54 = vpop.f32.mrf.mxu0  ;;  %v7032_v1 = vpop.f32.mrf.mxu1 }
0x3fee   :  { %v8849_v4 = vpop.f32.mrf.mxu0  ;;  %v2945_v5 = vpop.f32.mrf.mxu1 }
0x3ff0   :  { %v7011_v6 = vpop.f32.mrf.mxu0  ;;  %v7035_v57 = vpop.f32.mrf.mxu1 }
0x3ff2   :  { %v2860_v13 = vpop.f32.mrf.mxu0  ;;  %v2948_v7 = vpop.f32.mrf.mxu1 }
0x3ff4   :  { %v7012_v52 = vpop.f32.mrf.mxu0  ;;  %v7036_v61 = vpop.f32.mrf.mxu1 }
0x3ff6   :  { %v3005_v8 = vpop.f32.mrf.mxu0  ;;  %v3058_v10 = vpop.f32.mrf.mxu1 }
0x3ff7   :  { %v3011_v34 = vadd.f32 %v3005_v8, %v2825_v22  ;;  %v3064_v31 = vadd.f32 %v3058_v10, %v2945_v5 }
0x3ff8   :  { %v7051_v59 = vpop.f32.mrf.mxu1  ;;  %v7043_v11 = vpop.f32.mrf.mxu0 }
0x3ff9   :  { %7717 = vtanh.f32 %v3011_v34  ;;  %v6355_v20 = vmul.f32 -1.442695, %v3011_v34  ;;  %v6356_v23 = vmul.f32 -1.442695, %v3064_v31 }
0x3ffa   :  { %7719 = vtanh.f32 %v3064_v31  ;;  %v3061_v37 = vpop.f32.mrf.mxu1  ;;  %v3008_v17 = vpop.f32.mrf.mxu0 }
0x3ffb   :  { %7721 = vpow2.f32 %v6355_v20 }
0x3ffc   :  { %v7052_v12 = vpop.f32.mrf.mxu1  ;;  %v7044_v18 = vpop.f32.mrf.mxu0  ;;  %7723 = vpow2.f32 %v6356_v23 }
0x4006   :  { %v7718_v55 = vpop.eup %7717 }
0x4007   :  { %v7720_v35 = vpop.eup %7719  ;;  %3074 = vrot.lane.b32.xlu0 %v7718_v55, %s8036_s30 }
0x4008   :  { %3098 = vrot.lane.b32.xlu1 %v7720_v35, %s8036_s30  ;;  %v7722_v24 = vpop.eup %7721 }
0x4009   :  { %v7724_v25 = vpop.eup %7723  ;;  %v3068_v16 = vadd.f32 1.0, %v7722_v24 }
0x400a   :  { %v3092_v63 = vadd.f32 1.0, %v7724_v25 }
0x400b   :  { %7725 = vrcp.f32 %v3068_v16 }
0x400c   :  { %7727 = vrcp.f32 %v3092_v63 }
0x4018   :  { %v7726_v22 = vpop.eup %7725 }
0x4019   :  { %v7728_v56 = vpop.eup %7727  ;;  %v3072_v29 = vmul.f32 0.0, %v7726_v22 }
0x401a   :  { %v3096_v38 = vmul.f32 0.0, %v7728_v56 }
0x4079   :  { %v3075_v27 = vpop.permute.xlu0 %3074 }
0x407a   :  { %v3099_v49 = vpop.permute.xlu1 %3098  ;;  %v3077_v51 = vmul.f32 %v7726_v22, %v3075_v27 }
0x407b   :  { %v3101_v28 = vmul.f32 %v7728_v56, %v3099_v49 }
0x407c   :  { %3079 = vrot.lane.b32.xlu0 %v3077_v51, %s8041_s0 }
0x407d   :  { %3103 = vrot.lane.b32.xlu1 %v3101_v28, %s8041_s0 }
0x40ee   :  { %v3080_v21 = vpop.permute.xlu0 %3079 }
0x40ef   :  { %v3104_v15 = vpop.permute.xlu1 %3103  ;;  %v8855_v60 = vadd.f32 %v3080_v21, %v3072_v29 }
0x40f0   :  { %v8857_v47 = vadd.f32 %v3104_v15, %v3096_v38 }
0x40f1   :  { %7729 = vtanh.f32 %v8855_v60 }
0x40f2   :  { %7731 = vtanh.f32 %v8857_v47 }
0x40fe   :  { %v7730_v48 = vpop.eup %7729 }
0x40ff   :  { %v7732_v36 = vpop.eup %7731  ;;  %3085 = vrot.lane.b32.xlu0 %v7730_v48, %s8036_s30 }
0x4100   :  { %3109 = vrot.lane.b32.xlu1 %v7732_v36, %s8036_s30 }
0x4171   :  { %v3086_v50 = vpop.permute.xlu0 %3085 }
0x4172   :  { %v3110_v54 = vpop.permute.xlu1 %3109  ;;  %v8863_v1 = vmul.f32 %v7726_v22, %v3086_v50 }
0x4173   :  { %v8865_v5 = vmul.f32 %v7728_v56, %v3110_v54 }
0x4174   :  { %v3123_v6 = vpack.c.bf16 %v8863_v1, %v8863_v1 }
0x4175   :  { %v3171_v57 = vpack.c.bf16 %v8865_v5, %v8865_v5 }
0x4176   :  { %3125 = vrot.lane.b32.xlu0 %v3123_v6, %s8041_s0 }
0x4177   :  { %3173 = vrot.lane.b32.xlu1 %v3171_v57, %s8041_s0 }
0x41e8   :  { %v3126_v13 = vpop.permute.xlu0 %3125 }
0x41e9   :  { %v3174_v7 = vpop.permute.xlu1 %3173  ;;  %7058 = vmatmul.mubr.msk.bf16.vlgmr.msra.gmra.mxu0 %vm216_vm11, %v3126_v13 }
0x41ea   :  { %7066 = vmatmul.mubr.msk.bf16.vlgmr.msra.gmra.mxu1 %vm216_vm11, %v3174_v7  ;;  %7070 = vmatpush3.bf16.msra.mxu0 %v8755_v45 }
0x41eb   :  { %7078 = vmatpush3.bf16.msra.mxu1 %v8750_v32  ;;  %7071 = vmatprep.subr.bf16.mxu0 %v8039_v14 }
0x41ec   :  { %7079 = vmatprep.subr.bf16.mxu1 %v8039_v14  ;;  %7081 = vmatprep.mubr.msk.bf16.mxu1 %vm8040_vm10, %v8039_v14 }
0x41ed   :  { %7073 = vmatprep.mubr.msk.bf16.mxu0 %vm8040_vm10, %v8039_v14 }
0x41ee   :  { %7072 = vmatpush3.bf16.msra.mxu0 %v8774_v53 }
0x41ef   :  { %7080 = vmatpush3.bf16.msra.mxu1 %v8765_v46  ;;  %7085 = vmatprep.subr.bf16.mxu0 %v8039_v14 }
0x41f0   :  { %7093 = vmatprep.subr.bf16.mxu1 %v8039_v14 }
0x42a9   :  { %v3164_v52 = vpop.f32.mrf.mxu0 }
0x42aa   :  { %v3170_v61 = vadd.f32 %v3164_v52, %v8821_v43  ;;  %v3212_v8 = vpop.f32.mrf.mxu1 }
0x42ab   :  { %v3218_v10 = vadd.f32 %v3212_v8, %v8847_v41  ;;  %v7059_v34 = vpop.f32.mrf.mxu0 }
0x42ac   :  { %7733 = vtanh.f32 %v3170_v61  ;;  %v7067_v31 = vpop.f32.mrf.mxu1  ;;  %v6359_v55 = vmul.f32 -1.442695, %v3170_v61 }
0x42ad   :  { %7735 = vtanh.f32 %v3218_v10  ;;  %v3167_v59 = vpop.f32.mrf.mxu0  ;;  %v6360_v35 = vmul.f32 -1.442695, %v3218_v10 }
0x42ae   :  { %v3215_v11 = vpop.f32.mrf.mxu1  ;;  %7737 = vpow2.f32 %v6359_v55 }
0x42af   :  { %v7060_v37 = vpop.f32.mrf.mxu0  ;;  %7739 = vpow2.f32 %v6360_v35 }
0x42b0   :  { %v7068_v17 = vpop.f32.mrf.mxu1 }
0x42b9   :  { %v7734_v12 = vpop.eup %7733 }
0x42ba   :  { %v7736_v18 = vpop.eup %7735  ;;  %3228 = vrot.lane.b32.xlu0 %v7734_v12, %s8036_s30 }
0x42bb   :  { %3252 = vrot.lane.b32.xlu1 %v7736_v18, %s8036_s30  ;;  %v7738_v43 = vpop.eup %7737 }
0x42bc   :  { %v7740_v41 = vpop.eup %7739  ;;  %v3222_v20 = vadd.f32 1.0, %v7738_v43 }
0x42bd   :  { %v3246_v23 = vadd.f32 1.0, %v7740_v41 }
0x42be   :  { %7741 = vrcp.f32 %v3222_v20 }
0x42bf   :  { %7743 = vrcp.f32 %v3246_v23 }
0x42cb   :  { %v7742_v24 = vpop.eup %7741 }
0x42cc   :  { %v7744_v16 = vpop.eup %7743  ;;  %v3226_v56 = vmul.f32 %v7742_v24, %v8855_v60 }
0x42cd   :  { %v3250_v49 = vmul.f32 %v7744_v16, %v8857_v47 }
0x432c   :  { %v3229_v25 = vpop.permute.xlu0 %3228 }
0x432d   :  { %v3253_v63 = vpop.permute.xlu1 %3252  ;;  %v3231_v22 = vmul.f32 %v7742_v24, %v3229_v25 }
0x432e   :  { %v3255_v27 = vmul.f32 %v7744_v16, %v3253_v63 }
0x432f   :  { %3233 = vrot.lane.b32.xlu0 %v3231_v22, %s8041_s0 }
0x4330   :  { %3257 = vrot.lane.b32.xlu1 %v3255_v27, %s8041_s0 }
0x43a1   :  { %v3234_v51 = vpop.permute.xlu0 %3233 }
0x43a2   :  { %v3258_v28 = vpop.permute.xlu1 %3257  ;;  %v8895_v29 = vadd.f32 %v3234_v51, %v3226_v56 }
0x43a3   :  { %v8897_v38 = vadd.f32 %v3258_v28, %v3250_v49 }
0x43a4   :  { %7745 = vtanh.f32 %v8895_v29 }
0x43a5   :  { %7747 = vtanh.f32 %v8897_v38 }
0x43b1   :  { %v7746_v21 = vpop.eup %7745 }
0x43b2   :  { %v7748_v15 = vpop.eup %7747  ;;  %3239 = vrot.lane.b32.xlu0 %v7746_v21, %s8036_s30 }
0x43b3   :  { %3263 = vrot.lane.b32.xlu1 %v7748_v15, %s8036_s30 }
0x4424   :  { %v3240_v48 = vpop.permute.xlu0 %3239 }
0x4425   :  { %v3264_v60 = vpop.permute.xlu1 %3263  ;;  %v8903_v36 = vmul.f32 %v7742_v24, %v3240_v48 }
0x4426   :  { %v8905_v47 = vmul.f32 %v7744_v16, %v3264_v60 }
0x4427   :  { %v3277_v50 = vpack.c.bf16 %v8903_v36, %v8903_v36 }
0x4428   :  { %v3325_v54 = vpack.c.bf16 %v8905_v47, %v8905_v47 }
0x4429   :  { %3279 = vrot.lane.b32.xlu0 %v3277_v50, %s8041_s0 }
0x442a   :  { %3327 = vrot.lane.b32.xlu1 %v3325_v54, %s8041_s0 }
0x449b   :  { %v3280_v6 = vpop.permute.xlu0 %3279 }
0x449c   :  { %v3328_v57 = vpop.permute.xlu1 %3327  ;;  %7074 = vmatmul.mubr.msk.bf16.vlgmr.msra.gmra.mxu0 %vm216_vm11, %v3280_v6 }
0x449d   :  { %7082 = vmatmul.mubr.msk.bf16.vlgmr.msra.gmra.mxu1 %vm216_vm11, %v3328_v57  ;;  %7086 = vmatpush3.bf16.msra.mxu0 %v8755_v45 }
0x449e   :  { %7094 = vmatpush3.bf16.msra.mxu1 %v8750_v32  ;;  %7087 = vmatprep.subr.bf16.mxu0 %v8039_v14 }
0x449f   :  { %7095 = vmatprep.subr.bf16.mxu1 %v8039_v14  ;;  %7097 = vmatprep.mubr.msk.bf16.mxu1 %vm8040_vm10, %v8039_v14 }
0x44a0   :  { %7089 = vmatprep.mubr.msk.bf16.mxu0 %vm8040_vm10, %v8039_v14 }
0x44a1   :  { %7088 = vmatpush3.bf16.msra.mxu0 %v8774_v53 }
0x44a2   :  { %7096 = vmatpush3.bf16.msra.mxu1 %v8765_v46  ;;  %7101 = vmatprep.subr.bf16.mxu0 %v8039_v14 }
0x44a3   :  { %7109 = vmatprep.subr.bf16.mxu1 %v8039_v14 }
0x455c   :  { %v3318_v13 = vpop.f32.mrf.mxu0 }
0x455d   :  { %v3324_v7 = vadd.f32 %v3318_v13, %v8825_v26  ;;  %v3366_v52 = vpop.f32.mrf.mxu1 }
0x455e   :  { %v3372_v61 = vadd.f32 %v3366_v52, %v8843_v42  ;;  %v7075_v8 = vpop.f32.mrf.mxu0 }
0x455f   :  { %7749 = vtanh.f32 %v3324_v7  ;;  %v7083_v10 = vpop.f32.mrf.mxu1  ;;  %v6363_v12 = vmul.f32 -1.442695, %v3324_v7 }
0x4560   :  { %7751 = vtanh.f32 %v3372_v61  ;;  %v3321_v34 = vpop.f32.mrf.mxu0  ;;  %v6364_v18 = vmul.f32 -1.442695, %v3372_v61 }
0x4561   :  { %v3369_v31 = vpop.f32.mrf.mxu1  ;;  %7753 = vpow2.f32 %v6363_v12 }
0x4562   :  { %v7076_v59 = vpop.f32.mrf.mxu0  ;;  %7755 = vpow2.f32 %v6364_v18 }
0x4563   :  { %v7084_v11 = vpop.f32.mrf.mxu1 }
0x456c   :  { %v7750_v37 = vpop.eup %7749 }
0x456d   :  { %v7752_v17 = vpop.eup %7751  ;;  %3382 = vrot.lane.b32.xlu0 %v7750_v37, %s8036_s30 }
0x456e   :  { %3406 = vrot.lane.b32.xlu1 %v7752_v17, %s8036_s30  ;;  %v7754_v26 = vpop.eup %7753 }
0x456f   :  { %v7756_v42 = vpop.eup %7755  ;;  %v3376_v55 = vadd.f32 1.0, %v7754_v26 }
0x4570   :  { %v3400_v35 = vadd.f32 1.0, %v7756_v42 }
0x4571   :  { %7757 = vrcp.f32 %v3376_v55 }
0x4572   :  { %7759 = vrcp.f32 %v3400_v35 }
0x457e   :  { %v7758_v43 = vpop.eup %7757 }
0x457f   :  { %v7760_v20 = vpop.eup %7759  ;;  %v3380_v16 = vmul.f32 %v7758_v43, %v8895_v29 }
0x4580   :  { %v3404_v63 = vmul.f32 %v7760_v20, %v8897_v38 }
0x45df   :  { %v3383_v41 = vpop.permute.xlu0 %3382 }
0x45e0   :  { %v3407_v23 = vpop.permute.xlu1 %3406  ;;  %v3385_v24 = vmul.f32 %v7758_v43, %v3383_v41 }
0x45e1   :  { %v3409_v25 = vmul.f32 %v7760_v20, %v3407_v23 }
0x45e2   :  { %3387 = vrot.lane.b32.xlu0 %v3385_v24, %s8041_s0 }
0x45e3   :  { %3411 = vrot.lane.b32.xlu1 %v3409_v25, %s8041_s0 }
0x4654   :  { %v3388_v22 = vpop.permute.xlu0 %3387 }
0x4655   :  { %v3412_v27 = vpop.permute.xlu1 %3411  ;;  %v8935_v56 = vadd.f32 %v3388_v22, %v3380_v16 }
0x4656   :  { %v8937_v49 = vadd.f32 %v3412_v27, %v3404_v63 }
0x4657   :  { %7761 = vtanh.f32 %v8935_v56 }
0x4658   :  { %7763 = vtanh.f32 %v8937_v49 }
0x4664   :  { %v7762_v51 = vpop.eup %7761 }
0x4665   :  { %v7764_v28 = vpop.eup %7763  ;;  %3393 = vrot.lane.b32.xlu0 %v7762_v51, %s8036_s30 }
0x4666   :  { %3417 = vrot.lane.b32.xlu1 %v7764_v28, %s8036_s30 }
0x46d7   :  { %v3394_v21 = vpop.permute.xlu0 %3393 }
0x46d8   :  { %v3418_v29 = vpop.permute.xlu1 %3417  ;;  %v8943_v15 = vmul.f32 %v7758_v43, %v3394_v21 }
0x46d9   :  { %v8945_v38 = vmul.f32 %v7760_v20, %v3418_v29 }
0x46da   :  { %v3431_v48 = vpack.c.bf16 %v8943_v15, %v8943_v15 }
0x46db   :  { %v3479_v60 = vpack.c.bf16 %v8945_v38, %v8945_v38 }
0x46dc   :  { %3433 = vrot.lane.b32.xlu0 %v3431_v48, %s8041_s0 }
0x46dd   :  { %3481 = vrot.lane.b32.xlu1 %v3479_v60, %s8041_s0 }
0x474e   :  { %v3434_v50 = vpop.permute.xlu0 %3433 }
0x474f   :  { %v3482_v54 = vpop.permute.xlu1 %3481  ;;  %7090 = vmatmul.mubr.msk.bf16.vlgmr.msra.gmra.mxu0 %vm216_vm11, %v3434_v50 }
0x4750   :  { %7098 = vmatmul.mubr.msk.bf16.vlgmr.msra.gmra.mxu1 %vm216_vm11, %v3482_v54  ;;  %7102 = vmatpush3.bf16.msra.mxu0 %v8755_v45 }
0x4751   :  { %7110 = vmatpush3.bf16.msra.mxu1 %v8750_v32  ;;  %7103 = vmatprep.subr.bf16.mxu0 %v8039_v14 }
0x4752   :  { %7111 = vmatprep.subr.bf16.mxu1 %v8039_v14  ;;  %7113 = vmatprep.mubr.msk.bf16.mxu1 %vm8040_vm10, %v8039_v14 }
0x4753   :  { %7105 = vmatprep.mubr.msk.bf16.mxu0 %vm8040_vm10, %v8039_v14 }
0x4754   :  { %7104 = vmatpush3.bf16.msra.mxu0 %v8774_v53 }
0x4755   :  { %7112 = vmatpush3.bf16.msra.mxu1 %v8765_v46  ;;  %7117 = vmatprep.subr.bf16.mxu0 %v8039_v14 }
0x4756   :  { %7125 = vmatprep.subr.bf16.mxu1 %v8039_v14 }
0x480f   :  { %v3472_v6 = vpop.f32.mrf.mxu0 }
0x4810   :  { %v3478_v57 = vadd.f32 %v3472_v6, %v8829_v39  ;;  %v3520_v13 = vpop.f32.mrf.mxu1 }
0x4811   :  { %v3526_v7 = vadd.f32 %v3520_v13, %v8839_v3  ;;  %v7091_v52 = vpop.f32.mrf.mxu0 }
0x4812   :  { %7765 = vtanh.f32 %v3478_v57  ;;  %v7099_v61 = vpop.f32.mrf.mxu1  ;;  %v6367_v37 = vmul.f32 -1.442695, %v3478_v57 }
0x4813   :  { %7767 = vtanh.f32 %v3526_v7  ;;  %v3475_v8 = vpop.f32.mrf.mxu0  ;;  %v6368_v17 = vmul.f32 -1.442695, %v3526_v7 }
0x4814   :  { %v3523_v10 = vpop.f32.mrf.mxu1  ;;  %7769 = vpow2.f32 %v6367_v37 }
0x4815   :  { %v7092_v34 = vpop.f32.mrf.mxu0  ;;  %7771 = vpow2.f32 %v6368_v17 }
0x4816   :  { %v7100_v31 = vpop.f32.mrf.mxu1 }
0x481f   :  { %v7766_v59 = vpop.eup %7765 }
0x4820   :  { %v7768_v11 = vpop.eup %7767  ;;  %3536 = vrot.lane.b32.xlu0 %v7766_v59, %s8036_s30 }
0x4821   :  { %3560 = vrot.lane.b32.xlu1 %v7768_v11, %s8036_s30  ;;  %v7770_v39 = vpop.eup %7769 }
0x4822   :  { %v7772_v3 = vpop.eup %7771  ;;  %v3530_v12 = vadd.f32 1.0, %v7770_v39 }
0x4823   :  { %v3554_v18 = vadd.f32 1.0, %v7772_v3 }
0x4824   :  { %7773 = vrcp.f32 %v3530_v12 }
0x4825   :  { %7775 = vrcp.f32 %v3554_v18 }
0x4831   :  { %v7774_v26 = vpop.eup %7773 }
0x4832   :  { %v7776_v55 = vpop.eup %7775  ;;  %v3534_v20 = vmul.f32 %v7774_v26, %v8935_v56 }
0x4833   :  { %v3558_v23 = vmul.f32 %v7776_v55, %v8937_v49 }
0x4892   :  { %v3537_v42 = vpop.permute.xlu0 %3536 }
0x4893   :  { %v3561_v35 = vpop.permute.xlu1 %3560  ;;  %v3539_v43 = vmul.f32 %v7774_v26, %v3537_v42 }
0x4894   :  { %v3563_v41 = vmul.f32 %v7776_v55, %v3561_v35 }
0x4895   :  { %3541 = vrot.lane.b32.xlu0 %v3539_v43, %s8041_s0 }
0x4896   :  { %3565 = vrot.lane.b32.xlu1 %v3563_v41, %s8041_s0 }
0x4907   :  { %v3542_v24 = vpop.permute.xlu0 %3541 }
0x4908   :  { %v3566_v25 = vpop.permute.xlu1 %3565  ;;  %v8975_v16 = vadd.f32 %v3542_v24, %v3534_v20 }
0x4909   :  { %v8977_v63 = vadd.f32 %v3566_v25, %v3558_v23 }
0x490a   :  { %7777 = vtanh.f32 %v8975_v16 }
0x490b   :  { %7779 = vtanh.f32 %v8977_v63 }
0x4917   :  { %v7778_v22 = vpop.eup %7777 }
0x4918   :  { %v7780_v27 = vpop.eup %7779  ;;  %3547 = vrot.lane.b32.xlu0 %v7778_v22, %s8036_s30 }
0x4919   :  { %3571 = vrot.lane.b32.xlu1 %v7780_v27, %s8036_s30 }
0x498a   :  { %v3548_v51 = vpop.permute.xlu0 %3547 }
0x498b   :  { %v3572_v56 = vpop.permute.xlu1 %3571  ;;  %v8983_v28 = vmul.f32 %v7774_v26, %v3548_v51 }
0x498c   :  { %v8985_v49 = vmul.f32 %v7776_v55, %v3572_v56 }
0x498d   :  { %v3585_v21 = vpack.c.bf16 %v8983_v28, %v8983_v28 }
0x498e   :  { %v3633_v29 = vpack.c.bf16 %v8985_v49, %v8985_v49 }
0x498f   :  { %3587 = vrot.lane.b32.xlu0 %v3585_v21, %s8041_s0 }
0x4990   :  { %3635 = vrot.lane.b32.xlu1 %v3633_v29, %s8041_s0 }
0x4a01   :  { %v3588_v48 = vpop.permute.xlu0 %3587 }
0x4a02   :  { %v3636_v60 = vpop.permute.xlu1 %3635  ;;  %7106 = vmatmul.mubr.msk.bf16.vlgmr.msra.gmra.mxu0 %vm216_vm11, %v3588_v48 }
0x4a03   :  { %7114 = vmatmul.mubr.msk.bf16.vlgmr.msra.gmra.mxu1 %vm216_vm11, %v3636_v60  ;;  %7118 = vmatpush3.bf16.msra.mxu0 %v8755_v45 }
0x4a04   :  { %7126 = vmatpush3.bf16.msra.mxu1 %v8750_v32  ;;  %7119 = vmatprep.subr.bf16.mxu0 %v8039_v14 }
0x4a05   :  { %7127 = vmatprep.subr.bf16.mxu1 %v8039_v14  ;;  %7129 = vmatprep.mubr.msk.bf16.mxu1 %vm8040_vm10, %v8039_v14 }
0x4a06   :  { %7121 = vmatprep.mubr.msk.bf16.mxu0 %vm8040_vm10, %v8039_v14 }
0x4a07   :  { %7120 = vmatpush3.bf16.msra.mxu0 %v8774_v53 }
0x4a08   :  { %7128 = vmatpush3.bf16.msra.mxu1 %v8765_v46  ;;  %7133 = vmatprep.subr.bf16.mxu0 %v8039_v14 }
0x4a09   :  { %7141 = vmatprep.subr.bf16.mxu1 %v8039_v14 }
0x4ac2   :  { %v3626_v50 = vpop.f32.mrf.mxu0 }
0x4ac3   :  { %v3632_v54 = vadd.f32 %v3626_v50, %v8833_v58  ;;  %v3674_v6 = vpop.f32.mrf.mxu1 }
0x4ac4   :  { %v3680_v57 = vadd.f32 %v3674_v6, %v8835_v9  ;;  %v7107_v13 = vpop.f32.mrf.mxu0 }
0x4ac5   :  { %7781 = vtanh.f32 %v3632_v54  ;;  %v7115_v7 = vpop.f32.mrf.mxu1  ;;  %v6371_v59 = vmul.f32 -1.442695, %v3632_v54 }
0x4ac6   :  { %7783 = vtanh.f32 %v3680_v57  ;;  %v3629_v52 = vpop.f32.mrf.mxu0  ;;  %v6372_v11 = vmul.f32 -1.442695, %v3680_v57 }
0x4ac7   :  { %v3677_v61 = vpop.f32.mrf.mxu1  ;;  %7785 = vpow2.f32 %v6371_v59 }
0x4ac8   :  { %v7108_v8 = vpop.f32.mrf.mxu0  ;;  %7787 = vpow2.f32 %v6372_v11 }
0x4ac9   :  { %v7116_v10 = vpop.f32.mrf.mxu1 }
0x4ad2   :  { %v7782_v34 = vpop.eup %7781 }
0x4ad3   :  { %v7784_v31 = vpop.eup %7783  ;;  %3690 = vrot.lane.b32.xlu0 %v7782_v34, %s8036_s30 }
0x4ad4   :  { %3714 = vrot.lane.b32.xlu1 %v7784_v31, %s8036_s30  ;;  %v7786_v58 = vpop.eup %7785 }
0x4ad5   :  { %v7788_v9 = vpop.eup %7787  ;;  %v3684_v37 = vadd.f32 1.0, %v7786_v58 }
0x4ad6   :  { %v3708_v17 = vadd.f32 1.0, %v7788_v9 }
0x4ad7   :  { %7789 = vrcp.f32 %v3684_v37 }
0x4ad8   :  { %7791 = vrcp.f32 %v3708_v17 }
0x4ae4   :  { %v7790_v39 = vpop.eup %7789 }
0x4ae5   :  { %v7792_v12 = vpop.eup %7791  ;;  %v3688_v55 = vmul.f32 %v7790_v39, %v8975_v16 }
0x4ae6   :  { %v3712_v35 = vmul.f32 %v7792_v12, %v8977_v63 }
0x4b45   :  { %v3691_v3 = vpop.permute.xlu0 %3690 }
0x4b46   :  { %v3715_v18 = vpop.permute.xlu1 %3714  ;;  %v3693_v26 = vmul.f32 %v7790_v39, %v3691_v3 }
0x4b47   :  { %v3717_v42 = vmul.f32 %v7792_v12, %v3715_v18 }
0x4b48   :  { %3695 = vrot.lane.b32.xlu0 %v3693_v26, %s8041_s0 }
0x4b49   :  { %3719 = vrot.lane.b32.xlu1 %v3717_v42, %s8041_s0 }
0x4bba   :  { %v3696_v43 = vpop.permute.xlu0 %3695 }
0x4bbb   :  { %v3720_v41 = vpop.permute.xlu1 %3719  ;;  %v9015_v20 = vadd.f32 %v3696_v43, %v3688_v55 }
0x4bbc   :  { %v9017_v23 = vadd.f32 %v3720_v41, %v3712_v35 }
0x4bbd   :  { %7793 = vtanh.f32 %v9015_v20 }
0x4bbe   :  { %7795 = vtanh.f32 %v9017_v23 }
0x4bca   :  { %v7794_v24 = vpop.eup %7793 }
0x4bcb   :  { %v7796_v25 = vpop.eup %7795  ;;  %3701 = vrot.lane.b32.xlu0 %v7794_v24, %s8036_s30 }
0x4bcc   :  { %3725 = vrot.lane.b32.xlu1 %v7796_v25, %s8036_s30 }
0x4c3d   :  { %v3702_v22 = vpop.permute.xlu0 %3701 }
0x4c3e   :  { %v3726_v16 = vpop.permute.xlu1 %3725  ;;  %v9023_v27 = vmul.f32 %v7790_v39, %v3702_v22 }
0x4c3f   :  { %v9025_v63 = vmul.f32 %v7792_v12, %v3726_v16 }
0x4c40   :  { %v3739_v51 = vpack.c.bf16 %v9023_v27, %v9023_v27 }
0x4c41   :  { %v3787_v56 = vpack.c.bf16 %v9025_v63, %v9025_v63 }
0x4c42   :  { %3741 = vrot.lane.b32.xlu0 %v3739_v51, %s8041_s0 }
0x4c43   :  { %3789 = vrot.lane.b32.xlu1 %v3787_v56, %s8041_s0 }
0x4cb4   :  { %v3742_v21 = vpop.permute.xlu0 %3741 }
0x4cb5   :  { %v3790_v29 = vpop.permute.xlu1 %3789  ;;  %7122 = vmatmul.mubr.msk.bf16.vlgmr.msra.gmra.mxu0 %vm216_vm11, %v3742_v21 }
0x4cb6   :  { %7130 = vmatmul.mubr.msk.bf16.vlgmr.msra.gmra.mxu1 %vm216_vm11, %v3790_v29  ;;  %7134 = vmatpush3.bf16.msra.mxu0 %v8755_v45 }
0x4cb7   :  { %7142 = vmatpush3.bf16.msra.mxu1 %v8750_v32  ;;  %7135 = vmatprep.subr.bf16.mxu0 %v8039_v14 }
0x4cb8   :  { %7143 = vmatprep.subr.bf16.mxu1 %v8039_v14  ;;  %7145 = vmatprep.mubr.msk.bf16.mxu1 %vm8040_vm10, %v8039_v14 }
0x4cb9   :  { %7137 = vmatprep.mubr.msk.bf16.mxu0 %vm8040_vm10, %v8039_v14 }
0x4cba   :  { %7136 = vmatpush3.bf16.msra.mxu0 %v8774_v53 }
0x4cbb   :  { %7144 = vmatpush3.bf16.msra.mxu1 %v8765_v46  ;;  %7149 = vmatprep.subr.bf16.mxu0 %v8039_v14 }
0x4cbc   :  { %7157 = vmatprep.subr.bf16.mxu1 %v8039_v14 }
0x4d75   :  { %v3780_v48 = vpop.f32.mrf.mxu0 }
0x4d76   :  { %v3786_v60 = vadd.f32 %v3780_v48, %v8837_v44  ;;  %v3828_v50 = vpop.f32.mrf.mxu1 }
0x4d77   :  { %v3834_v54 = vadd.f32 %v3828_v50, %v8831_v30  ;;  %v7123_v6 = vpop.f32.mrf.mxu0 }
0x4d78   :  { %7797 = vtanh.f32 %v3786_v60  ;;  %v7131_v57 = vpop.f32.mrf.mxu1  ;;  %v6375_v34 = vmul.f32 -1.442695, %v3786_v60 }
0x4d79   :  { %7799 = vtanh.f32 %v3834_v54  ;;  %v3783_v13 = vpop.f32.mrf.mxu0  ;;  %v6376_v31 = vmul.f32 -1.442695, %v3834_v54 }
0x4d7a   :  { %v3831_v7 = vpop.f32.mrf.mxu1  ;;  %7801 = vpow2.f32 %v6375_v34 }
0x4d7b   :  { %v7124_v52 = vpop.f32.mrf.mxu0  ;;  %7803 = vpow2.f32 %v6376_v31 }
0x4d7c   :  { %v7132_v61 = vpop.f32.mrf.mxu1 }
0x4d85   :  { %v7798_v8 = vpop.eup %7797 }
0x4d86   :  { %v7800_v10 = vpop.eup %7799  ;;  %3844 = vrot.lane.b32.xlu0 %v7798_v8, %s8036_s30 }
0x4d87   :  { %3868 = vrot.lane.b32.xlu1 %v7800_v10, %s8036_s30  ;;  %v7802_v44 = vpop.eup %7801 }
0x4d88   :  { %v7804_v30 = vpop.eup %7803  ;;  %v3838_v59 = vadd.f32 1.0, %v7802_v44 }
0x4d89   :  { %v3862_v11 = vadd.f32 1.0, %v7804_v30 }
0x4d8a   :  { %7805 = vrcp.f32 %v3838_v59 }
0x4d8b   :  { %7807 = vrcp.f32 %v3862_v11 }
0x4d97   :  { %v7806_v58 = vpop.eup %7805 }
0x4d98   :  { %v7808_v37 = vpop.eup %7807  ;;  %v3842_v12 = vmul.f32 %v7806_v58, %v9015_v20 }
0x4d99   :  { %v3866_v18 = vmul.f32 %v7808_v37, %v9017_v23 }
0x4df8   :  { %v3845_v9 = vpop.permute.xlu0 %3844 }
0x4df9   :  { %v3869_v17 = vpop.permute.xlu1 %3868  ;;  %v3847_v39 = vmul.f32 %v7806_v58, %v3845_v9 }
0x4dfa   :  { %v3871_v3 = vmul.f32 %v7808_v37, %v3869_v17 }
0x4dfb   :  { %3849 = vrot.lane.b32.xlu0 %v3847_v39, %s8041_s0 }
0x4dfc   :  { %3873 = vrot.lane.b32.xlu1 %v3871_v3, %s8041_s0 }
0x4e6d   :  { %v3850_v26 = vpop.permute.xlu0 %3849 }
0x4e6e   :  { %v3874_v42 = vpop.permute.xlu1 %3873  ;;  %v9055_v55 = vadd.f32 %v3850_v26, %v3842_v12 }
0x4e6f   :  { %v9057_v35 = vadd.f32 %v3874_v42, %v3866_v18 }
0x4e70   :  { %7809 = vtanh.f32 %v9055_v55 }
0x4e71   :  { %7811 = vtanh.f32 %v9057_v35 }
0x4e7d   :  { %v7810_v43 = vpop.eup %7809 }
0x4e7e   :  { %v7812_v41 = vpop.eup %7811  ;;  %3855 = vrot.lane.b32.xlu0 %v7810_v43, %s8036_s30 }
0x4e7f   :  { %3879 = vrot.lane.b32.xlu1 %v7812_v41, %s8036_s30 }
0x4ef0   :  { %v3856_v24 = vpop.permute.xlu0 %3855 }
0x4ef1   :  { %v3880_v20 = vpop.permute.xlu1 %3879  ;;  %v9063_v25 = vmul.f32 %v7806_v58, %v3856_v24  ;;  %v8005_v24 = vld [vmem:[%s9758_s3 + $0x28] sm:$0xff]  }
0x4ef2   :  { %v9065_v23 = vmul.f32 %v7808_v37, %v3880_v20  ;;  %v8006_v20 = vld [vmem:[%s9758_s3 + $0x38] sm:$0xff]  }
0x4ef3   :  { %v3893_v22 = vpack.c.bf16 %v9063_v25, %v9063_v25 }
0x4ef4   :  { %v3941_v16 = vpack.c.bf16 %v9065_v23, %v9065_v23 }
0x4ef5   :  { %3895 = vrot.lane.b32.xlu0 %v3893_v22, %s8041_s0  ;;  %v8007_v22 = vld [vmem:[%s9758_s3 + $0x20] sm:$0xff]  }
0x4ef6   :  { %3943 = vrot.lane.b32.xlu1 %v3941_v16, %s8041_s0  ;;  %v8008_v16 = vld [vmem:[%s9758_s3 + $0x30] sm:$0xff]  }
0x4f67   :  { %v3896_v51 = vpop.permute.xlu0 %3895 }
0x4f68   :  { %v3944_v56 = vpop.permute.xlu1 %3943  ;;  %7138 = vmatmul.mubr.msk.bf16.vlgmr.msra.gmra.mxu0 %vm216_vm11, %v3896_v51 }
0x4f69   :  { %7146 = vmatmul.mubr.msk.bf16.vlgmr.msra.gmra.mxu1 %vm216_vm11, %v3944_v56  ;;  %7150 = vmatpush3.bf16.msra.mxu0 %v8755_v45 }
0x4f6a   :  { %7158 = vmatpush3.bf16.msra.mxu1 %v8750_v32  ;;  %7151 = vmatprep.subr.bf16.mxu0 %v8039_v14 }
0x4f6b   :  { %7159 = vmatprep.subr.bf16.mxu1 %v8039_v14  ;;  %7161 = vmatprep.mubr.msk.bf16.mxu1 %vm8040_vm10, %v8039_v14 }
0x4f6c   :  { %7153 = vmatprep.mubr.msk.bf16.mxu0 %vm8040_vm10, %v8039_v14 }
0x4f6d   :  { %7152 = vmatpush3.bf16.msra.mxu0 %v8774_v53 }
0x4f6e   :  { %7160 = vmatpush3.bf16.msra.mxu1 %v8765_v46  ;;  %7165 = vmatprep.subr.bf16.mxu0 %v8039_v14 }
0x4f6f   :  { %7173 = vmatprep.subr.bf16.mxu1 %v8039_v14 }
0x5028   :  { %v3934_v45 = vpop.f32.mrf.mxu0 }
0x5029   :  { %v3940_v32 = vadd.f32 %v3934_v45, %v8841_v33  ;;  %v3982_v21 = vpop.f32.mrf.mxu1 }
0x502a   :  { %v3988_v29 = vadd.f32 %v3982_v21, %v8827_v62  ;;  %v7139_v48 = vpop.f32.mrf.mxu0 }
0x502b   :  { %7813 = vtanh.f32 %v3940_v32  ;;  %v7147_v60 = vpop.f32.mrf.mxu1  ;;  %v6379_v13 = vmul.f32 -1.442695, %v3940_v32 }
0x502c   :  { %7815 = vtanh.f32 %v3988_v29  ;;  %v3937_v50 = vpop.f32.mrf.mxu0  ;;  %v6380_v7 = vmul.f32 -1.442695, %v3988_v29 }
0x502d   :  { %v3985_v54 = vpop.f32.mrf.mxu1  ;;  %7817 = vpow2.f32 %v6379_v13 }
0x502e   :  { %v7140_v6 = vpop.f32.mrf.mxu0  ;;  %7819 = vpow2.f32 %v6380_v7 }
0x502f   :  { %v7148_v53 = vpop.f32.mrf.mxu1 }
0x5038   :  { %v7814_v57 = vpop.eup %7813 }
0x5039   :  { %v7816_v46 = vpop.eup %7815  ;;  %3998 = vrot.lane.b32.xlu0 %v7814_v57, %s8036_s30 }
0x503a   :  { %4022 = vrot.lane.b32.xlu1 %v7816_v46, %s8036_s30  ;;  %v7818_v33 = vpop.eup %7817 }
0x503b   :  { %v7820_v62 = vpop.eup %7819  ;;  %v3992_v52 = vadd.f32 1.0, %v7818_v33 }
0x503c   :  { %v4016_v61 = vadd.f32 1.0, %v7820_v62 }
0x503d   :  { %7821 = vrcp.f32 %v3992_v52 }
0x503e   :  { %7823 = vrcp.f32 %v4016_v61 }
0x504a   :  { %v7822_v8 = vpop.eup %7821 }
0x504b   :  { %v7824_v34 = vpop.eup %7823  ;;  %v3996_v59 = vmul.f32 %v7822_v8, %v9055_v55 }
0x504c   :  { %v4020_v11 = vmul.f32 %v7824_v34, %v9057_v35 }
0x50ab   :  { %v3999_v10 = vpop.permute.xlu0 %3998 }
0x50ac   :  { %v4023_v31 = vpop.permute.xlu1 %4022  ;;  %v4001_v44 = vmul.f32 %v7822_v8, %v3999_v10 }
0x50ad   :  { %v4025_v30 = vmul.f32 %v7824_v34, %v4023_v31 }
0x50ae   :  { %4003 = vrot.lane.b32.xlu0 %v4001_v44, %s8041_s0 }
0x50af   :  { %4027 = vrot.lane.b32.xlu1 %v4025_v30, %s8041_s0 }
0x5120   :  { %v4004_v58 = vpop.permute.xlu0 %4003 }
0x5121   :  { %v4028_v9 = vpop.permute.xlu1 %4027  ;;  %v9095_v37 = vadd.f32 %v4004_v58, %v3996_v59 }
0x5122   :  { %v9097_v17 = vadd.f32 %v4028_v9, %v4020_v11 }
0x5123   :  { %7825 = vtanh.f32 %v9095_v37 }
0x5124   :  { %7827 = vtanh.f32 %v9097_v17 }
0x5130   :  { %v7826_v39 = vpop.eup %7825 }
0x5131   :  { %v7828_v3 = vpop.eup %7827  ;;  %4009 = vrot.lane.b32.xlu0 %v7826_v39, %s8036_s30 }
0x5132   :  { %4033 = vrot.lane.b32.xlu1 %v7828_v3, %s8036_s30 }
0x51a3   :  { %v4010_v12 = vpop.permute.xlu0 %4009 }
0x51a4   :  { %v4034_v18 = vpop.permute.xlu1 %4033  ;;  %v9103_v26 = vmul.f32 %v7822_v8, %v4010_v12 }
0x51a5   :  { %v9105_v42 = vmul.f32 %v7824_v34, %v4034_v18 }
0x51a6   :  { %v4047_v55 = vpack.c.bf16 %v9103_v26, %v9103_v26 }
0x51a7   :  { %v4095_v35 = vpack.c.bf16 %v9105_v42, %v9105_v42 }
0x51a8   :  { %4049 = vrot.lane.b32.xlu0 %v4047_v55, %s8041_s0 }
0x51a9   :  { %4097 = vrot.lane.b32.xlu1 %v4095_v35, %s8041_s0 }
0x521a   :  { %v4050_v43 = vpop.permute.xlu0 %4049 }
0x521b   :  { %v4098_v41 = vpop.permute.xlu1 %4097  ;;  %7154 = vmatmul.mubr.msk.bf16.vlgmr.msra.gmra.mxu0 %vm216_vm11, %v4050_v43 }
0x521c   :  { %7162 = vmatmul.mubr.msk.bf16.vlgmr.msra.gmra.mxu1 %vm216_vm11, %v4098_v41  ;;  %7166 = vmatpush3.bf16.msra.mxu0 %v8005_v24 }
0x521d   :  { %7174 = vmatpush3.bf16.msra.mxu1 %v8006_v20  ;;  %7167 = vmatprep.subr.bf16.mxu0 %v8039_v14 }
0x521e   :  { %7175 = vmatprep.subr.bf16.mxu1 %v8039_v14  ;;  %7177 = vmatprep.mubr.msk.bf16.mxu1 %vm8040_vm10, %v8039_v14 }
0x521f   :  { %7169 = vmatprep.mubr.msk.bf16.mxu0 %vm8040_vm10, %v8039_v14 }
0x5220   :  { %7168 = vmatpush3.bf16.msra.mxu0 %v8007_v22 }
0x5221   :  { %7176 = vmatpush3.bf16.msra.mxu1 %v8008_v16  ;;  %7181 = vmatprep.subr.bf16.mxu0 %v8039_v14 }
0x5222   :  { %7205 = vmatprep.subr.bf16.mxu1 %v8039_v14 }
0x52db   :  { %v4088_v51 = vpop.f32.mrf.mxu0 }
0x52dc   :  { %v4094_v56 = vadd.f32 %v4088_v51, %v8845_v40  ;;  %v4136_v45 = vpop.f32.mrf.mxu1 }
0x52dd   :  { %v4142_v32 = vadd.f32 %v4136_v45, %v8823_v2  ;;  %v7155_v21 = vpop.f32.mrf.mxu0 }
0x52de   :  { %7829 = vtanh.f32 %v4094_v56  ;;  %v7163_v29 = vpop.f32.mrf.mxu1  ;;  %v6383_v57 = vmul.f32 -1.442695, %v4094_v56 }
0x52df   :  { %7831 = vtanh.f32 %v4142_v32  ;;  %v4091_v48 = vpop.f32.mrf.mxu0  ;;  %v6384_v46 = vmul.f32 -1.442695, %v4142_v32 }
0x52e0   :  { %v4139_v60 = vpop.f32.mrf.mxu1  ;;  %7833 = vpow2.f32 %v6383_v57 }
0x52e1   :  { %v7156_v50 = vpop.f32.mrf.mxu0  ;;  %7835 = vpow2.f32 %v6384_v46 }
0x52e2   :  { %v7164_v54 = vpop.f32.mrf.mxu1 }
0x52eb   :  { %v7830_v6 = vpop.eup %7829 }
0x52ec   :  { %v7832_v53 = vpop.eup %7831  ;;  %4152 = vrot.lane.b32.xlu0 %v7830_v6, %s8036_s30 }
0x52ed   :  { %4176 = vrot.lane.b32.xlu1 %v7832_v53, %s8036_s30  ;;  %v7834_v40 = vpop.eup %7833 }
0x52ee   :  { %v7836_v2 = vpop.eup %7835  ;;  %v4146_v13 = vadd.f32 1.0, %v7834_v40 }
0x52ef   :  { %v4170_v7 = vadd.f32 1.0, %v7836_v2 }
0x52f0   :  { %7837 = vrcp.f32 %v4146_v13 }
0x52f1   :  { %7839 = vrcp.f32 %v4170_v7 }
0x52fd   :  { %v7838_v33 = vpop.eup %7837 }
0x52fe   :  { %v7840_v52 = vpop.eup %7839  ;;  %v4150_v34 = vmul.f32 %v7838_v33, %v9095_v37 }
0x52ff   :  { %v4174_v31 = vmul.f32 %v7840_v52, %v9097_v17 }
0x535e   :  { %v4153_v62 = vpop.permute.xlu0 %4152 }
0x535f   :  { %v4177_v61 = vpop.permute.xlu1 %4176  ;;  %v4155_v8 = vmul.f32 %v7838_v33, %v4153_v62 }
0x5360   :  { %v4179_v10 = vmul.f32 %v7840_v52, %v4177_v61 }
0x5361   :  { %4157 = vrot.lane.b32.xlu0 %v4155_v8, %s8041_s0  ;;  %v7475_v8 = vld [vmem:[%s9758_s3 + $0x48] sm:$0xff]  }
0x5362   :  { %4181 = vrot.lane.b32.xlu1 %v4179_v10, %s8041_s0  ;;  %v7476_v10 = vld [vmem:[%s9758_s3 + $0x40] sm:$0xff]  }
0x53d3   :  { %v4158_v44 = vpop.permute.xlu0 %4157 }
0x53d4   :  { %v4182_v30 = vpop.permute.xlu1 %4181  ;;  %v4160_v59 = vadd.f32 %v4158_v44, %v4150_v34 }
0x53d5   :  { %v4184_v11 = vadd.f32 %v4182_v30, %v4174_v31 }
0x53d6   :  { %7841 = vtanh.f32 %v4160_v59 }
0x53d7   :  { %7843 = vtanh.f32 %v4184_v11 }
0x53e3   :  { %v7842_v58 = vpop.eup %7841 }
0x53e4   :  { %v7844_v9 = vpop.eup %7843  ;;  %4163 = vrot.lane.b32.xlu0 %v7842_v58, %s8036_s30 }
0x53e5   :  { %4187 = vrot.lane.b32.xlu1 %v7844_v9, %s8036_s30 }
0x5456   :  { %v4164_v39 = vpop.permute.xlu0 %4163 }
0x5457   :  { %v4188_v3 = vpop.permute.xlu1 %4187  ;;  %v9145_v12 = vmul.f32 %v7838_v33, %v4164_v39 }
0x5458   :  { %v9147_v18 = vmul.f32 %v7840_v52, %v4188_v3 }
0x5459   :  { %v4201_v37 = vpack.c.bf16 %v9145_v12, %v9145_v12 }
0x545a   :  { %v4249_v17 = vpack.c.bf16 %v9147_v18, %v9147_v18 }
0x545b   :  { %4203 = vrot.lane.b32.xlu0 %v4201_v37, %s8041_s0 }
0x545c   :  { %4251 = vrot.lane.b32.xlu1 %v4249_v17, %s8041_s0 }
0x54cd   :  { %v4204_v55 = vpop.permute.xlu0 %4203 }
0x54ce   :  { %v4252_v35 = vpop.permute.xlu1 %4251  ;;  %7170 = vmatmul.mubr.msk.bf16.vlgmr.msra.gmra.mxu0 %vm216_vm11, %v4204_v55  ;;  %v7479_v55 = vld [vmem:[%s9758_s3 + $0x78] sm:$0xff]  }
0x54cf   :  { %7178 = vmatmul.mubr.msk.bf16.vlgmr.msra.gmra.mxu1 %vm216_vm11, %v4252_v35  ;;  %7185 = vmatprep.mubr.msk.bf16.mxu0 %vm8040_vm10, %v8039_v14 }
0x54d0   :  { %7209 = vmatprep.mubr.msk.bf16.mxu1 %vm8040_vm10, %v8039_v14  ;;  %7206 = vmatpush3.bf16.msra.mxu1 %v7475_v8  ;;  %v9312_v8 = vld [vmem:[%s9758_s3 + $0x80] sm:$0xff]  }
0x54d1   :  { %7207 = vmatprep.subr.bf16.mxu1 %v8039_v14 }
0x54d4   :  { %7208 = vmatpush3.bf16.msra.mxu1 %v7476_v10  ;;  %v9317_v10 = vld [vmem:[%s9758_s3 + $0x90] sm:$0xff]  }
0x54d5   :  { %7253 = vmatprep.subr.bf16.mxu1 %v8039_v14 }
0x558e   :  { %v4242_v43 = vpop.f32.mrf.mxu0 }
0x558f   :  { %v4248_v41 = vadd.f32 %v4242_v43, %v8849_v4  ;;  %v4290_v24 = vpop.f32.mrf.mxu1 }
0x5590   :  { %v4296_v20 = vadd.f32 %v4290_v24, %v8819_v19  ;;  %v7171_v22 = vpop.f32.mrf.mxu0 }
0x5591   :  { %7845 = vtanh.f32 %v4248_v41  ;;  %v7179_v16 = vpop.f32.mrf.mxu1  ;;  %v6387_v48 = vmul.f32 -1.442695, %v4248_v41 }
0x5592   :  { %7847 = vtanh.f32 %v4296_v20  ;;  %v4245_v51 = vpop.f32.mrf.mxu0  ;;  %v6388_v60 = vmul.f32 -1.442695, %v4296_v20  ;;  %v7481_v20 = vld [vmem:[%s9758_s3 + $0x70] sm:$0xff]  }
0x5593   :  { %v4293_v56 = vpop.f32.mrf.mxu1  ;;  %7849 = vpow2.f32 %v6387_v48 }
0x5594   :  { %v7172_v45 = vpop.f32.mrf.mxu0  ;;  %7851 = vpow2.f32 %v6388_v60 }
0x5595   :  { %v7180_v32 = vpop.f32.mrf.mxu1 }
0x559e   :  { %v7846_v21 = vpop.eup %7845 }
0x559f   :  { %v7848_v29 = vpop.eup %7847  ;;  %4306 = vrot.lane.b32.xlu0 %v7846_v21, %s8036_s30 }
0x55a0   :  { %4330 = vrot.lane.b32.xlu1 %v7848_v29, %s8036_s30  ;;  %v7850_v4 = vpop.eup %7849 }
0x55a1   :  { %v7852_v19 = vpop.eup %7851  ;;  %v4300_v50 = vadd.f32 1.0, %v7850_v4 }
0x55a2   :  { %v4324_v54 = vadd.f32 1.0, %v7852_v19 }
0x55a3   :  { %7853 = vrcp.f32 %v4300_v50 }
0x55a4   :  { %7855 = vrcp.f32 %v4324_v54 }
0x55b0   :  { %v9165_v6 = vpop.eup %7853 }
0x55b1   :  { %v7856_v57 = vpop.eup %7855  ;;  %v4304_v13 = vmul.f32 %v9165_v6, %v4160_v59  ;;  %v7480_v59 = vld [vmem:[%s9758_s3 + $0x68] sm:$0xff]  }
0x55b2   :  { %v4328_v7 = vmul.f32 %v7856_v57, %v4184_v11 }
0x5611   :  { %v4307_v53 = vpop.permute.xlu0 %4306 }
0x5612   :  { %v4331_v46 = vpop.permute.xlu1 %4330  ;;  %v4309_v40 = vmul.f32 %v9165_v6, %v4307_v53 }
0x5613   :  { %v4333_v2 = vmul.f32 %v7856_v57, %v4331_v46 }
0x5614   :  { %4311 = vrot.lane.b32.xlu0 %v4309_v40, %s8041_s0 }
0x5615   :  { %4335 = vrot.lane.b32.xlu1 %v4333_v2, %s8041_s0 }
0x5686   :  { %v4312_v33 = vpop.permute.xlu0 %4311 }
0x5687   :  { %v4336_v62 = vpop.permute.xlu1 %4335  ;;  %v4314_v52 = vadd.f32 %v4312_v33, %v4304_v13 }
0x5688   :  { %v4338_v61 = vadd.f32 %v4336_v62, %v4328_v7 }
0x5689   :  { %7857 = vtanh.f32 %v4314_v52  ;;  %v9297_v52 = vld [vmem:[%s9758_s3 + $0x88] sm:$0xff]  }
0x568a   :  { %7859 = vtanh.f32 %v4338_v61  ;;  %v9302_v61 = vld [vmem:[%s9758_s3 + $0x98] sm:$0xff]  }
0x5696   :  { %v7858_v34 = vpop.eup %7857 }
0x5697   :  { %v7860_v31 = vpop.eup %7859  ;;  %4317 = vrot.lane.b32.xlu0 %v7858_v34, %s8036_s30 }
0x5698   :  { %4341 = vrot.lane.b32.xlu1 %v7860_v31, %s8036_s30 }
0x569b   :  { %3268 = vrot.lane.b32.xlu0 %v8903_v36, %s8041_s0  ;;  %v7478_v36 = vld [vmem:[%s9758_s3 + $0x50] sm:$0xff]  }
0x569c   :  { %3114 = vrot.lane.b32.xlu1 %v8863_v1, %s8041_s0  ;;  %v7477_v1 = vld [vmem:[%s9758_s3 + $0x58] sm:$0xff]  }
0x569d   :  { %7182 = vmatpush3.bf16.msra.mxu0 %v7477_v1 }
0x569e   :  { %7183 = vmatprep.subr.bf16.mxu0 %v8039_v14 }
0x56a0   :  { %4197 = vrot.lane.b32.xlu1 %v9147_v18, %s8041_s0 }
0x56a1   :  { %7184 = vmatpush3.bf16.msra.mxu0 %v7478_v36 }
0x56a2   :  { %7229 = vmatprep.subr.bf16.mxu0 %v8039_v14 }
0x56a4   :  { %3422 = vrot.lane.b32.xlu1 %v8943_v15, %s8041_s0 }
0x56a8   :  { %3889 = vrot.lane.b32.xlu1 %v9065_v23, %s8041_s0 }
0x56ac   :  { %3581 = vrot.lane.b32.xlu1 %v8985_v49, %s8041_s0 }
0x56b0   :  { %3735 = vrot.lane.b32.xlu1 %v9025_v63, %s8041_s0 }
0x56b4   :  { %3273 = vrot.lane.b32.xlu1 %v8905_v47, %s8041_s0 }
0x56b8   :  { %4038 = vrot.lane.b32.xlu1 %v9103_v26, %s8041_s0 }
0x56bc   :  { %3119 = vrot.lane.b32.xlu1 %v8865_v5, %s8041_s0 }
0x5709   :  { %v4318_v47 = vpop.permute.xlu0 %4317 }
0x570a   :  { %v4342_v15 = vpop.permute.xlu1 %4341  ;;  %v4320_v39 = vmul.f32 %v9165_v6, %v4318_v47 }
0x570b   :  { %v4344_v49 = vmul.f32 %v7856_v57, %v4342_v15 }
0x570d   :  { %4351 = vrot.lane.b32.xlu0 %v4344_v49, %s8041_s0  ;;  %v3269_v5 = vpop.permute.xlu0 %3268 }
0x570e   :  { %v3115_v63 = vpop.permute.xlu1 %3114  ;;  %3271 = vst.msk [vmem:[#allocation5 + $0x8] sm:$0xff] %vm216_vm11, %v3269_v5 }
0x570f   :  { %3117 = vst.msk [vmem:[#allocation5] sm:$0xff] %vm216_vm11, %v3115_v63 }
0x5711   :  { %3576 = vrot.lane.b32.xlu0 %v8983_v28, %s8041_s0 }
0x5712   :  { %v4198_v23 = vpop.permute.xlu1 %4197 }
0x5713   :  { %4200 = vst.msk [vmem:[#allocation6 + $0x8] sm:$0xff] %vm216_vm11, %v4198_v23 }
0x5715   :  { %4043 = vrot.lane.b32.xlu0 %v9105_v42, %s8041_s0  ;;  %v4356_v26 = vld [vmem:[#allocation5 + $0x8] sm:$0xff]  ;;  %v7482_v42 = vld [vmem:[%s9758_s3 + $0x60] sm:$0xff]  }
0x5716   :  { %v3423_v44 = vpop.permute.xlu1 %3422  ;;  %v4355_v30 = vld [vmem:[#allocation5] sm:$0xff] }
0x5717   :  { %3425 = vst.msk [vmem:[#allocation5 + $0x10] sm:$0xff] %vm216_vm11, %v3423_v44  ;;  %v9221_v11 = vpack.c.bf16 %v4356_v26, %v4355_v30 }
0x5719   :  { %3730 = vrot.lane.b32.xlu0 %v9023_v27, %s8041_s0  ;;  %7210 = vmatmul.mubr.msk.bf16.vlgmr.msra.gmra.mxu1 %vm216_vm11, %v9221_v11 }
0x571a   :  { %v3890_v28 = vpop.permute.xlu1 %3889  ;;  %7254 = vmatpush3.bf16.msra.mxu1 %v7480_v59  ;;  %7213 = vmatprep.mubr.msk.bf16.mxu1 %vm8040_vm10, %v8039_v14  ;;  %v4365_v17 = vld [vmem:[#allocation6 + $0x8] sm:$0xff] }
0x571b   :  { %3892 = vst.msk [vmem:[#allocation6 + $0x18] sm:$0xff] %vm216_vm11, %v3890_v28  ;;  %7255 = vmatprep.subr.bf16.mxu1 %v8039_v14 }
0x571d   :  { %3884 = vrot.lane.b32.xlu0 %v9063_v25, %s8041_s0 }
0x571e   :  { %v3582_v27 = vpop.permute.xlu1 %3581  ;;  %7256 = vmatpush3.bf16.msra.mxu1 %v7482_v42  ;;  %v4357_v41 = vld [vmem:[#allocation5 + $0x10] sm:$0xff] }
0x571f   :  { %3584 = vst.msk [vmem:[#allocation6 + $0x28] sm:$0xff] %vm216_vm11, %v3582_v27  ;;  %7285 = vmatprep.subr.bf16.mxu1 %v8039_v14 }
0x5721   :  { %3427 = vrot.lane.b32.xlu0 %v8945_v38, %s8041_s0 }
0x5722   :  { %v3736_v58 = vpop.permute.xlu1 %3735  ;;  %v4367_v56 = vld [vmem:[#allocation6 + $0x18] sm:$0xff] }
0x5723   :  { %3738 = vst.msk [vmem:[#allocation6 + $0x20] sm:$0xff] %vm216_vm11, %v3736_v58 }
0x5725   :  { %4192 = vrot.lane.b32.xlu0 %v9145_v12, %s8041_s0 }
0x5726   :  { %v3274_v9 = vpop.permute.xlu1 %3273  ;;  %v4369_v48 = vld [vmem:[#allocation6 + $0x28] sm:$0xff] }
0x5727   :  { %3276 = vst.msk [vmem:[#allocation6 + $0x38] sm:$0xff] %vm216_vm11, %v3274_v9 }
0x5729   :  { %4346 = vrot.lane.b32.xlu0 %v4320_v39, %s8041_s0 }
0x572a   :  { %v4039_v25 = vpop.permute.xlu1 %4038  ;;  %v4368_v21 = vld [vmem:[#allocation6 + $0x20] sm:$0xff] }
0x572b   :  { %4041 = vst.msk [vmem:[#allocation5 + $0x30] sm:$0xff] %vm216_vm11, %v4039_v25  ;;  %v4388_v19 = vpack.c.bf16 %v4369_v48, %v4368_v21 }
0x572e   :  { %v3120_v3 = vpop.permute.xlu1 %3119  ;;  %v4371_v53 = vld [vmem:[#allocation6 + $0x38] sm:$0xff] }
0x572f   :  { %3122 = vst.msk [vmem:[#allocation6 + $0x40] sm:$0xff] %vm216_vm11, %v3120_v3 }
0x5732   :  { %v4361_v57 = vld [vmem:[#allocation5 + $0x30] sm:$0xff] }
0x5736   :  { %v4372_v13 = vld [vmem:[#allocation6 + $0x40] sm:$0xff] }
0x5737   :  { %v4390_v33 = vpack.c.bf16 %v4372_v13, %v4372_v13 }
0x577f   :  { %v4352_v38 = vpop.permute.xlu0 %4351 }
0x5780   :  { %4354 = vst.msk [vmem:[#allocation6] sm:$0xff] %vm216_vm11, %v4352_v38 }
0x5783   :  { %v3577_v18 = vpop.permute.xlu0 %3576 }
0x5784   :  { %3579 = vst.msk [vmem:[#allocation5 + $0x18] sm:$0xff] %vm216_vm11, %v3577_v18 }
0x5787   :  { %v4044_v12 = vpop.permute.xlu0 %4043  ;;  %v4364_v37 = vld [vmem:[#allocation6] sm:$0xff] }
0x5788   :  { %4046 = vst.msk [vmem:[#allocation6 + $0x10] sm:$0xff] %vm216_vm11, %v4044_v12  ;;  %v4386_v35 = vpack.c.bf16 %v4365_v17, %v4364_v37 }
0x578a   :  { %7186 = vmatmul.mubr.msk.bf16.vlgmr.msra.gmra.mxu0 %vm216_vm11, %v4386_v35 }
0x578b   :  { %7230 = vmatpush3.bf16.msra.mxu0 %v7479_v55  ;;  %v3731_v43 = vpop.permute.xlu0 %3730  ;;  %v4358_v24 = vld [vmem:[#allocation5 + $0x18] sm:$0xff]  ;;  %7189 = vmatprep.mubr.msk.bf16.mxu0 %vm8040_vm10, %v8039_v14 }
0x578c   :  { %3733 = vst.msk [vmem:[#allocation5 + $0x20] sm:$0xff] %vm216_vm11, %v3731_v43  ;;  %v9261_v22 = vpack.c.bf16 %v4358_v24, %v4357_v41  ;;  %7231 = vmatprep.subr.bf16.mxu0 %v8039_v14 }
0x578e   :  { %7214 = vmatmul.mubr.msk.bf16.gmra.mxu1 %vm216_vm11, %v9261_v22 }
0x578f   :  { %v3885_v16 = vpop.permute.xlu0 %3884  ;;  %v4366_v51 = vld [vmem:[#allocation6 + $0x10] sm:$0xff]  ;;  %7217 = vmatprep.mubr.msk.bf16.mxu1 %vm8040_vm10, %v8039_v14  ;;  %7232 = vmatpush3.bf16.msra.mxu0 %v7481_v20 }
0x5790   :  { %3887 = vst.msk [vmem:[#allocation5 + $0x28] sm:$0xff] %vm216_vm11, %v3885_v16  ;;  %v4387_v45 = vpack.c.bf16 %v4367_v56, %v4366_v51  ;;  %7277 = vmatprep.subr.bf16.mxu0 %v8039_v14 }
0x5792   :  { %7190 = vmatmul.mubr.msk.bf16.gmra.mxu0 %vm216_vm11, %v4387_v45 }
0x5793   :  { %v3428_v32 = vpop.permute.xlu0 %3427  ;;  %7193 = vmatprep.mubr.msk.bf16.mxu0 %vm8040_vm10, %v8039_v14  ;;  %v4359_v60 = vld [vmem:[#allocation5 + $0x20] sm:$0xff] }
0x5794   :  { %3430 = vst.msk [vmem:[#allocation6 + $0x30] sm:$0xff] %vm216_vm11, %v3428_v32 }
0x5797   :  { %v4193_v29 = vpop.permute.xlu0 %4192  ;;  %v4360_v4 = vld [vmem:[#allocation5 + $0x28] sm:$0xff] }
0x5798   :  { %4195 = vst.msk [vmem:[#allocation5 + $0x38] sm:$0xff] %vm216_vm11, %v4193_v29  ;;  %v4379_v50 = vpack.c.bf16 %v4360_v4, %v4359_v60 }
0x579a   :  { %7194 = vmatmul.mubr.msk.bf16.gmra.mxu0 %vm216_vm11, %v4388_v19  ;;  %7218 = vmatmul.mubr.msk.bf16.gmra.mxu1 %vm216_vm11, %v4379_v50 }
0x579b   :  { %v4347_v54 = vpop.permute.xlu0 %4346  ;;  %7197 = vmatprep.mubr.msk.bf16.mxu0 %vm8040_vm10, %v8039_v14  ;;  %7221 = vmatprep.mubr.msk.bf16.mxu1 %vm8040_vm10, %v8039_v14  ;;  %v4370_v6 = vld [vmem:[#allocation6 + $0x30] sm:$0xff] }
0x579c   :  { %4349 = vst.msk [vmem:[#allocation5 + $0x40] sm:$0xff] %vm216_vm11, %v4347_v54  ;;  %v4389_v40 = vpack.c.bf16 %v4371_v53, %v4370_v6 }
0x579f   :  { %v4362_v46 = vld [vmem:[#allocation5 + $0x38] sm:$0xff] }
0x57a0   :  { %v4380_v2 = vpack.c.bf16 %v4362_v46, %v4361_v57 }
0x57a2   :  { %7198 = vmatmul.mubr.msk.bf16.gmra.mxu0 %vm216_vm11, %v4389_v40  ;;  %7222 = vmatmul.mubr.msk.bf16.gmra.mxu1 %vm216_vm11, %v4380_v2 }
0x57a3   :  { %7201 = vmatprep.mubr.msk.bf16.mxu0 %vm8040_vm10, %v8039_v14  ;;  %7225 = vmatprep.mubr.msk.bf16.mxu1 %vm8040_vm10, %v8039_v14  ;;  %v4363_v7 = vld [vmem:[#allocation5 + $0x40] sm:$0xff] }
0x57a4   :  { %v4381_v62 = vpack.c.bf16 %v4363_v7, %v4363_v7 }
0x57aa   :  { %7202 = vmatmul.mubr.msk.bf16.gmra.mxu0 %vm216_vm11, %v4390_v33  ;;  %7226 = vmatmul.mubr.msk.bf16.gmra.mxu1 %vm216_vm11, %v4381_v62 }
0x57ab   :  { %7233 = vmatprep.mubr.msk.bf16.mxu0 %vm8040_vm10, %v8039_v14  ;;  %7257 = vmatprep.mubr.msk.bf16.mxu1 %vm8040_vm10, %v8039_v14 }
0x57b2   :  { %7234 = vmatmul.mubr.msk.bf16.vlgmr.msra.gmra.mxu0 %vm216_vm11, %v4386_v35  ;;  %7258 = vmatmul.mubr.msk.bf16.vlgmr.msra.gmra.mxu1 %vm216_vm11, %v9221_v11 }
0x57b3   :  { %7278 = vmatpush3.bf16.msra.mxu0 %v9297_v52  ;;  %7286 = vmatpush3.bf16.msra.mxu1 %v9302_v61 }
0x57b4   :  { %7237 = vmatprep.mubr.msk.bf16.mxu0 %vm8040_vm10, %v8039_v14  ;;  %7261 = vmatprep.mubr.msk.bf16.mxu1 %vm8040_vm10, %v8039_v14 }
0x57b5   :  { %7279 = vmatprep.subr.bf16.mxu0 %v8039_v14  ;;  %7287 = vmatprep.subr.bf16.mxu1 %v8039_v14 }
0x57b7   :  { %7280 = vmatpush3.bf16.msra.mxu0 %v9312_v8  ;;  %7288 = vmatpush3.bf16.msra.mxu1 %v9317_v10 }
0x57b8   :  { %7293 = vmatprep.subr.bf16.mxu0 %v8039_v14  ;;  %7301 = vmatprep.subr.bf16.mxu1 %v8039_v14 }
0x57ba   :  { %7238 = vmatmul.mubr.msk.bf16.gmra.mxu0 %vm216_vm11, %v4387_v45  ;;  %7262 = vmatmul.mubr.msk.bf16.gmra.mxu1 %vm216_vm11, %v9261_v22 }
0x57bb   :  { %7241 = vmatprep.mubr.msk.bf16.mxu0 %vm8040_vm10, %v8039_v14  ;;  %7265 = vmatprep.mubr.msk.bf16.mxu1 %vm8040_vm10, %v8039_v14 }
0x57c2   :  { %7242 = vmatmul.mubr.msk.bf16.gmra.mxu0 %vm216_vm11, %v4388_v19  ;;  %7266 = vmatmul.mubr.msk.bf16.gmra.mxu1 %vm216_vm11, %v4379_v50 }
0x57c3   :  { %7245 = vmatprep.mubr.msk.bf16.mxu0 %vm8040_vm10, %v8039_v14  ;;  %7269 = vmatprep.mubr.msk.bf16.mxu1 %vm8040_vm10, %v8039_v14 }
0x57ca   :  { %7246 = vmatmul.mubr.msk.bf16.gmra.mxu0 %vm216_vm11, %v4389_v40  ;;  %7270 = vmatmul.mubr.msk.bf16.gmra.mxu1 %vm216_vm11, %v4380_v2 }
0x57cb   :  { %7249 = vmatprep.mubr.msk.bf16.mxu0 %vm8040_vm10, %v8039_v14  ;;  %7273 = vmatprep.mubr.msk.bf16.mxu1 %vm8040_vm10, %v8039_v14 }
0x57d2   :  { %7250 = vmatmul.mubr.msk.bf16.gmra.mxu0 %vm216_vm11, %v4390_v33  ;;  %7274 = vmatmul.mubr.msk.bf16.gmra.mxu1 %vm216_vm11, %v4381_v62 }
0x57d3   :  { %7281 = vmatprep.mubr.msk.bf16.mxu0 %vm8040_vm10, %v8039_v14  ;;  %7289 = vmatprep.mubr.msk.bf16.mxu1 %vm8040_vm10, %v8039_v14 }
0x57d9   :  { %v9354_v34 = vpop.f32.mrf.mxu1 }
0x57da   :  { %7282 = vmatmul.mubr.bf16.vlgmr.msra.gmra.mxu0 %v8038_v0  ;;  %7290 = vmatmul.mubr.bf16.vlgmr.msra.gmra.mxu1 %v8038_v0 }
0x57db   :  { %v7211_v31 = vpop.f32.mrf.mxu1  ;;  %7294 = vmatpush3.bf16.msra.mxu0 %v9297_v52  ;;  %7302 = vmatpush3.bf16.msra.mxu1 %v9302_v61 }
0x57dc   :  { %7295 = vmatprep.subr.bf16.mxu0 %v8039_v14  ;;  %7303 = vmatprep.subr.bf16.mxu1 %v8039_v14 }
0x57dd   :  { %v9362_v1 = vpop.f32.mrf.mxu1  ;;  %7297 = vmatprep.mubr.msk.bf16.mxu0 %vm8040_vm10, %v8039_v14  ;;  %7305 = vmatprep.mubr.msk.bf16.mxu1 %vm8040_vm10, %v8039_v14 }
0x57df   :  { %v7212_v36 = vpop.f32.mrf.mxu1  ;;  %7296 = vmatpush3.bf16.msra.mxu0 %v9312_v8  ;;  %7304 = vmatpush3.bf16.msra.mxu1 %v9317_v10 }
0x57e0   :  { %7309 = vmatprep.subr.bf16.mxu0 %v8039_v14  ;;  %7317 = vmatprep.subr.bf16.mxu1 %v8039_v14 }
0x584a   :  { %v9372_v0 = vpop.f32.mrf.mxu0 }
0x584c   :  { %v7187_v47 = vpop.f32.mrf.mxu0 }
0x584e   :  { %v9374_v15 = vpop.f32.mrf.mxu0  ;;  %v4559_v49 = vpop.f32.mrf.mxu1 }
0x5850   :  { %v7188_v5 = vpop.f32.mrf.mxu0  ;;  %v7215_v63 = vpop.f32.mrf.mxu1 }
0x5852   :  { %v4460_v23 = vpop.f32.mrf.mxu0  ;;  %v4562_v26 = vpop.f32.mrf.mxu1 }
0x5853   :  { %v9376_v44 = vadd.f32 %v4559_v49, %v4460_v23 }
0x5854   :  { %v7191_v30 = vpop.f32.mrf.mxu0  ;;  %v7216_v59 = vpop.f32.mrf.mxu1 }
0x5856   :  { %v4463_v11 = vpop.f32.mrf.mxu0 }
0x5857   :  { %v9378_v28 = vadd.f32 %v4562_v26, %v4463_v11 }
0x5858   :  { %v7192_v42 = vpop.f32.mrf.mxu0 }
0x585a   :  { %v4468_v27 = vpop.f32.mrf.mxu0  ;;  %v4567_v58 = vpop.f32.mrf.mxu1 }
0x585b   :  { %v9380_v9 = vadd.f32 %v4567_v58, %v4468_v27 }
0x585c   :  { %v7195_v39 = vpop.f32.mrf.mxu0  ;;  %v7219_v25 = vpop.f32.mrf.mxu1 }
0x585e   :  { %v4471_v3 = vpop.f32.mrf.mxu0  ;;  %v4570_v38 = vpop.f32.mrf.mxu1 }
0x585f   :  { %v9382_v18 = vadd.f32 %v4570_v38, %v4471_v3 }
0x5860   :  { %v7196_v12 = vpop.f32.mrf.mxu0  ;;  %v7220_v37 = vpop.f32.mrf.mxu1 }
0x5862   :  { %v4476_v17 = vpop.f32.mrf.mxu0  ;;  %v4575_v55 = vpop.f32.mrf.mxu1 }
0x5863   :  { %v9384_v35 = vadd.f32 %v4575_v55, %v4476_v17 }
0x5864   :  { %v7199_v43 = vpop.f32.mrf.mxu0  ;;  %v7223_v41 = vpop.f32.mrf.mxu1 }
0x5866   :  { %v4479_v24 = vpop.f32.mrf.mxu0  ;;  %v4578_v20 = vpop.f32.mrf.mxu1 }
0x5867   :  { %v9386_v22 = vadd.f32 %v4578_v20, %v4479_v24 }
0x5868   :  { %v7200_v16 = vpop.f32.mrf.mxu0  ;;  %v7224_v51 = vpop.f32.mrf.mxu1 }
0x586a   :  { %v4484_v56 = vpop.f32.mrf.mxu0  ;;  %v4583_v45 = vpop.f32.mrf.mxu1 }
0x586b   :  { %v9388_v32 = vadd.f32 %v4583_v45, %v4484_v56 }
0x586c   :  { %v7203_v21 = vpop.f32.mrf.mxu0  ;;  %v7227_v29 = vpop.f32.mrf.mxu1 }
0x586e   :  { %v4487_v48 = vpop.f32.mrf.mxu0  ;;  %v4586_v60 = vpop.f32.mrf.mxu1 }
0x5870   :  { %v7204_v4 = vpop.f32.mrf.mxu0  ;;  %v7228_v19 = vpop.f32.mrf.mxu1 }
0x5872   :  { %v4643_v50 = vpop.f32.mrf.mxu0  ;;  %v4727_v54 = vpop.f32.mrf.mxu1 }
0x5873   :  { %v9390_v6 = vadd.f32 %v4727_v54, %v4643_v50  ;;  %v4552_v50 = vadd.f32 %v9354_v34, %v9372_v0 }
0x5874   :  { %v7235_v53 = vpop.f32.mrf.mxu0  ;;  %v7259_v57 = vpop.f32.mrf.mxu1 }
0x5876   :  { %v4646_v46 = vpop.f32.mrf.mxu0  ;;  %v4730_v40 = vpop.f32.mrf.mxu1 }
0x5877   :  { %v9392_v2 = vadd.f32 %v4730_v40, %v4646_v46 }
0x5878   :  { %v7236_v13 = vpop.f32.mrf.mxu0  ;;  %v7260_v7 = vpop.f32.mrf.mxu1 }
0x587a   :  { %v4651_v33 = vpop.f32.mrf.mxu0  ;;  %v4735_v62 = vpop.f32.mrf.mxu1 }
0x587b   :  { %v9394_v31 = vadd.f32 %v4735_v62, %v4651_v33 }
0x587c   :  { %v7239_v36 = vpop.f32.mrf.mxu0  ;;  %v7263_v47 = vpop.f32.mrf.mxu1 }
0x587e   :  { %v4654_v49 = vpop.f32.mrf.mxu0  ;;  %v4738_v5 = vpop.f32.mrf.mxu1 }
0x587f   :  { %v9396_v63 = vadd.f32 %v4738_v5, %v4654_v49 }
0x5880   :  { %v7240_v23 = vpop.f32.mrf.mxu0  ;;  %v7264_v26 = vpop.f32.mrf.mxu1 }
0x5882   :  { %v4659_v30 = vpop.f32.mrf.mxu0  ;;  %v4743_v59 = vpop.f32.mrf.mxu1 }
0x5883   :  { %v9398_v11 = vadd.f32 %v4743_v59, %v4659_v30 }
0x5884   :  { %v7243_v42 = vpop.f32.mrf.mxu0  ;;  %v7267_v27 = vpop.f32.mrf.mxu1 }
0x5886   :  { %v4662_v58 = vpop.f32.mrf.mxu0  ;;  %v4746_v39 = vpop.f32.mrf.mxu1 }
0x5887   :  { %v9400_v25 = vadd.f32 %v4746_v39, %v4662_v58 }
0x5888   :  { %v7244_v3 = vpop.f32.mrf.mxu0  ;;  %v7268_v38 = vpop.f32.mrf.mxu1 }
0x588a   :  { %v4667_v12 = vpop.f32.mrf.mxu0  ;;  %v4751_v37 = vpop.f32.mrf.mxu1 }
0x588b   :  { %v9402_v17 = vadd.f32 %v4751_v37, %v4667_v12 }
0x588c   :  { %v7247_v55 = vpop.f32.mrf.mxu0  ;;  %v7271_v43 = vpop.f32.mrf.mxu1 }
0x588e   :  { %v4670_v41 = vpop.f32.mrf.mxu0  ;;  %v4754_v24 = vpop.f32.mrf.mxu1 }
0x588f   :  { %v9404_v20 = vadd.f32 %v4754_v24, %v4670_v41 }
0x5890   :  { %v7248_v16 = vpop.f32.mrf.mxu0  ;;  %v7272_v51 = vpop.f32.mrf.mxu1 }
0x5892   :  { %v4675_v56 = vpop.f32.mrf.mxu0  ;;  %v4759_v45 = vpop.f32.mrf.mxu1 }
0x5893   :  { %v4760_v54 = vadd.f32 %v4759_v45, %v4675_v56 }
0x5894   :  { %v7251_v21 = vpop.f32.mrf.mxu0  ;;  %v7275_v29 = vpop.f32.mrf.mxu1 }
0x5896   :  { %v4678_v48 = vpop.f32.mrf.mxu0  ;;  %v4762_v60 = vpop.f32.mrf.mxu1 }
0x5898   :  { %v7252_v4 = vpop.f32.mrf.mxu0  ;;  %v7276_v19 = vpop.f32.mrf.mxu1 }
0x589a   :  { %v4819_v53 = vpop.f32.mrf.mxu0  ;;  %v4872_v57 = vpop.f32.mrf.mxu1 }
0x589b   :  { %v4825_v46 = vadd.f32 %v4819_v53, %v4552_v50  ;;  %v4878_v40 = vadd.f32 %v4872_v57, %v4760_v54  ;;  %v4555_v50 = vadd.f32 %v9362_v1, %v9374_v15 }
0x589c   :  { %v7283_v13 = vpop.f32.mrf.mxu0  ;;  %v7291_v7 = vpop.f32.mrf.mxu1 }
0x589d   :  { %7861 = vtanh.f32 %v4825_v46  ;;  %v6421_v34 = vmul.f32 -1.442695, %v4825_v46  ;;  %v6422_v0 = vmul.f32 -1.442695, %v4878_v40 }
0x589e   :  { %7863 = vtanh.f32 %v4878_v40  ;;  %v4822_v33 = vpop.f32.mrf.mxu0  ;;  %v4875_v62 = vpop.f32.mrf.mxu1 }
0x589f   :  { %7865 = vpow2.f32 %v6421_v34 }
0x58a0   :  { %v7284_v36 = vpop.f32.mrf.mxu0  ;;  %v7292_v47 = vpop.f32.mrf.mxu1  ;;  %7867 = vpow2.f32 %v6422_v0 }
0x58aa   :  { %v7862_v49 = vpop.eup %7861 }
0x58ab   :  { %v7864_v5 = vpop.eup %7863  ;;  %4888 = vrot.lane.b32.xlu1 %v7862_v49, %s8036_s30 }
0x58ac   :  { %4912 = vrot.lane.b32.xlu0 %v7864_v5, %s8036_s30  ;;  %v7866_v23 = vpop.eup %7865 }
0x58ad   :  { %v7868_v26 = vpop.eup %7867  ;;  %v4882_v30 = vadd.f32 1.0, %v7866_v23 }
0x58ae   :  { %v4906_v59 = vadd.f32 1.0, %v7868_v26 }
0x58af   :  { %7869 = vrcp.f32 %v4882_v30 }
0x58b0   :  { %7871 = vrcp.f32 %v4906_v59 }
0x58bc   :  { %v7870_v42 = vpop.eup %7869 }
0x58bd   :  { %v7872_v58 = vpop.eup %7871  ;;  %v4886_v12 = vmul.f32 0.0, %v7870_v42 }
0x58be   :  { %v4910_v37 = vmul.f32 0.0, %v7872_v58 }
0x591d   :  { %v4889_v27 = vpop.permute.xlu1 %4888 }
0x591e   :  { %v4913_v39 = vpop.permute.xlu0 %4912  ;;  %v4891_v3 = vmul.f32 %v7870_v42, %v4889_v27 }
0x591f   :  { %v4915_v38 = vmul.f32 %v7872_v58, %v4913_v39 }
0x5920   :  { %4893 = vrot.lane.b32.xlu1 %v4891_v3, %s8041_s0 }
0x5921   :  { %4917 = vrot.lane.b32.xlu0 %v4915_v38, %s8041_s0 }
0x5992   :  { %v4894_v55 = vpop.permute.xlu1 %4893 }
0x5993   :  { %v4918_v43 = vpop.permute.xlu0 %4917  ;;  %v9412_v41 = vadd.f32 %v4894_v55, %v4886_v12 }
0x5994   :  { %v9414_v24 = vadd.f32 %v4918_v43, %v4910_v37 }
0x5995   :  { %7873 = vtanh.f32 %v9412_v41 }
0x5996   :  { %7875 = vtanh.f32 %v9414_v24 }
0x59a2   :  { %v7874_v16 = vpop.eup %7873 }
0x59a3   :  { %v7876_v51 = vpop.eup %7875  ;;  %4899 = vrot.lane.b32.xlu1 %v7874_v16, %s8036_s30 }
0x59a4   :  { %4923 = vrot.lane.b32.xlu0 %v7876_v51, %s8036_s30 }
0x5a15   :  { %v4900_v56 = vpop.permute.xlu1 %4899 }
0x5a16   :  { %v4924_v45 = vpop.permute.xlu0 %4923  ;;  %v9420_v21 = vmul.f32 %v7870_v42, %v4900_v56 }
0x5a17   :  { %v9422_v29 = vmul.f32 %v7872_v58, %v4924_v45 }
0x5a18   :  { %v4929_v48 = vpack.c.bf16 %v9420_v21, %v9420_v21 }
0x5a19   :  { %v4977_v60 = vpack.c.bf16 %v9422_v29, %v9422_v29 }
0x5a1a   :  { %4931 = vrot.lane.b32.xlu1 %v4929_v48, %s8041_s0 }
0x5a1b   :  { %4979 = vrot.lane.b32.xlu0 %v4977_v60, %s8041_s0 }
0x5a8c   :  { %v4932_v4 = vpop.permute.xlu1 %4931 }
0x5a8d   :  { %v4980_v19 = vpop.permute.xlu0 %4979  ;;  %7298 = vmatmul.mubr.msk.bf16.vlgmr.msra.gmra.mxu0 %vm216_vm11, %v4932_v4 }
0x5a8e   :  { %7306 = vmatmul.mubr.msk.bf16.vlgmr.msra.gmra.mxu1 %vm216_vm11, %v4980_v19  ;;  %7310 = vmatpush3.bf16.msra.mxu0 %v9297_v52 }
0x5a8f   :  { %7318 = vmatpush3.bf16.msra.mxu1 %v9302_v61  ;;  %7311 = vmatprep.subr.bf16.mxu0 %v8039_v14 }
0x5a90   :  { %7319 = vmatprep.subr.bf16.mxu1 %v8039_v14  ;;  %7321 = vmatprep.mubr.msk.bf16.mxu1 %vm8040_vm10, %v8039_v14 }
0x5a91   :  { %7313 = vmatprep.mubr.msk.bf16.mxu0 %vm8040_vm10, %v8039_v14 }
0x5a92   :  { %7312 = vmatpush3.bf16.msra.mxu0 %v9312_v8 }
0x5a93   :  { %7320 = vmatpush3.bf16.msra.mxu1 %v9317_v10  ;;  %7325 = vmatprep.subr.bf16.mxu0 %v8039_v14 }
0x5a94   :  { %7333 = vmatprep.subr.bf16.mxu1 %v8039_v14 }
0x5b4d   :  { %v4970_v54 = vpop.f32.mrf.mxu0 }
0x5b4e   :  { %v4976_v53 = vadd.f32 %v4970_v54, %v4555_v50  ;;  %v5018_v57 = vpop.f32.mrf.mxu1 }
0x5b4f   :  { %v5024_v46 = vadd.f32 %v5018_v57, %v9404_v20  ;;  %v7299_v40 = vpop.f32.mrf.mxu0 }
0x5b50   :  { %7877 = vtanh.f32 %v4976_v53  ;;  %v7307_v13 = vpop.f32.mrf.mxu1  ;;  %v6425_v1 = vmul.f32 -1.442695, %v4976_v53 }
0x5b51   :  { %7879 = vtanh.f32 %v5024_v46  ;;  %v4973_v7 = vpop.f32.mrf.mxu0  ;;  %v6426_v15 = vmul.f32 -1.442695, %v5024_v46 }
0x5b52   :  { %v5021_v33 = vpop.f32.mrf.mxu1  ;;  %7881 = vpow2.f32 %v6425_v1 }
0x5b53   :  { %v7300_v62 = vpop.f32.mrf.mxu0  ;;  %7883 = vpow2.f32 %v6426_v15 }
0x5b54   :  { %v7308_v36 = vpop.f32.mrf.mxu1 }
0x5b5d   :  { %v7878_v47 = vpop.eup %7877 }
0x5b5e   :  { %v7880_v49 = vpop.eup %7879  ;;  %5034 = vrot.lane.b32.xlu1 %v7878_v47, %s8036_s30 }
0x5b5f   :  { %5058 = vrot.lane.b32.xlu0 %v7880_v49, %s8036_s30  ;;  %v7882_v5 = vpop.eup %7881 }
0x5b60   :  { %v7884_v20 = vpop.eup %7883  ;;  %v5028_v34 = vadd.f32 1.0, %v7882_v5 }
0x5b61   :  { %v5052_v0 = vadd.f32 1.0, %v7884_v20 }
0x5b62   :  { %7885 = vrcp.f32 %v5028_v34 }
0x5b63   :  { %7887 = vrcp.f32 %v5052_v0 }
0x5b6f   :  { %v7886_v23 = vpop.eup %7885 }
0x5b70   :  { %v7888_v30 = vpop.eup %7887  ;;  %v5032_v58 = vmul.f32 %v7886_v23, %v9412_v41 }
0x5b71   :  { %v5056_v39 = vmul.f32 %v7888_v30, %v9414_v24 }
0x5bd0   :  { %v5035_v26 = vpop.permute.xlu1 %5034 }
0x5bd1   :  { %v5059_v59 = vpop.permute.xlu0 %5058  ;;  %v5037_v42 = vmul.f32 %v7886_v23, %v5035_v26 }
0x5bd2   :  { %v5061_v27 = vmul.f32 %v7888_v30, %v5059_v59 }
0x5bd3   :  { %5039 = vrot.lane.b32.xlu1 %v5037_v42, %s8041_s0 }
0x5bd4   :  { %5063 = vrot.lane.b32.xlu0 %v5061_v27, %s8041_s0 }
0x5c45   :  { %v5040_v3 = vpop.permute.xlu1 %5039 }
0x5c46   :  { %v5064_v38 = vpop.permute.xlu0 %5063  ;;  %v9453_v12 = vadd.f32 %v5040_v3, %v5032_v58 }
0x5c47   :  { %v9455_v37 = vadd.f32 %v5064_v38, %v5056_v39 }
0x5c48   :  { %7889 = vtanh.f32 %v9453_v12 }
0x5c49   :  { %7891 = vtanh.f32 %v9455_v37 }
0x5c55   :  { %v7890_v55 = vpop.eup %7889 }
0x5c56   :  { %v7892_v43 = vpop.eup %7891  ;;  %5045 = vrot.lane.b32.xlu1 %v7890_v55, %s8036_s30 }
0x5c57   :  { %5069 = vrot.lane.b32.xlu0 %v7892_v43, %s8036_s30 }
0x5cc8   :  { %v5046_v16 = vpop.permute.xlu1 %5045 }
0x5cc9   :  { %v5070_v41 = vpop.permute.xlu0 %5069  ;;  %v9461_v51 = vmul.f32 %v7886_v23, %v5046_v16 }
0x5cca   :  { %v9463_v24 = vmul.f32 %v7888_v30, %v5070_v41 }
0x5ccb   :  { %v5075_v56 = vpack.c.bf16 %v9461_v51, %v9461_v51 }
0x5ccc   :  { %v5123_v45 = vpack.c.bf16 %v9463_v24, %v9463_v24  ;;  %v5074_v43 = vadd.f32 %v9463_v24, %v9422_v29 }
0x5ccd   :  { %5077 = vrot.lane.b32.xlu1 %v5075_v56, %s8041_s0 }
0x5cce   :  { %5125 = vrot.lane.b32.xlu0 %v5123_v45, %s8041_s0 }
0x5d3f   :  { %v5078_v48 = vpop.permute.xlu1 %5077 }
0x5d40   :  { %v5126_v60 = vpop.permute.xlu0 %5125  ;;  %7314 = vmatmul.mubr.msk.bf16.vlgmr.msra.gmra.mxu0 %vm216_vm11, %v5078_v48 }
0x5d41   :  { %7322 = vmatmul.mubr.msk.bf16.vlgmr.msra.gmra.mxu1 %vm216_vm11, %v5126_v60  ;;  %7326 = vmatpush3.bf16.msra.mxu0 %v9297_v52 }
0x5d42   :  { %7334 = vmatpush3.bf16.msra.mxu1 %v9302_v61  ;;  %7327 = vmatprep.subr.bf16.mxu0 %v8039_v14 }
0x5d43   :  { %7335 = vmatprep.subr.bf16.mxu1 %v8039_v14  ;;  %7337 = vmatprep.mubr.msk.bf16.mxu1 %vm8040_vm10, %v8039_v14 }
0x5d44   :  { %7329 = vmatprep.mubr.msk.bf16.mxu0 %vm8040_vm10, %v8039_v14 }
0x5d45   :  { %7328 = vmatpush3.bf16.msra.mxu0 %v9312_v8 }
0x5d46   :  { %7336 = vmatpush3.bf16.msra.mxu1 %v9317_v10  ;;  %7341 = vmatprep.subr.bf16.mxu0 %v8039_v14 }
0x5d47   :  { %7349 = vmatprep.subr.bf16.mxu1 %v8039_v14 }
0x5e00   :  { %v5116_v4 = vpop.f32.mrf.mxu0 }
0x5e01   :  { %v5122_v19 = vadd.f32 %v5116_v4, %v9376_v44  ;;  %v5164_v50 = vpop.f32.mrf.mxu1 }
0x5e02   :  { %v5170_v54 = vadd.f32 %v5164_v50, %v9402_v17  ;;  %v7315_v53 = vpop.f32.mrf.mxu0 }
0x5e03   :  { %7893 = vtanh.f32 %v5122_v19  ;;  %v7323_v57 = vpop.f32.mrf.mxu1  ;;  %v6429_v36 = vmul.f32 -1.442695, %v5122_v19 }
0x5e04   :  { %7895 = vtanh.f32 %v5170_v54  ;;  %v5119_v46 = vpop.f32.mrf.mxu0  ;;  %v6430_v47 = vmul.f32 -1.442695, %v5170_v54 }
0x5e05   :  { %v5167_v40 = vpop.f32.mrf.mxu1  ;;  %7897 = vpow2.f32 %v6429_v36 }
0x5e06   :  { %v7316_v13 = vpop.f32.mrf.mxu0  ;;  %7899 = vpow2.f32 %v6430_v47 }
0x5e07   :  { %v7324_v7 = vpop.f32.mrf.mxu1 }
0x5e10   :  { %v7894_v33 = vpop.eup %7893 }
0x5e11   :  { %v7896_v62 = vpop.eup %7895  ;;  %5180 = vrot.lane.b32.xlu1 %v7894_v33, %s8036_s30 }
0x5e12   :  { %5204 = vrot.lane.b32.xlu0 %v7896_v62, %s8036_s30  ;;  %v7898_v44 = vpop.eup %7897 }
0x5e13   :  { %v7900_v17 = vpop.eup %7899  ;;  %v5174_v49 = vadd.f32 1.0, %v7898_v44 }
0x5e14   :  { %v5198_v1 = vadd.f32 1.0, %v7900_v17 }
0x5e15   :  { %7901 = vrcp.f32 %v5174_v49 }
0x5e16   :  { %7903 = vrcp.f32 %v5198_v1 }
0x5e22   :  { %v7902_v15 = vpop.eup %7901 }
0x5e23   :  { %v7904_v20 = vpop.eup %7903  ;;  %v5178_v26 = vmul.f32 %v7902_v15, %v9453_v12  ;;  %v5073_v12 = vadd.f32 %v9461_v51, %v9420_v21 }
0x5e24   :  { %v5202_v30 = vmul.f32 %v7904_v20, %v9455_v37 }
0x5e83   :  { %v5181_v5 = vpop.permute.xlu1 %5180 }
0x5e84   :  { %v5205_v34 = vpop.permute.xlu0 %5204  ;;  %v5183_v0 = vmul.f32 %v7902_v15, %v5181_v5 }
0x5e85   :  { %v5207_v23 = vmul.f32 %v7904_v20, %v5205_v34 }
0x5e86   :  { %5185 = vrot.lane.b32.xlu1 %v5183_v0, %s8041_s0 }
0x5e87   :  { %5209 = vrot.lane.b32.xlu0 %v5207_v23, %s8041_s0 }
0x5ef8   :  { %v5186_v59 = vpop.permute.xlu1 %5185 }
0x5ef9   :  { %v5210_v42 = vpop.permute.xlu0 %5209  ;;  %v9493_v27 = vadd.f32 %v5186_v59, %v5178_v26 }
0x5efa   :  { %v9495_v58 = vadd.f32 %v5210_v42, %v5202_v30 }
0x5efb   :  { %7905 = vtanh.f32 %v9493_v27 }
0x5efc   :  { %7907 = vtanh.f32 %v9495_v58 }
0x5f08   :  { %v7906_v39 = vpop.eup %7905 }
0x5f09   :  { %v7908_v3 = vpop.eup %7907  ;;  %5191 = vrot.lane.b32.xlu1 %v7906_v39, %s8036_s30 }
0x5f0a   :  { %5215 = vrot.lane.b32.xlu0 %v7908_v3, %s8036_s30 }
0x5f7b   :  { %v5192_v38 = vpop.permute.xlu1 %5191 }
0x5f7c   :  { %v5216_v37 = vpop.permute.xlu0 %5215  ;;  %v5194_v55 = vmul.f32 %v7902_v15, %v5192_v38 }
0x5f7d   :  { %v5218_v16 = vmul.f32 %v7904_v20, %v5216_v37 }
0x5f7e   :  { %v9505_v41 = vadd.f32 %v5194_v55, %v5073_v12  ;;  %v5221_v56 = vpack.c.bf16 %v5194_v55, %v5194_v55 }
0x5f7f   :  { %v9507_v45 = vadd.f32 %v5218_v16, %v5074_v43  ;;  %v5269_v48 = vpack.c.bf16 %v5218_v16, %v5218_v16 }
0x5f80   :  { %5223 = vrot.lane.b32.xlu1 %v5221_v56, %s8041_s0 }
0x5f81   :  { %5271 = vrot.lane.b32.xlu0 %v5269_v48, %s8041_s0 }
0x5ff2   :  { %v5224_v60 = vpop.permute.xlu1 %5223 }
0x5ff3   :  { %v5272_v4 = vpop.permute.xlu0 %5271  ;;  %7330 = vmatmul.mubr.msk.bf16.vlgmr.msra.gmra.mxu0 %vm216_vm11, %v5224_v60 }
0x5ff4   :  { %7338 = vmatmul.mubr.msk.bf16.vlgmr.msra.gmra.mxu1 %vm216_vm11, %v5272_v4  ;;  %7342 = vmatpush3.bf16.msra.mxu0 %v9297_v52 }
0x5ff5   :  { %7350 = vmatpush3.bf16.msra.mxu1 %v9302_v61  ;;  %7343 = vmatprep.subr.bf16.mxu0 %v8039_v14 }
0x5ff6   :  { %7351 = vmatprep.subr.bf16.mxu1 %v8039_v14  ;;  %7353 = vmatprep.mubr.msk.bf16.mxu1 %vm8040_vm10, %v8039_v14 }
0x5ff7   :  { %7345 = vmatprep.mubr.msk.bf16.mxu0 %vm8040_vm10, %v8039_v14 }
0x5ff8   :  { %7344 = vmatpush3.bf16.msra.mxu0 %v9312_v8 }
0x5ff9   :  { %7352 = vmatpush3.bf16.msra.mxu1 %v9317_v10  ;;  %7357 = vmatprep.subr.bf16.mxu0 %v8039_v14 }
0x5ffa   :  { %7365 = vmatprep.subr.bf16.mxu1 %v8039_v14 }
0x60b3   :  { %v5262_v21 = vpop.f32.mrf.mxu0 }
0x60b4   :  { %v5268_v29 = vadd.f32 %v5262_v21, %v9378_v28  ;;  %v5310_v51 = vpop.f32.mrf.mxu1 }
0x60b5   :  { %v5316_v24 = vadd.f32 %v5310_v51, %v9400_v25  ;;  %v7331_v19 = vpop.f32.mrf.mxu0 }
0x60b6   :  { %7909 = vtanh.f32 %v5268_v29  ;;  %v7339_v50 = vpop.f32.mrf.mxu1  ;;  %v6433_v7 = vmul.f32 -1.442695, %v5268_v29 }
0x60b7   :  { %7911 = vtanh.f32 %v5316_v24  ;;  %v5265_v54 = vpop.f32.mrf.mxu0  ;;  %v6434_v33 = vmul.f32 -1.442695, %v5316_v24 }
0x60b8   :  { %v5313_v53 = vpop.f32.mrf.mxu1  ;;  %7913 = vpow2.f32 %v6433_v7 }
0x60b9   :  { %v7332_v57 = vpop.f32.mrf.mxu0  ;;  %7915 = vpow2.f32 %v6434_v33 }
0x60ba   :  { %v7340_v46 = vpop.f32.mrf.mxu1 }
0x60c3   :  { %v7910_v40 = vpop.eup %7909 }
0x60c4   :  { %v7912_v13 = vpop.eup %7911  ;;  %5326 = vrot.lane.b32.xlu1 %v7910_v40, %s8036_s30 }
0x60c5   :  { %5350 = vrot.lane.b32.xlu0 %v7912_v13, %s8036_s30  ;;  %v7914_v28 = vpop.eup %7913 }
0x60c6   :  { %v7916_v25 = vpop.eup %7915  ;;  %v5320_v62 = vadd.f32 1.0, %v7914_v28 }
0x60c7   :  { %v5344_v36 = vadd.f32 1.0, %v7916_v25 }
0x60c8   :  { %7917 = vrcp.f32 %v5320_v62 }
0x60c9   :  { %7919 = vrcp.f32 %v5344_v36 }
0x60d5   :  { %v7918_v47 = vpop.eup %7917 }
0x60d6   :  { %v7920_v17 = vpop.eup %7919  ;;  %v5324_v5 = vmul.f32 %v7918_v47, %v9493_v27 }
0x60d7   :  { %v5348_v20 = vmul.f32 %v7920_v17, %v9495_v58 }
0x6136   :  { %v5327_v44 = vpop.permute.xlu1 %5326 }
0x6137   :  { %v5351_v49 = vpop.permute.xlu0 %5350  ;;  %v5329_v1 = vmul.f32 %v7918_v47, %v5327_v44 }
0x6138   :  { %v5353_v15 = vmul.f32 %v7920_v17, %v5351_v49 }
0x6139   :  { %5331 = vrot.lane.b32.xlu1 %v5329_v1, %s8041_s0 }
0x613a   :  { %5355 = vrot.lane.b32.xlu0 %v5353_v15, %s8041_s0 }
0x61ab   :  { %v5332_v34 = vpop.permute.xlu1 %5331 }
0x61ac   :  { %v5356_v0 = vpop.permute.xlu0 %5355  ;;  %v9533_v23 = vadd.f32 %v5332_v34, %v5324_v5 }
0x61ad   :  { %v9535_v26 = vadd.f32 %v5356_v0, %v5348_v20 }
0x61ae   :  { %7921 = vtanh.f32 %v9533_v23 }
0x61af   :  { %7923 = vtanh.f32 %v9535_v26 }
0x61bb   :  { %v7922_v30 = vpop.eup %7921 }
0x61bc   :  { %v7924_v59 = vpop.eup %7923  ;;  %5337 = vrot.lane.b32.xlu1 %v7922_v30, %s8036_s30 }
0x61bd   :  { %5361 = vrot.lane.b32.xlu0 %v7924_v59, %s8036_s30 }
0x622e   :  { %v5338_v42 = vpop.permute.xlu1 %5337 }
0x622f   :  { %v5362_v27 = vpop.permute.xlu0 %5361  ;;  %v5340_v39 = vmul.f32 %v7918_v47, %v5338_v42 }
0x6230   :  { %v5364_v58 = vmul.f32 %v7920_v17, %v5362_v27 }
0x6231   :  { %v9542_v3 = vadd.f32 %v5340_v39, %v9505_v41  ;;  %v5367_v38 = vpack.c.bf16 %v5340_v39, %v5340_v39 }
0x6232   :  { %v9545_v12 = vadd.f32 %v5364_v58, %v9507_v45  ;;  %v5415_v37 = vpack.c.bf16 %v5364_v58, %v5364_v58 }
0x6233   :  { %5369 = vrot.lane.b32.xlu1 %v5367_v38, %s8041_s0 }
0x6234   :  { %5417 = vrot.lane.b32.xlu0 %v5415_v37, %s8041_s0 }
0x62a5   :  { %v5370_v55 = vpop.permute.xlu1 %5369 }
0x62a6   :  { %v5418_v43 = vpop.permute.xlu0 %5417  ;;  %7346 = vmatmul.mubr.msk.bf16.vlgmr.msra.gmra.mxu0 %vm216_vm11, %v5370_v55 }
0x62a7   :  { %7354 = vmatmul.mubr.msk.bf16.vlgmr.msra.gmra.mxu1 %vm216_vm11, %v5418_v43  ;;  %7358 = vmatpush3.bf16.msra.mxu0 %v9297_v52 }
0x62a8   :  { %7366 = vmatpush3.bf16.msra.mxu1 %v9302_v61  ;;  %7359 = vmatprep.subr.bf16.mxu0 %v8039_v14 }
0x62a9   :  { %7367 = vmatprep.subr.bf16.mxu1 %v8039_v14  ;;  %7369 = vmatprep.mubr.msk.bf16.mxu1 %vm8040_vm10, %v8039_v14 }
0x62aa   :  { %7361 = vmatprep.mubr.msk.bf16.mxu0 %vm8040_vm10, %v8039_v14 }
0x62ab   :  { %7360 = vmatpush3.bf16.msra.mxu0 %v9312_v8 }
0x62ac   :  { %7368 = vmatpush3.bf16.msra.mxu1 %v9317_v10  ;;  %7373 = vmatprep.subr.bf16.mxu0 %v8039_v14 }
0x62ad   :  { %7381 = vmatprep.subr.bf16.mxu1 %v8039_v14 }
0x6366   :  { %v5408_v16 = vpop.f32.mrf.mxu0 }
0x6367   :  { %v5414_v41 = vadd.f32 %v5408_v16, %v9380_v9  ;;  %v5456_v56 = vpop.f32.mrf.mxu1 }
0x6368   :  { %v5462_v45 = vadd.f32 %v5456_v56, %v9398_v11  ;;  %v7347_v48 = vpop.f32.mrf.mxu0 }
0x6369   :  { %7925 = vtanh.f32 %v5414_v41  ;;  %v7355_v60 = vpop.f32.mrf.mxu1  ;;  %v6437_v50 = vmul.f32 -1.442695, %v5414_v41 }
0x636a   :  { %7927 = vtanh.f32 %v5462_v45  ;;  %v5411_v4 = vpop.f32.mrf.mxu0  ;;  %v6438_v54 = vmul.f32 -1.442695, %v5462_v45 }
0x636b   :  { %v5459_v21 = vpop.f32.mrf.mxu1  ;;  %7929 = vpow2.f32 %v6437_v50 }
0x636c   :  { %v7348_v29 = vpop.f32.mrf.mxu0  ;;  %7931 = vpow2.f32 %v6438_v54 }
0x636d   :  { %v7356_v51 = vpop.f32.mrf.mxu1 }
0x6376   :  { %v7926_v24 = vpop.eup %7925 }
0x6377   :  { %v7928_v19 = vpop.eup %7927  ;;  %5472 = vrot.lane.b32.xlu1 %v7926_v24, %s8036_s30 }
0x6378   :  { %5496 = vrot.lane.b32.xlu0 %v7928_v19, %s8036_s30  ;;  %v7930_v9 = vpop.eup %7929 }
0x6379   :  { %v7932_v11 = vpop.eup %7931  ;;  %v5466_v53 = vadd.f32 1.0, %v7930_v9 }
0x637a   :  { %v5490_v57 = vadd.f32 1.0, %v7932_v11 }
0x637b   :  { %7933 = vrcp.f32 %v5466_v53 }
0x637c   :  { %7935 = vrcp.f32 %v5490_v57 }
0x6388   :  { %v7934_v46 = vpop.eup %7933 }
0x6389   :  { %v7936_v13 = vpop.eup %7935  ;;  %v5470_v25 = vmul.f32 %v7934_v46, %v9533_v23 }
0x638a   :  { %v5494_v62 = vmul.f32 %v7936_v13, %v9535_v26 }
0x63e9   :  { %v5473_v40 = vpop.permute.xlu1 %5472 }
0x63ea   :  { %v5497_v7 = vpop.permute.xlu0 %5496  ;;  %v5475_v33 = vmul.f32 %v7934_v46, %v5473_v40 }
0x63eb   :  { %v5499_v28 = vmul.f32 %v7936_v13, %v5497_v7 }
0x63ec   :  { %5477 = vrot.lane.b32.xlu1 %v5475_v33, %s8041_s0 }
0x63ed   :  { %5501 = vrot.lane.b32.xlu0 %v5499_v28, %s8041_s0 }
0x645e   :  { %v5478_v36 = vpop.permute.xlu1 %5477 }
0x645f   :  { %v5502_v47 = vpop.permute.xlu0 %5501  ;;  %v9571_v44 = vadd.f32 %v5478_v36, %v5470_v25 }
0x6460   :  { %v9573_v17 = vadd.f32 %v5502_v47, %v5494_v62  ;;  %v9630_v47 = vld [vmem:[%s9758_s3 + $0x88] sm:$0xff]  }
0x6461   :  { %7937 = vtanh.f32 %v9571_v44 }
0x6462   :  { %7939 = vtanh.f32 %v9573_v17 }
0x646e   :  { %v7938_v49 = vpop.eup %7937 }
0x646f   :  { %v7940_v1 = vpop.eup %7939  ;;  %5483 = vrot.lane.b32.xlu1 %v7938_v49, %s8036_s30  ;;  %v9654_v49 = vld [vmem:[%s9758_s3 + $0x90] sm:$0xff]  }
0x6470   :  { %5507 = vrot.lane.b32.xlu0 %v7940_v1, %s8036_s30 }
0x64e1   :  { %v5484_v15 = vpop.permute.xlu1 %5483 }
0x64e2   :  { %v5508_v5 = vpop.permute.xlu0 %5507  ;;  %v5486_v20 = vmul.f32 %v7934_v46, %v5484_v15 }
0x64e3   :  { %v5510_v34 = vmul.f32 %v7936_v13, %v5508_v5 }
0x64e4   :  { %v9580_v0 = vadd.f32 %v5486_v20, %v9542_v3  ;;  %v5513_v23 = vpack.c.bf16 %v5486_v20, %v5486_v20 }
0x64e5   :  { %v9583_v26 = vadd.f32 %v5510_v34, %v9545_v12  ;;  %v5561_v30 = vpack.c.bf16 %v5510_v34, %v5510_v34 }
0x64e6   :  { %5515 = vrot.lane.b32.xlu1 %v5513_v23, %s8041_s0 }
0x64e7   :  { %5563 = vrot.lane.b32.xlu0 %v5561_v30, %s8041_s0 }
0x6558   :  { %v5516_v59 = vpop.permute.xlu1 %5515 }
0x6559   :  { %v5564_v42 = vpop.permute.xlu0 %5563  ;;  %7362 = vmatmul.mubr.msk.bf16.vlgmr.msra.gmra.mxu0 %vm216_vm11, %v5516_v59 }
0x655a   :  { %7370 = vmatmul.mubr.msk.bf16.vlgmr.msra.gmra.mxu1 %vm216_vm11, %v5564_v42  ;;  %7374 = vmatpush3.bf16.msra.mxu0 %v9297_v52 }
0x655b   :  { %7382 = vmatpush3.bf16.msra.mxu1 %v9302_v61  ;;  %7375 = vmatprep.subr.bf16.mxu0 %v8039_v14 }
0x655c   :  { %7383 = vmatprep.subr.bf16.mxu1 %v8039_v14  ;;  %7385 = vmatprep.mubr.msk.bf16.mxu1 %vm8040_vm10, %v8039_v14 }
0x655d   :  { %7377 = vmatprep.mubr.msk.bf16.mxu0 %vm8040_vm10, %v8039_v14 }
0x655e   :  { %7376 = vmatpush3.bf16.msra.mxu0 %v9312_v8 }
0x655f   :  { %7384 = vmatpush3.bf16.msra.mxu1 %v9317_v10  ;;  %7389 = vmatprep.subr.bf16.mxu0 %v8039_v14 }
0x6560   :  { %7397 = vmatprep.subr.bf16.mxu1 %v8039_v14 }
0x6619   :  { %v5554_v52 = vpop.f32.mrf.mxu0 }
0x661a   :  { %v5560_v61 = vadd.f32 %v5554_v52, %v9382_v18  ;;  %v5602_v27 = vpop.f32.mrf.mxu1 }
0x661b   :  { %v5608_v39 = vadd.f32 %v5602_v27, %v9396_v63  ;;  %v7363_v58 = vpop.f32.mrf.mxu0 }
0x661c   :  { %7941 = vtanh.f32 %v5560_v61  ;;  %v7371_v3 = vpop.f32.mrf.mxu1  ;;  %v6441_v43 = vmul.f32 -1.442695, %v5560_v61 }
0x661d   :  { %7943 = vtanh.f32 %v5608_v39  ;;  %v5557_v38 = vpop.f32.mrf.mxu0  ;;  %v6442_v16 = vmul.f32 -1.442695, %v5608_v39 }
0x661e   :  { %v5605_v12 = vpop.f32.mrf.mxu1  ;;  %7945 = vpow2.f32 %v6441_v43 }
0x661f   :  { %v7364_v37 = vpop.f32.mrf.mxu0  ;;  %7947 = vpow2.f32 %v6442_v16 }
0x6620   :  { %v7372_v8 = vpop.f32.mrf.mxu1 }
0x6629   :  { %v7942_v55 = vpop.eup %7941 }
0x662a   :  { %v7944_v10 = vpop.eup %7943  ;;  %5618 = vrot.lane.b32.xlu1 %v7942_v55, %s8036_s30 }
0x662b   :  { %5642 = vrot.lane.b32.xlu0 %v7944_v10, %s8036_s30  ;;  %v7946_v18 = vpop.eup %7945 }
0x662c   :  { %v7948_v63 = vpop.eup %7947  ;;  %v5612_v41 = vadd.f32 1.0, %v7946_v18 }
0x662d   :  { %v5636_v56 = vadd.f32 1.0, %v7948_v63 }
0x662e   :  { %7949 = vrcp.f32 %v5612_v41 }
0x662f   :  { %7951 = vrcp.f32 %v5636_v56 }
0x663b   :  { %v7950_v45 = vpop.eup %7949 }
0x663c   :  { %v7952_v60 = vpop.eup %7951  ;;  %v5616_v51 = vmul.f32 %v7950_v45, %v9571_v44  ;;  %v9636_v44 = vld [vmem:[%s9758_s3 + $0x98] sm:$0xff]  }
0x663d   :  { %v5640_v24 = vmul.f32 %v7952_v60, %v9573_v17  ;;  %v9648_v17 = vld [vmem:[%s9758_s3 + $0x80] sm:$0xff]  }
0x669c   :  { %v5619_v48 = vpop.permute.xlu1 %5618 }
0x669d   :  { %v5643_v4 = vpop.permute.xlu0 %5642  ;;  %v5621_v21 = vmul.f32 %v7950_v45, %v5619_v48 }
0x669e   :  { %v5645_v29 = vmul.f32 %v7952_v60, %v5643_v4 }
0x669f   :  { %5623 = vrot.lane.b32.xlu1 %v5621_v21, %s8041_s0 }
0x66a0   :  { %5647 = vrot.lane.b32.xlu0 %v5645_v29, %s8041_s0 }
0x6711   :  { %v5624_v19 = vpop.permute.xlu1 %5623 }
0x6712   :  { %v5648_v50 = vpop.permute.xlu0 %5647  ;;  %v9609_v54 = vadd.f32 %v5624_v19, %v5616_v51 }
0x6713   :  { %v9611_v9 = vadd.f32 %v5648_v50, %v5640_v24 }
0x6714   :  { %7953 = vtanh.f32 %v9609_v54 }
0x6715   :  { %7955 = vtanh.f32 %v9611_v9 }
0x6721   :  { %v7954_v11 = vpop.eup %7953 }
0x6722   :  { %v7956_v53 = vpop.eup %7955  ;;  %5629 = vrot.lane.b32.xlu1 %v7954_v11, %s8036_s30 }
0x6723   :  { %5653 = vrot.lane.b32.xlu0 %v7956_v53, %s8036_s30 }
0x6794   :  { %v5630_v57 = vpop.permute.xlu1 %5629 }
0x6795   :  { %v5654_v46 = vpop.permute.xlu0 %5653  ;;  %v5632_v40 = vmul.f32 %v7950_v45, %v5630_v57 }
0x6796   :  { %v5656_v13 = vmul.f32 %v7952_v60, %v5654_v46 }
0x6797   :  { %v9618_v7 = vadd.f32 %v5632_v40, %v9580_v0  ;;  %v5659_v33 = vpack.c.bf16 %v5632_v40, %v5632_v40 }
0x6798   :  { %v9621_v28 = vadd.f32 %v5656_v13, %v9583_v26  ;;  %v5707_v25 = vpack.c.bf16 %v5656_v13, %v5656_v13 }
0x6799   :  { %5661 = vrot.lane.b32.xlu1 %v5659_v33, %s8041_s0 }
0x679a   :  { %5709 = vrot.lane.b32.xlu0 %v5707_v25, %s8041_s0 }
0x680b   :  { %v5662_v62 = vpop.permute.xlu1 %5661 }
0x680c   :  { %v5710_v36 = vpop.permute.xlu0 %5709  ;;  %7378 = vmatmul.mubr.msk.bf16.vlgmr.msra.gmra.mxu0 %vm216_vm11, %v5662_v62 }
0x680d   :  { %7386 = vmatmul.mubr.msk.bf16.vlgmr.msra.gmra.mxu1 %vm216_vm11, %v5710_v36  ;;  %7390 = vmatpush3.bf16.msra.mxu0 %v9630_v47 }
0x680e   :  { %7398 = vmatpush3.bf16.msra.mxu1 %v9636_v44  ;;  %7391 = vmatprep.subr.bf16.mxu0 %v8039_v14 }
0x680f   :  { %7399 = vmatprep.subr.bf16.mxu1 %v8039_v14  ;;  %7401 = vmatprep.mubr.msk.bf16.mxu1 %vm8040_vm10, %v8039_v14 }
0x6810   :  { %7393 = vmatprep.mubr.msk.bf16.mxu0 %vm8040_vm10, %v8039_v14 }
0x6811   :  { %7392 = vmatpush3.bf16.msra.mxu0 %v9648_v17 }
0x6812   :  { %7400 = vmatpush3.bf16.msra.mxu1 %v9654_v49  ;;  %7405 = vmatprep.subr.bf16.mxu0 %v8039_v14 }
0x6813   :  { %7413 = vmatprep.subr.bf16.mxu1 %v8039_v14 }
0x68cc   :  { %v5700_v1 = vpop.f32.mrf.mxu0 }
0x68cd   :  { %v5706_v15 = vadd.f32 %v5700_v1, %v9384_v35  ;;  %v5748_v5 = vpop.f32.mrf.mxu1 }
0x68ce   :  { %v5754_v20 = vadd.f32 %v5748_v5, %v9394_v31  ;;  %v7379_v34 = vpop.f32.mrf.mxu0 }
0x68cf   :  { %7957 = vtanh.f32 %v5706_v15  ;;  %v7387_v0 = vpop.f32.mrf.mxu1  ;;  %v6445_v61 = vmul.f32 -1.442695, %v5706_v15 }
0x68d0   :  { %7959 = vtanh.f32 %v5754_v20  ;;  %v5703_v23 = vpop.f32.mrf.mxu0  ;;  %v6446_v27 = vmul.f32 -1.442695, %v5754_v20 }
0x68d1   :  { %v5751_v26 = vpop.f32.mrf.mxu1  ;;  %7961 = vpow2.f32 %v6445_v61 }
0x68d2   :  { %v7380_v30 = vpop.f32.mrf.mxu0  ;;  %7963 = vpow2.f32 %v6446_v27 }
0x68d3   :  { %v7388_v59 = vpop.f32.mrf.mxu1 }
0x68dc   :  { %v7958_v42 = vpop.eup %7957 }
0x68dd   :  { %v7960_v52 = vpop.eup %7959  ;;  %5764 = vrot.lane.b32.xlu1 %v7958_v42, %s8036_s30 }
0x68de   :  { %5788 = vrot.lane.b32.xlu0 %v7960_v52, %s8036_s30  ;;  %v7962_v35 = vpop.eup %7961 }
0x68df   :  { %v7964_v31 = vpop.eup %7963  ;;  %v5758_v39 = vadd.f32 1.0, %v7962_v35 }
0x68e0   :  { %v5782_v58 = vadd.f32 1.0, %v7964_v31 }
0x68e1   :  { %7965 = vrcp.f32 %v5758_v39 }
0x68e2   :  { %7967 = vrcp.f32 %v5782_v58 }
0x68ee   :  { %v7966_v3 = vpop.eup %7965 }
0x68ef   :  { %v7968_v12 = vpop.eup %7967  ;;  %v5762_v10 = vmul.f32 %v7966_v3, %v9609_v54 }
0x68f0   :  { %v5786_v43 = vmul.f32 %v7968_v12, %v9611_v9 }
0x694f   :  { %v5765_v38 = vpop.permute.xlu1 %5764 }
0x6950   :  { %v5789_v37 = vpop.permute.xlu0 %5788  ;;  %v5767_v8 = vmul.f32 %v7966_v3, %v5765_v38 }
0x6951   :  { %v5791_v55 = vmul.f32 %v7968_v12, %v5789_v37 }
0x6952   :  { %5769 = vrot.lane.b32.xlu1 %v5767_v8, %s8041_s0 }
0x6953   :  { %5793 = vrot.lane.b32.xlu0 %v5791_v55, %s8041_s0 }
0x69c4   :  { %v5770_v16 = vpop.permute.xlu1 %5769 }
0x69c5   :  { %v5794_v18 = vpop.permute.xlu0 %5793  ;;  %v9667_v63 = vadd.f32 %v5770_v16, %v5762_v10 }
0x69c6   :  { %v9669_v41 = vadd.f32 %v5794_v18, %v5786_v43 }
0x69c7   :  { %7969 = vtanh.f32 %v9667_v63 }
0x69c8   :  { %7971 = vtanh.f32 %v9669_v41 }
0x69d4   :  { %v7970_v56 = vpop.eup %7969 }
0x69d5   :  { %v7972_v45 = vpop.eup %7971  ;;  %5775 = vrot.lane.b32.xlu1 %v7970_v56, %s8036_s30 }
0x69d6   :  { %5799 = vrot.lane.b32.xlu0 %v7972_v45, %s8036_s30 }
0x6a47   :  { %v5776_v48 = vpop.permute.xlu1 %5775 }
0x6a48   :  { %v5800_v60 = vpop.permute.xlu0 %5799  ;;  %v5778_v4 = vmul.f32 %v7966_v3, %v5776_v48 }
0x6a49   :  { %v5802_v21 = vmul.f32 %v7968_v12, %v5800_v60 }
0x6a4a   :  { %v9676_v29 = vadd.f32 %v5778_v4, %v9618_v7  ;;  %v5805_v51 = vpack.c.bf16 %v5778_v4, %v5778_v4 }
0x6a4b   :  { %v9679_v24 = vadd.f32 %v5802_v21, %v9621_v28  ;;  %v5853_v19 = vpack.c.bf16 %v5802_v21, %v5802_v21 }
0x6a4c   :  { %5807 = vrot.lane.b32.xlu1 %v5805_v51, %s8041_s0 }
0x6a4d   :  { %5855 = vrot.lane.b32.xlu0 %v5853_v19, %s8041_s0 }
0x6abe   :  { %v5808_v50 = vpop.permute.xlu1 %5807 }
0x6abf   :  { %v5856_v54 = vpop.permute.xlu0 %5855  ;;  %7394 = vmatmul.mubr.msk.bf16.vlgmr.msra.gmra.mxu0 %vm216_vm11, %v5808_v50 }
0x6ac0   :  { %7402 = vmatmul.mubr.msk.bf16.vlgmr.msra.gmra.mxu1 %vm216_vm11, %v5856_v54  ;;  %7406 = vmatpush3.bf16.msra.mxu0 %v9630_v47 }
0x6ac1   :  { %7414 = vmatpush3.bf16.msra.mxu1 %v9636_v44  ;;  %7407 = vmatprep.subr.bf16.mxu0 %v8039_v14 }
0x6ac2   :  { %7415 = vmatprep.subr.bf16.mxu1 %v8039_v14  ;;  %7417 = vmatprep.mubr.msk.bf16.mxu1 %vm8040_vm10, %v8039_v14 }
0x6ac3   :  { %7409 = vmatprep.mubr.msk.bf16.mxu0 %vm8040_vm10, %v8039_v14 }
0x6ac4   :  { %7408 = vmatpush3.bf16.msra.mxu0 %v9648_v17 }
0x6ac5   :  { %7416 = vmatpush3.bf16.msra.mxu1 %v9654_v49  ;;  %7421 = vmatprep.subr.bf16.mxu0 %v8039_v14 }
0x6ac6   :  { %7429 = vmatprep.subr.bf16.mxu1 %v8039_v14 }
0x6b7f   :  { %v5846_v9 = vpop.f32.mrf.mxu0 }
0x6b80   :  { %v5852_v11 = vadd.f32 %v5846_v9, %v9386_v22  ;;  %v5894_v53 = vpop.f32.mrf.mxu1 }
0x6b81   :  { %v5900_v57 = vadd.f32 %v5894_v53, %v9392_v2  ;;  %v7395_v46 = vpop.f32.mrf.mxu0 }
0x6b82   :  { %7973 = vtanh.f32 %v5852_v11  ;;  %v7403_v40 = vpop.f32.mrf.mxu1  ;;  %v6449_v36 = vmul.f32 -1.442695, %v5852_v11 }
0x6b83   :  { %7975 = vtanh.f32 %v5900_v57  ;;  %v5849_v13 = vpop.f32.mrf.mxu0  ;;  %v6450_v47 = vmul.f32 -1.442695, %v5900_v57 }
0x6b84   :  { %v5897_v7 = vpop.f32.mrf.mxu1  ;;  %7977 = vpow2.f32 %v6449_v36  ;;  %v7490_v36 = vld [vmem:[%s9761_s6] sm:$0xff]  }
0x6b85   :  { %v7396_v33 = vpop.f32.mrf.mxu0  ;;  %7979 = vpow2.f32 %v6450_v47 }
0x6b86   :  { %v7404_v28 = vpop.f32.mrf.mxu1 }
0x6b87   :  { %v7487_v28 = vld [vmem:[%s9761_s6 + $0x18] sm:$0xff]  }
0x6b8f   :  { %v7974_v25 = vpop.eup %7973 }
0x6b90   :  { %v7976_v62 = vpop.eup %7975  ;;  %5910 = vrot.lane.b32.xlu1 %v7974_v25, %s8036_s30  ;;  %v7488_v25 = vld [vmem:[%s9761_s6 + $0x8] sm:$0xff]  }
0x6b91   :  { %5934 = vrot.lane.b32.xlu0 %v7976_v62, %s8036_s30  ;;  %v7978_v22 = vpop.eup %7977  ;;  %v7489_v62 = vld [vmem:[%s9761_s6 + $0x10] sm:$0xff]  }
0x6b92   :  { %v7980_v2 = vpop.eup %7979  ;;  %v5904_v44 = vadd.f32 1.0, %v7978_v22 }
0x6b93   :  { %v5928_v17 = vadd.f32 1.0, %v7980_v2 }
0x6b94   :  { %7981 = vrcp.f32 %v5904_v44 }
0x6b95   :  { %7983 = vrcp.f32 %v5928_v17 }
0x6ba1   :  { %v7982_v49 = vpop.eup %7981 }
0x6ba2   :  { %v7984_v15 = vpop.eup %7983  ;;  %v5908_v0 = vmul.f32 %v7982_v49, %v9667_v63 }
0x6ba3   :  { %v5932_v23 = vmul.f32 %v7984_v15, %v9669_v41 }
0x6c02   :  { %v5911_v1 = vpop.permute.xlu1 %5910 }
0x6c03   :  { %v5935_v5 = vpop.permute.xlu0 %5934  ;;  %v5913_v20 = vmul.f32 %v7982_v49, %v5911_v1 }
0x6c04   :  { %v5937_v34 = vmul.f32 %v7984_v15, %v5935_v5 }
0x6c05   :  { %5915 = vrot.lane.b32.xlu1 %v5913_v20, %s8041_s0 }
0x6c06   :  { %5939 = vrot.lane.b32.xlu0 %v5937_v34, %s8041_s0 }
0x6c77   :  { %v5916_v26 = vpop.permute.xlu1 %5915 }
0x6c78   :  { %v5940_v30 = vpop.permute.xlu0 %5939  ;;  %v5918_v59 = vadd.f32 %v5916_v26, %v5908_v0 }
0x6c79   :  { %v5942_v42 = vadd.f32 %v5940_v30, %v5932_v23 }
0x6c7a   :  { %7985 = vtanh.f32 %v5918_v59 }
0x6c7b   :  { %7987 = vtanh.f32 %v5942_v42 }
0x6c87   :  { %v7986_v52 = vpop.eup %7985 }
0x6c88   :  { %v7988_v61 = vpop.eup %7987  ;;  %5921 = vrot.lane.b32.xlu1 %v7986_v52, %s8036_s30 }
0x6c89   :  { %5945 = vrot.lane.b32.xlu0 %v7988_v61, %s8036_s30 }
0x6cfa   :  { %v5922_v27 = vpop.permute.xlu1 %5921 }
0x6cfb   :  { %v5946_v35 = vpop.permute.xlu0 %5945  ;;  %v5924_v31 = vmul.f32 %v7982_v49, %v5922_v27 }
0x6cfc   :  { %v5948_v39 = vmul.f32 %v7984_v15, %v5946_v35 }
0x6cfd   :  { %v9708_v58 = vadd.f32 %v5924_v31, %v9676_v29  ;;  %v5951_v3 = vpack.c.bf16 %v5924_v31, %v5924_v31 }
0x6cfe   :  { %v9711_v38 = vadd.f32 %v5948_v39, %v9679_v24  ;;  %v5999_v12 = vpack.c.bf16 %v5948_v39, %v5948_v39 }
0x6cff   :  { %5953 = vrot.lane.b32.xlu1 %v5951_v3, %s8041_s0 }
0x6d00   :  { %6001 = vrot.lane.b32.xlu0 %v5999_v12, %s8041_s0 }
0x6d71   :  { %v5954_v37 = vpop.permute.xlu1 %5953 }
0x6d72   :  { %v6002_v8 = vpop.permute.xlu0 %6001  ;;  %7410 = vmatmul.mubr.msk.bf16.vlgmr.msra.gmra.mxu0 %vm216_vm11, %v5954_v37 }
0x6d73   :  { %7418 = vmatmul.mubr.msk.bf16.vlgmr.msra.gmra.mxu1 %vm216_vm11, %v6002_v8  ;;  %7425 = vmatprep.mubr.msk.bf16.mxu0 %vm8040_vm10, %v8039_v14 }
0x6d74   :  { %7433 = vmatprep.mubr.msk.bf16.mxu1 %vm8040_vm10, %v8039_v14  ;;  %7422 = vmatpush3.bf16.msra.mxu0 %v7487_v28 }
0x6d75   :  { %7430 = vmatpush3.bf16.msra.mxu1 %v7488_v25  ;;  %7423 = vmatprep.subr.bf16.mxu0 %v8039_v14 }
0x6d76   :  { %7431 = vmatprep.subr.bf16.mxu1 %v8039_v14 }
0x6d78   :  { %7424 = vmatpush3.bf16.msra.mxu0 %v7489_v62 }
0x6d79   :  { %7432 = vmatpush3.bf16.msra.mxu1 %v7490_v36 }
0x6e32   :  { %v5992_v55 = vpop.f32.mrf.mxu0 }
0x6e33   :  { %v5998_v10 = vadd.f32 %v5992_v55, %v9388_v32  ;;  %v6040_v43 = vpop.f32.mrf.mxu1 }
0x6e34   :  { %v6046_v16 = vadd.f32 %v6040_v43, %v9390_v6  ;;  %v7411_v18 = vpop.f32.mrf.mxu0 }
0x6e35   :  { %7989 = vtanh.f32 %v5998_v10  ;;  %v7419_v63 = vpop.f32.mrf.mxu1  ;;  %v6453_v21 = vmul.f32 -1.442695, %v5998_v10 }
0x6e36   :  { %7991 = vtanh.f32 %v6046_v16  ;;  %v5995_v41 = vpop.f32.mrf.mxu0  ;;  %v6454_v29 = vmul.f32 -1.442695, %v6046_v16 }
0x6e37   :  { %v6043_v56 = vpop.f32.mrf.mxu1  ;;  %7993 = vpow2.f32 %v6453_v21 }
0x6e38   :  { %v7412_v45 = vpop.f32.mrf.mxu0  ;;  %7995 = vpow2.f32 %v6454_v29 }
0x6e39   :  { %v7420_v48 = vpop.f32.mrf.mxu1 }
0x6e42   :  { %v7990_v60 = vpop.eup %7989 }
0x6e43   :  { %v7992_v4 = vpop.eup %7991  ;;  %6056 = vrot.lane.b32.xlu1 %v7990_v60, %s8036_s30 }
0x6e44   :  { %6080 = vrot.lane.b32.xlu0 %v7992_v4, %s8036_s30  ;;  %v7994_v32 = vpop.eup %7993 }
0x6e45   :  { %v7996_v6 = vpop.eup %7995  ;;  %v6050_v51 = vadd.f32 1.0, %v7994_v32 }
0x6e46   :  { %v6074_v24 = vadd.f32 1.0, %v7996_v6 }
0x6e47   :  { %7997 = vrcp.f32 %v6050_v51 }
0x6e48   :  { %7999 = vrcp.f32 %v6074_v24 }
0x6e54   :  { %v7998_v19 = vpop.eup %7997 }
0x6e55   :  { %v8000_v54 = vpop.eup %7999  ;;  %v6054_v57 = vmul.f32 %v7998_v19, %v5918_v59  ;;  %v6461_v59 = vld [vmem:[%s9762_s7] ss:$0 sm:$0xff] }
0x6e56   :  { %v6078_v46 = vmul.f32 %v8000_v54, %v5942_v42 }
0x6eb5   :  { %v6057_v50 = vpop.permute.xlu1 %6056 }
0x6eb6   :  { %v6081_v9 = vpop.permute.xlu0 %6080  ;;  %v6059_v11 = vmul.f32 %v7998_v19, %v6057_v50 }
0x6eb7   :  { %v6083_v53 = vmul.f32 %v8000_v54, %v6081_v9 }
0x6eb8   :  { %6061 = vrot.lane.b32.xlu1 %v6059_v11, %s8041_s0 }
0x6eb9   :  { %6085 = vrot.lane.b32.xlu0 %v6083_v53, %s8041_s0 }
0x6f2a   :  { %v6062_v40 = vpop.permute.xlu1 %6061 }
0x6f2b   :  { %v6086_v13 = vpop.permute.xlu0 %6085  ;;  %v6064_v7 = vadd.f32 %v6062_v40, %v6054_v57 }
0x6f2c   :  { %v6088_v33 = vadd.f32 %v6086_v13, %v6078_v46 }
0x6f2d   :  { %8001 = vtanh.f32 %v6064_v7 }
0x6f2e   :  { %8003 = vtanh.f32 %v6088_v33 }
0x6f3a   :  { %v8002_v47 = vpop.eup %8001 }
0x6f3b   :  { %v8004_v22 = vpop.eup %8003  ;;  %6067 = vrot.lane.b32.xlu1 %v8002_v47, %s8036_s30 }
0x6f3c   :  { %6091 = vrot.lane.b32.xlu0 %v8004_v22, %s8036_s30 }
0x6fad   :  { %v6068_v2 = vpop.permute.xlu1 %6067 }
0x6fae   :  { %v6092_v44 = vpop.permute.xlu0 %6091  ;;  %v6070_v17 = vmul.f32 %v7998_v19, %v6068_v2 }
0x6faf   :  { %v6094_v49 = vmul.f32 %v8000_v54, %v6092_v44 }
0x6fb0   :  { %v6095_v1 = vadd.f32 %v6070_v17, %v9708_v58 }
0x6fb1   :  { %v6096_v15 = vadd.f32 %v6094_v49, %v9711_v38 }
0x6fb2   :  { %v6097_v5 = vmul.f32 0.11111111, %v6095_v1 }
0x6fb3   :  { %v6103_v20 = vmul.f32 0.11111111, %v6096_v15 }
0x6fb4   :  { %v6102_v34 = vpack.c.bf16 %v6097_v5, %v6097_v5 }
0x6fb5   :  { %v6108_v0 = vpack.c.bf16 %v6103_v20, %v6103_v20 }
0x6fb6   :  { %6168 = vrot.lane.b32.xlu0 %v6102_v34, %s8041_s0 }
0x6fb7   :  { %6110 = vrot.lane.b32.xlu1 %v6108_v0, %s8041_s0 }
0x7028   :  { %v6169_v14 = vpop.permute.xlu0 %6168 }
0x7029   :  { %v6111_v23 = vpop.permute.xlu1 %6110  ;;  %7434 = vmatmul.mubr.msk.bf16.vlgmr.msra.gmra.mxu1 %vm216_vm11, %v6169_v14 }
0x702a   :  { %7426 = vmatmul.mubr.msk.bf16.vlgmr.msra.gmra.mxu0 %vm216_vm11, %v6111_v23 }
0x70e9   :  { %v6219_v26 = vpop.f32.mrf.mxu1 }
0x70ea   :  { %v6161_v30 = vpop.f32.mrf.mxu0 }
0x70eb   :  { %v6220_v42 = vadd.f32 %v6219_v26, %v6161_v30  ;;  %v7435_v52 = vpop.f32.mrf.mxu1 }
0x70ec   :  { %v7427_v61 = vpop.f32.mrf.mxu0 }
0x70ed   :  { %v6232_v27 = vadd.f32 %v6461_v59, %v6220_v42  ;;  %v6222_v35 = vpop.f32.mrf.mxu1 }
0x70ee   :  { %v6164_v31 = vpop.f32.mrf.mxu0 }
0x70ef   :  { %6234 = vst.msk [vmem:[%s9763_s8] sm:$0xff] %vm6233_vm12, %v6232_v27  ;;  %v7436_v39 = vpop.f32.mrf.mxu1 }
0x70f0   :  { %v7428_v58 = vpop.f32.mrf.mxu0 }
0x70f1   :  { %6239 = vsyncpa [#allocation8], 1 }

</bundles_post_ra>
